<compile_context>
chip_gen: v5e
topology: v5e:2x2
jax: 0.10.0
libtpu: 0.0.40
codegen_flags: <defaults>
</compile_context>

<pallas_src>
import functools

import numpy as np
import jax
import jax.numpy as jnp
from jax import lax
from jax.experimental import pallas as pl
from jax.experimental.pallas import tpu as pltpu  # noqa: F401  (kept for TPU-specific tweaks)

KW = 4
NTAP = KW * KW
PAD = 2
BN_EPS = 1e-5


# ----------------------------- fused Pallas kernel --------------------------

def _fused_net_kernel(*refs, plan0, plan):
    """Whole PatchDiscriminator forward in one kernel invocation.

    refs  = [p0, w0,  (g, wcat) per later layer...,  vecs, out]
    plan0 = (cout0, bias_row0)                       -- layer 0 (static)
    plan  = ((cout, has_bn, act, row_a, row_b), ...) -- layers 1..L (static)
    """
    out_ref = refs[-1]
    vec_ref = refs[-2]                         # (8, 128) packed bias/gamma/beta
    it = iter(refs[:-2])

    # ---- layer 0: host-built im2col patches -> one GEMM + bias + ReLU ------
    cout0, brow0 = plan0
    p0 = next(it)[...]                         # (R1, 16*Cin)
    w0 = next(it)[...]                         # (16*Cin, ndf)
    h = jnp.dot(p0, w0, preferred_element_type=jnp.float32)
    h = jnp.maximum(h + vec_ref[brow0:brow0 + 1, :cout0], 0.0)

    # ---- layers 1..L: one weight GEMM + 16 tap-gather matmuls + epilogue ---
    for (cout, has_bn, act, r0, r1) in plan:
        g_ref = next(it)                       # (16, M, R_prev) bf16 0/1 gathers
        wcat = next(it)[...]                   # (C_prev, 16*cout) f32, tap-major

        # one weight GEMM per layer: Z[r, t*cout+co] = h[r, :] @ W_t[:, co]
        z = jnp.dot(h, wcat, preferred_element_type=jnp.float32)   # (R_prev, 16*cout)

        if cout == 1:
            # final layer: keep all 16 taps in lanes, mask-select the tap's
            # column per gather and lane-reduce (no 1-wide slices / matmuls).
            m = g_ref.shape[1]
            lane = lax.broadcasted_iota(jnp.int32, (1, NTAP), 1)
            acc = jnp.zeros((m, NTAP), jnp.float32)
            for t in range(NTAP):
                pt = jnp.dot(g_ref[t].astype(jnp.float32), z,
                             preferred_element_type=jnp.float32)   # (M, 16)
                acc = acc + jnp.where(lane == t, pt, 0.0)
            y = jnp.sum(acc, axis=1, keepdims=True)                 # (M, 1)
        else:
            # per-tap: exact 0/1 row gather (MXU) applied to tap t's columns.
            y = None
            for t in range(NTAP):
                zt = z[:, t * cout:(t + 1) * cout]                  # (R_prev, cout)
                pt = jnp.dot(g_ref[t].astype(jnp.float32), zt,
                             preferred_element_type=jnp.float32)    # (M, cout)
                y = pt if y is None else y + pt

        if has_bn:
            # conv bias omitted for BN layers: cancelled exactly by mean-sub.
            gamma = vec_ref[r0:r0 + 1, :cout]
            beta = vec_ref[r1:r1 + 1, :cout]
            mean = jnp.mean(y, axis=0, keepdims=True)
            var = jnp.mean((y - mean) * (y - mean), axis=0, keepdims=True)
            y = (y - mean) * lax.rsqrt(var + BN_EPS) * gamma + beta
        else:
            y = y + vec_ref[r0:r0 + 1, :cout]

        if act == "relu":
            y = jnp.maximum(y, 0.0)
        elif act == "sigmoid":
            y = jax.nn.sigmoid(y)
        h = y

    out_ref[...] = h.astype(out_ref.dtype)


# ----------------------------- host-side helpers ----------------------------

def _im2col_xla(x_nhwc, stride):
    """im2col for the external input only (layer 0). Tiny: (162, 64) f32."""
    x = jnp.pad(x_nhwc, ((0, 0), (PAD, PAD), (PAD, PAD), (0, 0)))
    N, H, W, C = x.shape
    oh = (H - KW) // stride + 1
    ow = (W - KW) // stride + 1
    cols = []
    for i in range(KW):
        for j in range(KW):
            cols.append(x[:, i:i + stride * (oh - 1) + 1:stride,
                             j:j + stride * (ow - 1) + 1:stride, :])
    p = jnp.stack(cols, axis=3)                 # (N, oh, ow, 16, C)
    return p.reshape(N * oh * ow, KW * KW * C), oh, ow


def _gather_matrices(n, ih, iw, stride):
    """Per-tap 0/1 gather matrices (16, N*oh*ow, N*ih*iw), stored as bf16.

    A zero row encodes a padded (out-of-bounds) tap position.
    """
    oh = (ih + 2 * PAD - KW) // stride + 1
    ow = (iw + 2 * PAD - KW) // stride + 1
    m, r = n * oh * ow, n * ih * iw
    g = np.zeros((NTAP, m, r), np.float32)
    for b in range(n):
        for y in range(oh):
            for x in range(ow):
                row = b * oh * ow + y * ow + x
                for ki in range(KW):
                    for kj in range(KW):
                        uy = y * stride + ki - PAD
                        ux = x * stride + kj - PAD
                        if 0 <= uy < ih and 0 <= ux < iw:
                            g[ki * KW + kj, row, b * ih * iw + uy * iw + ux] = 1.0
    return jnp.asarray(g, dtype=jnp.bfloat16), oh, ow   # 0/1 exact in bf16


def _vec_row(v):
    """Pack a per-channel vector into one 128-lane row."""
    v = v.reshape(1, -1).astype(jnp.float32)
    return jnp.pad(v, ((0, 0), (0, 128 - v.shape[1])))


def patch_discriminator_forward(x_nchw, params):
    """Fused Pallas forward. Input NCHW f32, output NCHW (N, 1, OH, OW)."""
    N = x_nchw.shape[0]
    x_nhwc = jnp.transpose(x_nchw, (0, 2, 3, 1))

    # Layer-0 patches built in XLA from the external input (41 KB); the rest of
    # the network (4 convs, 3 BNs, activations) runs inside one Pallas kernel.
    p0, oh, ow = _im2col_xla(x_nhwc, params[0]["stride"])
    cout0 = params[0]["w2d"].shape[1]

    inputs = [p0, params[0]["w2d"]]
    vec_rows = [_vec_row(params[0]["b"])]
    plan0 = (cout0, 0)

    plan = []
    ih, iw = oh, ow
    for lp in params[1:]:
        g, oh, ow = _gather_matrices(N, ih, iw, lp["stride"])
        cout = lp["wcat"].shape[1] // NTAP
        inputs += [g, lp["wcat"]]
        if lp["bn"]:
            r0 = len(vec_rows); vec_rows.append(_vec_row(lp["gamma"]))
            r1 = len(vec_rows); vec_rows.append(_vec_row(lp["beta"]))
        else:
            r0 = len(vec_rows); vec_rows.append(_vec_row(lp["b"])); r1 = r0
        plan.append((cout, lp["bn"], lp["act"], r0, r1))
        ih, iw = oh, ow

    inputs.append(jnp.concatenate(vec_rows, axis=0))    # (8, 128) packed vectors

    out = pl.pallas_call(
        functools.partial(_fused_net_kernel, plan0=plan0, plan=tuple(plan)),
        out_shape=jax.ShapeDtypeStruct((N * oh * ow, plan[-1][0]), jnp.float32),
    )(*inputs)

    return jnp.transpose(out.reshape(N, oh, ow, -1), (0, 3, 1, 2))  # -> NCHW


# ----------------------------- pure-JAX reference ---------------------------

def reference_forward(x_nchw, params):
    h = x_nchw
    for lp in params:
        w_oihw = jnp.transpose(lp["w4"], (3, 2, 0, 1))
        h = lax.conv_general_dilated(
            h, w_oihw, (lp["stride"], lp["stride"]),
            [(PAD, PAD), (PAD, PAD)],
            dimension_numbers=("NCHW", "OIHW", "NCHW"),
            precision=lax.Precision.HIGHEST,
        ) + lp["b"].reshape(1, -1, 1, 1)
        if lp["bn"]:
            mean = jnp.mean(h, axis=(0, 2, 3), keepdims=True)
            var = jnp.mean((h - mean) ** 2, axis=(0, 2, 3), keepdims=True)
            h = (h - mean) * lax.rsqrt(var + BN_EPS)
            h = h * lp["gamma"].reshape(1, -1, 1, 1) + lp["beta"].reshape(1, -1, 1, 1)
        if lp["act"] == "relu":
            h = jnp.maximum(h, 0.0)
        elif lp["act"] == "sigmoid":
            h = jax.nn.sigmoid(h)
    return h


# ----------------------------- param init -----------------------------------

def make_params(key, input_nc=4, ndf=16, n_layers=3):
    # (Cin, Cout, stride, has_bn, activation) — mirrors PatchDiscriminator.__init__
    specs = [(input_nc, ndf, 2, False, "relu")]
    nf = ndf
    for _ in range(1, n_layers):
        nf_prev, nf = nf, min(nf * 2, 512)
        specs.append((nf_prev, nf, 2, True, "relu"))
    nf_prev, nf = nf, min(nf * 2, 512)
    specs.append((nf_prev, nf, 1, True, "relu"))
    specs.append((nf, 1, 1, False, "sigmoid"))

    params = []
    for cin, cout, stride, bn, act in specs:
        key, kw_, kb_ = jax.random.split(key, 3)
        w4 = jax.random.normal(kw_, (KW, KW, cin, cout), jnp.float32) * 0.05
        b = jax.random.normal(kb_, (cout,), jnp.float32) * 0.05
        params.append({
            "w4": w4,                                   # (KH, KW, Cin, Cout) reference
            "w2d": w4.reshape(KW * KW * cin, cout),     # layer-0 im2col weight
            # tap-major concat: wcat[:, t*cout:(t+1)*cout] = w4[ki, kj]
            "wcat": jnp.transpose(w4, (2, 0, 1, 3)).reshape(cin, KW * KW * cout),
            "b": b.reshape(1, cout),
            "stride": stride, "bn": bn, "act": act,
            "gamma": jnp.ones((1, cout), jnp.float32),  # PyTorch BN defaults
            "beta": jnp.zeros((1, cout), jnp.float32),
        })
    return params


# ----------------------------- main ------------------------------------------

if __name__ == "__main__":
    key = jax.random.PRNGKey(0)
    kx, kp = jax.random.split(key)
    x = jax.random.normal(kx, (2, 4, 16, 16), jnp.float32)  # NCHW
    params = make_params(kp, input_nc=4, ndf=16, n_layers=3)

    fwd = jax.jit(lambda xx: patch_discriminator_forward(xx, params))
    out = jax.block_until_ready(fwd(x))
    assert out.shape == (2, 1, 5, 5), out.shape

    ref = jax.block_until_ready(reference_forward(x, params))
    err = float(jnp.max(jnp.abs(out - ref)))
    assert jnp.allclose(out, ref, atol=1e-3, rtol=1e-3), err

    print("KERNEL_OK")
</pallas_src>

<mosaic_0001>
module attributes {stable_mosaic.version = 11 : i64} {
  func.func @_fused_net_kernel(%arg0: memref<162x64xf32, #tpu.memory_space<vmem>>, %arg1: memref<64x16xf32, #tpu.memory_space<vmem>>, %arg2: memref<16x50x162xbf16, #tpu.memory_space<vmem>>, %arg3: memref<16x512xf32, #tpu.memory_space<vmem>>, %arg4: memref<16x18x50xbf16, #tpu.memory_space<vmem>>, %arg5: memref<32x1024xf32, #tpu.memory_space<vmem>>, %arg6: memref<16x32x18xbf16, #tpu.memory_space<vmem>>, %arg7: memref<64x2048xf32, #tpu.memory_space<vmem>>, %arg8: memref<16x50x32xbf16, #tpu.memory_space<vmem>>, %arg9: memref<128x16xf32, #tpu.memory_space<vmem>>, %arg10: memref<8x128xf32, #tpu.memory_space<vmem>>, %arg11: memref<50x1xf32, #tpu.memory_space<vmem>>) attributes {dimension_semantics = [], scalar_prefetch = 0 : i64, scratch_operands = 0 : i64, tpu.core_type = #tpu.core_type<tc>} {
    %c0 = arith.constant 0 : index
    %c0_0 = arith.constant 0 : index
    %0 = vector.load %arg0[%c0, %c0_0] : memref<162x64xf32, #tpu.memory_space<vmem>>, vector<162x64xf32>
    %c0_1 = arith.constant 0 : index
    %c0_2 = arith.constant 0 : index
    %1 = vector.load %arg1[%c0_1, %c0_2] : memref<64x16xf32, #tpu.memory_space<vmem>>, vector<64x16xf32>
    %cst = arith.constant dense<0.000000e+00> : vector<162x16xf32>
    %2 = tpu.matmul %0, %1, %cst {dimension_numbers = #tpu.dot_dimension_numbers<[1], [0], [0], [1], [0, 0, 1, 1], [], []>} : vector<162x64xf32>, vector<64x16xf32>, vector<162x16xf32> -> vector<162x16xf32>
    %c0_3 = arith.constant 0 : index
    %c0_4 = arith.constant 0 : index
    %3 = vector.load %arg10[%c0_3, %c0_4] : memref<8x128xf32, #tpu.memory_space<vmem>>, vector<1x16xf32>
    %4 = vector.broadcast %3 : vector<1x16xf32> to vector<162x16xf32>
    %5 = arith.addf %2, %4 : vector<162x16xf32>
    %cst_5 = arith.constant 0.000000e+00 : f32
    %6 = vector.broadcast %cst_5 : f32 to vector<162x16xf32>
    %7 = arith.maximumf %5, %6 : vector<162x16xf32>
    %c0_6 = arith.constant 0 : index
    %c0_7 = arith.constant 0 : index
    %8 = vector.load %arg3[%c0_6, %c0_7] : memref<16x512xf32, #tpu.memory_space<vmem>>, vector<16x512xf32>
    %cst_8 = arith.constant dense<0.000000e+00> : vector<162x512xf32>
    %9 = tpu.matmul %7, %8, %cst_8 {dimension_numbers = #tpu.dot_dimension_numbers<[1], [0], [0], [1], [0, 0, 1, 1], [], []>} : vector<162x16xf32>, vector<16x512xf32>, vector<162x512xf32> -> vector<162x512xf32>
    %10 = vector.extract_strided_slice %9 {offsets = [0, 0], sizes = [162, 32], strides = [1, 1]} : vector<162x512xf32> to vector<162x32xf32>
    %c0_9 = arith.constant 0 : index
    %c0_10 = arith.constant 0 : index
    %c0_11 = arith.constant 0 : index
    %11 = vector.load %arg2[%c0_9, %c0_10, %c0_11] : memref<16x50x162xbf16, #tpu.memory_space<vmem>>, vector<1x50x162xbf16>
    %12 = vector.shape_cast %11 : vector<1x50x162xbf16> to vector<50x162xbf16>
    %13 = arith.extf %12 : vector<50x162xbf16> to vector<50x162xf32>
    %cst_12 = arith.constant dense<0.000000e+00> : vector<50x32xf32>
    %14 = tpu.matmul %13, %10, %cst_12 {dimension_numbers = #tpu.dot_dimension_numbers<[1], [0], [0], [1], [0, 0, 1, 1], [], []>} : vector<50x162xf32>, vector<162x32xf32>, vector<50x32xf32> -> vector<50x32xf32>
    %15 = vector.extract_strided_slice %9 {offsets = [0, 32], sizes = [162, 32], strides = [1, 1]} : vector<162x512xf32> to vector<162x32xf32>
    %c1 = arith.constant 1 : index
    %c0_13 = arith.constant 0 : index
    %c0_14 = arith.constant 0 : index
    %16 = vector.load %arg2[%c1, %c0_13, %c0_14] : memref<16x50x162xbf16, #tpu.memory_space<vmem>>, vector<1x50x162xbf16>
    %17 = vector.shape_cast %16 : vector<1x50x162xbf16> to vector<50x162xbf16>
    %18 = arith.extf %17 : vector<50x162xbf16> to vector<50x162xf32>
    %cst_15 = arith.constant dense<0.000000e+00> : vector<50x32xf32>
    %19 = tpu.matmul %18, %15, %cst_15 {dimension_numbers = #tpu.dot_dimension_numbers<[1], [0], [0], [1], [0, 0, 1, 1], [], []>} : vector<50x162xf32>, vector<162x32xf32>, vector<50x32xf32> -> vector<50x32xf32>
    %20 = arith.addf %14, %19 : vector<50x32xf32>
    %21 = vector.extract_strided_slice %9 {offsets = [0, 64], sizes = [162, 32], strides = [1, 1]} : vector<162x512xf32> to vector<162x32xf32>
    %c2 = arith.constant 2 : index
    %c0_16 = arith.constant 0 : index
    %c0_17 = arith.constant 0 : index
    %22 = vector.load %arg2[%c2, %c0_16, %c0_17] : memref<16x50x162xbf16, #tpu.memory_space<vmem>>, vector<1x50x162xbf16>
    %23 = vector.shape_cast %22 : vector<1x50x162xbf16> to vector<50x162xbf16>
    %24 = arith.extf %23 : vector<50x162xbf16> to vector<50x162xf32>
    %cst_18 = arith.constant dense<0.000000e+00> : vector<50x32xf32>
    %25 = tpu.matmul %24, %21, %cst_18 {dimension_numbers = #tpu.dot_dimension_numbers<[1], [0], [0], [1], [0, 0, 1, 1], [], []>} : vector<50x162xf32>, vector<162x32xf32>, vector<50x32xf32> -> vector<50x32xf32>
    %26 = arith.addf %20, %25 : vector<50x32xf32>
    %27 = vector.extract_strided_slice %9 {offsets = [0, 96], sizes = [162, 32], strides = [1, 1]} : vector<162x512xf32> to vector<162x32xf32>
    %c3 = arith.constant 3 : index
    %c0_19 = arith.constant 0 : index
    %c0_20 = arith.constant 0 : index
    %28 = vector.load %arg2[%c3, %c0_19, %c0_20] : memref<16x50x162xbf16, #tpu.memory_space<vmem>>, vector<1x50x162xbf16>
    %29 = vector.shape_cast %28 : vector<1x50x162xbf16> to vector<50x162xbf16>
    %30 = arith.extf %29 : vector<50x162xbf16> to vector<50x162xf32>
    %cst_21 = arith.constant dense<0.000000e+00> : vector<50x32xf32>
    %31 = tpu.matmul %30, %27, %cst_21 {dimension_numbers = #tpu.dot_dimension_numbers<[1], [0], [0], [1], [0, 0, 1, 1], [], []>} : vector<50x162xf32>, vector<162x32xf32>, vector<50x32xf32> -> vector<50x32xf32>
    %32 = arith.addf %26, %31 : vector<50x32xf32>
    %33 = vector.extract_strided_slice %9 {offsets = [0, 128], sizes = [162, 32], strides = [1, 1]} : vector<162x512xf32> to vector<162x32xf32>
    %c4 = arith.constant 4 : index
    %c0_22 = arith.constant 0 : index
    %c0_23 = arith.constant 0 : index
    %34 = vector.load %arg2[%c4, %c0_22, %c0_23] : memref<16x50x162xbf16, #tpu.memory_space<vmem>>, vector<1x50x162xbf16>
    %35 = vector.shape_cast %34 : vector<1x50x162xbf16> to vector<50x162xbf16>
    %36 = arith.extf %35 : vector<50x162xbf16> to vector<50x162xf32>
    %cst_24 = arith.constant dense<0.000000e+00> : vector<50x32xf32>
    %37 = tpu.matmul %36, %33, %cst_24 {dimension_numbers = #tpu.dot_dimension_numbers<[1], [0], [0], [1], [0, 0, 1, 1], [], []>} : vector<50x162xf32>, vector<162x32xf32>, vector<50x32xf32> -> vector<50x32xf32>
    %38 = arith.addf %32, %37 : vector<50x32xf32>
    %39 = vector.extract_strided_slice %9 {offsets = [0, 160], sizes = [162, 32], strides = [1, 1]} : vector<162x512xf32> to vector<162x32xf32>
    %c5 = arith.constant 5 : index
    %c0_25 = arith.constant 0 : index
    %c0_26 = arith.constant 0 : index
    %40 = vector.load %arg2[%c5, %c0_25, %c0_26] : memref<16x50x162xbf16, #tpu.memory_space<vmem>>, vector<1x50x162xbf16>
    %41 = vector.shape_cast %40 : vector<1x50x162xbf16> to vector<50x162xbf16>
    %42 = arith.extf %41 : vector<50x162xbf16> to vector<50x162xf32>
    %cst_27 = arith.constant dense<0.000000e+00> : vector<50x32xf32>
    %43 = tpu.matmul %42, %39, %cst_27 {dimension_numbers = #tpu.dot_dimension_numbers<[1], [0], [0], [1], [0, 0, 1, 1], [], []>} : vector<50x162xf32>, vector<162x32xf32>, vector<50x32xf32> -> vector<50x32xf32>
    %44 = arith.addf %38, %43 : vector<50x32xf32>
    %45 = vector.extract_strided_slice %9 {offsets = [0, 192], sizes = [162, 32], strides = [1, 1]} : vector<162x512xf32> to vector<162x32xf32>
    %c6 = arith.constant 6 : index
    %c0_28 = arith.constant 0 : index
    %c0_29 = arith.constant 0 : index
    %46 = vector.load %arg2[%c6, %c0_28, %c0_29] : memref<16x50x162xbf16, #tpu.memory_space<vmem>>, vector<1x50x162xbf16>
    %47 = vector.shape_cast %46 : vector<1x50x162xbf16> to vector<50x162xbf16>
    %48 = arith.extf %47 : vector<50x162xbf16> to vector<50x162xf32>
    %cst_30 = arith.constant dense<0.000000e+00> : vector<50x32xf32>
    %49 = tpu.matmul %48, %45, %cst_30 {dimension_numbers = #tpu.dot_dimension_numbers<[1], [0], [0], [1], [0, 0, 1, 1], [], []>} : vector<50x162xf32>, vector<162x32xf32>, vector<50x32xf32> -> vector<50x32xf32>
    %50 = arith.addf %44, %49 : vector<50x32xf32>
    %51 = vector.extract_strided_slice %9 {offsets = [0, 224], sizes = [162, 32], strides = [1, 1]} : vector<162x512xf32> to vector<162x32xf32>
    %c7 = arith.constant 7 : index
    %c0_31 = arith.constant 0 : index
    %c0_32 = arith.constant 0 : index
    %52 = vector.load %arg2[%c7, %c0_31, %c0_32] : memref<16x50x162xbf16, #tpu.memory_space<vmem>>, vector<1x50x162xbf16>
    %53 = vector.shape_cast %52 : vector<1x50x162xbf16> to vector<50x162xbf16>
    %54 = arith.extf %53 : vector<50x162xbf16> to vector<50x162xf32>
    %cst_33 = arith.constant dense<0.000000e+00> : vector<50x32xf32>
    %55 = tpu.matmul %54, %51, %cst_33 {dimension_numbers = #tpu.dot_dimension_numbers<[1], [0], [0], [1], [0, 0, 1, 1], [], []>} : vector<50x162xf32>, vector<162x32xf32>, vector<50x32xf32> -> vector<50x32xf32>
    %56 = arith.addf %50, %55 : vector<50x32xf32>
    %57 = vector.extract_strided_slice %9 {offsets = [0, 256], sizes = [162, 32], strides = [1, 1]} : vector<162x512xf32> to vector<162x32xf32>
    %c8 = arith.constant 8 : index
    %c0_34 = arith.constant 0 : index
    %c0_35 = arith.constant 0 : index
    %58 = vector.load %arg2[%c8, %c0_34, %c0_35] : memref<16x50x162xbf16, #tpu.memory_space<vmem>>, vector<1x50x162xbf16>
    %59 = vector.shape_cast %58 : vector<1x50x162xbf16> to vector<50x162xbf16>
    %60 = arith.extf %59 : vector<50x162xbf16> to vector<50x162xf32>
    %cst_36 = arith.constant dense<0.000000e+00> : vector<50x32xf32>
    %61 = tpu.matmul %60, %57, %cst_36 {dimension_numbers = #tpu.dot_dimension_numbers<[1], [0], [0], [1], [0, 0, 1, 1], [], []>} : vector<50x162xf32>, vector<162x32xf32>, vector<50x32xf32> -> vector<50x32xf32>
    %62 = arith.addf %56, %61 : vector<50x32xf32>
    %63 = vector.extract_strided_slice %9 {offsets = [0, 288], sizes = [162, 32], strides = [1, 1]} : vector<162x512xf32> to vector<162x32xf32>
    %c9 = arith.constant 9 : index
    %c0_37 = arith.constant 0 : index
    %c0_38 = arith.constant 0 : index
    %64 = vector.load %arg2[%c9, %c0_37, %c0_38] : memref<16x50x162xbf16, #tpu.memory_space<vmem>>, vector<1x50x162xbf16>
    %65 = vector.shape_cast %64 : vector<1x50x162xbf16> to vector<50x162xbf16>
    %66 = arith.extf %65 : vector<50x162xbf16> to vector<50x162xf32>
    %cst_39 = arith.constant dense<0.000000e+00> : vector<50x32xf32>
    %67 = tpu.matmul %66, %63, %cst_39 {dimension_numbers = #tpu.dot_dimension_numbers<[1], [0], [0], [1], [0, 0, 1, 1], [], []>} : vector<50x162xf32>, vector<162x32xf32>, vector<50x32xf32> -> vector<50x32xf32>
    %68 = arith.addf %62, %67 : vector<50x32xf32>
    %69 = vector.extract_strided_slice %9 {offsets = [0, 320], sizes = [162, 32], strides = [1, 1]} : vector<162x512xf32> to vector<162x32xf32>
    %c10 = arith.constant 10 : index
    %c0_40 = arith.constant 0 : index
    %c0_41 = arith.constant 0 : index
    %70 = vector.load %arg2[%c10, %c0_40, %c0_41] : memref<16x50x162xbf16, #tpu.memory_space<vmem>>, vector<1x50x162xbf16>
    %71 = vector.shape_cast %70 : vector<1x50x162xbf16> to vector<50x162xbf16>
    %72 = arith.extf %71 : vector<50x162xbf16> to vector<50x162xf32>
    %cst_42 = arith.constant dense<0.000000e+00> : vector<50x32xf32>
    %73 = tpu.matmul %72, %69, %cst_42 {dimension_numbers = #tpu.dot_dimension_numbers<[1], [0], [0], [1], [0, 0, 1, 1], [], []>} : vector<50x162xf32>, vector<162x32xf32>, vector<50x32xf32> -> vector<50x32xf32>
    %74 = arith.addf %68, %73 : vector<50x32xf32>
    %75 = vector.extract_strided_slice %9 {offsets = [0, 352], sizes = [162, 32], strides = [1, 1]} : vector<162x512xf32> to vector<162x32xf32>
    %c11 = arith.constant 11 : index
    %c0_43 = arith.constant 0 : index
    %c0_44 = arith.constant 0 : index
    %76 = vector.load %arg2[%c11, %c0_43, %c0_44] : memref<16x50x162xbf16, #tpu.memory_space<vmem>>, vector<1x50x162xbf16>
    %77 = vector.shape_cast %76 : vector<1x50x162xbf16> to vector<50x162xbf16>
    %78 = arith.extf %77 : vector<50x162xbf16> to vector<50x162xf32>
    %cst_45 = arith.constant dense<0.000000e+00> : vector<50x32xf32>
    %79 = tpu.matmul %78, %75, %cst_45 {dimension_numbers = #tpu.dot_dimension_numbers<[1], [0], [0], [1], [0, 0, 1, 1], [], []>} : vector<50x162xf32>, vector<162x32xf32>, vector<50x32xf32> -> vector<50x32xf32>
    %80 = arith.addf %74, %79 : vector<50x32xf32>
    %81 = vector.extract_strided_slice %9 {offsets = [0, 384], sizes = [162, 32], strides = [1, 1]} : vector<162x512xf32> to vector<162x32xf32>
    %c12 = arith.constant 12 : index
    %c0_46 = arith.constant 0 : index
    %c0_47 = arith.constant 0 : index
    %82 = vector.load %arg2[%c12, %c0_46, %c0_47] : memref<16x50x162xbf16, #tpu.memory_space<vmem>>, vector<1x50x162xbf16>
    %83 = vector.shape_cast %82 : vector<1x50x162xbf16> to vector<50x162xbf16>
    %84 = arith.extf %83 : vector<50x162xbf16> to vector<50x162xf32>
    %cst_48 = arith.constant dense<0.000000e+00> : vector<50x32xf32>
    %85 = tpu.matmul %84, %81, %cst_48 {dimension_numbers = #tpu.dot_dimension_numbers<[1], [0], [0], [1], [0, 0, 1, 1], [], []>} : vector<50x162xf32>, vector<162x32xf32>, vector<50x32xf32> -> vector<50x32xf32>
    %86 = arith.addf %80, %85 : vector<50x32xf32>
    %87 = vector.extract_strided_slice %9 {offsets = [0, 416], sizes = [162, 32], strides = [1, 1]} : vector<162x512xf32> to vector<162x32xf32>
    %c13 = arith.constant 13 : index
    %c0_49 = arith.constant 0 : index
    %c0_50 = arith.constant 0 : index
    %88 = vector.load %arg2[%c13, %c0_49, %c0_50] : memref<16x50x162xbf16, #tpu.memory_space<vmem>>, vector<1x50x162xbf16>
    %89 = vector.shape_cast %88 : vector<1x50x162xbf16> to vector<50x162xbf16>
    %90 = arith.extf %89 : vector<50x162xbf16> to vector<50x162xf32>
    %cst_51 = arith.constant dense<0.000000e+00> : vector<50x32xf32>
    %91 = tpu.matmul %90, %87, %cst_51 {dimension_numbers = #tpu.dot_dimension_numbers<[1], [0], [0], [1], [0, 0, 1, 1], [], []>} : vector<50x162xf32>, vector<162x32xf32>, vector<50x32xf32> -> vector<50x32xf32>
    %92 = arith.addf %86, %91 : vector<50x32xf32>
    %93 = vector.extract_strided_slice %9 {offsets = [0, 448], sizes = [162, 32], strides = [1, 1]} : vector<162x512xf32> to vector<162x32xf32>
    %c14 = arith.constant 14 : index
    %c0_52 = arith.constant 0 : index
    %c0_53 = arith.constant 0 : index
    %94 = vector.load %arg2[%c14, %c0_52, %c0_53] : memref<16x50x162xbf16, #tpu.memory_space<vmem>>, vector<1x50x162xbf16>
    %95 = vector.shape_cast %94 : vector<1x50x162xbf16> to vector<50x162xbf16>
    %96 = arith.extf %95 : vector<50x162xbf16> to vector<50x162xf32>
    %cst_54 = arith.constant dense<0.000000e+00> : vector<50x32xf32>
    %97 = tpu.matmul %96, %93, %cst_54 {dimension_numbers = #tpu.dot_dimension_numbers<[1], [0], [0], [1], [0, 0, 1, 1], [], []>} : vector<50x162xf32>, vector<162x32xf32>, vector<50x32xf32> -> vector<50x32xf32>
    %98 = arith.addf %92, %97 : vector<50x32xf32>
    %99 = vector.extract_strided_slice %9 {offsets = [0, 480], sizes = [162, 32], strides = [1, 1]} : vector<162x512xf32> to vector<162x32xf32>
    %c15 = arith.constant 15 : index
    %c0_55 = arith.constant 0 : index
    %c0_56 = arith.constant 0 : index
    %100 = vector.load %arg2[%c15, %c0_55, %c0_56] : memref<16x50x162xbf16, #tpu.memory_space<vmem>>, vector<1x50x162xbf16>
    %101 = vector.shape_cast %100 : vector<1x50x162xbf16> to vector<50x162xbf16>
    %102 = arith.extf %101 : vector<50x162xbf16> to vector<50x162xf32>
    %cst_57 = arith.constant dense<0.000000e+00> : vector<50x32xf32>
    %103 = tpu.matmul %102, %99, %cst_57 {dimension_numbers = #tpu.dot_dimension_numbers<[1], [0], [0], [1], [0, 0, 1, 1], [], []>} : vector<50x162xf32>, vector<162x32xf32>, vector<50x32xf32> -> vector<50x32xf32>
    %104 = arith.addf %98, %103 : vector<50x32xf32>
    %c1_58 = arith.constant 1 : index
    %c0_59 = arith.constant 0 : index
    %105 = vector.load %arg10[%c1_58, %c0_59] : memref<8x128xf32, #tpu.memory_space<vmem>>, vector<1x32xf32>
    %c2_60 = arith.constant 2 : index
    %c0_61 = arith.constant 0 : index
    %106 = vector.load %arg10[%c2_60, %c0_61] : memref<8x128xf32, #tpu.memory_space<vmem>>, vector<1x32xf32>
    %cst_62 = arith.constant dense<0.000000e+00> : vector<32xf32>
    %107 = vector.multi_reduction <add>, %104, %cst_62 [0] : vector<50x32xf32> to vector<32xf32>
    %108 = vector.shape_cast %107 : vector<32xf32> to vector<1x32xf32>
    %cst_63 = arith.constant 5.000000e+01 : f32
    %109 = vector.broadcast %cst_63 : f32 to vector<1x32xf32>
    %110 = arith.divf %108, %109 : vector<1x32xf32>
    %111 = vector.broadcast %110 : vector<1x32xf32> to vector<50x32xf32>
    %112 = arith.subf %104, %111 : vector<50x32xf32>
    %113 = vector.broadcast %110 : vector<1x32xf32> to vector<50x32xf32>
    %114 = arith.subf %104, %113 : vector<50x32xf32>
    %115 = arith.mulf %112, %114 : vector<50x32xf32>
    %cst_64 = arith.constant dense<0.000000e+00> : vector<32xf32>
    %116 = vector.multi_reduction <add>, %115, %cst_64 [0] : vector<50x32xf32> to vector<32xf32>
    %117 = vector.shape_cast %116 : vector<32xf32> to vector<1x32xf32>
    %cst_65 = arith.constant 5.000000e+01 : f32
    %118 = vector.broadcast %cst_65 : f32 to vector<1x32xf32>
    %119 = arith.divf %117, %118 : vector<1x32xf32>
    %120 = vector.broadcast %110 : vector<1x32xf32> to vector<50x32xf32>
    %121 = arith.subf %104, %120 : vector<50x32xf32>
    %cst_66 = arith.constant 9.99999974E-6 : f32
    %122 = vector.broadcast %cst_66 : f32 to vector<1x32xf32>
    %123 = arith.addf %119, %122 : vector<1x32xf32>
    %124 = math.rsqrt %123 : vector<1x32xf32>
    %125 = vector.broadcast %124 : vector<1x32xf32> to vector<50x32xf32>
    %126 = arith.mulf %121, %125 : vector<50x32xf32>
    %127 = vector.broadcast %105 : vector<1x32xf32> to vector<50x32xf32>
    %128 = arith.mulf %126, %127 : vector<50x32xf32>
    %129 = vector.broadcast %106 : vector<1x32xf32> to vector<50x32xf32>
    %130 = arith.addf %128, %129 : vector<50x32xf32>
    %cst_67 = arith.constant 0.000000e+00 : f32
    %131 = vector.broadcast %cst_67 : f32 to vector<50x32xf32>
    %132 = arith.maximumf %130, %131 : vector<50x32xf32>
    %c0_68 = arith.constant 0 : index
    %c0_69 = arith.constant 0 : index
    %133 = vector.load %arg5[%c0_68, %c0_69] : memref<32x1024xf32, #tpu.memory_space<vmem>>, vector<32x1024xf32>
    %cst_70 = arith.constant dense<0.000000e+00> : vector<50x1024xf32>
    %134 = tpu.matmul %132, %133, %cst_70 {dimension_numbers = #tpu.dot_dimension_numbers<[1], [0], [0], [1], [0, 0, 1, 1], [], []>} : vector<50x32xf32>, vector<32x1024xf32>, vector<50x1024xf32> -> vector<50x1024xf32>
    %135 = vector.extract_strided_slice %134 {offsets = [0, 0], sizes = [50, 64], strides = [1, 1]} : vector<50x1024xf32> to vector<50x64xf32>
    %c0_71 = arith.constant 0 : index
    %c0_72 = arith.constant 0 : index
    %c0_73 = arith.constant 0 : index
    %136 = vector.load %arg4[%c0_71, %c0_72, %c0_73] : memref<16x18x50xbf16, #tpu.memory_space<vmem>>, vector<1x18x50xbf16>
    %137 = vector.shape_cast %136 : vector<1x18x50xbf16> to vector<18x50xbf16>
    %138 = arith.extf %137 : vector<18x50xbf16> to vector<18x50xf32>
    %cst_74 = arith.constant dense<0.000000e+00> : vector<18x64xf32>
    %139 = tpu.matmul %138, %135, %cst_74 {dimension_numbers = #tpu.dot_dimension_numbers<[1], [0], [0], [1], [0, 0, 1, 1], [], []>} : vector<18x50xf32>, vector<50x64xf32>, vector<18x64xf32> -> vector<18x64xf32>
    %140 = vector.extract_strided_slice %134 {offsets = [0, 64], sizes = [50, 64], strides = [1, 1]} : vector<50x1024xf32> to vector<50x64xf32>
    %c1_75 = arith.constant 1 : index
    %c0_76 = arith.constant 0 : index
    %c0_77 = arith.constant 0 : index
    %141 = vector.load %arg4[%c1_75, %c0_76, %c0_77] : memref<16x18x50xbf16, #tpu.memory_space<vmem>>, vector<1x18x50xbf16>
    %142 = vector.shape_cast %141 : vector<1x18x50xbf16> to vector<18x50xbf16>
    %143 = arith.extf %142 : vector<18x50xbf16> to vector<18x50xf32>
    %cst_78 = arith.constant dense<0.000000e+00> : vector<18x64xf32>
    %144 = tpu.matmul %143, %140, %cst_78 {dimension_numbers = #tpu.dot_dimension_numbers<[1], [0], [0], [1], [0, 0, 1, 1], [], []>} : vector<18x50xf32>, vector<50x64xf32>, vector<18x64xf32> -> vector<18x64xf32>
    %145 = arith.addf %139, %144 : vector<18x64xf32>
    %146 = vector.extract_strided_slice %134 {offsets = [0, 128], sizes = [50, 64], strides = [1, 1]} : vector<50x1024xf32> to vector<50x64xf32>
    %c2_79 = arith.constant 2 : index
    %c0_80 = arith.constant 0 : index
    %c0_81 = arith.constant 0 : index
    %147 = vector.load %arg4[%c2_79, %c0_80, %c0_81] : memref<16x18x50xbf16, #tpu.memory_space<vmem>>, vector<1x18x50xbf16>
    %148 = vector.shape_cast %147 : vector<1x18x50xbf16> to vector<18x50xbf16>
    %149 = arith.extf %148 : vector<18x50xbf16> to vector<18x50xf32>
    %cst_82 = arith.constant dense<0.000000e+00> : vector<18x64xf32>
    %150 = tpu.matmul %149, %146, %cst_82 {dimension_numbers = #tpu.dot_dimension_numbers<[1], [0], [0], [1], [0, 0, 1, 1], [], []>} : vector<18x50xf32>, vector<50x64xf32>, vector<18x64xf32> -> vector<18x64xf32>
    %151 = arith.addf %145, %150 : vector<18x64xf32>
    %152 = vector.extract_strided_slice %134 {offsets = [0, 192], sizes = [50, 64], strides = [1, 1]} : vector<50x1024xf32> to vector<50x64xf32>
    %c3_83 = arith.constant 3 : index
    %c0_84 = arith.constant 0 : index
    %c0_85 = arith.constant 0 : index
    %153 = vector.load %arg4[%c3_83, %c0_84, %c0_85] : memref<16x18x50xbf16, #tpu.memory_space<vmem>>, vector<1x18x50xbf16>
    %154 = vector.shape_cast %153 : vector<1x18x50xbf16> to vector<18x50xbf16>
    %155 = arith.extf %154 : vector<18x50xbf16> to vector<18x50xf32>
    %cst_86 = arith.constant dense<0.000000e+00> : vector<18x64xf32>
    %156 = tpu.matmul %155, %152, %cst_86 {dimension_numbers = #tpu.dot_dimension_numbers<[1], [0], [0], [1], [0, 0, 1, 1], [], []>} : vector<18x50xf32>, vector<50x64xf32>, vector<18x64xf32> -> vector<18x64xf32>
    %157 = arith.addf %151, %156 : vector<18x64xf32>
    %158 = vector.extract_strided_slice %134 {offsets = [0, 256], sizes = [50, 64], strides = [1, 1]} : vector<50x1024xf32> to vector<50x64xf32>
    %c4_87 = arith.constant 4 : index
    %c0_88 = arith.constant 0 : index
    %c0_89 = arith.constant 0 : index
    %159 = vector.load %arg4[%c4_87, %c0_88, %c0_89] : memref<16x18x50xbf16, #tpu.memory_space<vmem>>, vector<1x18x50xbf16>
    %160 = vector.shape_cast %159 : vector<1x18x50xbf16> to vector<18x50xbf16>
    %161 = arith.extf %160 : vector<18x50xbf16> to vector<18x50xf32>
    %cst_90 = arith.constant dense<0.000000e+00> : vector<18x64xf32>
    %162 = tpu.matmul %161, %158, %cst_90 {dimension_numbers = #tpu.dot_dimension_numbers<[1], [0], [0], [1], [0, 0, 1, 1], [], []>} : vector<18x50xf32>, vector<50x64xf32>, vector<18x64xf32> -> vector<18x64xf32>
    %163 = arith.addf %157, %162 : vector<18x64xf32>
    %164 = vector.extract_strided_slice %134 {offsets = [0, 320], sizes = [50, 64], strides = [1, 1]} : vector<50x1024xf32> to vector<50x64xf32>
    %c5_91 = arith.constant 5 : index
    %c0_92 = arith.constant 0 : index
    %c0_93 = arith.constant 0 : index
    %165 = vector.load %arg4[%c5_91, %c0_92, %c0_93] : memref<16x18x50xbf16, #tpu.memory_space<vmem>>, vector<1x18x50xbf16>
    %166 = vector.shape_cast %165 : vector<1x18x50xbf16> to vector<18x50xbf16>
    %167 = arith.extf %166 : vector<18x50xbf16> to vector<18x50xf32>
    %cst_94 = arith.constant dense<0.000000e+00> : vector<18x64xf32>
    %168 = tpu.matmul %167, %164, %cst_94 {dimension_numbers = #tpu.dot_dimension_numbers<[1], [0], [0], [1], [0, 0, 1, 1], [], []>} : vector<18x50xf32>, vector<50x64xf32>, vector<18x64xf32> -> vector<18x64xf32>
    %169 = arith.addf %163, %168 : vector<18x64xf32>
    %170 = vector.extract_strided_slice %134 {offsets = [0, 384], sizes = [50, 64], strides = [1, 1]} : vector<50x1024xf32> to vector<50x64xf32>
    %c6_95 = arith.constant 6 : index
    %c0_96 = arith.constant 0 : index
    %c0_97 = arith.constant 0 : index
    %171 = vector.load %arg4[%c6_95, %c0_96, %c0_97] : memref<16x18x50xbf16, #tpu.memory_space<vmem>>, vector<1x18x50xbf16>
    %172 = vector.shape_cast %171 : vector<1x18x50xbf16> to vector<18x50xbf16>
    %173 = arith.extf %172 : vector<18x50xbf16> to vector<18x50xf32>
    %cst_98 = arith.constant dense<0.000000e+00> : vector<18x64xf32>
    %174 = tpu.matmul %173, %170, %cst_98 {dimension_numbers = #tpu.dot_dimension_numbers<[1], [0], [0], [1], [0, 0, 1, 1], [], []>} : vector<18x50xf32>, vector<50x64xf32>, vector<18x64xf32> -> vector<18x64xf32>
    %175 = arith.addf %169, %174 : vector<18x64xf32>
    %176 = vector.extract_strided_slice %134 {offsets = [0, 448], sizes = [50, 64], strides = [1, 1]} : vector<50x1024xf32> to vector<50x64xf32>
    %c7_99 = arith.constant 7 : index
    %c0_100 = arith.constant 0 : index
    %c0_101 = arith.constant 0 : index
    %177 = vector.load %arg4[%c7_99, %c0_100, %c0_101] : memref<16x18x50xbf16, #tpu.memory_space<vmem>>, vector<1x18x50xbf16>
    %178 = vector.shape_cast %177 : vector<1x18x50xbf16> to vector<18x50xbf16>
    %179 = arith.extf %178 : vector<18x50xbf16> to vector<18x50xf32>
    %cst_102 = arith.constant dense<0.000000e+00> : vector<18x64xf32>
    %180 = tpu.matmul %179, %176, %cst_102 {dimension_numbers = #tpu.dot_dimension_numbers<[1], [0], [0], [1], [0, 0, 1, 1], [], []>} : vector<18x50xf32>, vector<50x64xf32>, vector<18x64xf32> -> vector<18x64xf32>
    %181 = arith.addf %175, %180 : vector<18x64xf32>
    %182 = vector.extract_strided_slice %134 {offsets = [0, 512], sizes = [50, 64], strides = [1, 1]} : vector<50x1024xf32> to vector<50x64xf32>
    %c8_103 = arith.constant 8 : index
    %c0_104 = arith.constant 0 : index
    %c0_105 = arith.constant 0 : index
    %183 = vector.load %arg4[%c8_103, %c0_104, %c0_105] : memref<16x18x50xbf16, #tpu.memory_space<vmem>>, vector<1x18x50xbf16>
    %184 = vector.shape_cast %183 : vector<1x18x50xbf16> to vector<18x50xbf16>
    %185 = arith.extf %184 : vector<18x50xbf16> to vector<18x50xf32>
    %cst_106 = arith.constant dense<0.000000e+00> : vector<18x64xf32>
    %186 = tpu.matmul %185, %182, %cst_106 {dimension_numbers = #tpu.dot_dimension_numbers<[1], [0], [0], [1], [0, 0, 1, 1], [], []>} : vector<18x50xf32>, vector<50x64xf32>, vector<18x64xf32> -> vector<18x64xf32>
    %187 = arith.addf %181, %186 : vector<18x64xf32>
    %188 = vector.extract_strided_slice %134 {offsets = [0, 576], sizes = [50, 64], strides = [1, 1]} : vector<50x1024xf32> to vector<50x64xf32>
    %c9_107 = arith.constant 9 : index
    %c0_108 = arith.constant 0 : index
    %c0_109 = arith.constant 0 : index
    %189 = vector.load %arg4[%c9_107, %c0_108, %c0_109] : memref<16x18x50xbf16, #tpu.memory_space<vmem>>, vector<1x18x50xbf16>
    %190 = vector.shape_cast %189 : vector<1x18x50xbf16> to vector<18x50xbf16>
    %191 = arith.extf %190 : vector<18x50xbf16> to vector<18x50xf32>
    %cst_110 = arith.constant dense<0.000000e+00> : vector<18x64xf32>
    %192 = tpu.matmul %191, %188, %cst_110 {dimension_numbers = #tpu.dot_dimension_numbers<[1], [0], [0], [1], [0, 0, 1, 1], [], []>} : vector<18x50xf32>, vector<50x64xf32>, vector<18x64xf32> -> vector<18x64xf32>
    %193 = arith.addf %187, %192 : vector<18x64xf32>
    %194 = vector.extract_strided_slice %134 {offsets = [0, 640], sizes = [50, 64], strides = [1, 1]} : vector<50x1024xf32> to vector<50x64xf32>
    %c10_111 = arith.constant 10 : index
    %c0_112 = arith.constant 0 : index
    %c0_113 = arith.constant 0 : index
    %195 = vector.load %arg4[%c10_111, %c0_112, %c0_113] : memref<16x18x50xbf16, #tpu.memory_space<vmem>>, vector<1x18x50xbf16>
    %196 = vector.shape_cast %195 : vector<1x18x50xbf16> to vector<18x50xbf16>
    %197 = arith.extf %196 : vector<18x50xbf16> to vector<18x50xf32>
    %cst_114 = arith.constant dense<0.000000e+00> : vector<18x64xf32>
    %198 = tpu.matmul %197, %194, %cst_114 {dimension_numbers = #tpu.dot_dimension_numbers<[1], [0], [0], [1], [0, 0, 1, 1], [], []>} : vector<18x50xf32>, vector<50x64xf32>, vector<18x64xf32> -> vector<18x64xf32>
    %199 = arith.addf %193, %198 : vector<18x64xf32>
    %200 = vector.extract_strided_slice %134 {offsets = [0, 704], sizes = [50, 64], strides = [1, 1]} : vector<50x1024xf32> to vector<50x64xf32>
    %c11_115 = arith.constant 11 : index
    %c0_116 = arith.constant 0 : index
    %c0_117 = arith.constant 0 : index
    %201 = vector.load %arg4[%c11_115, %c0_116, %c0_117] : memref<16x18x50xbf16, #tpu.memory_space<vmem>>, vector<1x18x50xbf16>
    %202 = vector.shape_cast %201 : vector<1x18x50xbf16> to vector<18x50xbf16>
    %203 = arith.extf %202 : vector<18x50xbf16> to vector<18x50xf32>
    %cst_118 = arith.constant dense<0.000000e+00> : vector<18x64xf32>
    %204 = tpu.matmul %203, %200, %cst_118 {dimension_numbers = #tpu.dot_dimension_numbers<[1], [0], [0], [1], [0, 0, 1, 1], [], []>} : vector<18x50xf32>, vector<50x64xf32>, vector<18x64xf32> -> vector<18x64xf32>
    %205 = arith.addf %199, %204 : vector<18x64xf32>
    %206 = vector.extract_strided_slice %134 {offsets = [0, 768], sizes = [50, 64], strides = [1, 1]} : vector<50x1024xf32> to vector<50x64xf32>
    %c12_119 = arith.constant 12 : index
    %c0_120 = arith.constant 0 : index
    %c0_121 = arith.constant 0 : index
    %207 = vector.load %arg4[%c12_119, %c0_120, %c0_121] : memref<16x18x50xbf16, #tpu.memory_space<vmem>>, vector<1x18x50xbf16>
    %208 = vector.shape_cast %207 : vector<1x18x50xbf16> to vector<18x50xbf16>
    %209 = arith.extf %208 : vector<18x50xbf16> to vector<18x50xf32>
    %cst_122 = arith.constant dense<0.000000e+00> : vector<18x64xf32>
    %210 = tpu.matmul %209, %206, %cst_122 {dimension_numbers = #tpu.dot_dimension_numbers<[1], [0], [0], [1], [0, 0, 1, 1], [], []>} : vector<18x50xf32>, vector<50x64xf32>, vector<18x64xf32> -> vector<18x64xf32>
    %211 = arith.addf %205, %210 : vector<18x64xf32>
    %212 = vector.extract_strided_slice %134 {offsets = [0, 832], sizes = [50, 64], strides = [1, 1]} : vector<50x1024xf32> to vector<50x64xf32>
    %c13_123 = arith.constant 13 : index
    %c0_124 = arith.constant 0 : index
    %c0_125 = arith.constant 0 : index
    %213 = vector.load %arg4[%c13_123, %c0_124, %c0_125] : memref<16x18x50xbf16, #tpu.memory_space<vmem>>, vector<1x18x50xbf16>
    %214 = vector.shape_cast %213 : vector<1x18x50xbf16> to vector<18x50xbf16>
    %215 = arith.extf %214 : vector<18x50xbf16> to vector<18x50xf32>
    %cst_126 = arith.constant dense<0.000000e+00> : vector<18x64xf32>
    %216 = tpu.matmul %215, %212, %cst_126 {dimension_numbers = #tpu.dot_dimension_numbers<[1], [0], [0], [1], [0, 0, 1, 1], [], []>} : vector<18x50xf32>, vector<50x64xf32>, vector<18x64xf32> -> vector<18x64xf32>
    %217 = arith.addf %211, %216 : vector<18x64xf32>
    %218 = vector.extract_strided_slice %134 {offsets = [0, 896], sizes = [50, 64], strides = [1, 1]} : vector<50x1024xf32> to vector<50x64xf32>
    %c14_127 = arith.constant 14 : index
    %c0_128 = arith.constant 0 : index
    %c0_129 = arith.constant 0 : index
    %219 = vector.load %arg4[%c14_127, %c0_128, %c0_129] : memref<16x18x50xbf16, #tpu.memory_space<vmem>>, vector<1x18x50xbf16>
    %220 = vector.shape_cast %219 : vector<1x18x50xbf16> to vector<18x50xbf16>
    %221 = arith.extf %220 : vector<18x50xbf16> to vector<18x50xf32>
    %cst_130 = arith.constant dense<0.000000e+00> : vector<18x64xf32>
    %222 = tpu.matmul %221, %218, %cst_130 {dimension_numbers = #tpu.dot_dimension_numbers<[1], [0], [0], [1], [0, 0, 1, 1], [], []>} : vector<18x50xf32>, vector<50x64xf32>, vector<18x64xf32> -> vector<18x64xf32>
    %223 = arith.addf %217, %222 : vector<18x64xf32>
    %224 = vector.extract_strided_slice %134 {offsets = [0, 960], sizes = [50, 64], strides = [1, 1]} : vector<50x1024xf32> to vector<50x64xf32>
    %c15_131 = arith.constant 15 : index
    %c0_132 = arith.constant 0 : index
    %c0_133 = arith.constant 0 : index
    %225 = vector.load %arg4[%c15_131, %c0_132, %c0_133] : memref<16x18x50xbf16, #tpu.memory_space<vmem>>, vector<1x18x50xbf16>
    %226 = vector.shape_cast %225 : vector<1x18x50xbf16> to vector<18x50xbf16>
    %227 = arith.extf %226 : vector<18x50xbf16> to vector<18x50xf32>
    %cst_134 = arith.constant dense<0.000000e+00> : vector<18x64xf32>
    %228 = tpu.matmul %227, %224, %cst_134 {dimension_numbers = #tpu.dot_dimension_numbers<[1], [0], [0], [1], [0, 0, 1, 1], [], []>} : vector<18x50xf32>, vector<50x64xf32>, vector<18x64xf32> -> vector<18x64xf32>
    %229 = arith.addf %223, %228 : vector<18x64xf32>
    %c3_135 = arith.constant 3 : index
    %c0_136 = arith.constant 0 : index
    %230 = vector.load %arg10[%c3_135, %c0_136] : memref<8x128xf32, #tpu.memory_space<vmem>>, vector<1x64xf32>
    %c4_137 = arith.constant 4 : index
    %c0_138 = arith.constant 0 : index
    %231 = vector.load %arg10[%c4_137, %c0_138] : memref<8x128xf32, #tpu.memory_space<vmem>>, vector<1x64xf32>
    %cst_139 = arith.constant dense<0.000000e+00> : vector<64xf32>
    %232 = vector.multi_reduction <add>, %229, %cst_139 [0] : vector<18x64xf32> to vector<64xf32>
    %233 = vector.shape_cast %232 : vector<64xf32> to vector<1x64xf32>
    %cst_140 = arith.constant 1.800000e+01 : f32
    %234 = vector.broadcast %cst_140 : f32 to vector<1x64xf32>
    %235 = arith.divf %233, %234 : vector<1x64xf32>
    %236 = vector.broadcast %235 : vector<1x64xf32> to vector<18x64xf32>
    %237 = arith.subf %229, %236 : vector<18x64xf32>
    %238 = vector.broadcast %235 : vector<1x64xf32> to vector<18x64xf32>
    %239 = arith.subf %229, %238 : vector<18x64xf32>
    %240 = arith.mulf %237, %239 : vector<18x64xf32>
    %cst_141 = arith.constant dense<0.000000e+00> : vector<64xf32>
    %241 = vector.multi_reduction <add>, %240, %cst_141 [0] : vector<18x64xf32> to vector<64xf32>
    %242 = vector.shape_cast %241 : vector<64xf32> to vector<1x64xf32>
    %cst_142 = arith.constant 1.800000e+01 : f32
    %243 = vector.broadcast %cst_142 : f32 to vector<1x64xf32>
    %244 = arith.divf %242, %243 : vector<1x64xf32>
    %245 = vector.broadcast %235 : vector<1x64xf32> to vector<18x64xf32>
    %246 = arith.subf %229, %245 : vector<18x64xf32>
    %cst_143 = arith.constant 9.99999974E-6 : f32
    %247 = vector.broadcast %cst_143 : f32 to vector<1x64xf32>
    %248 = arith.addf %244, %247 : vector<1x64xf32>
    %249 = math.rsqrt %248 : vector<1x64xf32>
    %250 = vector.broadcast %249 : vector<1x64xf32> to vector<18x64xf32>
    %251 = arith.mulf %246, %250 : vector<18x64xf32>
    %252 = vector.broadcast %230 : vector<1x64xf32> to vector<18x64xf32>
    %253 = arith.mulf %251, %252 : vector<18x64xf32>
    %254 = vector.broadcast %231 : vector<1x64xf32> to vector<18x64xf32>
    %255 = arith.addf %253, %254 : vector<18x64xf32>
    %cst_144 = arith.constant 0.000000e+00 : f32
    %256 = vector.broadcast %cst_144 : f32 to vector<18x64xf32>
    %257 = arith.maximumf %255, %256 : vector<18x64xf32>
    %c0_145 = arith.constant 0 : index
    %c0_146 = arith.constant 0 : index
    %258 = vector.load %arg7[%c0_145, %c0_146] : memref<64x2048xf32, #tpu.memory_space<vmem>>, vector<64x2048xf32>
    %cst_147 = arith.constant dense<0.000000e+00> : vector<18x2048xf32>
    %259 = tpu.matmul %257, %258, %cst_147 {dimension_numbers = #tpu.dot_dimension_numbers<[1], [0], [0], [1], [0, 0, 1, 1], [], []>} : vector<18x64xf32>, vector<64x2048xf32>, vector<18x2048xf32> -> vector<18x2048xf32>
    %260 = vector.extract_strided_slice %259 {offsets = [0, 0], sizes = [18, 128], strides = [1, 1]} : vector<18x2048xf32> to vector<18x128xf32>
    %c0_148 = arith.constant 0 : index
    %c0_149 = arith.constant 0 : index
    %c0_150 = arith.constant 0 : index
    %261 = vector.load %arg6[%c0_148, %c0_149, %c0_150] : memref<16x32x18xbf16, #tpu.memory_space<vmem>>, vector<1x32x18xbf16>
    %262 = vector.shape_cast %261 : vector<1x32x18xbf16> to vector<32x18xbf16>
    %263 = arith.extf %262 : vector<32x18xbf16> to vector<32x18xf32>
    %cst_151 = arith.constant dense<0.000000e+00> : vector<32x128xf32>
    %264 = tpu.matmul %263, %260, %cst_151 {dimension_numbers = #tpu.dot_dimension_numbers<[1], [0], [0], [1], [0, 0, 1, 1], [], []>} : vector<32x18xf32>, vector<18x128xf32>, vector<32x128xf32> -> vector<32x128xf32>
    %265 = vector.extract_strided_slice %259 {offsets = [0, 128], sizes = [18, 128], strides = [1, 1]} : vector<18x2048xf32> to vector<18x128xf32>
    %c1_152 = arith.constant 1 : index
    %c0_153 = arith.constant 0 : index
    %c0_154 = arith.constant 0 : index
    %266 = vector.load %arg6[%c1_152, %c0_153, %c0_154] : memref<16x32x18xbf16, #tpu.memory_space<vmem>>, vector<1x32x18xbf16>
    %267 = vector.shape_cast %266 : vector<1x32x18xbf16> to vector<32x18xbf16>
    %268 = arith.extf %267 : vector<32x18xbf16> to vector<32x18xf32>
    %cst_155 = arith.constant dense<0.000000e+00> : vector<32x128xf32>
    %269 = tpu.matmul %268, %265, %cst_155 {dimension_numbers = #tpu.dot_dimension_numbers<[1], [0], [0], [1], [0, 0, 1, 1], [], []>} : vector<32x18xf32>, vector<18x128xf32>, vector<32x128xf32> -> vector<32x128xf32>
    %270 = arith.addf %264, %269 : vector<32x128xf32>
    %271 = vector.extract_strided_slice %259 {offsets = [0, 256], sizes = [18, 128], strides = [1, 1]} : vector<18x2048xf32> to vector<18x128xf32>
    %c2_156 = arith.constant 2 : index
    %c0_157 = arith.constant 0 : index
    %c0_158 = arith.constant 0 : index
    %272 = vector.load %arg6[%c2_156, %c0_157, %c0_158] : memref<16x32x18xbf16, #tpu.memory_space<vmem>>, vector<1x32x18xbf16>
    %273 = vector.shape_cast %272 : vector<1x32x18xbf16> to vector<32x18xbf16>
    %274 = arith.extf %273 : vector<32x18xbf16> to vector<32x18xf32>
    %cst_159 = arith.constant dense<0.000000e+00> : vector<32x128xf32>
    %275 = tpu.matmul %274, %271, %cst_159 {dimension_numbers = #tpu.dot_dimension_numbers<[1], [0], [0], [1], [0, 0, 1, 1], [], []>} : vector<32x18xf32>, vector<18x128xf32>, vector<32x128xf32> -> vector<32x128xf32>
    %276 = arith.addf %270, %275 : vector<32x128xf32>
    %277 = vector.extract_strided_slice %259 {offsets = [0, 384], sizes = [18, 128], strides = [1, 1]} : vector<18x2048xf32> to vector<18x128xf32>
    %c3_160 = arith.constant 3 : index
    %c0_161 = arith.constant 0 : index
    %c0_162 = arith.constant 0 : index
    %278 = vector.load %arg6[%c3_160, %c0_161, %c0_162] : memref<16x32x18xbf16, #tpu.memory_space<vmem>>, vector<1x32x18xbf16>
    %279 = vector.shape_cast %278 : vector<1x32x18xbf16> to vector<32x18xbf16>
    %280 = arith.extf %279 : vector<32x18xbf16> to vector<32x18xf32>
    %cst_163 = arith.constant dense<0.000000e+00> : vector<32x128xf32>
    %281 = tpu.matmul %280, %277, %cst_163 {dimension_numbers = #tpu.dot_dimension_numbers<[1], [0], [0], [1], [0, 0, 1, 1], [], []>} : vector<32x18xf32>, vector<18x128xf32>, vector<32x128xf32> -> vector<32x128xf32>
    %282 = arith.addf %276, %281 : vector<32x128xf32>
    %283 = vector.extract_strided_slice %259 {offsets = [0, 512], sizes = [18, 128], strides = [1, 1]} : vector<18x2048xf32> to vector<18x128xf32>
    %c4_164 = arith.constant 4 : index
    %c0_165 = arith.constant 0 : index
    %c0_166 = arith.constant 0 : index
    %284 = vector.load %arg6[%c4_164, %c0_165, %c0_166] : memref<16x32x18xbf16, #tpu.memory_space<vmem>>, vector<1x32x18xbf16>
    %285 = vector.shape_cast %284 : vector<1x32x18xbf16> to vector<32x18xbf16>
    %286 = arith.extf %285 : vector<32x18xbf16> to vector<32x18xf32>
    %cst_167 = arith.constant dense<0.000000e+00> : vector<32x128xf32>
    %287 = tpu.matmul %286, %283, %cst_167 {dimension_numbers = #tpu.dot_dimension_numbers<[1], [0], [0], [1], [0, 0, 1, 1], [], []>} : vector<32x18xf32>, vector<18x128xf32>, vector<32x128xf32> -> vector<32x128xf32>
    %288 = arith.addf %282, %287 : vector<32x128xf32>
    %289 = vector.extract_strided_slice %259 {offsets = [0, 640], sizes = [18, 128], strides = [1, 1]} : vector<18x2048xf32> to vector<18x128xf32>
    %c5_168 = arith.constant 5 : index
    %c0_169 = arith.constant 0 : index
    %c0_170 = arith.constant 0 : index
    %290 = vector.load %arg6[%c5_168, %c0_169, %c0_170] : memref<16x32x18xbf16, #tpu.memory_space<vmem>>, vector<1x32x18xbf16>
    %291 = vector.shape_cast %290 : vector<1x32x18xbf16> to vector<32x18xbf16>
    %292 = arith.extf %291 : vector<32x18xbf16> to vector<32x18xf32>
    %cst_171 = arith.constant dense<0.000000e+00> : vector<32x128xf32>
    %293 = tpu.matmul %292, %289, %cst_171 {dimension_numbers = #tpu.dot_dimension_numbers<[1], [0], [0], [1], [0, 0, 1, 1], [], []>} : vector<32x18xf32>, vector<18x128xf32>, vector<32x128xf32> -> vector<32x128xf32>
    %294 = arith.addf %288, %293 : vector<32x128xf32>
    %295 = vector.extract_strided_slice %259 {offsets = [0, 768], sizes = [18, 128], strides = [1, 1]} : vector<18x2048xf32> to vector<18x128xf32>
    %c6_172 = arith.constant 6 : index
    %c0_173 = arith.constant 0 : index
    %c0_174 = arith.constant 0 : index
    %296 = vector.load %arg6[%c6_172, %c0_173, %c0_174] : memref<16x32x18xbf16, #tpu.memory_space<vmem>>, vector<1x32x18xbf16>
    %297 = vector.shape_cast %296 : vector<1x32x18xbf16> to vector<32x18xbf16>
    %298 = arith.extf %297 : vector<32x18xbf16> to vector<32x18xf32>
    %cst_175 = arith.constant dense<0.000000e+00> : vector<32x128xf32>
    %299 = tpu.matmul %298, %295, %cst_175 {dimension_numbers = #tpu.dot_dimension_numbers<[1], [0], [0], [1], [0, 0, 1, 1], [], []>} : vector<32x18xf32>, vector<18x128xf32>, vector<32x128xf32> -> vector<32x128xf32>
    %300 = arith.addf %294, %299 : vector<32x128xf32>
    %301 = vector.extract_strided_slice %259 {offsets = [0, 896], sizes = [18, 128], strides = [1, 1]} : vector<18x2048xf32> to vector<18x128xf32>
    %c7_176 = arith.constant 7 : index
    %c0_177 = arith.constant 0 : index
    %c0_178 = arith.constant 0 : index
    %302 = vector.load %arg6[%c7_176, %c0_177, %c0_178] : memref<16x32x18xbf16, #tpu.memory_space<vmem>>, vector<1x32x18xbf16>
    %303 = vector.shape_cast %302 : vector<1x32x18xbf16> to vector<32x18xbf16>
    %304 = arith.extf %303 : vector<32x18xbf16> to vector<32x18xf32>
    %cst_179 = arith.constant dense<0.000000e+00> : vector<32x128xf32>
    %305 = tpu.matmul %304, %301, %cst_179 {dimension_numbers = #tpu.dot_dimension_numbers<[1], [0], [0], [1], [0, 0, 1, 1], [], []>} : vector<32x18xf32>, vector<18x128xf32>, vector<32x128xf32> -> vector<32x128xf32>
    %306 = arith.addf %300, %305 : vector<32x128xf32>
    %307 = vector.extract_strided_slice %259 {offsets = [0, 1024], sizes = [18, 128], strides = [1, 1]} : vector<18x2048xf32> to vector<18x128xf32>
    %c8_180 = arith.constant 8 : index
    %c0_181 = arith.constant 0 : index
    %c0_182 = arith.constant 0 : index
    %308 = vector.load %arg6[%c8_180, %c0_181, %c0_182] : memref<16x32x18xbf16, #tpu.memory_space<vmem>>, vector<1x32x18xbf16>
    %309 = vector.shape_cast %308 : vector<1x32x18xbf16> to vector<32x18xbf16>
    %310 = arith.extf %309 : vector<32x18xbf16> to vector<32x18xf32>
    %cst_183 = arith.constant dense<0.000000e+00> : vector<32x128xf32>
    %311 = tpu.matmul %310, %307, %cst_183 {dimension_numbers = #tpu.dot_dimension_numbers<[1], [0], [0], [1], [0, 0, 1, 1], [], []>} : vector<32x18xf32>, vector<18x128xf32>, vector<32x128xf32> -> vector<32x128xf32>
    %312 = arith.addf %306, %311 : vector<32x128xf32>
    %313 = vector.extract_strided_slice %259 {offsets = [0, 1152], sizes = [18, 128], strides = [1, 1]} : vector<18x2048xf32> to vector<18x128xf32>
    %c9_184 = arith.constant 9 : index
    %c0_185 = arith.constant 0 : index
    %c0_186 = arith.constant 0 : index
    %314 = vector.load %arg6[%c9_184, %c0_185, %c0_186] : memref<16x32x18xbf16, #tpu.memory_space<vmem>>, vector<1x32x18xbf16>
    %315 = vector.shape_cast %314 : vector<1x32x18xbf16> to vector<32x18xbf16>
    %316 = arith.extf %315 : vector<32x18xbf16> to vector<32x18xf32>
    %cst_187 = arith.constant dense<0.000000e+00> : vector<32x128xf32>
    %317 = tpu.matmul %316, %313, %cst_187 {dimension_numbers = #tpu.dot_dimension_numbers<[1], [0], [0], [1], [0, 0, 1, 1], [], []>} : vector<32x18xf32>, vector<18x128xf32>, vector<32x128xf32> -> vector<32x128xf32>
    %318 = arith.addf %312, %317 : vector<32x128xf32>
    %319 = vector.extract_strided_slice %259 {offsets = [0, 1280], sizes = [18, 128], strides = [1, 1]} : vector<18x2048xf32> to vector<18x128xf32>
    %c10_188 = arith.constant 10 : index
    %c0_189 = arith.constant 0 : index
    %c0_190 = arith.constant 0 : index
    %320 = vector.load %arg6[%c10_188, %c0_189, %c0_190] : memref<16x32x18xbf16, #tpu.memory_space<vmem>>, vector<1x32x18xbf16>
    %321 = vector.shape_cast %320 : vector<1x32x18xbf16> to vector<32x18xbf16>
    %322 = arith.extf %321 : vector<32x18xbf16> to vector<32x18xf32>
    %cst_191 = arith.constant dense<0.000000e+00> : vector<32x128xf32>
    %323 = tpu.matmul %322, %319, %cst_191 {dimension_numbers = #tpu.dot_dimension_numbers<[1], [0], [0], [1], [0, 0, 1, 1], [], []>} : vector<32x18xf32>, vector<18x128xf32>, vector<32x128xf32> -> vector<32x128xf32>
    %324 = arith.addf %318, %323 : vector<32x128xf32>
    %325 = vector.extract_strided_slice %259 {offsets = [0, 1408], sizes = [18, 128], strides = [1, 1]} : vector<18x2048xf32> to vector<18x128xf32>
    %c11_192 = arith.constant 11 : index
    %c0_193 = arith.constant 0 : index
    %c0_194 = arith.constant 0 : index
    %326 = vector.load %arg6[%c11_192, %c0_193, %c0_194] : memref<16x32x18xbf16, #tpu.memory_space<vmem>>, vector<1x32x18xbf16>
    %327 = vector.shape_cast %326 : vector<1x32x18xbf16> to vector<32x18xbf16>
    %328 = arith.extf %327 : vector<32x18xbf16> to vector<32x18xf32>
    %cst_195 = arith.constant dense<0.000000e+00> : vector<32x128xf32>
    %329 = tpu.matmul %328, %325, %cst_195 {dimension_numbers = #tpu.dot_dimension_numbers<[1], [0], [0], [1], [0, 0, 1, 1], [], []>} : vector<32x18xf32>, vector<18x128xf32>, vector<32x128xf32> -> vector<32x128xf32>
    %330 = arith.addf %324, %329 : vector<32x128xf32>
    %331 = vector.extract_strided_slice %259 {offsets = [0, 1536], sizes = [18, 128], strides = [1, 1]} : vector<18x2048xf32> to vector<18x128xf32>
    %c12_196 = arith.constant 12 : index
    %c0_197 = arith.constant 0 : index
    %c0_198 = arith.constant 0 : index
    %332 = vector.load %arg6[%c12_196, %c0_197, %c0_198] : memref<16x32x18xbf16, #tpu.memory_space<vmem>>, vector<1x32x18xbf16>
    %333 = vector.shape_cast %332 : vector<1x32x18xbf16> to vector<32x18xbf16>
    %334 = arith.extf %333 : vector<32x18xbf16> to vector<32x18xf32>
    %cst_199 = arith.constant dense<0.000000e+00> : vector<32x128xf32>
    %335 = tpu.matmul %334, %331, %cst_199 {dimension_numbers = #tpu.dot_dimension_numbers<[1], [0], [0], [1], [0, 0, 1, 1], [], []>} : vector<32x18xf32>, vector<18x128xf32>, vector<32x128xf32> -> vector<32x128xf32>
    %336 = arith.addf %330, %335 : vector<32x128xf32>
    %337 = vector.extract_strided_slice %259 {offsets = [0, 1664], sizes = [18, 128], strides = [1, 1]} : vector<18x2048xf32> to vector<18x128xf32>
    %c13_200 = arith.constant 13 : index
    %c0_201 = arith.constant 0 : index
    %c0_202 = arith.constant 0 : index
    %338 = vector.load %arg6[%c13_200, %c0_201, %c0_202] : memref<16x32x18xbf16, #tpu.memory_space<vmem>>, vector<1x32x18xbf16>
    %339 = vector.shape_cast %338 : vector<1x32x18xbf16> to vector<32x18xbf16>
    %340 = arith.extf %339 : vector<32x18xbf16> to vector<32x18xf32>
    %cst_203 = arith.constant dense<0.000000e+00> : vector<32x128xf32>
    %341 = tpu.matmul %340, %337, %cst_203 {dimension_numbers = #tpu.dot_dimension_numbers<[1], [0], [0], [1], [0, 0, 1, 1], [], []>} : vector<32x18xf32>, vector<18x128xf32>, vector<32x128xf32> -> vector<32x128xf32>
    %342 = arith.addf %336, %341 : vector<32x128xf32>
    %343 = vector.extract_strided_slice %259 {offsets = [0, 1792], sizes = [18, 128], strides = [1, 1]} : vector<18x2048xf32> to vector<18x128xf32>
    %c14_204 = arith.constant 14 : index
    %c0_205 = arith.constant 0 : index
    %c0_206 = arith.constant 0 : index
    %344 = vector.load %arg6[%c14_204, %c0_205, %c0_206] : memref<16x32x18xbf16, #tpu.memory_space<vmem>>, vector<1x32x18xbf16>
    %345 = vector.shape_cast %344 : vector<1x32x18xbf16> to vector<32x18xbf16>
    %346 = arith.extf %345 : vector<32x18xbf16> to vector<32x18xf32>
    %cst_207 = arith.constant dense<0.000000e+00> : vector<32x128xf32>
    %347 = tpu.matmul %346, %343, %cst_207 {dimension_numbers = #tpu.dot_dimension_numbers<[1], [0], [0], [1], [0, 0, 1, 1], [], []>} : vector<32x18xf32>, vector<18x128xf32>, vector<32x128xf32> -> vector<32x128xf32>
    %348 = arith.addf %342, %347 : vector<32x128xf32>
    %349 = vector.extract_strided_slice %259 {offsets = [0, 1920], sizes = [18, 128], strides = [1, 1]} : vector<18x2048xf32> to vector<18x128xf32>
    %c15_208 = arith.constant 15 : index
    %c0_209 = arith.constant 0 : index
    %c0_210 = arith.constant 0 : index
    %350 = vector.load %arg6[%c15_208, %c0_209, %c0_210] : memref<16x32x18xbf16, #tpu.memory_space<vmem>>, vector<1x32x18xbf16>
    %351 = vector.shape_cast %350 : vector<1x32x18xbf16> to vector<32x18xbf16>
    %352 = arith.extf %351 : vector<32x18xbf16> to vector<32x18xf32>
    %cst_211 = arith.constant dense<0.000000e+00> : vector<32x128xf32>
    %353 = tpu.matmul %352, %349, %cst_211 {dimension_numbers = #tpu.dot_dimension_numbers<[1], [0], [0], [1], [0, 0, 1, 1], [], []>} : vector<32x18xf32>, vector<18x128xf32>, vector<32x128xf32> -> vector<32x128xf32>
    %354 = arith.addf %348, %353 : vector<32x128xf32>
    %c5_212 = arith.constant 5 : index
    %c0_213 = arith.constant 0 : index
    %355 = vector.load %arg10[%c5_212, %c0_213] : memref<8x128xf32, #tpu.memory_space<vmem>>, vector<1x128xf32>
    %c6_214 = arith.constant 6 : index
    %c0_215 = arith.constant 0 : index
    %356 = vector.load %arg10[%c6_214, %c0_215] : memref<8x128xf32, #tpu.memory_space<vmem>>, vector<1x128xf32>
    %cst_216 = arith.constant dense<0.000000e+00> : vector<128xf32>
    %357 = vector.multi_reduction <add>, %354, %cst_216 [0] : vector<32x128xf32> to vector<128xf32>
    %358 = vector.shape_cast %357 : vector<128xf32> to vector<1x128xf32>
    %cst_217 = arith.constant 3.200000e+01 : f32
    %359 = vector.broadcast %cst_217 : f32 to vector<1x128xf32>
    %360 = arith.divf %358, %359 : vector<1x128xf32>
    %361 = vector.broadcast %360 : vector<1x128xf32> to vector<32x128xf32>
    %362 = arith.subf %354, %361 : vector<32x128xf32>
    %363 = vector.broadcast %360 : vector<1x128xf32> to vector<32x128xf32>
    %364 = arith.subf %354, %363 : vector<32x128xf32>
    %365 = arith.mulf %362, %364 : vector<32x128xf32>
    %cst_218 = arith.constant dense<0.000000e+00> : vector<128xf32>
    %366 = vector.multi_reduction <add>, %365, %cst_218 [0] : vector<32x128xf32> to vector<128xf32>
    %367 = vector.shape_cast %366 : vector<128xf32> to vector<1x128xf32>
    %cst_219 = arith.constant 3.200000e+01 : f32
    %368 = vector.broadcast %cst_219 : f32 to vector<1x128xf32>
    %369 = arith.divf %367, %368 : vector<1x128xf32>
    %370 = vector.broadcast %360 : vector<1x128xf32> to vector<32x128xf32>
    %371 = arith.subf %354, %370 : vector<32x128xf32>
    %cst_220 = arith.constant 9.99999974E-6 : f32
    %372 = vector.broadcast %cst_220 : f32 to vector<1x128xf32>
    %373 = arith.addf %369, %372 : vector<1x128xf32>
    %374 = math.rsqrt %373 : vector<1x128xf32>
    %375 = vector.broadcast %374 : vector<1x128xf32> to vector<32x128xf32>
    %376 = arith.mulf %371, %375 : vector<32x128xf32>
    %377 = vector.broadcast %355 : vector<1x128xf32> to vector<32x128xf32>
    %378 = arith.mulf %376, %377 : vector<32x128xf32>
    %379 = vector.broadcast %356 : vector<1x128xf32> to vector<32x128xf32>
    %380 = arith.addf %378, %379 : vector<32x128xf32>
    %cst_221 = arith.constant 0.000000e+00 : f32
    %381 = vector.broadcast %cst_221 : f32 to vector<32x128xf32>
    %382 = arith.maximumf %380, %381 : vector<32x128xf32>
    %c0_222 = arith.constant 0 : index
    %c0_223 = arith.constant 0 : index
    %383 = vector.load %arg9[%c0_222, %c0_223] : memref<128x16xf32, #tpu.memory_space<vmem>>, vector<128x16xf32>
    %cst_224 = arith.constant dense<0.000000e+00> : vector<32x16xf32>
    %384 = tpu.matmul %382, %383, %cst_224 {dimension_numbers = #tpu.dot_dimension_numbers<[1], [0], [0], [1], [0, 0, 1, 1], [], []>} : vector<32x128xf32>, vector<128x16xf32>, vector<32x16xf32> -> vector<32x16xf32>
    %385 = tpu.iota {dimensions = array<i32: 1>} : vector<1x16xi32>
    %cst_225 = arith.constant 0.000000e+00 : f32
    %386 = vector.broadcast %cst_225 : f32 to vector<50x16xf32>
    %c0_226 = arith.constant 0 : index
    %c0_227 = arith.constant 0 : index
    %c0_228 = arith.constant 0 : index
    %387 = vector.load %arg8[%c0_226, %c0_227, %c0_228] : memref<16x50x32xbf16, #tpu.memory_space<vmem>>, vector<1x50x32xbf16>
    %388 = vector.shape_cast %387 : vector<1x50x32xbf16> to vector<50x32xbf16>
    %389 = arith.extf %388 : vector<50x32xbf16> to vector<50x32xf32>
    %cst_229 = arith.constant dense<0.000000e+00> : vector<50x16xf32>
    %390 = tpu.matmul %389, %384, %cst_229 {dimension_numbers = #tpu.dot_dimension_numbers<[1], [0], [0], [1], [0, 0, 1, 1], [], []>} : vector<50x32xf32>, vector<32x16xf32>, vector<50x16xf32> -> vector<50x16xf32>
    %c0_i32 = arith.constant 0 : i32
    %391 = vector.broadcast %c0_i32 : i32 to vector<1x16xi32>
    %392 = arith.cmpi eq, %385, %391 : vector<1x16xi32>
    %cst_230 = arith.constant 0.000000e+00 : f32
    %393 = vector.shape_cast %392 : vector<1x16xi1> to vector<1x16xi1>
    %394 = vector.broadcast %393 : vector<1x16xi1> to vector<50x16xi1>
    %395 = vector.broadcast %cst_230 : f32 to vector<50x16xf32>
    %396 = arith.select %394, %390, %395 : vector<50x16xi1>, vector<50x16xf32>
    %397 = arith.addf %386, %396 : vector<50x16xf32>
    %c1_231 = arith.constant 1 : index
    %c0_232 = arith.constant 0 : index
    %c0_233 = arith.constant 0 : index
    %398 = vector.load %arg8[%c1_231, %c0_232, %c0_233] : memref<16x50x32xbf16, #tpu.memory_space<vmem>>, vector<1x50x32xbf16>
    %399 = vector.shape_cast %398 : vector<1x50x32xbf16> to vector<50x32xbf16>
    %400 = arith.extf %399 : vector<50x32xbf16> to vector<50x32xf32>
    %cst_234 = arith.constant dense<0.000000e+00> : vector<50x16xf32>
    %401 = tpu.matmul %400, %384, %cst_234 {dimension_numbers = #tpu.dot_dimension_numbers<[1], [0], [0], [1], [0, 0, 1, 1], [], []>} : vector<50x32xf32>, vector<32x16xf32>, vector<50x16xf32> -> vector<50x16xf32>
    %c1_i32 = arith.constant 1 : i32
    %402 = vector.broadcast %c1_i32 : i32 to vector<1x16xi32>
    %403 = arith.cmpi eq, %385, %402 : vector<1x16xi32>
    %cst_235 = arith.constant 0.000000e+00 : f32
    %404 = vector.shape_cast %403 : vector<1x16xi1> to vector<1x16xi1>
    %405 = vector.broadcast %404 : vector<1x16xi1> to vector<50x16xi1>
    %406 = vector.broadcast %cst_235 : f32 to vector<50x16xf32>
    %407 = arith.select %405, %401, %406 : vector<50x16xi1>, vector<50x16xf32>
    %408 = arith.addf %397, %407 : vector<50x16xf32>
    %c2_236 = arith.constant 2 : index
    %c0_237 = arith.constant 0 : index
    %c0_238 = arith.constant 0 : index
    %409 = vector.load %arg8[%c2_236, %c0_237, %c0_238] : memref<16x50x32xbf16, #tpu.memory_space<vmem>>, vector<1x50x32xbf16>
    %410 = vector.shape_cast %409 : vector<1x50x32xbf16> to vector<50x32xbf16>
    %411 = arith.extf %410 : vector<50x32xbf16> to vector<50x32xf32>
    %cst_239 = arith.constant dense<0.000000e+00> : vector<50x16xf32>
    %412 = tpu.matmul %411, %384, %cst_239 {dimension_numbers = #tpu.dot_dimension_numbers<[1], [0], [0], [1], [0, 0, 1, 1], [], []>} : vector<50x32xf32>, vector<32x16xf32>, vector<50x16xf32> -> vector<50x16xf32>
    %c2_i32 = arith.constant 2 : i32
    %413 = vector.broadcast %c2_i32 : i32 to vector<1x16xi32>
    %414 = arith.cmpi eq, %385, %413 : vector<1x16xi32>
    %cst_240 = arith.constant 0.000000e+00 : f32
    %415 = vector.shape_cast %414 : vector<1x16xi1> to vector<1x16xi1>
    %416 = vector.broadcast %415 : vector<1x16xi1> to vector<50x16xi1>
    %417 = vector.broadcast %cst_240 : f32 to vector<50x16xf32>
    %418 = arith.select %416, %412, %417 : vector<50x16xi1>, vector<50x16xf32>
    %419 = arith.addf %408, %418 : vector<50x16xf32>
    %c3_241 = arith.constant 3 : index
    %c0_242 = arith.constant 0 : index
    %c0_243 = arith.constant 0 : index
    %420 = vector.load %arg8[%c3_241, %c0_242, %c0_243] : memref<16x50x32xbf16, #tpu.memory_space<vmem>>, vector<1x50x32xbf16>
    %421 = vector.shape_cast %420 : vector<1x50x32xbf16> to vector<50x32xbf16>
    %422 = arith.extf %421 : vector<50x32xbf16> to vector<50x32xf32>
    %cst_244 = arith.constant dense<0.000000e+00> : vector<50x16xf32>
    %423 = tpu.matmul %422, %384, %cst_244 {dimension_numbers = #tpu.dot_dimension_numbers<[1], [0], [0], [1], [0, 0, 1, 1], [], []>} : vector<50x32xf32>, vector<32x16xf32>, vector<50x16xf32> -> vector<50x16xf32>
    %c3_i32 = arith.constant 3 : i32
    %424 = vector.broadcast %c3_i32 : i32 to vector<1x16xi32>
    %425 = arith.cmpi eq, %385, %424 : vector<1x16xi32>
    %cst_245 = arith.constant 0.000000e+00 : f32
    %426 = vector.shape_cast %425 : vector<1x16xi1> to vector<1x16xi1>
    %427 = vector.broadcast %426 : vector<1x16xi1> to vector<50x16xi1>
    %428 = vector.broadcast %cst_245 : f32 to vector<50x16xf32>
    %429 = arith.select %427, %423, %428 : vector<50x16xi1>, vector<50x16xf32>
    %430 = arith.addf %419, %429 : vector<50x16xf32>
    %c4_246 = arith.constant 4 : index
    %c0_247 = arith.constant 0 : index
    %c0_248 = arith.constant 0 : index
    %431 = vector.load %arg8[%c4_246, %c0_247, %c0_248] : memref<16x50x32xbf16, #tpu.memory_space<vmem>>, vector<1x50x32xbf16>
    %432 = vector.shape_cast %431 : vector<1x50x32xbf16> to vector<50x32xbf16>
    %433 = arith.extf %432 : vector<50x32xbf16> to vector<50x32xf32>
    %cst_249 = arith.constant dense<0.000000e+00> : vector<50x16xf32>
    %434 = tpu.matmul %433, %384, %cst_249 {dimension_numbers = #tpu.dot_dimension_numbers<[1], [0], [0], [1], [0, 0, 1, 1], [], []>} : vector<50x32xf32>, vector<32x16xf32>, vector<50x16xf32> -> vector<50x16xf32>
    %c4_i32 = arith.constant 4 : i32
    %435 = vector.broadcast %c4_i32 : i32 to vector<1x16xi32>
    %436 = arith.cmpi eq, %385, %435 : vector<1x16xi32>
    %cst_250 = arith.constant 0.000000e+00 : f32
    %437 = vector.shape_cast %436 : vector<1x16xi1> to vector<1x16xi1>
    %438 = vector.broadcast %437 : vector<1x16xi1> to vector<50x16xi1>
    %439 = vector.broadcast %cst_250 : f32 to vector<50x16xf32>
    %440 = arith.select %438, %434, %439 : vector<50x16xi1>, vector<50x16xf32>
    %441 = arith.addf %430, %440 : vector<50x16xf32>
    %c5_251 = arith.constant 5 : index
    %c0_252 = arith.constant 0 : index
    %c0_253 = arith.constant 0 : index
    %442 = vector.load %arg8[%c5_251, %c0_252, %c0_253] : memref<16x50x32xbf16, #tpu.memory_space<vmem>>, vector<1x50x32xbf16>
    %443 = vector.shape_cast %442 : vector<1x50x32xbf16> to vector<50x32xbf16>
    %444 = arith.extf %443 : vector<50x32xbf16> to vector<50x32xf32>
    %cst_254 = arith.constant dense<0.000000e+00> : vector<50x16xf32>
    %445 = tpu.matmul %444, %384, %cst_254 {dimension_numbers = #tpu.dot_dimension_numbers<[1], [0], [0], [1], [0, 0, 1, 1], [], []>} : vector<50x32xf32>, vector<32x16xf32>, vector<50x16xf32> -> vector<50x16xf32>
    %c5_i32 = arith.constant 5 : i32
    %446 = vector.broadcast %c5_i32 : i32 to vector<1x16xi32>
    %447 = arith.cmpi eq, %385, %446 : vector<1x16xi32>
    %cst_255 = arith.constant 0.000000e+00 : f32
    %448 = vector.shape_cast %447 : vector<1x16xi1> to vector<1x16xi1>
    %449 = vector.broadcast %448 : vector<1x16xi1> to vector<50x16xi1>
    %450 = vector.broadcast %cst_255 : f32 to vector<50x16xf32>
    %451 = arith.select %449, %445, %450 : vector<50x16xi1>, vector<50x16xf32>
    %452 = arith.addf %441, %451 : vector<50x16xf32>
    %c6_256 = arith.constant 6 : index
    %c0_257 = arith.constant 0 : index
    %c0_258 = arith.constant 0 : index
    %453 = vector.load %arg8[%c6_256, %c0_257, %c0_258] : memref<16x50x32xbf16, #tpu.memory_space<vmem>>, vector<1x50x32xbf16>
    %454 = vector.shape_cast %453 : vector<1x50x32xbf16> to vector<50x32xbf16>
    %455 = arith.extf %454 : vector<50x32xbf16> to vector<50x32xf32>
    %cst_259 = arith.constant dense<0.000000e+00> : vector<50x16xf32>
    %456 = tpu.matmul %455, %384, %cst_259 {dimension_numbers = #tpu.dot_dimension_numbers<[1], [0], [0], [1], [0, 0, 1, 1], [], []>} : vector<50x32xf32>, vector<32x16xf32>, vector<50x16xf32> -> vector<50x16xf32>
    %c6_i32 = arith.constant 6 : i32
    %457 = vector.broadcast %c6_i32 : i32 to vector<1x16xi32>
    %458 = arith.cmpi eq, %385, %457 : vector<1x16xi32>
    %cst_260 = arith.constant 0.000000e+00 : f32
    %459 = vector.shape_cast %458 : vector<1x16xi1> to vector<1x16xi1>
    %460 = vector.broadcast %459 : vector<1x16xi1> to vector<50x16xi1>
    %461 = vector.broadcast %cst_260 : f32 to vector<50x16xf32>
    %462 = arith.select %460, %456, %461 : vector<50x16xi1>, vector<50x16xf32>
    %463 = arith.addf %452, %462 : vector<50x16xf32>
    %c7_261 = arith.constant 7 : index
    %c0_262 = arith.constant 0 : index
    %c0_263 = arith.constant 0 : index
    %464 = vector.load %arg8[%c7_261, %c0_262, %c0_263] : memref<16x50x32xbf16, #tpu.memory_space<vmem>>, vector<1x50x32xbf16>
    %465 = vector.shape_cast %464 : vector<1x50x32xbf16> to vector<50x32xbf16>
    %466 = arith.extf %465 : vector<50x32xbf16> to vector<50x32xf32>
    %cst_264 = arith.constant dense<0.000000e+00> : vector<50x16xf32>
    %467 = tpu.matmul %466, %384, %cst_264 {dimension_numbers = #tpu.dot_dimension_numbers<[1], [0], [0], [1], [0, 0, 1, 1], [], []>} : vector<50x32xf32>, vector<32x16xf32>, vector<50x16xf32> -> vector<50x16xf32>
    %c7_i32 = arith.constant 7 : i32
    %468 = vector.broadcast %c7_i32 : i32 to vector<1x16xi32>
    %469 = arith.cmpi eq, %385, %468 : vector<1x16xi32>
    %cst_265 = arith.constant 0.000000e+00 : f32
    %470 = vector.shape_cast %469 : vector<1x16xi1> to vector<1x16xi1>
    %471 = vector.broadcast %470 : vector<1x16xi1> to vector<50x16xi1>
    %472 = vector.broadcast %cst_265 : f32 to vector<50x16xf32>
    %473 = arith.select %471, %467, %472 : vector<50x16xi1>, vector<50x16xf32>
    %474 = arith.addf %463, %473 : vector<50x16xf32>
    %c8_266 = arith.constant 8 : index
    %c0_267 = arith.constant 0 : index
    %c0_268 = arith.constant 0 : index
    %475 = vector.load %arg8[%c8_266, %c0_267, %c0_268] : memref<16x50x32xbf16, #tpu.memory_space<vmem>>, vector<1x50x32xbf16>
    %476 = vector.shape_cast %475 : vector<1x50x32xbf16> to vector<50x32xbf16>
    %477 = arith.extf %476 : vector<50x32xbf16> to vector<50x32xf32>
    %cst_269 = arith.constant dense<0.000000e+00> : vector<50x16xf32>
    %478 = tpu.matmul %477, %384, %cst_269 {dimension_numbers = #tpu.dot_dimension_numbers<[1], [0], [0], [1], [0, 0, 1, 1], [], []>} : vector<50x32xf32>, vector<32x16xf32>, vector<50x16xf32> -> vector<50x16xf32>
    %c8_i32 = arith.constant 8 : i32
    %479 = vector.broadcast %c8_i32 : i32 to vector<1x16xi32>
    %480 = arith.cmpi eq, %385, %479 : vector<1x16xi32>
    %cst_270 = arith.constant 0.000000e+00 : f32
    %481 = vector.shape_cast %480 : vector<1x16xi1> to vector<1x16xi1>
    %482 = vector.broadcast %481 : vector<1x16xi1> to vector<50x16xi1>
    %483 = vector.broadcast %cst_270 : f32 to vector<50x16xf32>
    %484 = arith.select %482, %478, %483 : vector<50x16xi1>, vector<50x16xf32>
    %485 = arith.addf %474, %484 : vector<50x16xf32>
    %c9_271 = arith.constant 9 : index
    %c0_272 = arith.constant 0 : index
    %c0_273 = arith.constant 0 : index
    %486 = vector.load %arg8[%c9_271, %c0_272, %c0_273] : memref<16x50x32xbf16, #tpu.memory_space<vmem>>, vector<1x50x32xbf16>
    %487 = vector.shape_cast %486 : vector<1x50x32xbf16> to vector<50x32xbf16>
    %488 = arith.extf %487 : vector<50x32xbf16> to vector<50x32xf32>
    %cst_274 = arith.constant dense<0.000000e+00> : vector<50x16xf32>
    %489 = tpu.matmul %488, %384, %cst_274 {dimension_numbers = #tpu.dot_dimension_numbers<[1], [0], [0], [1], [0, 0, 1, 1], [], []>} : vector<50x32xf32>, vector<32x16xf32>, vector<50x16xf32> -> vector<50x16xf32>
    %c9_i32 = arith.constant 9 : i32
    %490 = vector.broadcast %c9_i32 : i32 to vector<1x16xi32>
    %491 = arith.cmpi eq, %385, %490 : vector<1x16xi32>
    %cst_275 = arith.constant 0.000000e+00 : f32
    %492 = vector.shape_cast %491 : vector<1x16xi1> to vector<1x16xi1>
    %493 = vector.broadcast %492 : vector<1x16xi1> to vector<50x16xi1>
    %494 = vector.broadcast %cst_275 : f32 to vector<50x16xf32>
    %495 = arith.select %493, %489, %494 : vector<50x16xi1>, vector<50x16xf32>
    %496 = arith.addf %485, %495 : vector<50x16xf32>
    %c10_276 = arith.constant 10 : index
    %c0_277 = arith.constant 0 : index
    %c0_278 = arith.constant 0 : index
    %497 = vector.load %arg8[%c10_276, %c0_277, %c0_278] : memref<16x50x32xbf16, #tpu.memory_space<vmem>>, vector<1x50x32xbf16>
    %498 = vector.shape_cast %497 : vector<1x50x32xbf16> to vector<50x32xbf16>
    %499 = arith.extf %498 : vector<50x32xbf16> to vector<50x32xf32>
    %cst_279 = arith.constant dense<0.000000e+00> : vector<50x16xf32>
    %500 = tpu.matmul %499, %384, %cst_279 {dimension_numbers = #tpu.dot_dimension_numbers<[1], [0], [0], [1], [0, 0, 1, 1], [], []>} : vector<50x32xf32>, vector<32x16xf32>, vector<50x16xf32> -> vector<50x16xf32>
    %c10_i32 = arith.constant 10 : i32
    %501 = vector.broadcast %c10_i32 : i32 to vector<1x16xi32>
    %502 = arith.cmpi eq, %385, %501 : vector<1x16xi32>
    %cst_280 = arith.constant 0.000000e+00 : f32
    %503 = vector.shape_cast %502 : vector<1x16xi1> to vector<1x16xi1>
    %504 = vector.broadcast %503 : vector<1x16xi1> to vector<50x16xi1>
    %505 = vector.broadcast %cst_280 : f32 to vector<50x16xf32>
    %506 = arith.select %504, %500, %505 : vector<50x16xi1>, vector<50x16xf32>
    %507 = arith.addf %496, %506 : vector<50x16xf32>
    %c11_281 = arith.constant 11 : index
    %c0_282 = arith.constant 0 : index
    %c0_283 = arith.constant 0 : index
    %508 = vector.load %arg8[%c11_281, %c0_282, %c0_283] : memref<16x50x32xbf16, #tpu.memory_space<vmem>>, vector<1x50x32xbf16>
    %509 = vector.shape_cast %508 : vector<1x50x32xbf16> to vector<50x32xbf16>
    %510 = arith.extf %509 : vector<50x32xbf16> to vector<50x32xf32>
    %cst_284 = arith.constant dense<0.000000e+00> : vector<50x16xf32>
    %511 = tpu.matmul %510, %384, %cst_284 {dimension_numbers = #tpu.dot_dimension_numbers<[1], [0], [0], [1], [0, 0, 1, 1], [], []>} : vector<50x32xf32>, vector<32x16xf32>, vector<50x16xf32> -> vector<50x16xf32>
    %c11_i32 = arith.constant 11 : i32
    %512 = vector.broadcast %c11_i32 : i32 to vector<1x16xi32>
    %513 = arith.cmpi eq, %385, %512 : vector<1x16xi32>
    %cst_285 = arith.constant 0.000000e+00 : f32
    %514 = vector.shape_cast %513 : vector<1x16xi1> to vector<1x16xi1>
    %515 = vector.broadcast %514 : vector<1x16xi1> to vector<50x16xi1>
    %516 = vector.broadcast %cst_285 : f32 to vector<50x16xf32>
    %517 = arith.select %515, %511, %516 : vector<50x16xi1>, vector<50x16xf32>
    %518 = arith.addf %507, %517 : vector<50x16xf32>
    %c12_286 = arith.constant 12 : index
    %c0_287 = arith.constant 0 : index
    %c0_288 = arith.constant 0 : index
    %519 = vector.load %arg8[%c12_286, %c0_287, %c0_288] : memref<16x50x32xbf16, #tpu.memory_space<vmem>>, vector<1x50x32xbf16>
    %520 = vector.shape_cast %519 : vector<1x50x32xbf16> to vector<50x32xbf16>
    %521 = arith.extf %520 : vector<50x32xbf16> to vector<50x32xf32>
    %cst_289 = arith.constant dense<0.000000e+00> : vector<50x16xf32>
    %522 = tpu.matmul %521, %384, %cst_289 {dimension_numbers = #tpu.dot_dimension_numbers<[1], [0], [0], [1], [0, 0, 1, 1], [], []>} : vector<50x32xf32>, vector<32x16xf32>, vector<50x16xf32> -> vector<50x16xf32>
    %c12_i32 = arith.constant 12 : i32
    %523 = vector.broadcast %c12_i32 : i32 to vector<1x16xi32>
    %524 = arith.cmpi eq, %385, %523 : vector<1x16xi32>
    %cst_290 = arith.constant 0.000000e+00 : f32
    %525 = vector.shape_cast %524 : vector<1x16xi1> to vector<1x16xi1>
    %526 = vector.broadcast %525 : vector<1x16xi1> to vector<50x16xi1>
    %527 = vector.broadcast %cst_290 : f32 to vector<50x16xf32>
    %528 = arith.select %526, %522, %527 : vector<50x16xi1>, vector<50x16xf32>
    %529 = arith.addf %518, %528 : vector<50x16xf32>
    %c13_291 = arith.constant 13 : index
    %c0_292 = arith.constant 0 : index
    %c0_293 = arith.constant 0 : index
    %530 = vector.load %arg8[%c13_291, %c0_292, %c0_293] : memref<16x50x32xbf16, #tpu.memory_space<vmem>>, vector<1x50x32xbf16>
    %531 = vector.shape_cast %530 : vector<1x50x32xbf16> to vector<50x32xbf16>
    %532 = arith.extf %531 : vector<50x32xbf16> to vector<50x32xf32>
    %cst_294 = arith.constant dense<0.000000e+00> : vector<50x16xf32>
    %533 = tpu.matmul %532, %384, %cst_294 {dimension_numbers = #tpu.dot_dimension_numbers<[1], [0], [0], [1], [0, 0, 1, 1], [], []>} : vector<50x32xf32>, vector<32x16xf32>, vector<50x16xf32> -> vector<50x16xf32>
    %c13_i32 = arith.constant 13 : i32
    %534 = vector.broadcast %c13_i32 : i32 to vector<1x16xi32>
    %535 = arith.cmpi eq, %385, %534 : vector<1x16xi32>
    %cst_295 = arith.constant 0.000000e+00 : f32
    %536 = vector.shape_cast %535 : vector<1x16xi1> to vector<1x16xi1>
    %537 = vector.broadcast %536 : vector<1x16xi1> to vector<50x16xi1>
    %538 = vector.broadcast %cst_295 : f32 to vector<50x16xf32>
    %539 = arith.select %537, %533, %538 : vector<50x16xi1>, vector<50x16xf32>
    %540 = arith.addf %529, %539 : vector<50x16xf32>
    %c14_296 = arith.constant 14 : index
    %c0_297 = arith.constant 0 : index
    %c0_298 = arith.constant 0 : index
    %541 = vector.load %arg8[%c14_296, %c0_297, %c0_298] : memref<16x50x32xbf16, #tpu.memory_space<vmem>>, vector<1x50x32xbf16>
    %542 = vector.shape_cast %541 : vector<1x50x32xbf16> to vector<50x32xbf16>
    %543 = arith.extf %542 : vector<50x32xbf16> to vector<50x32xf32>
    %cst_299 = arith.constant dense<0.000000e+00> : vector<50x16xf32>
    %544 = tpu.matmul %543, %384, %cst_299 {dimension_numbers = #tpu.dot_dimension_numbers<[1], [0], [0], [1], [0, 0, 1, 1], [], []>} : vector<50x32xf32>, vector<32x16xf32>, vector<50x16xf32> -> vector<50x16xf32>
    %c14_i32 = arith.constant 14 : i32
    %545 = vector.broadcast %c14_i32 : i32 to vector<1x16xi32>
    %546 = arith.cmpi eq, %385, %545 : vector<1x16xi32>
    %cst_300 = arith.constant 0.000000e+00 : f32
    %547 = vector.shape_cast %546 : vector<1x16xi1> to vector<1x16xi1>
    %548 = vector.broadcast %547 : vector<1x16xi1> to vector<50x16xi1>
    %549 = vector.broadcast %cst_300 : f32 to vector<50x16xf32>
    %550 = arith.select %548, %544, %549 : vector<50x16xi1>, vector<50x16xf32>
    %551 = arith.addf %540, %550 : vector<50x16xf32>
    %c15_301 = arith.constant 15 : index
    %c0_302 = arith.constant 0 : index
    %c0_303 = arith.constant 0 : index
    %552 = vector.load %arg8[%c15_301, %c0_302, %c0_303] : memref<16x50x32xbf16, #tpu.memory_space<vmem>>, vector<1x50x32xbf16>
    %553 = vector.shape_cast %552 : vector<1x50x32xbf16> to vector<50x32xbf16>
    %554 = arith.extf %553 : vector<50x32xbf16> to vector<50x32xf32>
    %cst_304 = arith.constant dense<0.000000e+00> : vector<50x16xf32>
    %555 = tpu.matmul %554, %384, %cst_304 {dimension_numbers = #tpu.dot_dimension_numbers<[1], [0], [0], [1], [0, 0, 1, 1], [], []>} : vector<50x32xf32>, vector<32x16xf32>, vector<50x16xf32> -> vector<50x16xf32>
    %c15_i32 = arith.constant 15 : i32
    %556 = vector.broadcast %c15_i32 : i32 to vector<1x16xi32>
    %557 = arith.cmpi eq, %385, %556 : vector<1x16xi32>
    %cst_305 = arith.constant 0.000000e+00 : f32
    %558 = vector.shape_cast %557 : vector<1x16xi1> to vector<1x16xi1>
    %559 = vector.broadcast %558 : vector<1x16xi1> to vector<50x16xi1>
    %560 = vector.broadcast %cst_305 : f32 to vector<50x16xf32>
    %561 = arith.select %559, %555, %560 : vector<50x16xi1>, vector<50x16xf32>
    %562 = arith.addf %551, %561 : vector<50x16xf32>
    %cst_306 = arith.constant dense<0.000000e+00> : vector<50xf32>
    %563 = vector.multi_reduction <add>, %562, %cst_306 [1] : vector<50x16xf32> to vector<50xf32>
    %564 = vector.shape_cast %563 : vector<50xf32> to vector<50x1xf32>
    %c7_307 = arith.constant 7 : index
    %c0_308 = arith.constant 0 : index
    %565 = vector.load %arg10[%c7_307, %c0_308] : memref<8x128xf32, #tpu.memory_space<vmem>>, vector<1x1xf32>
    %566 = vector.broadcast %565 : vector<1x1xf32> to vector<50x1xf32>
    %567 = arith.addf %564, %566 : vector<50x1xf32>
    %568 = arith.negf %567 : vector<50x1xf32>
    %569 = math.exp %568 : vector<50x1xf32>
    %cst_309 = arith.constant 1.000000e+00 : f32
    %570 = vector.broadcast %cst_309 : f32 to vector<50x1xf32>
    %571 = arith.addf %570, %569 : vector<50x1xf32>
    %572 = arith.divf %570, %571 : vector<50x1xf32>
    %c0_310 = arith.constant 0 : index
    %c0_311 = arith.constant 0 : index
    %573 = vector.load %arg11[%c0_310, %c0_311] : memref<50x1xf32, #tpu.memory_space<vmem>>, vector<50x1xf32>
    tpu.vector_store %arg11[%c0_310, %c0_311], %572 {strides = array<i32>} : memref<50x1xf32, #tpu.memory_space<vmem>>, vector<50x1xf32>,
    return
  }
}

</mosaic_0001>

<bundles_post_ra>
// kernel: _lambda_.1
= control target key start
LH: loop header
LB: loop body
LE: loop exit
PB: predicated region body
PF: predicated region fallthrough
CT: control target
= control target key end

     0   :  { %vm69_vm0 = vcmask 523264   ;;  %vm242_vm1 = vcmask 130048   ;;  %s10276_s13 = smov 64   ;;  %vm774_vm2 = vcmask 1041408   ;;  %s10277_s14 = smov 32   ;;  %vm752_vm3 = vcmask 277504   ;;  %s14736_s1 = inlined_call_operand.vmem [shape: f32[64,16], index: 1, kind: input, shape index: {}]   ;;  %s14737_s10 = inlined_call_operand.vmem [shape: f32[8,128], index: 10, kind: input, shape index: {}]   ;;  %s14738_s0 = inlined_call_operand.vmem [shape: f32[162,64], index: 0, kind: input, shape index: {}]   ;;  %s14739_s3 = inlined_call_operand.vmem [shape: f32[16,512], index: 3, kind: input, shape index: {}]   ;;  %s14740_s2 = inlined_call_operand.vmem [shape: bf16[16,50,162], index: 2, kind: input, shape index: {}]   ;;  %s14741_s5 = inlined_call_operand.vmem [shape: f32[32,1024], index: 5, kind: input, shape index: {}]   ;;  %s14742_s4 = inlined_call_operand.vmem [shape: bf16[16,18,50], index: 4, kind: input, shape index: {}]   ;;  %s14743_s7 = inlined_call_operand.vmem [shape: f32[64,2048], index: 7, kind: input, shape index: {}]   ;;  %s14744_s6 = inlined_call_operand.vmem [shape: bf16[16,32,18], index: 6, kind: input, shape index: {}]   ;;  %s14745_s9 = inlined_call_operand.vmem [shape: f32[128,16], index: 9, kind: input, shape index: {}]   ;;  %s14746_s8 = inlined_call_operand.vmem [shape: bf16[16,50,32], index: 8, kind: input, shape index: {}]   ;;  %s14747_s11 = inlined_call_operand.vmem [shape: f32[50,1], index: 11, kind: output, shape index: {}]  }
   0x1   :  { %v66_v0 = vld [vmem:[%s14736_s1 + $0x38] sm:$0xff]  ;;  %v65_v1 = vld [vmem:[%s14736_s1 + $0x30] sm:$0xff]  ;;  %v64_v2 = vld [vmem:[%s14736_s1 + $0x28] sm:$0xff]  ;;  %vm3491_vm4 = vcmask 261120   ;;  %vm3503_vm5 = vcmask 254976   ;;  %vm3992_vm10 = vcmask 408576  }
   0x2   :  { %141 = vmatpush.msra.mxu0 %v66_v0  ;;  %v63_v3 = vld [vmem:[%s14736_s1 + $0x20] sm:$0xff]  ;;  %v62_v4 = vld [vmem:[%s14736_s1 + $0x18] sm:$0xff]  ;;  %v61_v5 = vld [vmem:[%s14736_s1 + $0x10] sm:$0xff]  ;;  %vm4919_vm11 = vcmask 517120  }
   0x3   :  { %v60_v6 = vld [vmem:[%s14736_s1 + $0x8] sm:$0xff]  ;;  %v59_v7 = vld [vmem:[%s14736_s1] sm:$0xff]  ;;  %v40_v10 = vld [vmem:[%s14738_s0 + $0x10] sm:$0xff] }
   0x4   :  { %142 = vmatpush.msra.mxu0 %v65_v1  ;;  %v38_v8 = vld [vmem:[%s14738_s0] sm:$0xff]  ;;  %v39_v9 = vld [vmem:[%s14738_s0 + $0x8] sm:$0xff]  ;;  %v41_v11 = vld [vmem:[%s14738_s0 + $0x18] sm:$0xff] }
   0x5   :  { %v42_v12 = vld [vmem:[%s14738_s0 + $0x20] sm:$0xff]  ;;  %v43_v13 = vld [vmem:[%s14738_s0 + $0x28] sm:$0xff]  ;;  %v44_v14 = vld [vmem:[%s14738_s0 + $0x30] sm:$0xff] }
   0x6   :  { %143 = vmatpush.msra.mxu0 %v64_v2  ;;  %v45_v15 = vld [vmem:[%s14738_s0 + $0x38] sm:$0xff]  ;;  %v46_v16 = vld [vmem:[%s14738_s0 + $0x40] sm:$0xff]  ;;  %v47_v17 = vld [vmem:[%s14738_s0 + $0x48] sm:$0xff] }
   0x7   :  { %v48_v18 = vld [vmem:[%s14738_s0 + $0x50] sm:$0xff]  ;;  %v49_v19 = vld [vmem:[%s14738_s0 + $0x58] sm:$0xff]  ;;  %v50_v20 = vld [vmem:[%s14738_s0 + $0x60] sm:$0xff] }
   0x8   :  { %144 = vmatpush.msra.mxu0 %v63_v3  ;;  %v238_v21 = vld [vmem:[%s14739_s3 + $0x20] sm:$0xff]  ;;  %v239_v22 = vld [vmem:[%s14739_s3 + $0x28] sm:$0xff]  ;;  %v240_v23 = vld [vmem:[%s14739_s3 + $0x30] sm:$0xff] }
   0x9   :  { %320 = vmatpush.msra.mxu1 %v238_v21  ;;  %400 = vmatpush.msra.mxu2 %v239_v22  ;;  %v234_v24 = vld [vmem:[%s14739_s3] sm:$0xff]  ;;  %v235_v25 = vld [vmem:[%s14739_s3 + $0x8] sm:$0xff]  ;;  %v236_v26 = vld [vmem:[%s14739_s3 + $0x10] sm:$0xff] }
   0xa   :  { %145 = vmatpush.msra.mxu0 %v62_v4  ;;  %480 = vmatpush.msra.mxu3 %v240_v23  ;;  %v51_v27 = vld [vmem:[%s14738_s0 + $0x68] sm:$0xff]  ;;  %v52_v28 = vld [vmem:[%s14738_s0 + $0x70] sm:$0xff]  ;;  %v53_v29 = vld [vmem:[%s14738_s0 + $0x78] sm:$0xff] }
   0xb   :  { %321 = vmatpush.msra.mxu1 %v234_v24  ;;  %401 = vmatpush.msra.mxu2 %v235_v25  ;;  %v10450_v30 = vld [vmem:[%s14737_s10] ss:$0 sm:$0xff]  ;;  %v55_v36 = vld [vmem:[%s14738_s0 + $0x88] sm:$0xff]  ;;  %v56_v40 = vld [vmem:[%s14738_s0 + $0x90] sm:$0xff] }
   0xc   :  { %146 = vmatpush.msra.mxu0 %v61_v5  ;;  %481 = vmatpush.msra.mxu3 %v236_v26  ;;  %v54_v32 = vld [vmem:[%s14738_s0 + $0x80] sm:$0xff]  ;;  %v57_v44 = vld [vmem:[%s14738_s0 + $0x98] sm:$0xff] }
   0xd   :  { %v58_v48 = vld [vmem:[%s14738_s0 + $0xa0] sm:$0x3] }
   0xe   :  { %147 = vmatpush.msra.mxu0 %v60_v6 }
  0x10   :  { %148 = vmatpush.msra.mxu0 %v59_v7 }
  0x11   :  { %8181 = vmatmul.msk.f32.vlgmr.msra.gmra.mxu0 %vm69_vm0, %v38_v8 }
  0x19   :  { %8182 = vmatmul.msk.f32.gmra.mxu0 %vm69_vm0, %v39_v9 }
  0x21   :  { %8183 = vmatmul.msk.f32.gmra.mxu0 %vm69_vm0, %v40_v10 }
  0x29   :  { %8184 = vmatmul.msk.f32.gmra.mxu0 %vm69_vm0, %v41_v11 }
  0x31   :  { %8185 = vmatmul.msk.f32.gmra.mxu0 %vm69_vm0, %v42_v12 }
  0x39   :  { %8186 = vmatmul.msk.f32.gmra.mxu0 %vm69_vm0, %v43_v13 }
  0x41   :  { %8187 = vmatmul.msk.f32.gmra.mxu0 %vm69_vm0, %v44_v14 }
  0x49   :  { %8188 = vmatmul.msk.f32.gmra.mxu0 %vm69_vm0, %v45_v15 }
  0x51   :  { %8189 = vmatmul.msk.f32.gmra.mxu0 %vm69_vm0, %v46_v16 }
  0x59   :  { %8190 = vmatmul.msk.f32.gmra.mxu0 %vm69_vm0, %v47_v17 }
  0x61   :  { %8191 = vmatmul.msk.f32.gmra.mxu0 %vm69_vm0, %v48_v18 }
  0x69   :  { %8192 = vmatmul.msk.f32.gmra.mxu0 %vm69_vm0, %v49_v19 }
  0x71   :  { %8193 = vmatmul.msk.f32.gmra.mxu0 %vm69_vm0, %v50_v20 }
  0x79   :  { %8194 = vmatmul.msk.f32.gmra.mxu0 %vm69_vm0, %v51_v27 }
  0x81   :  { %8195 = vmatmul.msk.f32.gmra.mxu0 %vm69_vm0, %v52_v28  ;;  %v241_v28 = vld [vmem:[%s14739_s3 + $0x38] sm:$0xff] }
  0x82   :  { %560 = vmatpush.msrb.mxu1 %v241_v28 }
  0x89   :  { %8196 = vmatmul.msk.f32.gmra.mxu0 %vm69_vm0, %v53_v29 }
  0x8e   :  { %v150_v31 = vpop.f32.mrf.mxu0 }
  0x8f   :  { %v151_v33 = vadd.f32 %v10450_v30, %v150_v31  ;;  %v237_v31 = vld [vmem:[%s14739_s3 + $0x18] sm:$0xff]  ;;  %s10275_s3 = smov 96  }
  0x90   :  { %561 = vmatpush.msrb.mxu1 %v237_v31 }
  0x91   :  { %v10456_v34 = vmax.f32 %v151_v33, 0.0  ;;  %8197 = vmatmul.msk.f32.gmra.mxu0 %vm69_vm0, %v54_v32 }
  0x93   :  { %8202 = vmatmul.msk.f32.vlgmr.msra.gmra.mxu1 %vm242_vm1, %v10456_v34  ;;  %8223 = vmatmul.msk.f32.vlgmr.msra.gmra.mxu2 %vm242_vm1, %v10456_v34 }
  0x94   :  { %8244 = vmatmul.msk.f32.vlgmr.msra.gmra.mxu3 %vm242_vm1, %v10456_v34 }
  0x96   :  { %v153_v35 = vpop.f32.mrf.mxu0 }
  0x97   :  { %v154_v37 = vadd.f32 %v10450_v30, %v153_v35 }
  0x99   :  { %v10469_v38 = vmax.f32 %v154_v37, 0.0  ;;  %8198 = vmatmul.msk.f32.gmra.mxu0 %vm69_vm0, %v55_v36 }
  0x9b   :  { %8203 = vmatmul.msk.f32.gmra.mxu1 %vm242_vm1, %v10469_v38  ;;  %8224 = vmatmul.msk.f32.gmra.mxu2 %vm242_vm1, %v10469_v38 }
  0x9c   :  { %8245 = vmatmul.msk.f32.gmra.mxu3 %vm242_vm1, %v10469_v38 }
  0x9e   :  { %v156_v39 = vpop.f32.mrf.mxu0 }
  0x9f   :  { %v157_v41 = vadd.f32 %v10450_v30, %v156_v39 }
  0xa1   :  { %v10482_v42 = vmax.f32 %v157_v41, 0.0  ;;  %8199 = vmatmul.msk.f32.gmra.mxu0 %vm69_vm0, %v56_v40 }
  0xa3   :  { %8204 = vmatmul.msk.f32.gmra.mxu1 %vm242_vm1, %v10482_v42  ;;  %8225 = vmatmul.msk.f32.gmra.mxu2 %vm242_vm1, %v10482_v42 }
  0xa4   :  { %8246 = vmatmul.msk.f32.gmra.mxu3 %vm242_vm1, %v10482_v42 }
  0xa6   :  { %v159_v43 = vpop.f32.mrf.mxu0 }
  0xa7   :  { %v160_v45 = vadd.f32 %v10450_v30, %v159_v43 }
  0xa9   :  { %v10495_v46 = vmax.f32 %v160_v45, 0.0  ;;  %8200 = vmatmul.msk.f32.gmra.mxu0 %vm69_vm0, %v57_v44 }
  0xab   :  { %8205 = vmatmul.msk.f32.gmra.mxu1 %vm242_vm1, %v10495_v46  ;;  %8226 = vmatmul.msk.f32.gmra.mxu2 %vm242_vm1, %v10495_v46 }
  0xac   :  { %8247 = vmatmul.msk.f32.gmra.mxu3 %vm242_vm1, %v10495_v46 }
  0xae   :  { %v162_v47 = vpop.f32.mrf.mxu0 }
  0xaf   :  { %v163_v49 = vadd.f32 %v10450_v30, %v162_v47 }
  0xb1   :  { %v10508_v50 = vmax.f32 %v163_v49, 0.0  ;;  %8201 = vmatmul.msk.f32.gmra.mxu0 %vm69_vm0, %v58_v48 }
  0xb3   :  { %8206 = vmatmul.msk.f32.gmra.mxu1 %vm242_vm1, %v10508_v50  ;;  %8227 = vmatmul.msk.f32.gmra.mxu2 %vm242_vm1, %v10508_v50 }
  0xb4   :  { %8248 = vmatmul.msk.f32.gmra.mxu3 %vm242_vm1, %v10508_v50 }
  0xb6   :  { %v165_v51 = vpop.f32.mrf.mxu0 }
  0xb7   :  { %v166_v52 = vadd.f32 %v10450_v30, %v165_v51 }
  0xb9   :  { %v10518_v53 = vmax.f32 %v166_v52, 0.0 }
  0xbb   :  { %8207 = vmatmul.msk.f32.gmra.mxu1 %vm242_vm1, %v10518_v53  ;;  %8228 = vmatmul.msk.f32.gmra.mxu2 %vm242_vm1, %v10518_v53 }
  0xbc   :  { %8249 = vmatmul.msk.f32.gmra.mxu3 %vm242_vm1, %v10518_v53 }
  0xbe   :  { %v168_v54 = vpop.f32.mrf.mxu0 }
  0xbf   :  { %v169_v55 = vadd.f32 %v10450_v30, %v168_v54 }
  0xc1   :  { %v10527_v56 = vmax.f32 %v169_v55, 0.0 }
  0xc3   :  { %8208 = vmatmul.msk.f32.gmra.mxu1 %vm242_vm1, %v10527_v56  ;;  %8229 = vmatmul.msk.f32.gmra.mxu2 %vm242_vm1, %v10527_v56 }
  0xc4   :  { %8250 = vmatmul.msk.f32.gmra.mxu3 %vm242_vm1, %v10527_v56 }
  0xc6   :  { %v171_v57 = vpop.f32.mrf.mxu0 }
  0xc7   :  { %v172_v58 = vadd.f32 %v10450_v30, %v171_v57 }
  0xc9   :  { %v10536_v59 = vmax.f32 %v172_v58, 0.0 }
  0xcb   :  { %8209 = vmatmul.msk.f32.gmra.mxu1 %vm242_vm1, %v10536_v59  ;;  %8230 = vmatmul.msk.f32.gmra.mxu2 %vm242_vm1, %v10536_v59 }
  0xcc   :  { %8251 = vmatmul.msk.f32.gmra.mxu3 %vm242_vm1, %v10536_v59 }
  0xce   :  { %v174_v60 = vpop.f32.mrf.mxu0 }
  0xcf   :  { %v175_v61 = vadd.f32 %v10450_v30, %v174_v60 }
  0xd1   :  { %v10545_v62 = vmax.f32 %v175_v61, 0.0 }
  0xd3   :  { %8210 = vmatmul.msk.f32.gmra.mxu1 %vm242_vm1, %v10545_v62  ;;  %8231 = vmatmul.msk.f32.gmra.mxu2 %vm242_vm1, %v10545_v62 }
  0xd4   :  { %8252 = vmatmul.msk.f32.gmra.mxu3 %vm242_vm1, %v10545_v62 }
  0xd6   :  { %v177_v63 = vpop.f32.mrf.mxu0 }
  0xd7   :  { %v178_v0 = vadd.f32 %v10450_v30, %v177_v63 }
  0xd9   :  { %v10554_v1 = vmax.f32 %v178_v0, 0.0 }
  0xdb   :  { %8211 = vmatmul.msk.f32.gmra.mxu1 %vm242_vm1, %v10554_v1  ;;  %8232 = vmatmul.msk.f32.gmra.mxu2 %vm242_vm1, %v10554_v1 }
  0xdc   :  { %8253 = vmatmul.msk.f32.gmra.mxu3 %vm242_vm1, %v10554_v1 }
  0xde   :  { %v180_v2 = vpop.f32.mrf.mxu0 }
  0xdf   :  { %v181_v3 = vadd.f32 %v10450_v30, %v180_v2 }
  0xe1   :  { %v10563_v4 = vmax.f32 %v181_v3, 0.0 }
  0xe3   :  { %8212 = vmatmul.msk.f32.gmra.mxu1 %vm242_vm1, %v10563_v4  ;;  %8233 = vmatmul.msk.f32.gmra.mxu2 %vm242_vm1, %v10563_v4 }
  0xe4   :  { %8254 = vmatmul.msk.f32.gmra.mxu3 %vm242_vm1, %v10563_v4 }
  0xe6   :  { %v183_v5 = vpop.f32.mrf.mxu0 }
  0xe7   :  { %v184_v6 = vadd.f32 %v10450_v30, %v183_v5 }
  0xe9   :  { %v10572_v7 = vmax.f32 %v184_v6, 0.0 }
  0xeb   :  { %8213 = vmatmul.msk.f32.gmra.mxu1 %vm242_vm1, %v10572_v7  ;;  %8234 = vmatmul.msk.f32.gmra.mxu2 %vm242_vm1, %v10572_v7 }
  0xec   :  { %8255 = vmatmul.msk.f32.gmra.mxu3 %vm242_vm1, %v10572_v7 }
  0xee   :  { %v186_v8 = vpop.f32.mrf.mxu0 }
  0xef   :  { %v187_v9 = vadd.f32 %v10450_v30, %v186_v8 }
  0xf1   :  { %v10581_v10 = vmax.f32 %v187_v9, 0.0 }
  0xf3   :  { %8214 = vmatmul.msk.f32.gmra.mxu1 %vm242_vm1, %v10581_v10  ;;  %8235 = vmatmul.msk.f32.gmra.mxu2 %vm242_vm1, %v10581_v10 }
  0xf4   :  { %8256 = vmatmul.msk.f32.gmra.mxu3 %vm242_vm1, %v10581_v10 }
  0xf6   :  { %v189_v11 = vpop.f32.mrf.mxu0 }
  0xf7   :  { %v190_v12 = vadd.f32 %v10450_v30, %v189_v11 }
  0xf9   :  { %v10590_v13 = vmax.f32 %v190_v12, 0.0 }
  0xfb   :  { %8215 = vmatmul.msk.f32.gmra.mxu1 %vm242_vm1, %v10590_v13  ;;  %8236 = vmatmul.msk.f32.gmra.mxu2 %vm242_vm1, %v10590_v13 }
  0xfc   :  { %8257 = vmatmul.msk.f32.gmra.mxu3 %vm242_vm1, %v10590_v13 }
  0xfe   :  { %v192_v14 = vpop.f32.mrf.mxu0 }
  0xff   :  { %v193_v15 = vadd.f32 %v10450_v30, %v192_v14 }
 0x101   :  { %v10599_v16 = vmax.f32 %v193_v15, 0.0 }
 0x103   :  { %8216 = vmatmul.msk.f32.gmra.mxu1 %vm242_vm1, %v10599_v16  ;;  %8237 = vmatmul.msk.f32.gmra.mxu2 %vm242_vm1, %v10599_v16 }
 0x104   :  { %8258 = vmatmul.msk.f32.gmra.mxu3 %vm242_vm1, %v10599_v16 }
 0x106   :  { %v195_v17 = vpop.f32.mrf.mxu0 }
 0x107   :  { %v196_v18 = vadd.f32 %v10450_v30, %v195_v17 }
 0x109   :  { %v10608_v19 = vmax.f32 %v196_v18, 0.0 }
 0x10b   :  { %8217 = vmatmul.msk.f32.gmra.mxu1 %vm242_vm1, %v10608_v19  ;;  %8238 = vmatmul.msk.f32.gmra.mxu2 %vm242_vm1, %v10608_v19 }
 0x10c   :  { %8259 = vmatmul.msk.f32.gmra.mxu3 %vm242_vm1, %v10608_v19 }
 0x10e   :  { %v198_v20 = vpop.f32.mrf.mxu0 }
 0x10f   :  { %v199_v21 = vadd.f32 %v10450_v30, %v198_v20 }
 0x110   :  { %v10617_v22 = vpop.f32.mrf.mxu1 }
 0x111   :  { %v10619_v23 = vmax.f32 %v199_v21, 0.0 }
 0x113   :  { %8218 = vmatmul.msk.f32.gmra.mxu1 %vm242_vm1, %v10619_v23  ;;  %8239 = vmatmul.msk.f32.gmra.mxu2 %vm242_vm1, %v10619_v23 }
 0x114   :  { %8260 = vmatmul.msk.f32.gmra.mxu3 %vm242_vm1, %v10619_v23 }
 0x116   :  { %v201_v24 = vpop.f32.mrf.mxu0  ;;  %v10627_v25 = vpop.f32.mrf.mxu2 }
 0x117   :  { %14770 = vst [vmem:[#allocation2_spill] sm:$0xff] %v10627_v25  ;;  %v202_v26 = vadd.f32 %v10450_v30, %v201_v24  ;;  %v10761_v18 = vpop.f32.mrf.mxu3 }
 0x118   :  { %v10630_v27 = vpop.f32.mrf.mxu1  ;;  %14772 = vst [vmem:[#allocation4_spill] sm:$0xff] %v10761_v18 }
 0x119   :  { %v10635_v29 = vmax.f32 %v202_v26, 0.0 }
 0x11b   :  { %8219 = vmatmul.msk.f32.gmra.mxu1 %vm242_vm1, %v10635_v29  ;;  %8240 = vmatmul.msk.f32.gmra.mxu2 %vm242_vm1, %v10635_v29 }
 0x11c   :  { %8261 = vmatmul.msk.f32.gmra.mxu3 %vm242_vm1, %v10635_v29 }
 0x11e   :  { %v204_v32 = vpop.f32.mrf.mxu0  ;;  %v10646_v33 = vpop.f32.mrf.mxu2 }
 0x11f   :  { %14771 = vst [vmem:[#allocation3_spill] sm:$0xff] %v10646_v33  ;;  %v205_v35 = vadd.f32 %v10450_v30, %v204_v32  ;;  %v10776_v24 = vpop.f32.mrf.mxu3 }
 0x120   :  { %v10649_v36 = vpop.f32.mrf.mxu1 }
 0x121   :  { %v10651_v37 = vmax.f32 %v205_v35, 0.0 }
 0x123   :  { %8220 = vmatmul.msk.f32.gmra.mxu1 %vm242_vm1, %v10651_v37  ;;  %8241 = vmatmul.msk.f32.gmra.mxu2 %vm242_vm1, %v10651_v37 }
 0x124   :  { %8262 = vmatmul.msk.f32.gmra.mxu3 %vm242_vm1, %v10651_v37 }
 0x126   :  { %v207_v39 = vpop.f32.mrf.mxu0  ;;  %v10659_v40 = vpop.f32.mrf.mxu2 }
 0x127   :  { %v208_v41 = vadd.f32 %v10450_v30, %v207_v39 }
 0x128   :  { %v10662_v43 = vpop.f32.mrf.mxu1 }
 0x129   :  { %v10664_v44 = vmax.f32 %v208_v41, 0.0 }
 0x12b   :  { %8221 = vmatmul.msk.f32.gmra.mxu1 %vm242_vm1, %v10664_v44  ;;  %8242 = vmatmul.msk.f32.gmra.mxu2 %vm242_vm1, %v10664_v44 }
 0x12c   :  { %8263 = vmatmul.msk.f32.gmra.mxu3 %vm242_vm1, %v10664_v44 }
 0x12e   :  { %v210_v45 = vpop.f32.mrf.mxu0  ;;  %v10672_v47 = vpop.f32.mrf.mxu2 }
 0x12f   :  { %v211_v48 = vadd.f32 %v10450_v30, %v210_v45 }
 0x130   :  { %v10675_v49 = vpop.f32.mrf.mxu1 }
 0x131   :  { %v10677_v51 = vmax.f32 %v211_v48, 0.0 }
 0x133   :  { %8222 = vmatmul.msk.f32.gmra.mxu1 %vm242_vm1, %v10677_v51  ;;  %8243 = vmatmul.msk.f32.gmra.mxu2 %vm242_vm1, %v10677_v51 }
 0x134   :  { %8264 = vmatmul.msk.f32.gmra.mxu3 %vm242_vm1, %v10677_v51 }
 0x136   :  { %v10685_v52 = vpop.f32.mrf.mxu2 }
 0x138   :  { %v338_v54 = vpop.f32.mrf.mxu1 }
 0x139   :  { %v10704_v63 = vpack.i.bf16 %v10675_v49, %v338_v54 }
 0x13b   :  { %8265 = vmatmul.msk.f32.vlgmr.msrb.gmra.mxu1 %vm242_vm1, %v10456_v34 }
 0x13e   :  { %v10689_v30 = vpop.f32.mrf.mxu2 }
 0x140   :  { %v341_v55 = vpop.f32.mrf.mxu1 }
 0x143   :  { %8266 = vmatmul.msk.f32.gmra.mxu1 %vm242_vm1, %v10469_v38 }
 0x146   :  { %v10693_v57 = vpop.f32.mrf.mxu2 }
 0x148   :  { %v344_v58 = vpop.f32.mrf.mxu1 }
 0x149   :  { %v10695_v60 = vpack.i.bf16 %v341_v55, %v344_v58 }
 0x14b   :  { %8267 = vmatmul.msk.f32.gmra.mxu1 %vm242_vm1, %v10482_v42  ;;  %9528 = vrot.lane.b32.xlu2 %v10695_v60, %s10275_s3 }
 0x14e   :  { %v10701_v61 = vpop.f32.mrf.mxu2 }
 0x150   :  { %v347_v34 = vpop.f32.mrf.mxu1 }
 0x153   :  { %8268 = vmatmul.msk.f32.gmra.mxu1 %vm242_vm1, %v10495_v46  ;;  %9533 = vrot.lane.b32.xlu2 %v10704_v63, %s10275_s3 }
 0x156   :  { %v10710_v38 = vpop.f32.mrf.mxu2 }
 0x158   :  { %v350_v0 = vpop.f32.mrf.mxu1 }
 0x159   :  { %v10728_v8 = vpack.i.bf16 %v347_v34, %v350_v0 }
 0x15b   :  { %8269 = vmatmul.msk.f32.gmra.mxu1 %vm242_vm1, %v10508_v50 }
 0x15e   :  { %v10714_v42 = vpop.f32.mrf.mxu2 }
 0x160   :  { %v353_v2 = vpop.f32.mrf.mxu1 }
 0x163   :  { %8270 = vmatmul.msk.f32.gmra.mxu1 %vm242_vm1, %v10518_v53 }
 0x166   :  { %v10718_v3 = vpop.f32.mrf.mxu2 }
 0x168   :  { %v356_v5 = vpop.f32.mrf.mxu1 }
 0x169   :  { %v10720_v6 = vpack.i.bf16 %v353_v2, %v356_v5 }
 0x16b   :  { %8271 = vmatmul.msk.f32.gmra.mxu1 %vm242_vm1, %v10527_v56  ;;  %9518 = vrot.lane.b32.xlu1 %v10720_v6, %s10275_s3 }
 0x16e   :  { %v10726_v46 = vpop.f32.mrf.mxu2 }
 0x170   :  { %v359_v50 = vpop.f32.mrf.mxu1 }
 0x173   :  { %8272 = vmatmul.msk.f32.gmra.mxu1 %vm242_vm1, %v10536_v59  ;;  %9523 = vrot.lane.b32.xlu1 %v10728_v8, %s10275_s3 }
 0x176   :  { %v10734_v53 = vpop.f32.mrf.mxu2 }
 0x178   :  { %v362_v9 = vpop.f32.mrf.mxu1 }
 0x17b   :  { %8273 = vmatmul.msk.f32.gmra.mxu1 %vm242_vm1, %v10545_v62 }
 0x17e   :  { %v10738_v56 = vpop.f32.mrf.mxu2 }
 0x180   :  { %v365_v11 = vpop.f32.mrf.mxu1 }
 0x183   :  { %8274 = vmatmul.msk.f32.gmra.mxu1 %vm242_vm1, %v10554_v1  ;;  %v9512_v1 = vpack.i.bf16 %v359_v50, %v362_v9 }
 0x186   :  { %v10742_v12 = vpop.f32.mrf.mxu2 }
 0x188   :  { %v368_v14 = vpop.f32.mrf.mxu1 }
 0x189   :  { %876 = vmatpush.msrb.mxu0 %v368_v14  ;;  %v10744_v59 = vpack.i.bf16 %v365_v11, %v368_v14 }
 0x18b   :  { %8275 = vmatmul.msk.f32.gmra.mxu1 %vm242_vm1, %v10563_v4  ;;  %9508 = vrot.lane.b32.xlu0 %v10744_v59, %s10275_s3 }
 0x18c   :  { %877 = vmatpush.msrb.mxu0 %v365_v11 }
 0x18e   :  { %878 = vmatpush.msrb.mxu0 %v362_v9  ;;  %v10750_v62 = vpop.f32.mrf.mxu2 }
 0x190   :  { %879 = vmatpush.msrb.mxu0 %v359_v50  ;;  %v10752_v15 = vpop.f32.mrf.mxu1 }
 0x191   :  { %v9552_v35 = vpack.i.bf16 %v10752_v15, %v10617_v22 }
 0x192   :  { %880 = vmatpush.msrb.mxu0 %v356_v5 }
 0x193   :  { %8276 = vmatmul.msk.f32.gmra.mxu1 %vm242_vm1, %v10572_v7  ;;  %9513 = vrot.lane.b32.xlu0 %v9512_v1, %s10275_s3 }
 0x194   :  { %881 = vmatpush.msrb.mxu0 %v353_v2 }
 0x196   :  { %882 = vmatpush.msrb.mxu0 %v350_v0  ;;  %v10757_v4 = vpop.f32.mrf.mxu2 }
 0x198   :  { %883 = vmatpush.msrb.mxu0 %v347_v34  ;;  %v10759_v17 = vpop.f32.mrf.mxu1 }
 0x199   :  { %v9547_v39 = vpack.i.bf16 %v10759_v17, %v10630_v27 }
 0x19a   :  { %884 = vmatpush.msrb.mxu0 %v344_v58 }
 0x19b   :  { %8277 = vmatmul.msk.f32.gmra.mxu1 %vm242_vm1, %v10581_v10 }
 0x19c   :  { %885 = vmatpush.msrb.mxu0 %v341_v55 }
 0x19e   :  { %886 = vmatpush.msrb.mxu0 %v338_v54  ;;  %v10765_v20 = vpop.f32.mrf.mxu2  ;;  %v9662_v54 = vpack.i.bf16 %v10734_v53, %v10738_v56 }
 0x1a0   :  { %887 = vmatpush.msrb.mxu0 %v10675_v49  ;;  %v10768_v7 = vpop.f32.mrf.mxu1  ;;  %v10888_v49 = vpack.i.bf16 %v10685_v52, %v10689_v30 }
 0x1a1   :  { %v9537_v21 = vpack.i.bf16 %v10768_v7, %v10649_v36 }
 0x1a2   :  { %888 = vmatpush.msrb.mxu0 %v10662_v43 }
 0x1a3   :  { %8278 = vmatmul.msk.f32.gmra.mxu1 %vm242_vm1, %v10590_v13  ;;  %9538 = vrot.lane.b32.xlu2 %v9537_v21, %s10275_s3  ;;  %v10792_v13 = vpop.f32.mrf.mxu3 }
 0x1a4   :  { %889 = vmatpush.msrb.mxu0 %v10649_v36  ;;  %14773 = vst [vmem:[#allocation5_spill] sm:$0xff] %v10792_v13 }
 0x1a5   :  { %v10880_v48 = vpop.permute.xlu2 %9528 }
 0x1a6   :  { %890 = vmatpush.msrb.mxu0 %v10630_v27  ;;  %v10780_v10 = vpop.f32.mrf.mxu2 }
 0x1a7   :  { %v10906_v34 = vpack.i.bf16 %v10780_v10, %v10659_v40 }
 0x1a8   :  { %891 = vmatpush.msrb.mxu0 %v10617_v22  ;;  %v10783_v26 = vpop.f32.mrf.mxu1 }
 0x1a9   :  { %v9542_v28 = vpack.i.bf16 %v10783_v26, %v10662_v43 }
 0x1ab   :  { %8279 = vmatmul.msk.f32.gmra.mxu1 %vm242_vm1, %v10599_v16  ;;  %9558 = vrot.lane.b32.xlu2 %v10744_v59, %s10276_s13  ;;  %v10813_v41 = vpop.f32.mrf.mxu3 }
 0x1ac   :  { %9543 = vrot.lane.b32.xlu1 %v9542_v28, %s10275_s3  ;;  %14774 = vst [vmem:[#allocation6_spill] sm:$0xff] %v10813_v41 }
 0x1ad   :  { %v10899_v58 = vpop.permute.xlu2 %9533 }
 0x1ae   :  { %v10794_v31 = vpop.f32.mrf.mxu2 }
 0x1af   :  { %v10930_v14 = vpack.i.bf16 %v10794_v31, %v10672_v47 }
 0x1b0   :  { %v10796_v32 = vpop.f32.mrf.mxu1 }
 0x1b1   :  { %730 = vrot.lane.b32.xlu0 %v10796_v32, %s10275_s3 }
 0x1b3   :  { %8280 = vmatmul.msk.f32.gmra.mxu1 %vm242_vm1, %v10608_v19  ;;  %9573 = vrot.lane.b32.xlu2 %v10728_v8, %s10276_s13  ;;  %v9587_v19 = vpack.i.bf16 %v10649_v36, %v10662_v43  ;;  %v10828_v45 = vpop.f32.mrf.mxu3  ;;  %v10876_v43 = vpack.i.bf16 %v10718_v3, %v10726_v46 }
 0x1b4   :  { %9553 = vrot.lane.b32.xlu1 %v9552_v35, %s10275_s3  ;;  %14775 = vst [vmem:[#allocation7_spill] sm:$0xff] %v10828_v45 }
 0x1b6   :  { %v10807_v16 = vpop.f32.mrf.mxu2 }
 0x1b7   :  { %8346 = vmatpush.msk.msra.mxu1 %vm774_vm2, %v10807_v16 }
 0x1b9   :  { %1428 = vmatpush.msra.mxu1 %v10794_v31  ;;  %9548 = vrot.lane.b32.xlu0 %v9547_v39, %s10275_s3  ;;  %v10945_v31 = vpack.i.bf16 %v10757_v4, %v10627_v25 }
 0x1bb   :  { %8281 = vmatmul.msk.f32.gmra.mxu1 %vm242_vm1, %v10619_v23  ;;  %9588 = vrot.lane.b32.xlu2 %v9587_v19, %s10276_s13  ;;  %v10841_v23 = vpop.f32.mrf.mxu3 }
 0x1bc   :  { %1429 = vmatpush.msra.mxu1 %v10780_v10  ;;  %9568 = vrot.lane.b32.xlu1 %v10720_v6, %s10276_s13  ;;  %14776 = vst [vmem:[#allocation8_spill] sm:$0xff] %v10841_v23 }
 0x1be   :  { %1430 = vmatpush.msra.mxu1 %v10765_v20 }
 0x1c0   :  { %1431 = vmatpush.msra.mxu1 %v10757_v4 }
 0x1c1   :  { %9563 = vrot.lane.b32.xlu0 %v9512_v1, %s10276_s13 }
 0x1c3   :  { %8282 = vmatmul.msk.f32.gmra.mxu1 %vm242_vm1, %v10635_v29  ;;  %9603 = vrot.lane.b32.xlu2 %v9512_v1, %s10277_s14  ;;  %v9592_v29 = vpack.i.bf16 %v10617_v22, %v10630_v27  ;;  %v10853_v36 = vpop.f32.mrf.mxu3  ;;  %v9652_v27 = vpack.i.bf16 %v10752_v15, %v10759_v17 }
 0x1c4   :  { %9583 = vrot.lane.b32.xlu1 %v10704_v63, %s10276_s13  ;;  %14777 = vst [vmem:[#allocation9_spill] sm:$0xff] %v10853_v36 }
 0x1c9   :  { %9578 = vrot.lane.b32.xlu0 %v10695_v60, %s10276_s13 }
 0x1cb   :  { %8283 = vmatmul.msk.f32.gmra.mxu1 %vm242_vm1, %v10651_v37  ;;  %9618 = vrot.lane.b32.xlu2 %v10695_v60, %s10277_s14  ;;  %v9637_v37 = vpack.i.bf16 %v10768_v7, %v10783_v26  ;;  %v10863_v22 = vpop.f32.mrf.mxu3  ;;  %v9657_v60 = vpack.i.bf16 %v10742_v12, %v10750_v62 }
 0x1cc   :  { %9598 = vrot.lane.b32.xlu1 %v10744_v59, %s10277_s14  ;;  %14778 = vst [vmem:[#allocation10_spill] sm:$0xff] %v10863_v22 }
 0x1d1   :  { %9593 = vrot.lane.b32.xlu0 %v9592_v29, %s10276_s13  ;;  %v10951_v29 = vld [vmem:[%s14740_s2] sm:$0xff] }
 0x1d3   :  { %8284 = vmatmul.msk.f32.gmra.mxu1 %vm242_vm1, %v10664_v44  ;;  %9628 = vrot.lane.b32.xlu2 %v9542_v28, %s10277_s14  ;;  %v10878_v44 = vpop.f32.mrf.mxu3 }
 0x1d4   :  { %9613 = vrot.lane.b32.xlu1 %v10728_v8, %s10277_s14  ;;  %14779 = vst [vmem:[#allocation11_spill] sm:$0xff] %v10878_v44  ;;  %v10924_v8 = vpack.i.bf16 %v10710_v38, %v10714_v42 }
 0x1d9   :  { %9608 = vrot.lane.b32.xlu0 %v10720_v6, %s10277_s14 }
 0x1db   :  { %8285 = vmatmul.msk.f32.gmra.mxu1 %vm242_vm1, %v10677_v51  ;;  %9638 = vrot.lane.b32.xlu2 %v9637_v37, %s10276_s13  ;;  %v10890_v51 = vpop.f32.mrf.mxu1  ;;  %v10896_v55 = vpop.f32.mrf.mxu3 }
 0x1dc   :  { %9633 = vrot.lane.b32.xlu1 %v9537_v21, %s10277_s14  ;;  %14780 = vst [vmem:[#allocation12_spill] sm:$0xff] %v10890_v51 }
 0x1dd   :  { %14781 = vst [vmem:[#allocation13_spill] sm:$0xff] %v10896_v55  ;;  %v9519_v11 = vpop.permute.xlu1 %9518 }
 0x1de   :  { %v9521_v37 = vunpack.i.h.bf16 %v9519_v11 }
 0x1e1   :  { %9623 = vrot.lane.b32.xlu0 %v10704_v63, %s10277_s14  ;;  %v10910_v63 = vpack.i.bf16 %v10693_v57, %v10701_v61 }
 0x1e3   :  { %9653 = vrot.lane.b32.xlu2 %v9652_v27, %s10276_s13  ;;  %v10914_v0 = vpop.f32.mrf.mxu1  ;;  %v10920_v6 = vpop.f32.mrf.mxu3  ;;  %v633_v27 = vunpack.c.l.bf16 %v10951_v29 }
 0x1e4   :  { %1204 = vrot.lane.b32.xlu1 %v10796_v32, %s10277_s14  ;;  %14782 = vst [vmem:[#allocation14_spill] sm:$0xff] %v10914_v0 }
 0x1e5   :  { %14783 = vst [vmem:[#allocation15_spill] sm:$0xff] %v10920_v6  ;;  %v9524_v19 = vpop.permute.xlu1 %9523  ;;  %892 = vmatmul.f32.vlgmr.msrb.gmra.mxu0 %v633_v27  ;;  %v9536_v27 = vunpack.i.h.bf16 %v10899_v58 }
 0x1e6   :  { %v9525_v4 = vunpack.i.l.bf16 %v9524_v19 }
 0x1e9   :  { %1014 = vrot.lane.b32.xlu0 %v10796_v32, %s10276_s13 }
 0x1eb   :  { %9668 = vrot.lane.b32.xlu2 %v10876_v43, %s10275_s3  ;;  %v10937_v10 = vpop.f32.mrf.mxu1  ;;  %v10939_v28 = vpop.f32.mrf.mxu3 }
 0x1ec   :  { %9648 = vrot.lane.b32.xlu1 %v9552_v35, %s10277_s14  ;;  %14784 = vst [vmem:[#allocation16_spill] sm:$0xff] %v10937_v10 }
 0x1ed   :  { %14785 = vst [vmem:[#allocation17_spill] sm:$0xff] %v10939_v28 }
 0x1f1   :  { %9643 = vrot.lane.b32.xlu0 %v9547_v39, %s10277_s14  ;;  %v9520_v39 = vunpack.i.l.bf16 %v9519_v11  ;;  %v9530_v11 = vunpack.i.l.bf16 %v10880_v48 }
 0x1f3   :  { %9683 = vrot.lane.b32.xlu2 %v10888_v49, %s10275_s3 }
 0x1f4   :  { %9663 = vrot.lane.b32.xlu1 %v9662_v54, %s10275_s3 }
 0x1f9   :  { %9658 = vrot.lane.b32.xlu0 %v9657_v60, %s10275_s3 }
 0x1fb   :  { %9693 = vrot.lane.b32.xlu2 %v10906_v34, %s10275_s3 }
 0x1fc   :  { %9678 = vrot.lane.b32.xlu1 %v10910_v63, %s10275_s3 }
 0x1fd   :  { %v9509_v2 = vpop.permute.xlu0 %9508  ;;  %v10918_v5 = vpop.permute.xlu2 %9538 }
 0x1fe   :  { %v9510_v50 = vunpack.i.l.bf16 %v9509_v2  ;;  %v9511_v9 = vunpack.i.h.bf16 %v9509_v2 }
 0x200   :  { %777 = vmatpush.msrb.mxu2 %v9510_v50  ;;  %v10960_v50 = vpack.i.bf16 %v10765_v20, %v10646_v33  ;;  %v9531_v20 = vunpack.i.h.bf16 %v10880_v48 }
 0x201   :  { %9673 = vrot.lane.b32.xlu0 %v10924_v8, %s10275_s3 }
 0x202   :  { %778 = vmatpush.msrb.mxu2 %v9511_v9  ;;  %v9526_v9 = vunpack.i.h.bf16 %v9524_v19 }
 0x203   :  { %9708 = vrot.lane.b32.xlu2 %v9657_v60, %s10277_s14 }
 0x204   :  { %9688 = vrot.lane.b32.xlu1 %v10930_v14, %s10275_s3 }
 0x205   :  { %v9514_v59 = vpop.permute.xlu0 %9513  ;;  %v10935_v1 = vpop.permute.xlu2 %9558 }
 0x206   :  { %v9515_v21 = vunpack.i.l.bf16 %v9514_v59  ;;  %v9516_v35 = vunpack.i.h.bf16 %v9514_v59  ;;  %v10962_v59 = vpop.f32.mrf.mxu1  ;;  %v9560_v33 = vunpack.i.l.bf16 %v10935_v1 }
 0x207   :  { %14786 = vst [vmem:[#allocation18_spill] sm:$0xff] %v10962_v59 }
 0x208   :  { %779 = vmatpush.msrb.mxu2 %v9515_v21  ;;  %v10966_v21 = vpop.f32.mrf.mxu3 }
 0x209   :  { %1543 = vrot.lane.b32.xlu0 %v10807_v16, %s10275_s3 }
 0x20a   :  { %780 = vmatpush.msrb.mxu2 %v9516_v35  ;;  %v10976_v35 = vld [vmem:[%s14740_s2 + $0x8] sm:$0xff] }
 0x20b   :  { %9723 = vrot.lane.b32.xlu2 %v9662_v54, %s10276_s13  ;;  %v635_v19 = vunpack.c.l.bf16 %v10976_v35 }
 0x20c   :  { %9703 = vrot.lane.b32.xlu1 %v10945_v31, %s10275_s3  ;;  %781 = vmatpush.msrb.mxu2 %v9520_v39 }
 0x20d   :  { %v10956_v2 = vpop.permute.xlu2 %9573  ;;  %895 = vmatmul.f32.gmra.mxu0 %v635_v19 }
 0x20e   :  { %782 = vmatpush.msrb.mxu2 %v9521_v37  ;;  %v9535_v37 = vunpack.i.l.bf16 %v10899_v58  ;;  %v10984_v48 = vpop.f32.mrf.mxu1 }
 0x20f   :  { %14787 = vst [vmem:[#allocation19_spill] sm:$0xff] %v10984_v48 }
 0x210   :  { %783 = vmatpush.msrb.mxu2 %v9525_v4  ;;  %v10995_v4 = vld [vmem:[%s14740_s2 + $0x10] sm:$0xff] }
 0x211   :  { %9698 = vrot.lane.b32.xlu0 %v10960_v50, %s10275_s3  ;;  %v637_v58 = vunpack.c.l.bf16 %v10995_v4 }
 0x212   :  { %784 = vmatpush.msrb.mxu2 %v9526_v9 }
 0x213   :  { %9738 = vrot.lane.b32.xlu2 %v10924_v8, %s10277_s14 }
 0x214   :  { %9718 = vrot.lane.b32.xlu1 %v9662_v54, %s10277_s14  ;;  %785 = vmatpush.msrb.mxu2 %v9530_v11  ;;  %v10988_v54 = vpop.f32.mrf.mxu3 }
 0x215   :  { %v10978_v39 = vpop.permute.xlu2 %9588  ;;  %898 = vmatmul.f32.gmra.mxu0 %v637_v58 }
 0x216   :  { %786 = vmatpush.msrb.mxu2 %v9531_v20  ;;  %v9540_v20 = vunpack.i.l.bf16 %v10918_v5  ;;  %v11013_v58 = vpop.f32.mrf.mxu1 }
 0x217   :  { %14788 = vst [vmem:[#allocation20_spill] sm:$0xff] %v11013_v58 }
 0x218   :  { %787 = vmatpush.msrb.mxu2 %v9535_v37 }
 0x219   :  { %9713 = vrot.lane.b32.xlu0 %v9657_v60, %s10276_s13 }
 0x21a   :  { %788 = vmatpush.msrb.mxu2 %v9536_v27  ;;  %v11011_v27 = vld [vmem:[%s14740_s2 + $0x18] sm:$0xff] }
 0x21b   :  { %9753 = vrot.lane.b32.xlu2 %v10910_v63, %s10276_s13 }
 0x21c   :  { %9733 = vrot.lane.b32.xlu1 %v10876_v43, %s10276_s13 }
 0x21d   :  { %v10997_v9 = vpop.permute.xlu2 %9603 }
 0x21e   :  { %v9544_v60 = vpop.permute.xlu1 %9543  ;;  %v11038_v25 = vpop.f32.mrf.mxu1 }
 0x21f   :  { %v9545_v11 = vunpack.i.l.bf16 %v9544_v60  ;;  %v9546_v37 = vunpack.i.h.bf16 %v9544_v60  ;;  %v8286_v60 = vld [vmem:[%s14740_s2 + $0x38] sm:$0xff]  ;;  %14789 = vst [vmem:[#allocation21_spill] sm:$0xff] %v11038_v25 }
 0x220   :  { %v656_v58 = vunpack.c.h.bf16 %v8286_v60 }
 0x221   :  { %789 = vmatpush.msrb.mxu2 %v9545_v11  ;;  %9728 = vrot.lane.b32.xlu0 %v10876_v43, %s10277_s14  ;;  %v639_v11 = vunpack.c.l.bf16 %v11011_v27 }
 0x223   :  { %790 = vmatpush.msrb.mxu2 %v9540_v20  ;;  %9763 = vrot.lane.b32.xlu2 %v10888_v49, %s10276_s13  ;;  %v731_v19 = vpop.permute.xlu0 %730  ;;  %v11018_v20 = vpop.f32.mrf.mxu3 }
 0x224   :  { %9748 = vrot.lane.b32.xlu1 %v10910_v63, %s10277_s14  ;;  %8293 = vmatpush.msk.msrb.mxu3 %vm774_vm2, %v731_v19  ;;  %v9541_v63 = vunpack.i.h.bf16 %v10918_v5  ;;  %v11033_v5 = vld [vmem:[%s14740_s2 + $0x20] sm:$0xff] }
 0x225   :  { %v11015_v43 = vpop.permute.xlu2 %9618  ;;  %901 = vmatmul.f32.gmra.mxu0 %v639_v11 }
 0x226   :  { %v9554_v0 = vpop.permute.xlu1 %9553  ;;  %827 = vmatpush.msrb.mxu3 %v9546_v37 }
 0x227   :  { %v9555_v10 = vunpack.i.l.bf16 %v9554_v0  ;;  %v9556_v48 = vunpack.i.h.bf16 %v9554_v0 }
 0x228   :  { %828 = vmatpush.msrb.mxu3 %v9541_v63  ;;  %v641_v63 = vunpack.c.l.bf16 %v11033_v5 }
 0x229   :  { %9743 = vrot.lane.b32.xlu0 %v10924_v8, %s10276_s13  ;;  %v655_v8 = vunpack.c.l.bf16 %v8286_v60 }
 0x22b   :  { %9773 = vrot.lane.b32.xlu2 %v10906_v34, %s10277_s14  ;;  %v9549_v19 = vpop.permute.xlu0 %9548 }
 0x22c   :  { %9783 = vrot.lane.b32.xlu1 %v10960_v50, %s10277_s14  ;;  %v9550_v51 = vunpack.i.l.bf16 %v9549_v19  ;;  %v9551_v37 = vunpack.i.h.bf16 %v9549_v19  ;;  %v11040_v19 = vpop.f32.mrf.mxu3 }
 0x22d   :  { %v11035_v11 = vpop.permute.xlu2 %9628  ;;  %904 = vmatmul.f32.gmra.mxu0 %v641_v63 }
 0x22e   :  { %v9569_v59 = vpop.permute.xlu1 %9568  ;;  %791 = vmatpush.msrb.mxu2 %v9550_v51  ;;  %829 = vmatpush.msrb.mxu3 %v9551_v37  ;;  %v9561_v51 = vunpack.i.h.bf16 %v10935_v1 }
 0x22f   :  { %v9570_v37 = vunpack.i.l.bf16 %v9569_v59 }
 0x230   :  { %792 = vmatpush.msrb.mxu2 %v9555_v10  ;;  %830 = vmatpush.msrb.mxu3 %v9556_v48  ;;  %v8287_v10 = vld [vmem:[%s14740_s2 + $0x40] sm:$0xff] }
 0x231   :  { %9758 = vrot.lane.b32.xlu0 %v10888_v49, %s10277_s14  ;;  %793 = vmatmul.f32.vlgmr.msrb.gmra.mxu2 %v655_v8  ;;  %v657_v48 = vunpack.c.l.bf16 %v8287_v10 }
 0x232   :  { %8294 = vmatmul.msk.f32.vlgmr.msrb.gmra.mxu3 %vm752_vm3, %v656_v58  ;;  %8301 = vmatpush.msk.msra.mxu2 %vm774_vm2, %v10796_v32  ;;  %v11060_v32 = vld [vmem:[%s14740_s2 + $0x28] sm:$0xff]  ;;  %v658_v58 = vunpack.c.h.bf16 %v8287_v10 }
 0x233   :  { %1059 = vmatpush.msra.mxu3 %v9560_v33  ;;  %9788 = vrot.lane.b32.xlu2 %v10906_v34, %s10276_s13  ;;  %v9564_v0 = vpop.permute.xlu0 %9563  ;;  %v643_v34 = vunpack.c.l.bf16 %v11060_v32 }
 0x234   :  { %1923 = vrot.lane.b32.xlu1 %v10807_v16, %s10277_s14  ;;  %v9565_v49 = vunpack.i.l.bf16 %v9564_v0  ;;  %926 = vmatpush.msra.mxu2 %v10783_v26  ;;  %v9566_v60 = vunpack.i.h.bf16 %v9564_v0  ;;  %v11069_v26 = vpop.f32.mrf.mxu1  ;;  %v11073_v8 = vpop.f32.mrf.mxu3 }
 0x235   :  { %1060 = vmatpush.msra.mxu3 %v9561_v51  ;;  %v11062_v33 = vpop.permute.xlu2 %9638  ;;  %907 = vmatmul.f32.gmra.mxu0 %v643_v34  ;;  %14790 = vst [vmem:[#allocation22_spill] sm:$0xff] %v11069_v26  ;;  %v11087_v51 = vld [vmem:[%s14740_s2 + $0x30] sm:$0x11]  ;;  %v9576_v34 = vunpack.i.h.bf16 %v10956_v2 }
 0x236   :  { %v11065_v1 = vpop.permute.xlu1 %9583  ;;  %927 = vmatpush.msra.mxu2 %v10768_v7  ;;  %v9571_v7 = vunpack.i.h.bf16 %v9569_v59  ;;  %v9575_v59 = vunpack.i.l.bf16 %v10956_v2  ;;  %v645_v0 = vunpack.c.l.bf16 %v11087_v51  ;;  %v9605_v2 = vunpack.i.l.bf16 %v10997_v9 }
 0x237   :  { %1061 = vmatpush.msra.mxu3 %v9565_v49 }
 0x238   :  { %928 = vmatpush.msra.mxu2 %v10759_v17  ;;  %v8288_v17 = vld [vmem:[%s14740_s2 + $0x48] sm:$0xff] }
 0x239   :  { %1062 = vmatpush.msra.mxu3 %v9566_v60  ;;  %9768 = vrot.lane.b32.xlu0 %v10930_v14, %s10277_s14  ;;  %v659_v49 = vunpack.c.l.bf16 %v8288_v17 }
 0x23a   :  { %796 = vmatmul.f32.gmra.mxu2 %v657_v48  ;;  %8295 = vmatmul.msk.f32.gmra.mxu3 %vm752_vm3, %v658_v58  ;;  %v660_v58 = vunpack.c.h.bf16 %v8288_v17 }
 0x23b   :  { %929 = vmatpush.msra.mxu2 %v10752_v15  ;;  %1063 = vmatpush.msra.mxu3 %v9570_v37  ;;  %v9579_v63 = vpop.permute.xlu0 %9578  ;;  %v11098_v37 = vpack.i.bf16 %v10920_v6, %v10939_v28 }
 0x23c   :  { %9803 = vrot.lane.b32.xlu2 %v10945_v31, %s10276_s13  ;;  %1733 = vrot.lane.b32.xlu1 %v10807_v16, %s10276_s13  ;;  %v9580_v60 = vunpack.i.l.bf16 %v9579_v63 }
 0x23d   :  { %1064 = vmatpush.msra.mxu3 %v9571_v7  ;;  %v11090_v15 = vpop.permute.xlu2 %9653  ;;  %910 = vmatmul.f32.gmra.mxu0 %v645_v0  ;;  %v11100_v7 = vpop.f32.mrf.mxu1  ;;  %v9581_v0 = vunpack.i.h.bf16 %v9579_v63 }
 0x23e   :  { %v9599_v10 = vpop.permute.xlu1 %9598  ;;  %14791 = vst [vmem:[#allocation23_spill] sm:$0xff] %v11100_v7 }
 0x23f   :  { %v9600_v48 = vunpack.i.l.bf16 %v9599_v10  ;;  %1065 = vmatpush.msra.mxu3 %v9575_v59  ;;  %v9601_v16 = vunpack.i.h.bf16 %v9599_v10  ;;  %v11104_v59 = vpop.f32.mrf.mxu3  ;;  %v9606_v10 = vunpack.i.h.bf16 %v10997_v9  ;;  %v11128_v9 = vpack.i.bf16 %v10966_v21, %v10988_v54 }
 0x241   :  { %1066 = vmatpush.msra.mxu3 %v9576_v34  ;;  %1249 = vmatpush.msrb.mxu2 %v9600_v48  ;;  %v9585_v34 = vunpack.i.l.bf16 %v11065_v1 }
 0x242   :  { %9778 = vrot.lane.b32.xlu0 %v10930_v14, %s10276_s13  ;;  %799 = vmatmul.f32.gmra.mxu2 %v659_v49  ;;  %v8289_v14 = vld [vmem:[%s14740_s2 + $0x50] sm:$0xff] }
 0x243   :  { %8296 = vmatmul.msk.f32.gmra.mxu3 %vm752_vm3, %v660_v58  ;;  %1250 = vmatpush.msrb.mxu2 %v9601_v16  ;;  %v9594_v17 = vpop.permute.xlu0 %9593  ;;  %v661_v48 = vunpack.c.l.bf16 %v8289_v14  ;;  %v662_v58 = vunpack.c.h.bf16 %v8289_v14  ;;  %v9586_v16 = vunpack.i.h.bf16 %v11065_v1  ;;  %v9591_v1 = vunpack.i.h.bf16 %v10978_v39 }
 0x244   :  { %1067 = vmatpush.msra.mxu3 %v9580_v60  ;;  %9818 = vrot.lane.b32.xlu2 %v11098_v37, %s10275_s3  ;;  %v9590_v60 = vunpack.i.l.bf16 %v10978_v39 }
 0x245   :  { %9798 = vrot.lane.b32.xlu1 %v10960_v50, %s10276_s13  ;;  %1251 = vmatpush.msrb.mxu2 %v9605_v2  ;;  %v11114_v49 = vpop.permute.xlu2 %9668  ;;  %v11123_v50 = vpack.i.bf16 %v10828_v45, %v10841_v23  ;;  %v11136_v14 = vpop.f32.mrf.mxu1  ;;  %v9596_v45 = vunpack.i.h.bf16 %v9594_v17  ;;  %v11148_v23 = vpack.i.bf16 %v11018_v20, %v11040_v19 }
 0x246   :  { %1068 = vmatpush.msra.mxu3 %v9581_v0  ;;  %v9614_v63 = vpop.permute.xlu1 %9613 }
 0x247   :  { %1252 = vmatpush.msrb.mxu2 %v9606_v10  ;;  %v9615_v6 = vunpack.i.l.bf16 %v9614_v63 }
 0x248   :  { %1069 = vmatpush.msra.mxu3 %v9585_v34  ;;  %v11142_v34 = vpop.f32.mrf.mxu3 }
 0x24a   :  { %1070 = vmatpush.msra.mxu3 %v9586_v16  ;;  %9793 = vrot.lane.b32.xlu0 %v10945_v31, %s10277_s14  ;;  %v8290_v31 = vld [vmem:[%s14740_s2 + $0x58] sm:$0xff] }
 0x24b   :  { %802 = vmatmul.f32.gmra.mxu2 %v661_v48  ;;  %8297 = vmatmul.msk.f32.gmra.mxu3 %vm752_vm3, %v662_v58  ;;  %v9609_v2 = vpop.permute.xlu0 %9608  ;;  %v9595_v48 = vunpack.i.l.bf16 %v9594_v17  ;;  %v663_v16 = vunpack.c.l.bf16 %v8290_v31  ;;  %v11159_v17 = vpack.i.bf16 %v10853_v36, %v10863_v22  ;;  %v9621_v36 = vunpack.i.h.bf16 %v11015_v43 }
 0x24c   :  { %1071 = vmatpush.msra.mxu3 %v9590_v60  ;;  %9833 = vrot.lane.b32.xlu2 %v11123_v50, %s10275_s3  ;;  %v9610_v0 = vunpack.i.l.bf16 %v9609_v2  ;;  %v9611_v39 = vunpack.i.h.bf16 %v9609_v2  ;;  %v664_v60 = vunpack.c.h.bf16 %v8290_v31  ;;  %v11154_v2 = vpack.i.bf16 %v11142_v34, %v10792_v13 }
 0x24d   :  { %9813 = vrot.lane.b32.xlu1 %v11128_v9, %s10275_s3  ;;  %v11140_v10 = vpop.permute.xlu2 %9683  ;;  %v11180_v22 = vpack.i.bf16 %v10878_v44, %v10896_v55  ;;  %v8309_v44 = vld [vmem:[%s14740_s2 + $0x70] sm:$0xff] }
 0x24e   :  { %1072 = vmatpush.msra.mxu3 %v9591_v1  ;;  %v11144_v58 = vpop.permute.xlu1 %9633  ;;  %1253 = vmatpush.msrb.mxu2 %v9610_v0  ;;  %v9616_v0 = vunpack.i.h.bf16 %v9614_v63 }
 0x250   :  { %1073 = vmatpush.msra.mxu3 %v9595_v48  ;;  %1254 = vmatpush.msrb.mxu2 %v9611_v39  ;;  %v9620_v48 = vunpack.i.l.bf16 %v11015_v43  ;;  %v11175_v13 = vpop.f32.mrf.mxu3 }
 0x252   :  { %1074 = vmatpush.msra.mxu3 %v9596_v45  ;;  %9808 = vrot.lane.b32.xlu0 %v11148_v23, %s10275_s3  ;;  %v8291_v45 = vld [vmem:[%s14740_s2 + $0x60] sm:$0xff] }
 0x253   :  { %805 = vmatmul.f32.gmra.mxu2 %v663_v16  ;;  %8298 = vmatmul.msk.f32.gmra.mxu3 %vm752_vm3, %v664_v60  ;;  %v9624_v1 = vpop.permute.xlu0 %9623  ;;  %v11171_v16 = vpop.f32.mrf.mxu1  ;;  %v665_v63 = vunpack.c.l.bf16 %v8291_v45  ;;  %v666_v60 = vunpack.c.h.bf16 %v8291_v45  ;;  %v11188_v45 = vpack.i.bf16 %v11175_v13, %v10813_v41 }
 0x254   :  { %1255 = vmatpush.msrb.mxu2 %v9615_v6  ;;  %9843 = vrot.lane.b32.xlu2 %v11154_v2, %s10275_s3  ;;  %v9631_v6 = vunpack.i.h.bf16 %v11035_v11  ;;  %v9625_v28 = vunpack.i.l.bf16 %v9624_v1 }
 0x255   :  { %9828 = vrot.lane.b32.xlu1 %v11159_v17, %s10275_s3  ;;  %v11168_v31 = vpop.permute.xlu2 %9693 }
 0x256   :  { %1256 = vmatpush.msrb.mxu2 %v9616_v0  ;;  %v1205_v39 = vpop.permute.xlu1 %1204  ;;  %v9636_v0 = vunpack.i.h.bf16 %v11144_v58 }
 0x257   :  { %8331 = vmatpush.msk.msrb.mxu3 %vm774_vm2, %v1205_v39  ;;  %v8292_v39 = vld [vmem:[%s14740_s2 + $0x68] sm:$0x11] }
 0x258   :  { %1257 = vmatpush.msrb.mxu2 %v9620_v48  ;;  %v9626_v48 = vunpack.i.h.bf16 %v9624_v1  ;;  %v667_v1 = vunpack.c.l.bf16 %v8292_v39  ;;  %v668_v41 = vunpack.c.h.bf16 %v8292_v39  ;;  %v9656_v39 = vunpack.i.h.bf16 %v11090_v15 }
 0x259   :  { %1299 = vmatpush.msrb.mxu3 %v9631_v6  ;;  %v9630_v6 = vunpack.i.l.bf16 %v11035_v11  ;;  %v11209_v11 = vpop.f32.mrf.mxu3 }
 0x25a   :  { %1258 = vmatpush.msrb.mxu2 %v9621_v36  ;;  %9823 = vrot.lane.b32.xlu0 %v11180_v22, %s10275_s3 }
 0x25b   :  { %808 = vmatmul.f32.gmra.mxu2 %v665_v63  ;;  %8299 = vmatmul.msk.f32.gmra.mxu3 %vm752_vm3, %v666_v60  ;;  %v1015_v43 = vpop.permute.xlu0 %1014  ;;  %v9640_v63 = vunpack.i.l.bf16 %v11062_v33  ;;  %v9641_v60 = vunpack.i.h.bf16 %v11062_v33  ;;  %v11207_v55 = vpop.f32.mrf.mxu1  ;;  %v11216_v33 = vpack.i.bf16 %v11073_v8, %v10761_v18  ;;  %v634_v18 = vunpack.c.h.bf16 %v10951_v29 }
 0x25c   :  { %1259 = vmatpush.msrb.mxu2 %v9625_v28  ;;  %1300 = vmatpush.msrb.mxu3 %v9636_v0  ;;  %v9635_v0 = vunpack.i.l.bf16 %v11144_v58 }
 0x25d   :  { %9858 = vrot.lane.b32.xlu2 %v11148_v23, %s10277_s14  ;;  %9838 = vrot.lane.b32.xlu1 %v11188_v45, %s10275_s3  ;;  %v11197_v36 = vpop.permute.xlu2 %9708 }
 0x25e   :  { %8316 = vmatpush.msk.msra.mxu0 %vm774_vm2, %v1015_v43  ;;  %1260 = vmatpush.msrb.mxu2 %v9626_v48  ;;  %v9649_v28 = vpop.permute.xlu1 %9648  ;;  %v9655_v43 = vunpack.i.l.bf16 %v11090_v15  ;;  %v961_v48 = vunpack.c.h.bf16 %v8309_v44 }
 0x25f   :  { %v9651_v15 = vunpack.i.h.bf16 %v9649_v28 }
 0x260   :  { %1109 = vmatpush.msra.mxu0 %v9640_v63  ;;  %1261 = vmatpush.msrb.mxu2 %v9630_v6 }
 0x262   :  { %1110 = vmatpush.msra.mxu0 %v9641_v60  ;;  %1262 = vmatpush.msrb.mxu2 %v9635_v0  ;;  %v9650_v60 = vunpack.i.l.bf16 %v9649_v28 }
 0x263   :  { %2262 = vrot.lane.b32.xlu0 %v11209_v11, %s10275_s3  ;;  %811 = vmatmul.f32.gmra.mxu2 %v667_v1  ;;  %v9644_v58 = vpop.permute.xlu0 %9643  ;;  %v11237_v29 = vpop.f32.mrf.mxu1 }
 0x264   :  { %8300 = vmatmul.msk.f32.gmra.mxu3 %vm752_vm3, %v668_v41  ;;  %1111 = vmatpush.msra.mxu0 %v9655_v43  ;;  %v9646_v6 = vunpack.i.h.bf16 %v9644_v58  ;;  %v9645_v63 = vunpack.i.l.bf16 %v9644_v58  ;;  %v960_v41 = vunpack.c.l.bf16 %v8309_v44  ;;  %v8310_v43 = vld [vmem:[%s14740_s2 + $0x78] sm:$0xff]  ;;  %v11234_v58 = vpack.i.bf16 %v11104_v59, %v10776_v24 }
 0x265   :  { %9873 = vrot.lane.b32.xlu2 %v11128_v9, %s10276_s13  ;;  %9853 = vrot.lane.b32.xlu1 %v11216_v33, %s10275_s3  ;;  %v11224_v1 = vpop.permute.xlu2 %9723  ;;  %v963_v44 = vunpack.c.h.bf16 %v8310_v43 }
 0x266   :  { %1112 = vmatpush.msra.mxu0 %v9656_v39  ;;  %v9664_v0 = vpop.permute.xlu1 %9663  ;;  %1263 = vmatpush.msrb.mxu2 %v9645_v63 }
 0x267   :  { %8317 = vmatmul.msk.f32.vlgmr.msra.gmra.mxu0 %vm752_vm3, %v961_v48  ;;  %1301 = vmatpush.msrb.mxu3 %v9646_v6  ;;  %v962_v6 = vunpack.c.l.bf16 %v8310_v43  ;;  %v9666_v63 = vunpack.i.h.bf16 %v9664_v0 }
 0x268   :  { %1378 = vmatpush.msrb.mxu0 %v10750_v62  ;;  %1264 = vmatpush.msrb.mxu2 %v9650_v60 }
 0x269   :  { %1302 = vmatpush.msrb.mxu3 %v9651_v15 }
 0x26a   :  { %1379 = vmatpush.msrb.mxu0 %v10742_v12 }
 0x26b   :  { %9848 = vrot.lane.b32.xlu0 %v11234_v58, %s10275_s3  ;;  %8302 = vmatmul.msk.f32.vlgmr.msra.gmra.mxu2 %vm752_vm3, %v634_v18  ;;  %v9659_v62 = vpop.permute.xlu0 %9658  ;;  %v636_v18 = vunpack.c.h.bf16 %v10976_v35 }
 0x26c   :  { %1075 = vmatmul.f32.vlgmr.msra.gmra.mxu3 %v960_v41  ;;  %1380 = vmatpush.msrb.mxu0 %v10738_v56  ;;  %v9660_v28 = vunpack.i.l.bf16 %v9659_v62  ;;  %v9661_v48 = vunpack.i.h.bf16 %v9659_v62  ;;  %v9665_v56 = vunpack.i.l.bf16 %v9664_v0  ;;  %v638_v0 = vunpack.c.h.bf16 %v10995_v4  ;;  %v8312_v41 = vld [vmem:[%s14740_s2 + $0x88] sm:$0xff] }
 0x26d   :  { %9888 = vrot.lane.b32.xlu2 %v11180_v22, %s10277_s14  ;;  %9868 = vrot.lane.b32.xlu1 %v11128_v9, %s10277_s14  ;;  %v11247_v12 = vpop.permute.xlu2 %9738  ;;  %v8311_v9 = vld [vmem:[%s14740_s2 + $0x80] sm:$0xff] }
 0x26e   :  { %1381 = vmatpush.msrb.mxu0 %v10734_v53  ;;  %v11250_v39 = vpop.permute.xlu1 %9678  ;;  %1588 = vmatpush.msra.mxu2 %v9660_v28  ;;  %v965_v35 = vunpack.c.h.bf16 %v8311_v9  ;;  %v964_v15 = vunpack.c.l.bf16 %v8311_v9 }
 0x26f   :  { %8318 = vmatmul.msk.f32.gmra.mxu0 %vm752_vm3, %v963_v44  ;;  %v9680_v62 = vunpack.i.l.bf16 %v11250_v39  ;;  %v9681_v28 = vunpack.i.h.bf16 %v11250_v39 }
 0x270   :  { %1382 = vmatpush.msrb.mxu0 %v10726_v46  ;;  %1589 = vmatpush.msra.mxu2 %v9661_v48  ;;  %v11263_v46 = vpop.f32.mrf.mxu1  ;;  %v966_v48 = vunpack.c.l.bf16 %v8312_v41 }
 0x272   :  { %1383 = vmatpush.msrb.mxu0 %v10718_v3  ;;  %1590 = vmatpush.msra.mxu2 %v9665_v56  ;;  %v8313_v56 = vld [vmem:[%s14740_s2 + $0x90] sm:$0xff] }
 0x273   :  { %9863 = vrot.lane.b32.xlu0 %v11148_v23, %s10276_s13  ;;  %8303 = vmatmul.msk.f32.gmra.mxu2 %vm752_vm3, %v636_v18  ;;  %v9674_v53 = vpop.permute.xlu0 %9673  ;;  %v9670_v23 = vunpack.i.l.bf16 %v11114_v49  ;;  %v9696_v18 = vunpack.i.h.bf16 %v11168_v31  ;;  %v969_v9 = vunpack.c.h.bf16 %v8313_v56 }
 0x274   :  { %1078 = vmatmul.f32.gmra.mxu3 %v962_v6  ;;  %1384 = vmatpush.msrb.mxu0 %v10714_v42  ;;  %v9671_v42 = vunpack.i.h.bf16 %v11114_v49  ;;  %v9676_v49 = vunpack.i.h.bf16 %v9674_v53 }
 0x275   :  { %9903 = vrot.lane.b32.xlu2 %v11159_v17, %s10276_s13  ;;  %9883 = vrot.lane.b32.xlu1 %v11098_v37, %s10276_s13  ;;  %v11269_v3 = vpop.permute.xlu2 %9753 }
 0x276   :  { %1385 = vmatpush.msrb.mxu0 %v10710_v38  ;;  %1591 = vmatpush.msra.mxu2 %v9666_v63  ;;  %v11273_v60 = vpop.permute.xlu1 %9688  ;;  %v9675_v38 = vunpack.i.l.bf16 %v9674_v53  ;;  %v9686_v53 = vunpack.i.h.bf16 %v11140_v10 }
 0x277   :  { %8319 = vmatmul.msk.f32.gmra.mxu0 %vm752_vm3, %v965_v35  ;;  %v9691_v44 = vunpack.i.h.bf16 %v11273_v60  ;;  %v14792_v35 = vld [vmem:[#allocation3_spill] sm:$0xff]  ;;  %v9690_v63 = vunpack.i.l.bf16 %v11273_v60  ;;  %v8314_v60 = vld [vmem:[%s14740_s2 + $0x98] sm:$0xff] }
 0x278   :  { %1386 = vmatpush.msrb.mxu0 %v10701_v61  ;;  %1592 = vmatpush.msra.mxu2 %v9670_v23  ;;  %v967_v61 = vunpack.c.h.bf16 %v8312_v41  ;;  %v14793_v23 = vld [vmem:[#allocation2_spill] sm:$0xff]  ;;  %v968_v41 = vunpack.c.l.bf16 %v8313_v56 }
 0x27a   :  { %1387 = vmatpush.msrb.mxu0 %v10693_v57  ;;  %1593 = vmatpush.msra.mxu2 %v9671_v42  ;;  %v642_v42 = vunpack.c.h.bf16 %v11033_v5 }
 0x27b   :  { %9878 = vrot.lane.b32.xlu0 %v11098_v37, %s10277_s14  ;;  %8304 = vmatmul.msk.f32.gmra.mxu2 %vm752_vm3, %v638_v0  ;;  %v1544_v4 = vpop.permute.xlu0 %1543  ;;  %v11296_v37 = vpop.f32.mrf.mxu1 }
 0x27c   :  { %1081 = vmatmul.f32.gmra.mxu3 %v964_v15  ;;  %1388 = vmatpush.msrb.mxu0 %v10689_v30  ;;  %v11303_v30 = vld [vmem:[%s14740_s2 + $0xe0] sm:$0xff] }
 0x27d   :  { %1594 = vmatpush.msra.mxu2 %v9675_v38  ;;  %9913 = vrot.lane.b32.xlu2 %v11123_v50, %s10276_s13  ;;  %v11289_v43 = vpop.permute.xlu2 %9763  ;;  %v9695_v38 = vunpack.i.l.bf16 %v11168_v31  ;;  %v971_v31 = vunpack.c.h.bf16 %v8314_v60 }
 0x27e   :  { %9898 = vrot.lane.b32.xlu1 %v11159_v17, %s10277_s14  ;;  %1389 = vmatpush.msrb.mxu0 %v10685_v52  ;;  %v11294_v57 = vpop.permute.xlu1 %9703  ;;  %v1341_v52 = vunpack.c.h.bf16 %v11303_v30  ;;  %v640_v17 = vunpack.c.h.bf16 %v11011_v27  ;;  %v9685_v27 = vunpack.i.l.bf16 %v11140_v10 }
 0x27f   :  { %1595 = vmatpush.msra.mxu2 %v9676_v49  ;;  %8361 = vmatpush.msk.msra.mxu3 %vm774_vm2, %v1544_v4  ;;  %v9706_v15 = vunpack.i.h.bf16 %v11294_v57 }
 0x280   :  { %8320 = vmatmul.msk.f32.gmra.mxu0 %vm752_vm3, %v967_v61  ;;  %8347 = vmatmul.msk.f32.vlgmr.msra.gmra.mxu1 %vm752_vm3, %v1341_v52 }
 0x281   :  { %1390 = vmatpush.msrb.mxu0 %v10672_v47  ;;  %1596 = vmatpush.msra.mxu2 %v9680_v62  ;;  %v9705_v62 = vunpack.i.l.bf16 %v11294_v57 }
 0x282   :  { %1638 = vmatpush.msra.mxu3 %v9691_v44 }
 0x283   :  { %1391 = vmatpush.msrb.mxu0 %v10659_v40  ;;  %1597 = vmatpush.msra.mxu2 %v9681_v28  ;;  %v9699_v6 = vpop.permute.xlu0 %9698  ;;  %v11339_v0 = vpop.f32.mrf.mxu1  ;;  %v644_v28 = vunpack.c.h.bf16 %v11060_v32 }
 0x284   :  { %1639 = vmatpush.msra.mxu3 %v9696_v18  ;;  %9893 = vrot.lane.b32.xlu0 %v11180_v22, %s10276_s13  ;;  %v9701_v47 = vunpack.i.h.bf16 %v9699_v6  ;;  %v11334_v22 = vld [vmem:[%s14740_s2 + $0xe8] sm:$0xff]  ;;  %v9700_v61 = vunpack.i.l.bf16 %v9699_v6  ;;  %v8315_v18 = vld [vmem:[%s14740_s2 + $0xa0] sm:$0x11] }
 0x285   :  { %8305 = vmatmul.msk.f32.gmra.mxu2 %vm752_vm3, %v640_v17  ;;  %1084 = vmatmul.f32.gmra.mxu3 %v966_v48  ;;  %v11321_v39 = vpop.permute.xlu2 %9773  ;;  %v1343_v10 = vunpack.c.h.bf16 %v11334_v22  ;;  %v9725_v17 = vunpack.i.l.bf16 %v11224_v1  ;;  %v970_v48 = vunpack.c.l.bf16 %v8314_v60  ;;  %v973_v32 = vunpack.c.h.bf16 %v8315_v18 }
 0x286   :  { %1392 = vmatpush.msrb.mxu0 %v14792_v35  ;;  %1598 = vmatpush.msra.mxu2 %v9685_v27  ;;  %v11325_v40 = vpop.permute.xlu1 %9718 }
 0x287   :  { %9923 = vrot.lane.b32.xlu2 %v11154_v2, %s10277_s14  ;;  %9933 = vrot.lane.b32.xlu1 %v11234_v58, %s10277_s14 }
 0x288   :  { %1393 = vmatpush.msrb.mxu0 %v14793_v23  ;;  %1599 = vmatpush.msra.mxu2 %v9686_v53  ;;  %v11391_v53 = vld [vmem:[%s14740_s2 + $0xf8] sm:$0xff]  ;;  %v972_v23 = vunpack.c.l.bf16 %v8315_v18  ;;  %v1342_v18 = vunpack.c.l.bf16 %v11334_v22  ;;  %v9766_v22 = vunpack.i.h.bf16 %v11289_v43 }
 0x289   :  { %8321 = vmatmul.msk.f32.gmra.mxu0 %vm752_vm3, %v969_v9  ;;  %1640 = vmatpush.msra.mxu3 %v9701_v47  ;;  %v1347_v35 = vunpack.c.h.bf16 %v11391_v53 }
 0x28a   :  { %1600 = vmatpush.msra.mxu2 %v9690_v63  ;;  %8348 = vmatmul.msk.f32.gmra.mxu1 %vm752_vm3, %v1343_v10  ;;  %v646_v63 = vunpack.c.h.bf16 %v11087_v51  ;;  %v1340_v51 = vunpack.c.l.bf16 %v11303_v30  ;;  %v9755_v30 = vunpack.i.l.bf16 %v11269_v3 }
 0x28b   :  { %1641 = vmatpush.msra.mxu3 %v9706_v15  ;;  %v9714_v4 = vpop.permute.xlu0 %9713  ;;  %v11373_v56 = vpop.f32.mrf.mxu1 }
 0x28c   :  { %1601 = vmatpush.msra.mxu2 %v9695_v38  ;;  %9908 = vrot.lane.b32.xlu0 %v11123_v50, %s10277_s14  ;;  %v9715_v5 = vunpack.i.l.bf16 %v9714_v4  ;;  %v9716_v44 = vunpack.i.h.bf16 %v9714_v4  ;;  %v11362_v50 = vld [vmem:[%s14740_s2 + $0xf0] sm:$0xff]  ;;  %v11407_v38 = vpop.f32.mrf.mxu0 }
 0x28d   :  { %8306 = vmatmul.msk.f32.gmra.mxu2 %vm752_vm3, %v642_v42  ;;  %1087 = vmatmul.f32.gmra.mxu3 %v968_v41  ;;  %v11352_v49 = vpop.permute.xlu2 %9788  ;;  %v1345_v57 = vunpack.c.h.bf16 %v11362_v50  ;;  %v11404_v41 = vpack.i.bf16 %v11171_v16, %v11207_v55 }
 0x28e   :  { %1602 = vmatpush.msra.mxu2 %v9700_v61  ;;  %v9734_v52 = vpop.permute.xlu1 %9733  ;;  %1778 = vmatpush.msra.mxu0 %v9715_v5  ;;  %v11424_v5 = vld [vmem:[%s14740_s2 + $0x100] sm:$0xff] }
 0x28f   :  { %9938 = vrot.lane.b32.xlu2 %v11154_v2, %s10276_s13  ;;  %2642 = vrot.lane.b32.xlu1 %v11209_v11, %s10277_s14  ;;  %v9726_v2 = vunpack.i.h.bf16 %v11224_v1  ;;  %v9735_v27 = vunpack.i.l.bf16 %v9734_v52  ;;  %v9736_v1 = vunpack.i.h.bf16 %v9734_v52  ;;  %v9756_v52 = vunpack.i.h.bf16 %v11269_v3 }
 0x290   :  { %1603 = vmatpush.msra.mxu2 %v9705_v62  ;;  %1779 = vmatpush.msra.mxu0 %v9716_v44  ;;  %v1349_v44 = vunpack.c.h.bf16 %v11424_v5  ;;  %v11442_v3 = vpack.i.bf16 %v11237_v29, %v11263_v46 }
 0x291   :  { %8322 = vmatmul.msk.f32.gmra.mxu0 %vm752_vm3, %v971_v31 }
 0x292   :  { %1780 = vmatpush.msra.mxu0 %v9725_v17  ;;  %8349 = vmatmul.msk.f32.gmra.mxu1 %vm752_vm3, %v1345_v57  ;;  %v9710_v17 = vunpack.i.l.bf16 %v11197_v36  ;;  %v9765_v57 = vunpack.i.l.bf16 %v11289_v43 }
 0x293   :  { %v11375_v6 = vpop.permute.xlu0 %9728  ;;  %v11399_v15 = vpop.f32.mrf.mxu1 }
 0x294   :  { %9918 = vrot.lane.b32.xlu0 %v11188_v45, %s10277_s14  ;;  %1781 = vmatpush.msra.mxu0 %v9726_v2  ;;  %v9730_v43 = vunpack.i.l.bf16 %v11375_v6 }
 0x295   :  { %8307 = vmatmul.msk.f32.gmra.mxu2 %vm752_vm3, %v644_v28  ;;  %1090 = vmatmul.f32.gmra.mxu3 %v970_v48  ;;  %v14794_v28 = vld [vmem:[#allocation20_spill] sm:$0xff]  ;;  %v14795_v48 = vld [vmem:[#allocation19_spill] sm:$0xff] }
 0x296   :  { %v11380_v47 = vpop.permute.xlu2 %9803  ;;  %v11382_v9 = vpop.permute.xlu1 %9748  ;;  %1782 = vmatpush.msra.mxu0 %v9735_v27  ;;  %v11438_v2 = vpack.i.bf16 %v14795_v48, %v14794_v28  ;;  %v9711_v27 = vunpack.i.h.bf16 %v11197_v36  ;;  %v9720_v36 = vunpack.i.l.bf16 %v11325_v40 }
 0x297   :  { %9953 = vrot.lane.b32.xlu2 %v11216_v33, %s10276_s13  ;;  %2452 = vrot.lane.b32.xlu1 %v11209_v11, %s10276_s13 }
 0x298   :  { %1783 = vmatpush.msra.mxu0 %v9736_v1  ;;  %v8325_v1 = vld [vmem:[%s14740_s2 + $0xb0] sm:$0xff] }
 0x299   :  { %8323 = vmatmul.msk.f32.gmra.mxu0 %vm752_vm3, %v973_v32 }
 0x29a   :  { %8350 = vmatmul.msk.f32.gmra.mxu1 %vm752_vm3, %v1347_v35 }
 0x29b   :  { %v9744_v10 = vpop.permute.xlu0 %9743  ;;  %v11451_v35 = vpop.f32.mrf.mxu1 }
 0x29c   :  { %9928 = vrot.lane.b32.xlu0 %v11188_v45, %s10276_s13  ;;  %v9745_v42 = vunpack.i.l.bf16 %v9744_v10  ;;  %v9746_v60 = vunpack.i.h.bf16 %v9744_v10  ;;  %v8324_v45 = vld [vmem:[%s14740_s2 + $0xa8] sm:$0xff]  ;;  %v1153_v10 = vunpack.c.h.bf16 %v8325_v1 }
 0x29d   :  { %8308 = vmatmul.msk.f32.gmra.mxu2 %vm752_vm3, %v646_v63  ;;  %1093 = vmatmul.f32.gmra.mxu3 %v972_v23  ;;  %v1150_v31 = vunpack.c.l.bf16 %v8324_v45  ;;  %v1151_v62 = vunpack.c.h.bf16 %v8324_v45  ;;  %v11460_v63 = vpop.f32.mrf.mxu0  ;;  %v1152_v23 = vunpack.c.l.bf16 %v8325_v1 }
 0x29e   :  { %v11409_v4 = vpop.permute.xlu2 %9818  ;;  %v11411_v61 = vpop.permute.xlu1 %9783  ;;  %1784 = vmatpush.msra.mxu0 %v9745_v42  ;;  %v9721_v42 = vunpack.i.h.bf16 %v11325_v40  ;;  %v11476_v40 = vpack.i.bf16 %v11038_v25, %v11069_v26 }
 0x29f   :  { %9948 = vrot.lane.b32.xlu1 %v11234_v58, %s10276_s13  ;;  %9968 = vrot.lane.b32.xlu2 %v11404_v41, %s10275_s3  ;;  %v9786_v1 = vunpack.i.h.bf16 %v11411_v61  ;;  %v9820_v25 = vunpack.i.l.bf16 %v11409_v4 }
 0x2a0   :  { %1785 = vmatpush.msra.mxu0 %v9746_v60 }
 0x2a1   :  { %1394 = vmatmul.f32.vlgmr.msrb.gmra.mxu0 %v1340_v51  ;;  %v11465_v51 = vpack.i.bf16 %v11296_v37, %v11339_v0 }
 0x2a2   :  { %1786 = vmatpush.msra.mxu0 %v9755_v30  ;;  %8351 = vmatmul.msk.f32.gmra.mxu1 %vm752_vm3, %v1349_v44  ;;  %v14796_v30 = vld [vmem:[#allocation16_spill] sm:$0xff]  ;;  %v11486_v44 = vld [vmem:[%s14740_s2 + $0x108] sm:$0xff] }
 0x2a3   :  { %v11428_v58 = vpop.permute.xlu0 %9758 }
 0x2a4   :  { %9943 = vrot.lane.b32.xlu0 %v11216_v33, %s10277_s14  ;;  %1787 = vmatpush.msra.mxu0 %v9756_v52  ;;  %v9731_v52 = vunpack.i.h.bf16 %v11375_v6  ;;  %v9740_v6 = vunpack.i.l.bf16 %v11247_v12 }
 0x2a5   :  { %1265 = vmatmul.f32.vlgmr.msrb.gmra.mxu2 %v1150_v31  ;;  %8332 = vmatmul.msk.f32.vlgmr.msrb.gmra.mxu3 %vm752_vm3, %v1151_v62  ;;  %v11480_v31 = vpack.i.bf16 %v11451_v35, %v14796_v30  ;;  %v1344_v62 = vunpack.c.l.bf16 %v11362_v50  ;;  %v9761_v30 = vunpack.i.h.bf16 %v11428_v58 }
 0x2a6   :  { %1968 = vmatpush.msrb.mxu2 %v9710_v17  ;;  %v11446_v32 = vpop.permute.xlu2 %9833  ;;  %v1924_v33 = vpop.permute.xlu1 %1923  ;;  %1788 = vmatpush.msra.mxu0 %v9765_v57  ;;  %v8326_v57 = vld [vmem:[%s14740_s2 + $0xb8] sm:$0xff] }
 0x2a7   :  { %9983 = vrot.lane.b32.xlu2 %v11438_v2, %s10275_s3  ;;  %9963 = vrot.lane.b32.xlu1 %v11442_v3, %s10275_s3 }
 0x2a8   :  { %1969 = vmatpush.msrb.mxu2 %v9711_v27  ;;  %8391 = vmatpush.msk.msrb.mxu3 %vm774_vm2, %v1924_v33  ;;  %v9776_v27 = vunpack.i.h.bf16 %v11321_v39  ;;  %v11502_v33 = vpop.f32.mrf.mxu1 }
 0x2a9   :  { %1397 = vmatmul.f32.gmra.mxu0 %v1342_v18  ;;  %v1351_v18 = vunpack.c.h.bf16 %v11486_v44 }
 0x2aa   :  { %1970 = vmatpush.msrb.mxu2 %v9720_v36  ;;  %1789 = vmatpush.msra.mxu0 %v9766_v22  ;;  %v1154_v22 = vunpack.c.l.bf16 %v8326_v57  ;;  %v1155_v36 = vunpack.c.h.bf16 %v8326_v57 }
 0x2ab   :  { %v11467_v60 = vpop.permute.xlu0 %9768  ;;  %8352 = vmatmul.msk.f32.gmra.mxu1 %vm752_vm3, %v1351_v18 }
 0x2ac   :  { %1971 = vmatpush.msrb.mxu2 %v9721_v42  ;;  %9958 = vrot.lane.b32.xlu0 %v11465_v51, %s10275_s3  ;;  %v9771_v45 = vunpack.i.h.bf16 %v11467_v60  ;;  %v11510_v42 = vpop.f32.mrf.mxu0  ;;  %v9770_v48 = vunpack.i.l.bf16 %v11467_v60  ;;  %v14798_v60 = vld [vmem:[#allocation12_spill] sm:$0xff] }
 0x2ad   :  { %1268 = vmatmul.f32.gmra.mxu2 %v1152_v23  ;;  %8333 = vmatmul.msk.f32.gmra.mxu3 %vm752_vm3, %v1153_v10  ;;  %v9741_v23 = vunpack.i.h.bf16 %v11247_v12  ;;  %v11508_v10 = vpack.i.bf16 %v11100_v7, %v11136_v14 }
 0x2ae   :  { %1972 = vmatpush.msrb.mxu2 %v9730_v43  ;;  %v1734_v17 = vpop.permute.xlu1 %1733  ;;  %2018 = vmatpush.msrb.mxu3 %v9771_v45  ;;  %v11498_v50 = vpop.permute.xlu2 %9843  ;;  %v9750_v43 = vunpack.i.l.bf16 %v11382_v9 }
 0x2af   :  { %9978 = vrot.lane.b32.xlu1 %v11476_v40, %s10275_s3  ;;  %9988 = vrot.lane.b32.xlu2 %v11480_v31, %s10275_s3 }
 0x2b0   :  { %1973 = vmatpush.msrb.mxu2 %v9731_v52  ;;  %8376 = vmatpush.msk.msrb.mxu1 %vm774_vm2, %v1734_v17  ;;  %v14797_v17 = vld [vmem:[#allocation18_spill] sm:$0xff] }
 0x2b1   :  { %1400 = vmatmul.f32.gmra.mxu0 %v1344_v62  ;;  %2019 = vmatpush.msrb.mxu3 %v9776_v27  ;;  %v11521_v57 = vpack.i.bf16 %v11502_v33, %v14797_v17  ;;  %v1346_v27 = vunpack.c.l.bf16 %v11391_v53  ;;  %v11540_v17 = vpop.f32.mrf.mxu1 }
 0x2b2   :  { %1974 = vmatpush.msrb.mxu2 %v9740_v6  ;;  %v9751_v6 = vunpack.i.h.bf16 %v11382_v9  ;;  %v9791_v9 = vunpack.i.h.bf16 %v11352_v49 }
 0x2b3   :  { %2020 = vmatpush.msrb.mxu3 %v9786_v1  ;;  %v8327_v1 = vld [vmem:[%s14740_s2 + $0xc0] sm:$0xff] }
 0x2b4   :  { %1975 = vmatpush.msrb.mxu2 %v9741_v23  ;;  %9973 = vrot.lane.b32.xlu0 %v11508_v10, %s10275_s3  ;;  %v9779_v45 = vpop.permute.xlu0 %9778  ;;  %v11516_v62 = vpop.f32.mrf.mxu2  ;;  %v9760_v23 = vunpack.i.l.bf16 %v11428_v58 }
 0x2b5   :  { %1271 = vmatmul.f32.gmra.mxu2 %v1154_v22  ;;  %8334 = vmatmul.msk.f32.gmra.mxu3 %vm752_vm3, %v1155_v36  ;;  %v9781_v12 = vunpack.i.h.bf16 %v9779_v45  ;;  %v9780_v52 = vunpack.i.l.bf16 %v9779_v45  ;;  %v11523_v18 = vpop.f32.mrf.mxu3  ;;  %v9790_v36 = vunpack.i.l.bf16 %v11352_v49  ;;  %v1157_v45 = vunpack.c.h.bf16 %v8327_v1 }
 0x2b6   :  { %1976 = vmatpush.msrb.mxu2 %v9750_v43  ;;  %v1156_v43 = vunpack.c.l.bf16 %v8327_v1  ;;  %v1348_v1 = vunpack.c.l.bf16 %v11424_v5 }
 0x2b7   :  { %10008 = vrot.lane.b32.xlu2 %v11465_v51, %s10277_s14  ;;  %9993 = vrot.lane.b32.xlu1 %v11521_v57, %s10275_s3  ;;  %v9799_v22 = vpop.permute.xlu1 %9798  ;;  %v11537_v53 = vpop.permute.xlu2 %9858 }
 0x2b8   :  { %1977 = vmatpush.msrb.mxu2 %v9751_v6  ;;  %1790 = vmatpush.msra.mxu0 %v9780_v52  ;;  %v9800_v28 = vunpack.i.l.bf16 %v9799_v22  ;;  %v11545_v52 = vpop.f32.mrf.mxu0  ;;  %v9775_v6 = vunpack.i.l.bf16 %v11321_v39  ;;  %v8328_v39 = vld [vmem:[%s14740_s2 + $0xc8] sm:$0xff] }
 0x2b9   :  { %1403 = vmatmul.f32.gmra.mxu0 %v1346_v27  ;;  %1828 = vmatpush.msrb.mxu1 %v9781_v12  ;;  %v9801_v12 = vunpack.i.h.bf16 %v9799_v22  ;;  %v9805_v22 = vunpack.i.l.bf16 %v11380_v47  ;;  %v1159_v5 = vunpack.c.h.bf16 %v8328_v39 }
 0x2ba   :  { %1978 = vmatpush.msrb.mxu2 %v9760_v23  ;;  %1791 = vmatpush.msra.mxu0 %v9790_v36  ;;  %v9806_v36 = vunpack.i.h.bf16 %v11380_v47  ;;  %v1158_v47 = vunpack.c.l.bf16 %v8328_v39 }
 0x2bb   :  { %1829 = vmatpush.msrb.mxu1 %v9791_v9 }
 0x2bc   :  { %1979 = vmatpush.msrb.mxu2 %v9761_v30  ;;  %2981 = vrot.lane.b32.xlu0 %v11540_v17, %s10275_s3  ;;  %v9794_v49 = vpop.permute.xlu0 %9793  ;;  %v11555_v30 = vpack.i.bf16 %v11373_v56, %v14798_v60 }
 0x2bd   :  { %1274 = vmatmul.f32.gmra.mxu2 %v1156_v43  ;;  %8335 = vmatmul.msk.f32.gmra.mxu3 %vm752_vm3, %v1157_v45  ;;  %v11548_v58 = vpop.f32.mrf.mxu2  ;;  %v11550_v27 = vpop.f32.mrf.mxu3  ;;  %v9795_v9 = vunpack.i.l.bf16 %v9794_v49 }
 0x2be   :  { %1980 = vmatpush.msrb.mxu2 %v9770_v48  ;;  %1792 = vmatpush.msra.mxu0 %v9800_v28  ;;  %v9785_v28 = vunpack.i.l.bf16 %v11411_v61  ;;  %v9796_v48 = vunpack.i.h.bf16 %v9794_v49  ;;  %v14799_v49 = vld [vmem:[#allocation14_spill] sm:$0xff] }
 0x2bf   :  { %1830 = vmatpush.msrb.mxu1 %v9801_v12  ;;  %10023 = vrot.lane.b32.xlu2 %v11442_v3, %s10276_s13  ;;  %v11562_v23 = vpop.permute.xlu1 %9813  ;;  %v11570_v43 = vpop.permute.xlu2 %9873  ;;  %v11582_v12 = vpack.i.bf16 %v11399_v15, %v14799_v49 }
 0x2c0   :  { %1981 = vmatpush.msrb.mxu2 %v9775_v6  ;;  %10003 = vrot.lane.b32.xlu1 %v11555_v30, %s10275_s3  ;;  %v1350_v6 = vunpack.c.l.bf16 %v11486_v44 }
 0x2c1   :  { %1793 = vmatpush.msra.mxu0 %v9805_v22  ;;  %1831 = vmatpush.msrb.mxu1 %v9806_v36  ;;  %v8345_v36 = vld [vmem:[%s14740_s2 + $0x110] sm:$0x11]  ;;  %v14800_v22 = vld [vmem:[#allocation17_spill] sm:$0xff] }
 0x2c2   :  { %1406 = vmatmul.f32.gmra.mxu0 %v1348_v1  ;;  %1982 = vmatpush.msrb.mxu2 %v9785_v28  ;;  %v8329_v1 = vld [vmem:[%s14740_s2 + $0xd0] sm:$0xff] }
 0x2c3   :  { %2097 = vmatpush.msrb.mxu0 %v11040_v19  ;;  %8406 = vmatpush.msk.msra.mxu1 %vm774_vm2, %v11209_v11  ;;  %v11585_v11 = vpop.f32.mrf.mxu0  ;;  %v1161_v44 = vunpack.c.h.bf16 %v8329_v1 }
 0x2c4   :  { %2021 = vmatpush.msrb.mxu3 %v9796_v48  ;;  %1983 = vmatpush.msrb.mxu2 %v9795_v9  ;;  %v11575_v61 = vpop.permute.xlu0 %9808  ;;  %v14801_v48 = vld [vmem:[#allocation15_spill] sm:$0xff]  ;;  %v14802_v9 = vld [vmem:[#allocation13_spill] sm:$0xff] }
 0x2c5   :  { %2098 = vmatpush.msrb.mxu0 %v11018_v20  ;;  %2147 = vmatpush.msra.mxu1 %v11175_v13  ;;  %v800_v45 = vpop.f32.mrf.mxu2 }
 0x2c6   :  { %1277 = vmatmul.f32.gmra.mxu2 %v1158_v47  ;;  %8336 = vmatmul.msk.f32.gmra.mxu3 %vm752_vm3, %v1159_v5  ;;  %v838_v19 = vpop.f32.mrf.mxu3 }
 0x2c7   :  { %2099 = vmatpush.msrb.mxu0 %v10988_v54  ;;  %2148 = vmatpush.msra.mxu1 %v11142_v34  ;;  %v11589_v20 = vadd.f32 %v838_v19, %v800_v45  ;;  %v11591_v13 = vpop.permute.xlu1 %9828  ;;  %v1353_v54 = vunpack.c.h.bf16 %v8345_v36  ;;  %v1160_v34 = vunpack.c.l.bf16 %v8329_v1  ;;  %v11612_v28 = vpop.permute.xlu2 %9888  ;;  %v8369_v45 = vld [vmem:[%s14740_s2 + $0x150] sm:$0xff]  ;;  %v14803_v1 = vld [vmem:[#allocation11_spill] sm:$0xff] }
 0x2c8   :  { %9998 = vrot.lane.b32.xlu0 %v11582_v12, %s10275_s3  ;;  %10038 = vrot.lane.b32.xlu2 %v11508_v10, %s10277_s14  ;;  %v1680_v19 = vunpack.c.h.bf16 %v8369_v45 }
 0x2c9   :  { %2100 = vmatpush.msrb.mxu0 %v10966_v21  ;;  %2149 = vmatpush.msra.mxu1 %v11104_v59 }
 0x2ca   :  { %10018 = vrot.lane.b32.xlu1 %v11442_v3, %s10277_s14  ;;  %1409 = vmatmul.f32.gmra.mxu0 %v1350_v6  ;;  %v1352_v3 = vunpack.c.l.bf16 %v8345_v36 }
 0x2cb   :  { %2101 = vmatpush.msrb.mxu0 %v14800_v22  ;;  %2150 = vmatpush.msra.mxu1 %v11073_v8  ;;  %v8330_v8 = vld [vmem:[%s14740_s2 + $0xd8] sm:$0x11]  ;;  %v11631_v6 = vpop.f32.mrf.mxu0 }
 0x2cc   :  { %v11609_v39 = vpop.permute.xlu0 %9823  ;;  %8353 = vmatmul.msk.f32.gmra.mxu1 %vm752_vm3, %v1353_v54  ;;  %v1162_v36 = vunpack.c.l.bf16 %v8330_v8  ;;  %v1163_v54 = vunpack.c.h.bf16 %v8330_v8 }
 0x2cd   :  { %2102 = vmatpush.msrb.mxu0 %v14801_v48 }
 0x2ce   :  { %1280 = vmatmul.f32.gmra.mxu2 %v1160_v34  ;;  %8337 = vmatmul.msk.f32.gmra.mxu3 %vm752_vm3, %v1161_v44  ;;  %v803_v21 = vpop.f32.mrf.mxu2  ;;  %v841_v59 = vpop.f32.mrf.mxu3  ;;  %v14804_v34 = vld [vmem:[#allocation10_spill] sm:$0xff]  ;;  %v14805_v44 = vld [vmem:[#allocation9_spill] sm:$0xff] }
 0x2cf   :  { %2103 = vmatpush.msrb.mxu0 %v14802_v9  ;;  %v11617_v47 = vadd.f32 %v841_v59, %v803_v21  ;;  %v11619_v5 = vpop.permute.xlu1 %9838  ;;  %v1679_v21 = vunpack.c.l.bf16 %v8369_v45  ;;  %v11640_v59 = vpop.permute.xlu2 %9903  ;;  %v14806_v9 = vld [vmem:[#allocation8_spill] sm:$0xff] }
 0x2d0   :  { %10013 = vrot.lane.b32.xlu0 %v11465_v51, %s10276_s13  ;;  %10053 = vrot.lane.b32.xlu2 %v11476_v40, %s10276_s13 }
 0x2d1   :  { %2104 = vmatpush.msrb.mxu0 %v14803_v1  ;;  %v8370_v1 = vld [vmem:[%s14740_s2 + $0x158] sm:$0xff] }
 0x2d2   :  { %10033 = vrot.lane.b32.xlu1 %v11404_v41, %s10276_s13  ;;  %1412 = vmatmul.f32.gmra.mxu0 %v1352_v3  ;;  %v1682_v45 = vunpack.c.h.bf16 %v8370_v1 }
 0x2d3   :  { %2105 = vmatpush.msrb.mxu0 %v14804_v34 }
 0x2d4   :  { %8377 = vmatmul.msk.f32.vlgmr.msrb.gmra.mxu1 %vm752_vm3, %v1680_v19  ;;  %v8354_v19 = vld [vmem:[%s14740_s2 + $0x118] sm:$0xff] }
 0x2d5   :  { %2106 = vmatpush.msrb.mxu0 %v14805_v44  ;;  %v2263_v51 = vpop.permute.xlu0 %2262  ;;  %v1470_v34 = vunpack.c.h.bf16 %v8354_v19  ;;  %v11660_v44 = vpop.f32.mrf.mxu0 }
 0x2d6   :  { %1283 = vmatmul.f32.gmra.mxu2 %v1162_v36  ;;  %8338 = vmatmul.msk.f32.gmra.mxu3 %vm752_vm3, %v1163_v54  ;;  %v806_v22 = vpop.f32.mrf.mxu2  ;;  %v844_v48 = vpop.f32.mrf.mxu3  ;;  %v14807_v36 = vld [vmem:[#allocation7_spill] sm:$0xff]  ;;  %v1469_v54 = vunpack.c.l.bf16 %v8354_v19 }
 0x2d7   :  { %2107 = vmatpush.msrb.mxu0 %v14806_v9  ;;  %v11643_v3 = vadd.f32 %v844_v48, %v806_v22  ;;  %v11645_v8 = vpop.permute.xlu1 %9853  ;;  %v14808_v22 = vld [vmem:[#allocation6_spill] sm:$0xff]  ;;  %v14809_v48 = vld [vmem:[#allocation5_spill] sm:$0xff] }
 0x2d8   :  { %10028 = vrot.lane.b32.xlu0 %v11404_v41, %s10277_s14  ;;  %10063 = vrot.lane.b32.xlu2 %v11438_v2, %s10276_s13  ;;  %v9810_v41 = vunpack.i.l.bf16 %v11575_v61 }
 0x2d9   :  { %2108 = vmatpush.msrb.mxu0 %v14807_v36 }
 0x2da   :  { %10048 = vrot.lane.b32.xlu1 %v11476_v40, %s10277_s14  ;;  %1794 = vmatmul.f32.vlgmr.msra.gmra.mxu0 %v1679_v21  ;;  %v9811_v21 = vunpack.i.h.bf16 %v11575_v61  ;;  %v8371_v61 = vld [vmem:[%s14740_s2 + $0x160] sm:$0xff] }
 0x2db   :  { %2109 = vmatpush.msrb.mxu0 %v14808_v22  ;;  %v9841_v22 = vunpack.i.h.bf16 %v11619_v5 }
 0x2dc   :  { %8378 = vmatmul.msk.f32.gmra.mxu1 %vm752_vm3, %v1682_v45  ;;  %v1681_v45 = vunpack.c.l.bf16 %v8370_v1  ;;  %v1684_v1 = vunpack.c.h.bf16 %v8371_v61 }
 0x2dd   :  { %2110 = vmatpush.msrb.mxu0 %v14809_v48  ;;  %v11666_v9 = vpop.permute.xlu0 %9848 }
 0x2de   :  { %1604 = vmatmul.f32.vlgmr.msra.gmra.mxu2 %v1469_v54  ;;  %8362 = vmatmul.msk.f32.vlgmr.msra.gmra.mxu3 %vm752_vm3, %v1470_v34  ;;  %v11669_v36 = vpop.f32.mrf.mxu2  ;;  %v11671_v40 = vpop.f32.mrf.mxu3  ;;  %v8355_v54 = vld [vmem:[%s14740_s2 + $0x120] sm:$0xff]  ;;  %v14810_v34 = vld [vmem:[#allocation4_spill] sm:$0xff] }
 0x2df   :  { %2111 = vmatpush.msrb.mxu0 %v10776_v24  ;;  %2307 = vmatpush.msra.mxu2 %v9810_v41  ;;  %v11675_v19 = vpop.permute.xlu1 %9868  ;;  %v11687_v24 = vpop.permute.xlu2 %9913  ;;  %v9846_v41 = vunpack.i.h.bf16 %v11498_v50  ;;  %v1471_v48 = vunpack.c.l.bf16 %v8355_v54  ;;  %v1472_v60 = vunpack.c.h.bf16 %v8355_v54 }
 0x2e0   :  { %8421 = vmatpush.msk.msra.mxu3 %vm774_vm2, %v2263_v51  ;;  %10043 = vrot.lane.b32.xlu0 %v11508_v10, %s10276_s13  ;;  %v9815_v51 = vunpack.i.l.bf16 %v11562_v23  ;;  %v9851_v10 = vunpack.i.h.bf16 %v11666_v9 }
 0x2e1   :  { %2112 = vmatpush.msrb.mxu0 %v14810_v34  ;;  %2308 = vmatpush.msra.mxu2 %v9811_v21  ;;  %v9816_v34 = vunpack.i.h.bf16 %v11562_v23  ;;  %v1683_v23 = vunpack.c.l.bf16 %v8371_v61  ;;  %v9825_v61 = vunpack.i.l.bf16 %v11609_v39 }
 0x2e2   :  { %2357 = vmatpush.msra.mxu3 %v9841_v22  ;;  %10073 = vrot.lane.b32.xlu2 %v11480_v31, %s10277_s14  ;;  %v9856_v22 = vunpack.i.h.bf16 %v11645_v8 }
 0x2e3   :  { %10083 = vrot.lane.b32.xlu1 %v11582_v12, %s10277_s14  ;;  %1797 = vmatmul.f32.gmra.mxu0 %v1681_v45 }
 0x2e4   :  { %2309 = vmatpush.msra.mxu2 %v9815_v51  ;;  %2358 = vmatpush.msra.mxu3 %v9846_v41  ;;  %v1114_v21 = vpop.f32.mrf.mxu0  ;;  %v9821_v41 = vunpack.i.h.bf16 %v11409_v4  ;;  %v8356_v51 = vld [vmem:[%s14740_s2 + $0x128] sm:$0xff] }
 0x2e5   :  { %v9864_v49 = vpop.permute.xlu0 %9863  ;;  %8379 = vmatmul.msk.f32.gmra.mxu1 %vm752_vm3, %v1684_v1  ;;  %v1473_v4 = vunpack.c.l.bf16 %v8356_v51 }
 0x2e6   :  { %2310 = vmatpush.msra.mxu2 %v9816_v34  ;;  %2359 = vmatpush.msra.mxu3 %v9851_v10  ;;  %v9865_v26 = vunpack.i.l.bf16 %v9864_v49  ;;  %v812_v7 = vpop.f32.mrf.mxu2  ;;  %v8372_v10 = vld [vmem:[%s14740_s2 + $0x168] sm:$0xff]  ;;  %v9826_v34 = vunpack.i.h.bf16 %v11609_v39 }
 0x2e7   :  { %1607 = vmatmul.f32.gmra.mxu2 %v1471_v48  ;;  %8363 = vmatmul.msk.f32.gmra.mxu3 %vm752_vm3, %v1472_v60  ;;  %v850_v45 = vpop.f32.mrf.mxu3  ;;  %v11702_v54 = vpop.permute.xlu1 %9883  ;;  %v1686_v60 = vunpack.c.h.bf16 %v8372_v10  ;;  %v9866_v48 = vunpack.i.h.bf16 %v9864_v49  ;;  %v1685_v39 = vunpack.c.l.bf16 %v8372_v10 }
 0x2e8   :  { %2311 = vmatpush.msra.mxu2 %v9820_v25  ;;  %2360 = vmatpush.msra.mxu3 %v9856_v22  ;;  %v851_v1 = vadd.f32 %v850_v45, %v812_v7  ;;  %v11719_v7 = vpop.permute.xlu2 %9923 }
 0x2e9   :  { %10058 = vrot.lane.b32.xlu0 %v11438_v2, %s10277_s14  ;;  %2497 = vmatpush.msra.mxu0 %v9865_v26  ;;  %v1474_v2 = vunpack.c.h.bf16 %v8356_v51  ;;  %v9875_v26 = vunpack.i.l.bf16 %v11570_v43 }
 0x2ea   :  { %2312 = vmatpush.msra.mxu2 %v9821_v41  ;;  %10088 = vrot.lane.b32.xlu2 %v11480_v31, %s10276_s13  ;;  %v11717_v25 = vadd.f32 %v11660_v44, %v851_v1  ;;  %v9876_v31 = vunpack.i.h.bf16 %v11570_v43  ;;  %v9830_v44 = vunpack.i.l.bf16 %v11591_v13  ;;  %v9831_v41 = vunpack.i.h.bf16 %v11591_v13  ;;  %v8357_v43 = vld [vmem:[%s14740_s2 + $0x130] sm:$0xff] }
 0x2eb   :  { %3361 = vrot.lane.b32.xlu1 %v11540_v17, %s10277_s14  ;;  %1800 = vmatmul.f32.gmra.mxu0 %v1683_v23  ;;  %v9835_v13 = vunpack.i.l.bf16 %v11446_v32 }
 0x2ec   :  { %2313 = vmatpush.msra.mxu2 %v9825_v61  ;;  %2498 = vmatpush.msra.mxu0 %v9866_v48  ;;  %v1117_v49 = vpop.f32.mrf.mxu0  ;;  %v9885_v61 = vunpack.i.l.bf16 %v11702_v54  ;;  %v1476_v48 = vunpack.c.h.bf16 %v8357_v43 }
 0x2ed   :  { %v11725_v22 = vpop.permute.xlu0 %9878  ;;  %8380 = vmatmul.msk.f32.gmra.mxu1 %vm752_vm3, %v1686_v60  ;;  %v8373_v60 = vld [vmem:[%s14740_s2 + $0x170] sm:$0xff] }
 0x2ee   :  { %2314 = vmatpush.msra.mxu2 %v9826_v34  ;;  %2499 = vmatpush.msra.mxu0 %v9875_v26  ;;  %v11730_v45 = vpop.f32.mrf.mxu2  ;;  %v1688_v10 = vunpack.c.h.bf16 %v8373_v60 }
 0x2ef   :  { %1610 = vmatmul.f32.gmra.mxu2 %v1473_v4  ;;  %8364 = vmatmul.msk.f32.gmra.mxu3 %vm752_vm3, %v1474_v2  ;;  %v1076_v23 = vpop.f32.mrf.mxu3  ;;  %v9836_v4 = vunpack.i.h.bf16 %v11446_v32  ;;  %v9886_v2 = vunpack.i.h.bf16 %v11702_v54  ;;  %v1687_v54 = vunpack.c.l.bf16 %v8373_v60 }
 0x2f0   :  { %2315 = vmatpush.msra.mxu2 %v9830_v44  ;;  %2500 = vmatpush.msra.mxu0 %v9876_v31  ;;  %v11734_v1 = vpop.permute.xlu1 %9898  ;;  %v11736_v51 = vadd.f32 %v1114_v21, %v1076_v23  ;;  %v1475_v21 = vunpack.c.l.bf16 %v8357_v43  ;;  %v11754_v34 = vpop.permute.xlu2 %9938  ;;  %v9840_v31 = vunpack.i.l.bf16 %v11619_v5  ;;  %v8358_v5 = vld [vmem:[%s14740_s2 + $0x138] sm:$0xff] }
 0x2f1   :  { %10068 = vrot.lane.b32.xlu0 %v11521_v57, %s10277_s14 }
 0x2f2   :  { %2316 = vmatpush.msra.mxu2 %v9831_v41  ;;  %10103 = vrot.lane.b32.xlu2 %v11555_v30, %s10276_s13  ;;  %v9845_v41 = vunpack.i.l.bf16 %v11498_v50  ;;  %v9850_v50 = vunpack.i.l.bf16 %v11666_v9 }
 0x2f3   :  { %3171 = vrot.lane.b32.xlu1 %v11540_v17, %s10276_s13  ;;  %1803 = vmatmul.f32.gmra.mxu0 %v1685_v39 }
 0x2f4   :  { %2317 = vmatpush.msra.mxu2 %v9835_v13  ;;  %2501 = vmatpush.msra.mxu0 %v9885_v61  ;;  %v1120_v26 = vpop.f32.mrf.mxu0 }
 0x2f5   :  { %8381 = vmatmul.msk.f32.gmra.mxu1 %vm752_vm3, %v1688_v10  ;;  %v8374_v10 = vld [vmem:[%s14740_s2 + $0x178] sm:$0xff] }
 0x2f6   :  { %2318 = vmatpush.msra.mxu2 %v9836_v4  ;;  %2502 = vmatpush.msra.mxu0 %v9886_v2  ;;  %v9894_v44 = vpop.permute.xlu0 %9893  ;;  %v11758_v23 = vpop.f32.mrf.mxu2  ;;  %v1690_v60 = vunpack.c.h.bf16 %v8374_v10  ;;  %v9855_v4 = vunpack.i.l.bf16 %v11645_v8  ;;  %v9906_v2 = vunpack.i.h.bf16 %v11640_v59 }
 0x2f7   :  { %1613 = vmatmul.f32.gmra.mxu2 %v1475_v21  ;;  %8365 = vmatmul.msk.f32.gmra.mxu3 %vm752_vm3, %v1476_v48  ;;  %v9895_v32 = vunpack.i.l.bf16 %v9894_v44  ;;  %v1079_v39 = vpop.f32.mrf.mxu3  ;;  %v9896_v61 = vunpack.i.h.bf16 %v9894_v44  ;;  %v1478_v21 = vunpack.c.h.bf16 %v8358_v5  ;;  %v9905_v48 = vunpack.i.l.bf16 %v11640_v59  ;;  %v8359_v59 = vld [vmem:[%s14740_s2 + $0x140] sm:$0xff] }
 0x2f8   :  { %2319 = vmatpush.msra.mxu2 %v9840_v31  ;;  %v11762_v43 = vadd.f32 %v1117_v49, %v1079_v39  ;;  %v1477_v49 = vunpack.c.l.bf16 %v8358_v5  ;;  %v11785_v44 = vpop.permute.xlu2 %9953  ;;  %v1689_v39 = vunpack.c.l.bf16 %v8374_v10  ;;  %v9916_v10 = vunpack.i.h.bf16 %v11687_v24 }
 0x2f9   :  { %10078 = vrot.lane.b32.xlu0 %v11521_v57, %s10276_s13  ;;  %v11772_v13 = vpop.permute.xlu1 %9933  ;;  %2503 = vmatpush.msra.mxu0 %v9895_v32  ;;  %v900_v57 = vadd.f32 %v11510_v42, %v11589_v20  ;;  %v9915_v42 = vunpack.i.l.bf16 %v11687_v24 }
 0x2fa   :  { %2320 = vmatpush.msra.mxu2 %v9845_v41 }
 0x2fb   :  { %10098 = vrot.lane.b32.xlu1 %v11582_v12, %s10276_s13  ;;  %1806 = vmatmul.f32.gmra.mxu0 %v1687_v54  ;;  %v8375_v54 = vld [vmem:[%s14740_s2 + $0x180] sm:$0x11] }
 0x2fc   :  { %2321 = vmatpush.msra.mxu2 %v9850_v50  ;;  %2504 = vmatpush.msra.mxu0 %v9896_v61  ;;  %v1692_v5 = vunpack.c.h.bf16 %v8375_v54  ;;  %v1480_v50 = vunpack.c.h.bf16 %v8359_v59 }
 0x2fd   :  { %8382 = vmatmul.msk.f32.gmra.mxu1 %vm752_vm3, %v1690_v60  ;;  %v1123_v9 = vpop.f32.mrf.mxu0 }
 0x2fe   :  { %2322 = vmatpush.msra.mxu2 %v9855_v4  ;;  %2505 = vmatpush.msra.mxu0 %v9905_v48  ;;  %v11783_v12 = vpop.permute.xlu0 %9908  ;;  %v937_v31 = vpop.f32.mrf.mxu2  ;;  %v8360_v4 = vld [vmem:[%s14740_s2 + $0x148] sm:$0x11] }
 0x2ff   :  { %1616 = vmatmul.f32.gmra.mxu2 %v1477_v49  ;;  %8366 = vmatmul.msk.f32.gmra.mxu3 %vm752_vm3, %v1478_v21  ;;  %v938_v8 = vadd.f32 %v937_v31, %v900_v57  ;;  %v1082_v32 = vpop.f32.mrf.mxu3  ;;  %v1691_v21 = vunpack.c.l.bf16 %v8375_v54  ;;  %v8399_v57 = vld [vmem:[%s14740_s2 + $0x1c0] sm:$0xff] }
 0x300   :  { %2506 = vmatpush.msra.mxu0 %v9906_v2  ;;  %v1121_v20 = vadd.f32 %v1120_v26, %v1082_v32  ;;  %v1479_v26 = vunpack.c.l.bf16 %v8359_v59  ;;  %v11814_v2 = vpop.permute.xlu2 %9968 }
 0x301   :  { %10093 = vrot.lane.b32.xlu0 %v11555_v30, %s10277_s14  ;;  %v11797_v41 = vpop.permute.xlu1 %2642  ;;  %v903_v30 = vadd.f32 %v11545_v52, %v11617_v47  ;;  %v2060_v52 = vunpack.c.h.bf16 %v8399_v57 }
 0x302   :  { %v11800_v60 = vadd.f32 %v1121_v20, %v938_v8  ;;  %2507 = vmatpush.msra.mxu0 %v9915_v42  ;;  %v1482_v42 = vunpack.c.h.bf16 %v8360_v4  ;;  %v11820_v20 = vpop.f32.mrf.mxu1 }
 0x303   :  { %1809 = vmatmul.f32.gmra.mxu0 %v1689_v39  ;;  %v1481_v39 = vunpack.c.l.bf16 %v8360_v4 }
 0x304   :  { %2508 = vmatpush.msra.mxu0 %v9916_v10 }
 0x305   :  { %8383 = vmatmul.msk.f32.gmra.mxu1 %vm752_vm3, %v1692_v5  ;;  %v906_v5 = vadd.f32 %v11585_v11, %v11643_v3  ;;  %v8400_v11 = vld [vmem:[%s14740_s2 + $0x1c8] sm:$0xff]  ;;  %v848_v3 = vadd.f32 %v11671_v40, %v11669_v36 }
 0x306   :  { %v11803_v61 = vpop.permute.xlu0 %9918  ;;  %v1126_v49 = vpop.f32.mrf.mxu0 }
 0x307   :  { %1619 = vmatmul.f32.gmra.mxu2 %v1479_v26  ;;  %8367 = vmatmul.msk.f32.gmra.mxu3 %vm752_vm3, %v1480_v50  ;;  %v2059_v26 = vunpack.c.l.bf16 %v8399_v57  ;;  %v9940_v57 = vunpack.i.l.bf16 %v11754_v34  ;;  %v909_v40 = vadd.f32 %v11631_v6, %v848_v3 }
 0x308   :  { %v940_v24 = vpop.f32.mrf.mxu2  ;;  %v1085_v48 = vpop.f32.mrf.mxu3 }
 0x309   :  { %v941_v31 = vadd.f32 %v940_v24, %v903_v30  ;;  %v2453_v8 = vpop.permute.xlu1 %2452  ;;  %v1124_v32 = vadd.f32 %v1123_v9, %v1085_v48  ;;  %v9941_v24 = vunpack.i.h.bf16 %v11754_v34  ;;  %v9956_v34 = vunpack.i.h.bf16 %v11785_v44 }
 0x30a   :  { %8436 = vmatpush.msk.msrb.mxu1 %vm774_vm2, %v2453_v8  ;;  %v2062_v8 = vunpack.c.h.bf16 %v8400_v11 }
 0x30b   :  { %1812 = vmatmul.f32.gmra.mxu0 %v1691_v21  ;;  %v11817_v47 = vadd.f32 %v1124_v32, %v941_v31  ;;  %v8384_v21 = vld [vmem:[%s14740_s2 + $0x188] sm:$0xff]  ;;  %v11835_v32 = vpop.permute.xlu2 %9983 }
 0x30d   :  { %8407 = vmatmul.msk.f32.vlgmr.msra.gmra.mxu1 %vm752_vm3, %v2060_v52 }
 0x30e   :  { %v9929_v59 = vpop.permute.xlu0 %9928  ;;  %v1129_v54 = vpop.f32.mrf.mxu0 }
 0x30f   :  { %1622 = vmatmul.f32.gmra.mxu2 %v1481_v39  ;;  %8368 = vmatmul.msk.f32.gmra.mxu3 %vm752_vm3, %v1482_v42  ;;  %v9931_v9 = vunpack.i.h.bf16 %v9929_v59  ;;  %v9930_v10 = vunpack.i.l.bf16 %v9929_v59  ;;  %v1870_v42 = vunpack.c.h.bf16 %v8384_v21 }
 0x310   :  { %v943_v50 = vpop.f32.mrf.mxu2  ;;  %v1088_v30 = vpop.f32.mrf.mxu3 }
 0x311   :  { %v944_v48 = vadd.f32 %v943_v50, %v906_v5  ;;  %v9949_v4 = vpop.permute.xlu1 %9948  ;;  %v1127_v31 = vadd.f32 %v1126_v49, %v1088_v30  ;;  %2509 = vmatpush.msra.mxu0 %v9930_v10  ;;  %2547 = vmatpush.msrb.mxu1 %v9931_v9  ;;  %v1869_v49 = vunpack.c.l.bf16 %v8384_v21  ;;  %v9860_v5 = vunpack.i.l.bf16 %v11537_v53  ;;  %v11847_v50 = vpop.f32.mrf.mxu1 }
 0x312   :  { %v9951_v52 = vunpack.i.h.bf16 %v9949_v4  ;;  %v9950_v59 = vunpack.i.l.bf16 %v9949_v4  ;;  %v9955_v10 = vunpack.i.l.bf16 %v11785_v44  ;;  %v9861_v30 = vunpack.i.h.bf16 %v11537_v53  ;;  %v8385_v44 = vld [vmem:[%s14740_s2 + $0x190] sm:$0xff] }
 0x313   :  { %2113 = vmatmul.f32.vlgmr.msrb.gmra.mxu0 %v2059_v26  ;;  %v11837_v39 = vadd.f32 %v1127_v31, %v944_v48  ;;  %2548 = vmatpush.msrb.mxu1 %v9941_v24  ;;  %v2061_v26 = vunpack.c.l.bf16 %v8400_v11  ;;  %v9921_v21 = vunpack.i.h.bf16 %v11803_v61  ;;  %v9926_v53 = vunpack.i.h.bf16 %v11719_v7 }
 0x314   :  { %2510 = vmatpush.msra.mxu0 %v9940_v57  ;;  %v9870_v11 = vunpack.i.l.bf16 %v11675_v19  ;;  %v1871_v3 = vunpack.c.l.bf16 %v8385_v44  ;;  %v9871_v57 = vunpack.i.h.bf16 %v11675_v19 }
 0x315   :  { %2549 = vmatpush.msrb.mxu1 %v9951_v52  ;;  %v11866_v52 = vpop.permute.xlu2 %9988 }
 0x316   :  { %2511 = vmatpush.msra.mxu0 %v9950_v59  ;;  %v11840_v9 = vpop.permute.xlu0 %9943  ;;  %v1132_v36 = vpop.f32.mrf.mxu0  ;;  %8408 = vmatmul.msk.f32.gmra.mxu1 %vm752_vm3, %v2062_v8  ;;  %v9936_v8 = vunpack.i.h.bf16 %v11772_v13  ;;  %v833_v59 = vadd.f32 %v11523_v18, %v11516_v62 }
 0x317   :  { %1984 = vmatmul.f32.vlgmr.msrb.gmra.mxu2 %v1869_v49  ;;  %8392 = vmatmul.msk.f32.vlgmr.msrb.gmra.mxu3 %vm752_vm3, %v1870_v42  ;;  %v9880_v49 = vunpack.i.l.bf16 %v11725_v22 }
 0x318   :  { %2687 = vmatpush.msrb.mxu2 %v9860_v5  ;;  %8451 = vmatpush.msk.msrb.mxu3 %vm774_vm2, %v11797_v41  ;;  %v946_v24 = vpop.f32.mrf.mxu2  ;;  %v1091_v6 = vpop.f32.mrf.mxu3  ;;  %v9946_v5 = vunpack.i.h.bf16 %v11840_v9 }
 0x319   :  { %v947_v48 = vadd.f32 %v946_v24, %v909_v40  ;;  %2512 = vmatpush.msra.mxu0 %v9955_v10  ;;  %2550 = vmatpush.msrb.mxu1 %v9956_v34  ;;  %v11856_v4 = vpop.permute.xlu1 %9963  ;;  %v1130_v31 = vadd.f32 %v1129_v54, %v1091_v6  ;;  %v1872_v54 = vunpack.c.h.bf16 %v8385_v44  ;;  %v9891_v24 = vunpack.i.h.bf16 %v11612_v28 }
 0x31a   :  { %2688 = vmatpush.msrb.mxu2 %v9861_v30  ;;  %2737 = vmatpush.msrb.mxu3 %v9921_v21  ;;  %v11891_v30 = vpop.f32.mrf.mxu1  ;;  %v9890_v21 = vunpack.i.l.bf16 %v11612_v28  ;;  %v9900_v28 = vunpack.i.l.bf16 %v11734_v1 }
 0x31b   :  { %2116 = vmatmul.f32.gmra.mxu0 %v2061_v26  ;;  %8466 = vmatpush.msk.msra.mxu1 %vm774_vm2, %v11540_v17  ;;  %v11862_v41 = vadd.f32 %v1130_v31, %v947_v48  ;;  %v8401_v17 = vld [vmem:[%s14740_s2 + $0x1d0] sm:$0xff]  ;;  %v9901_v31 = vunpack.i.h.bf16 %v11734_v1 }
 0x31c   :  { %2689 = vmatpush.msrb.mxu2 %v9870_v11  ;;  %2738 = vmatpush.msrb.mxu3 %v9926_v53  ;;  %v2063_v10 = vunpack.c.l.bf16 %v8401_v17 }
 0x31d   :  { %2816 = vmatpush.msrb.mxu0 %v11339_v0  ;;  %2866 = vmatpush.msra.mxu1 %v11502_v33  ;;  %v2064_v0 = vunpack.c.h.bf16 %v8401_v17  ;;  %v9881_v33 = vunpack.i.h.bf16 %v11725_v22  ;;  %v894_v22 = vadd.f32 %v11407_v38, %v833_v59  ;;  %v11915_v44 = vpop.permute.xlu2 %10008  ;;  %v9911_v17 = vunpack.i.h.bf16 %v11783_v12 }
 0x31e   :  { %2690 = vmatpush.msrb.mxu2 %v9871_v57  ;;  %2739 = vmatpush.msrb.mxu3 %v9936_v8  ;;  %v11874_v19 = vpop.permute.xlu0 %9958  ;;  %v11876_v42 = vpop.f32.mrf.mxu0  ;;  %v14811_v57 = vld [vmem:[#allocation23_spill] sm:$0xff] }
 0x31f   :  { %2817 = vmatpush.msrb.mxu0 %v11296_v37  ;;  %1987 = vmatmul.f32.gmra.mxu2 %v1871_v3  ;;  %v8386_v37 = vld [vmem:[%s14740_s2 + $0x198] sm:$0xff]  ;;  %v9910_v3 = vunpack.i.l.bf16 %v11783_v12 }
 0x320   :  { %8393 = vmatmul.msk.f32.gmra.mxu3 %vm752_vm3, %v1872_v54  ;;  %2691 = vmatpush.msrb.mxu2 %v9880_v49  ;;  %v949_v40 = vpop.f32.mrf.mxu2  ;;  %v1094_v34 = vpop.f32.mrf.mxu3  ;;  %v8403_v49 = vld [vmem:[%s14740_s2 + $0x1e0] sm:$0xff] }
 0x321   :  { %2740 = vmatpush.msrb.mxu3 %v9946_v5  ;;  %2818 = vmatpush.msrb.mxu0 %v11263_v46  ;;  %v950_v26 = vadd.f32 %v949_v40, %v11717_v25  ;;  %v11886_v62 = vpop.permute.xlu1 %9978  ;;  %v1133_v18 = vadd.f32 %v1132_v36, %v1094_v34  ;;  %v1873_v25 = vunpack.c.l.bf16 %v8386_v37  ;;  %v1874_v36 = vunpack.c.h.bf16 %v8386_v37  ;;  %v8388_v37 = vld [vmem:[%s14740_s2 + $0x1a8] sm:$0xff] }
 0x322   :  { %2867 = vmatpush.msra.mxu1 %v11451_v35  ;;  %2692 = vmatpush.msrb.mxu2 %v9881_v33  ;;  %v932_v35 = vadd.f32 %v11730_v45, %v894_v22  ;;  %v9920_v5 = vunpack.i.l.bf16 %v11803_v61  ;;  %v2067_v40 = vunpack.c.l.bf16 %v8403_v49  ;;  %v2068_v34 = vunpack.c.h.bf16 %v8403_v49 }
 0x323   :  { %2819 = vmatpush.msrb.mxu0 %v11237_v29  ;;  %v11897_v46 = vadd.f32 %v1133_v18, %v950_v26  ;;  %8409 = vmatmul.msk.f32.gmra.mxu1 %vm752_vm3, %v2064_v0  ;;  %v8402_v29 = vld [vmem:[%s14740_s2 + $0x1d8] sm:$0xff]  ;;  %v14814_v18 = vld [vmem:[#allocation20_spill] sm:$0xff] }
 0x324   :  { %2868 = vmatpush.msra.mxu1 %v11399_v15  ;;  %2119 = vmatmul.f32.gmra.mxu0 %v2063_v10  ;;  %v836_v15 = vadd.f32 %v11550_v27, %v11548_v58  ;;  %v2066_v48 = vunpack.c.h.bf16 %v8402_v29  ;;  %v1135_v53 = vadd.f32 %v11736_v51, %v932_v35  ;;  %v11932_v51 = vpop.f32.mrf.mxu1  ;;  %v14813_v0 = vld [vmem:[#allocation21_spill] sm:$0xff]  ;;  %v9925_v10 = vunpack.i.l.bf16 %v11719_v7 }
 0x325   :  { %2693 = vmatpush.msrb.mxu2 %v9890_v21  ;;  %2820 = vmatpush.msrb.mxu0 %v11207_v55  ;;  %v11954_v22 = vpop.permute.xlu2 %10023  ;;  %v9945_v35 = vunpack.i.l.bf16 %v11840_v9 }
 0x326   :  { %2869 = vmatpush.msra.mxu1 %v11373_v56  ;;  %v11908_v38 = vpop.permute.xlu0 %9973  ;;  %v11910_v6 = vpop.f32.mrf.mxu0  ;;  %v2065_v56 = vunpack.c.l.bf16 %v8402_v29  ;;  %v897_v11 = vadd.f32 %v11460_v63, %v836_v15  ;;  %v14812_v63 = vld [vmem:[#allocation22_spill] sm:$0xff]  ;;  %v8404_v15 = vld [vmem:[%s14740_s2 + $0x1e8] sm:$0xff] }
 0x327   :  { %2694 = vmatpush.msrb.mxu2 %v9891_v24  ;;  %2821 = vmatpush.msrb.mxu0 %v11171_v16  ;;  %v8387_v16 = vld [vmem:[%s14740_s2 + $0x1a0] sm:$0xff]  ;;  %v1878_v24 = vunpack.c.h.bf16 %v8388_v37  ;;  %v2069_v9 = vunpack.c.l.bf16 %v8404_v15 }
 0x328   :  { %1990 = vmatmul.f32.gmra.mxu2 %v1873_v25  ;;  %8394 = vmatmul.msk.f32.gmra.mxu3 %vm752_vm3, %v1874_v36  ;;  %v1266_v55 = vpop.f32.mrf.mxu2  ;;  %v1304_v45 = vpop.f32.mrf.mxu3  ;;  %v1876_v8 = vunpack.c.h.bf16 %v8387_v16  ;;  %v935_v54 = vadd.f32 %v11758_v23, %v897_v11  ;;  %v9935_v25 = vunpack.i.l.bf16 %v11772_v13  ;;  %v14815_v36 = vld [vmem:[#allocation19_spill] sm:$0xff]  ;;  %v14816_v29 = vld [vmem:[#allocation18_spill] sm:$0xff]  ;;  %v14819_v11 = vld [vmem:[#allocation12_spill] sm:$0xff] }
 0x329   :  { %2695 = vmatpush.msrb.mxu2 %v9900_v28  ;;  %2822 = vmatpush.msrb.mxu0 %v11136_v14  ;;  %v1305_v58 = vadd.f32 %v1304_v45, %v1266_v55  ;;  %v11922_v27 = vpop.permute.xlu1 %9993  ;;  %v1875_v14 = vunpack.c.l.bf16 %v8387_v16  ;;  %v14817_v55 = vld [vmem:[#allocation16_spill] sm:$0xff] }
 0x32a   :  { %v1136_v26 = vadd.f32 %v11762_v43, %v935_v54  ;;  %v1877_v43 = vunpack.c.l.bf16 %v8388_v37  ;;  %v8429_v37 = vld [vmem:[%s14740_s2 + $0x230] sm:$0xff] }
 0x32b   :  { %2696 = vmatpush.msrb.mxu2 %v9901_v31  ;;  %2823 = vmatpush.msrb.mxu0 %v14811_v57  ;;  %v11930_v1 = vadd.f32 %v1305_v58, %v1135_v53  ;;  %v14818_v31 = vld [vmem:[#allocation14_spill] sm:$0xff]  ;;  %v8389_v58 = vld [vmem:[%s14740_s2 + $0x1b0] sm:$0xff] }
 0x32c   :  { %2122 = vmatmul.f32.gmra.mxu0 %v2065_v56  ;;  %8410 = vmatmul.msk.f32.gmra.mxu1 %vm752_vm3, %v2066_v48  ;;  %v11968_v13 = vpop.f32.mrf.mxu1  ;;  %v2070_v48 = vunpack.c.h.bf16 %v8404_v15  ;;  %v1880_v54 = vunpack.c.h.bf16 %v8389_v58 }
 0x32d   :  { %2697 = vmatpush.msrb.mxu2 %v9910_v3  ;;  %2824 = vmatpush.msrb.mxu0 %v14812_v63  ;;  %v11984_v57 = vpop.permute.xlu2 %10038 }
 0x32e   :  { %v11941_v59 = vpop.f32.mrf.mxu0  ;;  %v11945_v33 = vpop.permute.xlu0 %2981 }
 0x32f   :  { %2698 = vmatpush.msrb.mxu2 %v9911_v17  ;;  %2825 = vmatpush.msrb.mxu0 %v14813_v0  ;;  %v8405_v17 = vld [vmem:[%s14740_s2 + $0x1f0] sm:$0x11] }
 0x330   :  { %1993 = vmatmul.f32.gmra.mxu2 %v1875_v14  ;;  %8395 = vmatmul.msk.f32.gmra.mxu3 %vm752_vm3, %v1876_v8  ;;  %v1269_v23 = vpop.f32.mrf.mxu2  ;;  %v1307_v12 = vpop.f32.mrf.mxu3  ;;  %v1879_v8 = vunpack.c.l.bf16 %v8389_v58  ;;  %v2071_v0 = vunpack.c.l.bf16 %v8405_v17 }
 0x331   :  { %2699 = vmatpush.msrb.mxu2 %v9920_v5  ;;  %2826 = vmatpush.msrb.mxu0 %v14814_v18  ;;  %v1308_v61 = vadd.f32 %v1307_v12, %v1269_v23  ;;  %v2072_v23 = vunpack.c.h.bf16 %v8405_v17 }
 0x332   :  { %v11956_v21 = vpop.permute.xlu1 %10003 }
 0x333   :  { %2700 = vmatpush.msrb.mxu2 %v9925_v10  ;;  %2827 = vmatpush.msrb.mxu0 %v14815_v36  ;;  %v11960_v7 = vadd.f32 %v1308_v61, %v1136_v26 }
 0x334   :  { %2125 = vmatmul.f32.gmra.mxu0 %v2067_v40  ;;  %8411 = vmatmul.msk.f32.gmra.mxu1 %vm752_vm3, %v2068_v34  ;;  %v11994_v49 = vpop.f32.mrf.mxu1  ;;  %v8390_v40 = vld [vmem:[%s14740_s2 + $0x1b8] sm:$0x11] }
 0x335   :  { %2701 = vmatpush.msrb.mxu2 %v9935_v25  ;;  %2828 = vmatpush.msrb.mxu0 %v14816_v29  ;;  %v1881_v18 = vunpack.c.l.bf16 %v8390_v40  ;;  %v1882_v61 = vunpack.c.h.bf16 %v8390_v40  ;;  %v12009_v25 = vpop.permute.xlu2 %10053  ;;  %v8414_v29 = vld [vmem:[%s14740_s2 + $0x1f8] sm:$0xff]  ;;  %v8415_v40 = vld [vmem:[%s14740_s2 + $0x200] sm:$0xff] }
 0x336   :  { %v11970_v28 = vpop.f32.mrf.mxu0 }
 0x337   :  { %2702 = vmatpush.msrb.mxu2 %v9945_v35  ;;  %2829 = vmatpush.msrb.mxu0 %v14817_v55 }
 0x338   :  { %1996 = vmatmul.f32.gmra.mxu2 %v1877_v43  ;;  %8396 = vmatmul.msk.f32.gmra.mxu3 %vm752_vm3, %v1878_v24  ;;  %v1272_v45 = vpop.f32.mrf.mxu2  ;;  %v1310_v56 = vpop.f32.mrf.mxu3  ;;  %v2399_v43 = vunpack.c.h.bf16 %v8429_v37 }
 0x339   :  { %2830 = vmatpush.msrb.mxu0 %v14818_v31  ;;  %v1311_v53 = vadd.f32 %v1310_v56, %v1272_v45  ;;  %v2188_v31 = vunpack.c.l.bf16 %v8414_v29 }
 0x33a   :  { %v11978_v16 = vpop.permute.xlu0 %9998 }
 0x33b   :  { %2831 = vmatpush.msrb.mxu0 %v14819_v11  ;;  %v11982_v3 = vadd.f32 %v1311_v53, %v11800_v60  ;;  %v2189_v53 = vunpack.c.h.bf16 %v8414_v29  ;;  %v12030_v11 = vld [vmem:[%s14740_s2 + $0x238] sm:$0xff] }
 0x33c   :  { %2128 = vmatmul.f32.gmra.mxu0 %v2069_v9  ;;  %v11986_v14 = vpop.permute.xlu1 %10018  ;;  %8412 = vmatmul.msk.f32.gmra.mxu1 %vm752_vm3, %v2070_v48 }
 0x33d   :  { %v12036_v17 = vpop.permute.xlu2 %10063 }
 0x33f   :  { %v11992_v63 = vpop.f32.mrf.mxu0 }
 0x340   :  { %1999 = vmatmul.f32.gmra.mxu2 %v1879_v8  ;;  %8397 = vmatmul.msk.f32.gmra.mxu3 %vm752_vm3, %v1880_v54  ;;  %v1275_v60 = vpop.f32.mrf.mxu2  ;;  %v1313_v5 = vpop.f32.mrf.mxu3  ;;  %v9960_v8 = vunpack.i.l.bf16 %v11874_v19 }
 0x341   :  { %v1314_v12 = vadd.f32 %v1313_v5, %v1275_v60  ;;  %v2401_v60 = vunpack.c.h.bf16 %v12030_v11  ;;  %v9961_v5 = vunpack.i.h.bf16 %v11874_v19  ;;  %v9991_v19 = vunpack.i.h.bf16 %v11866_v52 }
 0x342   :  { %v10014_v34 = vpop.permute.xlu0 %10013 }
 0x343   :  { %v12001_v10 = vadd.f32 %v1314_v12, %v11817_v47  ;;  %v2398_v47 = vunpack.c.l.bf16 %v8429_v37  ;;  %v10015_v56 = vunpack.i.l.bf16 %v10014_v34  ;;  %v10016_v58 = vunpack.i.h.bf16 %v10014_v34 }
 0x344   :  { %2131 = vmatmul.f32.gmra.mxu0 %v2071_v0  ;;  %v12003_v26 = vpop.permute.xlu1 %10033  ;;  %8413 = vmatmul.msk.f32.gmra.mxu1 %vm752_vm3, %v2072_v23  ;;  %v9996_v0 = vunpack.i.h.bf16 %v11922_v27  ;;  %v10026_v34 = vunpack.i.h.bf16 %v11954_v22 }
 0x347   :  { %v12011_v36 = vpop.f32.mrf.mxu0 }
 0x348   :  { %2002 = vmatmul.f32.gmra.mxu2 %v1881_v18  ;;  %8398 = vmatmul.msk.f32.gmra.mxu3 %vm752_vm3, %v1882_v61 }
 0x349   :  { %v1278_v24 = vpop.f32.mrf.mxu2  ;;  %v1316_v35 = vpop.f32.mrf.mxu3 }
 0x34a   :  { %v12017_v15 = vpop.permute.xlu0 %10028  ;;  %v1317_v55 = vadd.f32 %v1316_v35, %v1278_v24  ;;  %v12019_v45 = vpop.f32.mrf.mxu1  ;;  %v2190_v24 = vunpack.c.l.bf16 %v8415_v40  ;;  %v10001_v35 = vunpack.i.h.bf16 %v11978_v16 }
 0x34c   :  { %v12022_v9 = vadd.f32 %v1317_v55, %v11837_v39  ;;  %2513 = vmatmul.f32.vlgmr.msra.gmra.mxu0 %v2398_v47  ;;  %v12024_v48 = vpop.permute.xlu1 %10048  ;;  %8437 = vmatmul.msk.f32.vlgmr.msrb.gmra.mxu1 %vm752_vm3, %v2399_v43  ;;  %v10025_v39 = vunpack.i.l.bf16 %v11954_v22  ;;  %v9965_v47 = vunpack.i.l.bf16 %v11856_v4  ;;  %v9966_v22 = vunpack.i.h.bf16 %v11856_v4 }
 0x34d   :  { %3216 = vmatpush.msra.mxu0 %v10015_v56  ;;  %v2191_v55 = vunpack.c.h.bf16 %v8415_v40  ;;  %v12064_v56 = vld [vmem:[%s14740_s2 + $0x240] sm:$0xff]  ;;  %v2400_v4 = vunpack.c.l.bf16 %v12030_v11  ;;  %v8416_v11 = vld [vmem:[%s14740_s2 + $0x208] sm:$0xff]  ;;  %v9975_v40 = vunpack.i.l.bf16 %v11908_v38 }
 0x34f   :  { %3217 = vmatpush.msra.mxu0 %v10016_v58  ;;  %v12033_v54 = vpop.f32.mrf.mxu0  ;;  %v10006_v58 = vunpack.i.h.bf16 %v11956_v21 }
 0x350   :  { %2323 = vmatmul.f32.vlgmr.msra.gmra.mxu2 %v2188_v31  ;;  %8422 = vmatmul.msk.f32.vlgmr.msra.gmra.mxu3 %vm752_vm3, %v2189_v53  ;;  %v9970_v31 = vunpack.i.l.bf16 %v11814_v2 }
 0x351   :  { %3026 = vmatpush.msra.mxu2 %v9960_v8  ;;  %8481 = vmatpush.msk.msra.mxu3 %vm774_vm2, %v11945_v33  ;;  %v1281_v23 = vpop.f32.mrf.mxu2  ;;  %v1319_v12 = vpop.f32.mrf.mxu3  ;;  %v10035_v33 = vunpack.i.l.bf16 %v12003_v26 }
 0x352   :  { %3218 = vmatpush.msra.mxu0 %v10025_v39  ;;  %v10044_v18 = vpop.permute.xlu0 %10043  ;;  %v1320_v61 = vadd.f32 %v1319_v12, %v1281_v23  ;;  %v12048_v37 = vpop.f32.mrf.mxu1  ;;  %v2403_v39 = vunpack.c.h.bf16 %v12064_v56 }
 0x353   :  { %3027 = vmatpush.msra.mxu2 %v9961_v5  ;;  %3076 = vmatpush.msra.mxu3 %v9996_v0  ;;  %v10045_v8 = vunpack.i.l.bf16 %v10044_v18  ;;  %v10046_v0 = vunpack.i.h.bf16 %v10044_v18  ;;  %v2192_v18 = vunpack.c.l.bf16 %v8416_v11 }
 0x354   :  { %3219 = vmatpush.msra.mxu0 %v10026_v34  ;;  %v12054_v43 = vadd.f32 %v1320_v61, %v11862_v41  ;;  %8438 = vmatmul.msk.f32.gmra.mxu1 %vm752_vm3, %v2401_v60  ;;  %v10036_v41 = vunpack.i.h.bf16 %v12003_v26  ;;  %v9971_v60 = vunpack.i.h.bf16 %v11814_v2  ;;  %v12081_v34 = vpop.permute.xlu2 %10073  ;;  %v10055_v61 = vunpack.i.l.bf16 %v12009_v25 }
 0x355   :  { %3028 = vmatpush.msra.mxu2 %v9965_v47  ;;  %v12059_v29 = vpop.permute.xlu1 %10083  ;;  %3077 = vmatpush.msra.mxu3 %v9991_v19  ;;  %v9976_v47 = vunpack.i.h.bf16 %v11908_v38  ;;  %v10065_v38 = vunpack.i.l.bf16 %v12036_v17 }
 0x356   :  { %3220 = vmatpush.msra.mxu0 %v10035_v33 }
 0x357   :  { %3029 = vmatpush.msra.mxu2 %v9966_v22  ;;  %3078 = vmatpush.msra.mxu3 %v10001_v35  ;;  %v12069_v53 = vpop.f32.mrf.mxu0  ;;  %v8432_v22 = vld [vmem:[%s14740_s2 + $0x248] sm:$0xff]  ;;  %v10056_v35 = vunpack.i.h.bf16 %v12009_v25 }
 0x358   :  { %3221 = vmatpush.msra.mxu0 %v10036_v41  ;;  %2326 = vmatmul.f32.gmra.mxu2 %v2190_v24  ;;  %v2193_v24 = vunpack.c.h.bf16 %v8416_v11  ;;  %v2402_v41 = vunpack.c.l.bf16 %v12064_v56 }
 0x359   :  { %8423 = vmatmul.msk.f32.gmra.mxu3 %vm752_vm3, %v2191_v55  ;;  %3030 = vmatpush.msra.mxu2 %v9970_v31  ;;  %v1284_v26 = vpop.f32.mrf.mxu2  ;;  %v1322_v5 = vpop.f32.mrf.mxu3  ;;  %v1434_v55 = vadd.f32 %v11820_v20, %v11876_v42  ;;  %v8417_v42 = vld [vmem:[%s14740_s2 + $0x210] sm:$0xff] }
 0x35a   :  { %3079 = vmatpush.msra.mxu3 %v10006_v58  ;;  %3222 = vmatpush.msra.mxu0 %v10045_v8  ;;  %v1323_v23 = vadd.f32 %v1322_v5, %v1284_v26  ;;  %v12078_v12 = vpop.f32.mrf.mxu1  ;;  %v9981_v58 = vunpack.i.h.bf16 %v11886_v62  ;;  %v10066_v8 = vunpack.i.h.bf16 %v12036_v17  ;;  %v2194_v11 = vunpack.c.l.bf16 %v8417_v42 }
 0x35b   :  { %3031 = vmatpush.msra.mxu2 %v9971_v60  ;;  %v12083_v2 = vpop.permute.xlu0 %10058  ;;  %2516 = vmatmul.f32.gmra.mxu0 %v2400_v4  ;;  %v2405_v4 = vunpack.c.h.bf16 %v8432_v22  ;;  %v1454_v56 = vadd.f32 %v1434_v55, %v11930_v1  ;;  %v9985_v60 = vunpack.i.l.bf16 %v11835_v32  ;;  %v9986_v1 = vunpack.i.h.bf16 %v11835_v32 }
 0x35c   :  { %3223 = vmatpush.msra.mxu0 %v10046_v0  ;;  %v12087_v19 = vadd.f32 %v1323_v23, %v11897_v46  ;;  %8439 = vmatmul.msk.f32.gmra.mxu1 %vm752_vm3, %v2403_v39  ;;  %v9980_v46 = vunpack.i.l.bf16 %v11886_v62  ;;  %v10089_v0 = vpop.permute.xlu2 %10088  ;;  %v2195_v23 = vunpack.c.h.bf16 %v8417_v42 }
 0x35d   :  { %3032 = vmatpush.msra.mxu2 %v9975_v40  ;;  %v12091_v33 = vpop.permute.xlu1 %3361  ;;  %v8433_v40 = vld [vmem:[%s14740_s2 + $0x250] sm:$0xff] }
 0x35e   :  { %3224 = vmatpush.msra.mxu0 %v10055_v61  ;;  %v9995_v61 = vunpack.i.l.bf16 %v11922_v27  ;;  %v2407_v32 = vunpack.c.h.bf16 %v8433_v40  ;;  %v8418_v27 = vld [vmem:[%s14740_s2 + $0x218] sm:$0xff] }
 0x35f   :  { %3033 = vmatpush.msra.mxu2 %v9976_v47  ;;  %v2404_v47 = vunpack.c.l.bf16 %v8432_v22  ;;  %v2197_v42 = vunpack.c.h.bf16 %v8418_v27 }
 0x360   :  { %3225 = vmatpush.msra.mxu0 %v10056_v35  ;;  %2329 = vmatmul.f32.gmra.mxu2 %v2192_v18  ;;  %v12102_v31 = vpop.f32.mrf.mxu0  ;;  %v1437_v18 = vadd.f32 %v11847_v50, %v11910_v6  ;;  %v9990_v35 = vunpack.i.l.bf16 %v11866_v52  ;;  %v10000_v50 = vunpack.i.l.bf16 %v11978_v16  ;;  %v10005_v52 = vunpack.i.l.bf16 %v11956_v21 }
 0x361   :  { %8424 = vmatmul.msk.f32.gmra.mxu3 %vm752_vm3, %v2193_v24  ;;  %3034 = vmatpush.msra.mxu2 %v9980_v46  ;;  %v1605_v25 = vpop.f32.mrf.mxu2  ;;  %v1643_v20 = vpop.f32.mrf.mxu3  ;;  %v10090_v16 = vunpack.i.l.bf16 %v10089_v0 }
 0x362   :  { %3226 = vmatpush.msra.mxu0 %v10065_v38  ;;  %v1644_v39 = vadd.f32 %v1643_v20, %v1605_v25  ;;  %v12114_v62 = vpop.f32.mrf.mxu1  ;;  %v2196_v20 = vunpack.c.l.bf16 %v8418_v27  ;;  %v1443_v27 = vadd.f32 %v11932_v51, %v11970_v28 }
 0x363   :  { %3035 = vmatpush.msra.mxu2 %v9981_v58  ;;  %v12112_v26 = vpop.permute.xlu0 %10068  ;;  %2519 = vmatmul.f32.gmra.mxu0 %v2402_v41  ;;  %v1455_v41 = vadd.f32 %v1437_v18, %v11960_v7  ;;  %v10091_v7 = vunpack.i.h.bf16 %v10089_v0 }
 0x364   :  { %3227 = vmatpush.msra.mxu0 %v10066_v8  ;;  %v12116_v5 = vadd.f32 %v1644_v39, %v1454_v56  ;;  %8440 = vmatmul.msk.f32.gmra.mxu1 %vm752_vm3, %v2405_v4  ;;  %v8434_v8 = vld [vmem:[%s14740_s2 + $0x258] sm:$0xff]  ;;  %v1440_v39 = vadd.f32 %v11891_v30, %v11941_v59  ;;  %v10104_v21 = vpop.permute.xlu2 %10103  ;;  %v8419_v30 = vld [vmem:[%s14740_s2 + $0x220] sm:$0xff] }
 0x365   :  { %3036 = vmatpush.msra.mxu2 %v9985_v60  ;;  %v3172_v17 = vpop.permute.xlu1 %3171  ;;  %v2406_v60 = vunpack.c.l.bf16 %v8433_v40  ;;  %v2409_v0 = vunpack.c.h.bf16 %v8434_v8 }
 0x366   :  { %8496 = vmatpush.msk.msrb.mxu1 %vm774_vm2, %v3172_v17  ;;  %v1456_v59 = vadd.f32 %v1440_v39, %v11982_v3 }
 0x367   :  { %3037 = vmatpush.msra.mxu2 %v9986_v1 }
 0x368   :  { %2332 = vmatmul.f32.gmra.mxu2 %v2194_v11  ;;  %v12127_v24 = vpop.f32.mrf.mxu0 }
 0x369   :  { %8425 = vmatmul.msk.f32.gmra.mxu3 %vm752_vm3, %v2195_v23  ;;  %3038 = vmatpush.msra.mxu2 %v9995_v61  ;;  %v10106_v23 = vunpack.i.h.bf16 %v10104_v21  ;;  %v10105_v61 = vunpack.i.l.bf16 %v10104_v21 }
 0x36a   :  { %v1608_v55 = vpop.f32.mrf.mxu2  ;;  %v1646_v46 = vpop.f32.mrf.mxu3 }
 0x36b   :  { %3039 = vmatpush.msra.mxu2 %v9990_v35  ;;  %v10079_v6 = vpop.permute.xlu0 %10078  ;;  %v1647_v22 = vadd.f32 %v1646_v46, %v1608_v55  ;;  %2522 = vmatmul.f32.gmra.mxu0 %v2404_v47  ;;  %v12140_v56 = vpop.f32.mrf.mxu1  ;;  %v2198_v35 = vunpack.c.l.bf16 %v8419_v30  ;;  %v2199_v55 = vunpack.c.h.bf16 %v8419_v30  ;;  %v8435_v46 = vld [vmem:[%s14740_s2 + $0x260] sm:$0x11]  ;;  %v10010_v30 = vunpack.i.l.bf16 %v11915_v44 }
 0x36c   :  { %v10081_v38 = vunpack.i.h.bf16 %v10079_v6  ;;  %v10080_v4 = vunpack.i.l.bf16 %v10079_v6  ;;  %8441 = vmatmul.msk.f32.gmra.mxu1 %vm752_vm3, %v2407_v32  ;;  %v2411_v6 = vunpack.c.h.bf16 %v8435_v46 }
 0x36d   :  { %v12138_v58 = vadd.f32 %v1647_v22, %v1455_v41  ;;  %v10099_v25 = vpop.permute.xlu1 %10098  ;;  %3040 = vmatpush.msra.mxu2 %v10000_v50  ;;  %v2408_v41 = vunpack.c.l.bf16 %v8434_v8 }
 0x36e   :  { %3228 = vmatpush.msra.mxu0 %v10080_v4  ;;  %3266 = vmatpush.msrb.mxu1 %v10081_v38  ;;  %v10101_v11 = vunpack.i.h.bf16 %v10099_v25  ;;  %v10100_v1 = vunpack.i.l.bf16 %v10099_v25  ;;  %v8420_v4 = vld [vmem:[%s14740_s2 + $0x228] sm:$0x11] }
 0x36f   :  { %3041 = vmatpush.msra.mxu2 %v10005_v52  ;;  %v1457_v52 = vadd.f32 %v1443_v27, %v12001_v10  ;;  %v2200_v28 = vunpack.c.l.bf16 %v8420_v4  ;;  %v10076_v27 = vunpack.i.h.bf16 %v12081_v34 }
 0x370   :  { %3229 = vmatpush.msra.mxu0 %v10090_v16  ;;  %3267 = vmatpush.msrb.mxu1 %v10091_v7  ;;  %v12147_v17 = vpop.f32.mrf.mxu0  ;;  %v1446_v7 = vadd.f32 %v11968_v13, %v11992_v63  ;;  %v2410_v16 = vunpack.c.l.bf16 %v8435_v46 }
 0x371   :  { %2335 = vmatmul.f32.gmra.mxu2 %v2196_v20  ;;  %8426 = vmatmul.msk.f32.gmra.mxu3 %vm752_vm3, %v2197_v42  ;;  %v2201_v20 = vunpack.c.h.bf16 %v8420_v4  ;;  %v8459_v42 = vld [vmem:[%s14740_s2 + $0x2a0] sm:$0xff] }
 0x372   :  { %3230 = vmatpush.msra.mxu0 %v10100_v1  ;;  %3268 = vmatpush.msrb.mxu1 %v10101_v11  ;;  %v1611_v18 = vpop.f32.mrf.mxu2  ;;  %v1649_v47 = vpop.f32.mrf.mxu3  ;;  %v2779_v39 = vunpack.c.h.bf16 %v8459_v42  ;;  %v8444_v11 = vld [vmem:[%s14740_s2 + $0x268] sm:$0xff]  ;;  %v1458_v1 = vadd.f32 %v1446_v7, %v12022_v9 }
 0x373   :  { %v1650_v40 = vadd.f32 %v1649_v47, %v1611_v18  ;;  %2525 = vmatmul.f32.gmra.mxu0 %v2406_v60  ;;  %v12162_v50 = vpop.f32.mrf.mxu1  ;;  %v2588_v63 = vunpack.c.l.bf16 %v8444_v11  ;;  %v1449_v18 = vadd.f32 %v11994_v49, %v12011_v36  ;;  %v2778_v47 = vunpack.c.l.bf16 %v8459_v42  ;;  %v8445_v49 = vld [vmem:[%s14740_s2 + $0x270] sm:$0xff] }
 0x374   :  { %3231 = vmatpush.msra.mxu0 %v10105_v61  ;;  %3269 = vmatpush.msrb.mxu1 %v10106_v23  ;;  %v2589_v23 = vunpack.c.h.bf16 %v8444_v11  ;;  %v8460_v61 = vld [vmem:[%s14740_s2 + $0x2a8] sm:$0xff]  ;;  %v2591_v4 = vunpack.c.h.bf16 %v8445_v49  ;;  %v10030_v42 = vunpack.i.l.bf16 %v12017_v15  ;;  %v10040_v11 = vunpack.i.l.bf16 %v11984_v57 }
 0x375   :  { %v12154_v32 = vadd.f32 %v1650_v40, %v1456_v59  ;;  %8442 = vmatmul.msk.f32.gmra.mxu1 %vm752_vm3, %v2409_v0  ;;  %v2781_v9 = vunpack.c.h.bf16 %v8460_v61  ;;  %v10011_v59 = vunpack.i.h.bf16 %v11915_v44  ;;  %v10071_v40 = vunpack.i.h.bf16 %v12112_v26 }
 0x376   :  { %v1459_v36 = vadd.f32 %v1449_v18, %v12054_v43  ;;  %v10020_v44 = vunpack.i.l.bf16 %v11986_v14  ;;  %v10021_v43 = vunpack.i.h.bf16 %v11986_v14  ;;  %v1834_v18 = vadd.f32 %v12048_v37, %v12069_v53 }
 0x377   :  { %v10060_v53 = vunpack.i.l.bf16 %v12083_v2 }
 0x378   :  { %v12164_v3 = vpop.f32.mrf.mxu0 }
 0x379   :  { %2338 = vmatmul.f32.gmra.mxu2 %v2198_v35  ;;  %8427 = vmatmul.msk.f32.gmra.mxu3 %vm752_vm3, %v2199_v55 }
 0x37a   :  { %v1614_v22 = vpop.f32.mrf.mxu2  ;;  %v1652_v38 = vpop.f32.mrf.mxu3 }
 0x37b   :  { %v1653_v25 = vadd.f32 %v1652_v38, %v1614_v22  ;;  %2528 = vmatmul.f32.gmra.mxu0 %v2408_v41  ;;  %v12182_v8 = vpop.f32.mrf.mxu1  ;;  %v2590_v38 = vunpack.c.l.bf16 %v8445_v49 }
 0x37d   :  { %v12171_v51 = vadd.f32 %v1653_v25, %v1457_v52  ;;  %8443 = vmatmul.msk.f32.gmra.mxu1 %vm752_vm3, %v2411_v6  ;;  %v10086_v52 = vunpack.i.h.bf16 %v12059_v29  ;;  %v8461_v25 = vld [vmem:[%s14740_s2 + $0x2b0] sm:$0xff] }
 0x37e   :  { %v2783_v14 = vunpack.c.h.bf16 %v8461_v25 }
 0x380   :  { %v12180_v10 = vpop.f32.mrf.mxu0 }
 0x381   :  { %2341 = vmatmul.f32.gmra.mxu2 %v2200_v28  ;;  %8428 = vmatmul.msk.f32.gmra.mxu3 %vm752_vm3, %v2201_v20  ;;  %v1452_v28 = vadd.f32 %v12019_v45, %v12033_v54  ;;  %v2780_v20 = vunpack.c.l.bf16 %v8460_v61  ;;  %v8446_v45 = vld [vmem:[%s14740_s2 + $0x278] sm:$0xff] }
 0x382   :  { %v1617_v21 = vpop.f32.mrf.mxu2  ;;  %v1655_v60 = vpop.f32.mrf.mxu3 }
 0x383   :  { %v1656_v0 = vadd.f32 %v1655_v60, %v1617_v21  ;;  %2531 = vmatmul.f32.gmra.mxu0 %v2410_v16  ;;  %v12210_v6 = vpop.f32.mrf.mxu1  ;;  %v10031_v16 = vunpack.i.h.bf16 %v12017_v15  ;;  %v1460_v54 = vadd.f32 %v1452_v28, %v12087_v19  ;;  %v10041_v15 = vunpack.i.h.bf16 %v11984_v57  ;;  %v8462_v19 = vld [vmem:[%s14740_s2 + $0x2b8] sm:$0xff] }
 0x384   :  { %v2785_v57 = vunpack.c.h.bf16 %v8462_v19 }
 0x385   :  { %v12188_v13 = vadd.f32 %v1656_v0, %v1458_v1  ;;  %8467 = vmatmul.msk.f32.vlgmr.msra.gmra.mxu1 %vm752_vm3, %v2779_v39  ;;  %v2592_v0 = vunpack.c.l.bf16 %v8446_v45 }
 0x388   :  { %v12208_v41 = vpop.f32.mrf.mxu0 }
 0x389   :  { %2703 = vmatmul.f32.vlgmr.msrb.gmra.mxu2 %v2588_v63  ;;  %8452 = vmatmul.msk.f32.vlgmr.msrb.gmra.mxu3 %vm752_vm3, %v2589_v23  ;;  %v2593_v63 = vunpack.c.h.bf16 %v8446_v45 }
 0x38a   :  { %3406 = vmatpush.msrb.mxu2 %v10010_v30  ;;  %8511 = vmatpush.msk.msrb.mxu3 %vm774_vm2, %v12091_v33  ;;  %v1620_v35 = vpop.f32.mrf.mxu2  ;;  %v1658_v55 = vpop.f32.mrf.mxu3  ;;  %v10050_v30 = vunpack.i.l.bf16 %v12024_v48 }
 0x38b   :  { %v1659_v46 = vadd.f32 %v1658_v55, %v1620_v35  ;;  %2832 = vmatmul.f32.vlgmr.msrb.gmra.mxu0 %v2778_v47  ;;  %v12212_v33 = vpop.permute.xlu0 %10093  ;;  %v12239_v61 = vpop.f32.mrf.mxu1  ;;  %v2782_v47 = vunpack.c.l.bf16 %v8461_v25  ;;  %v8447_v35 = vld [vmem:[%s14740_s2 + $0x280] sm:$0xff]  ;;  %v1854_v55 = vadd.f32 %v1834_v18, %v12116_v5  ;;  %v10070_v5 = vunpack.i.l.bf16 %v12112_v26  ;;  %v8448_v26 = vld [vmem:[%s14740_s2 + $0x288] sm:$0xff] }
 0x38c   :  { %3407 = vmatpush.msrb.mxu2 %v10011_v59  ;;  %3456 = vmatpush.msrb.mxu3 %v10071_v40  ;;  %v10096_v7 = vunpack.i.h.bf16 %v12212_v33  ;;  %v1843_v18 = vadd.f32 %v12140_v56, %v12147_v17 }
 0x38d   :  { %v12214_v22 = vadd.f32 %v1659_v46, %v1459_v36  ;;  %8468 = vmatmul.msk.f32.gmra.mxu1 %vm752_vm3, %v2781_v9  ;;  %v10051_v9 = vunpack.i.h.bf16 %v12024_v48  ;;  %v2594_v36 = vunpack.c.l.bf16 %v8447_v35  ;;  %v2595_v46 = vunpack.c.h.bf16 %v8447_v35 }
 0x38e   :  { %3408 = vmatpush.msrb.mxu2 %v10020_v44  ;;  %3457 = vmatpush.msrb.mxu3 %v10076_v27  ;;  %v10061_v48 = vunpack.i.h.bf16 %v12083_v2  ;;  %v8463_v27 = vld [vmem:[%s14740_s2 + $0x2c0] sm:$0xff]  ;;  %v2784_v44 = vunpack.c.l.bf16 %v8462_v19 }
 0x38f   :  { %v2787_v2 = vunpack.c.h.bf16 %v8463_v27 }
 0x390   :  { %3409 = vmatpush.msrb.mxu2 %v10021_v43  ;;  %3458 = vmatpush.msrb.mxu3 %v10086_v52  ;;  %v12237_v23 = vpop.f32.mrf.mxu0  ;;  %v10075_v52 = vunpack.i.l.bf16 %v12081_v34  ;;  %v10095_v34 = vunpack.i.l.bf16 %v12212_v33  ;;  %v8449_v33 = vld [vmem:[%s14740_s2 + $0x290] sm:$0xff] }
 0x391   :  { %2706 = vmatmul.f32.gmra.mxu2 %v2590_v38  ;;  %8453 = vmatmul.msk.f32.gmra.mxu3 %vm752_vm3, %v2591_v4  ;;  %v1837_v38 = vadd.f32 %v12078_v12, %v12102_v31  ;;  %v10085_v12 = vunpack.i.l.bf16 %v12059_v29  ;;  %v1840_v29 = vadd.f32 %v12114_v62, %v12127_v24  ;;  %v2598_v62 = vunpack.c.l.bf16 %v8449_v33 }
 0x392   :  { %3410 = vmatpush.msrb.mxu2 %v10030_v42  ;;  %3459 = vmatpush.msrb.mxu3 %v10096_v7  ;;  %v1623_v39 = vpop.f32.mrf.mxu2  ;;  %v1661_v21 = vpop.f32.mrf.mxu3  ;;  %v2596_v42 = vunpack.c.l.bf16 %v8448_v26  ;;  %v2597_v7 = vunpack.c.h.bf16 %v8448_v26  ;;  %v2599_v24 = vunpack.c.h.bf16 %v8449_v33 }
 0x393   :  { %v1662_v60 = vadd.f32 %v1661_v21, %v1623_v39  ;;  %2835 = vmatmul.f32.gmra.mxu0 %v2780_v20  ;;  %v12266_v43 = vpop.f32.mrf.mxu1  ;;  %v1855_v31 = vadd.f32 %v1837_v38, %v12138_v58  ;;  %v2786_v39 = vunpack.c.l.bf16 %v8463_v27 }
 0x394   :  { %3411 = vmatpush.msrb.mxu2 %v10031_v16  ;;  %v8464_v16 = vld [vmem:[%s14740_s2 + $0x2c8] sm:$0xff] }
 0x395   :  { %v12233_v1 = vadd.f32 %v1662_v60, %v1460_v54  ;;  %8469 = vmatmul.msk.f32.gmra.mxu1 %vm752_vm3, %v2783_v14  ;;  %v2789_v58 = vunpack.c.h.bf16 %v8464_v16  ;;  %v2788_v19 = vunpack.c.l.bf16 %v8464_v16 }
 0x396   :  { %3412 = vmatpush.msrb.mxu2 %v10040_v11  ;;  %v1856_v11 = vadd.f32 %v1840_v29, %v12154_v32  ;;  %v8450_v32 = vld [vmem:[%s14740_s2 + $0x298] sm:$0x11]  ;;  %v1852_v29 = vadd.f32 %v12210_v6, %v12208_v41 }
 0x397   :  { %v2601_v56 = vunpack.c.h.bf16 %v8450_v32 }
 0x398   :  { %3413 = vmatpush.msrb.mxu2 %v10041_v15  ;;  %v12264_v4 = vpop.f32.mrf.mxu0  ;;  %v8465_v15 = vld [vmem:[%s14740_s2 + $0x2d0] sm:$0x11] }
 0x399   :  { %2709 = vmatmul.f32.gmra.mxu2 %v2592_v0  ;;  %8454 = vmatmul.msk.f32.gmra.mxu3 %vm752_vm3, %v2593_v63 }
 0x39a   :  { %3414 = vmatpush.msrb.mxu2 %v10050_v30  ;;  %v1985_v59 = vpop.f32.mrf.mxu2  ;;  %v2023_v40 = vpop.f32.mrf.mxu3 }
 0x39b   :  { %v2024_v37 = vadd.f32 %v2023_v40, %v1985_v59  ;;  %2838 = vmatmul.f32.gmra.mxu0 %v2782_v47  ;;  %v2791_v47 = vunpack.c.h.bf16 %v8465_v15 }
 0x39c   :  { %3415 = vmatpush.msrb.mxu2 %v10051_v9  ;;  %v1857_v9 = vadd.f32 %v1843_v18, %v12171_v51  ;;  %v2153_v18 = vadd.f32 %v12239_v61, %v12237_v23 }
 0x39d   :  { %v12254_v49 = vadd.f32 %v2024_v37, %v1854_v55  ;;  %8470 = vmatmul.msk.f32.gmra.mxu1 %vm752_vm3, %v2785_v57  ;;  %v2600_v55 = vunpack.c.l.bf16 %v8450_v32  ;;  %v8489_v37 = vld [vmem:[%s14740_s2 + $0x310] sm:$0xff] }
 0x39e   :  { %3416 = vmatpush.msrb.mxu2 %v10060_v53  ;;  %v2790_v53 = vunpack.c.l.bf16 %v8465_v15  ;;  %v3118_v51 = vunpack.c.h.bf16 %v8489_v37  ;;  %v3117_v26 = vunpack.c.l.bf16 %v8489_v37  ;;  %v8492_v15 = vld [vmem:[%s14740_s2 + $0x328] sm:$0xff]  ;;  %v8493_v37 = vld [vmem:[%s14740_s2 + $0x330] sm:$0xff] }
 0x3a0   :  { %3417 = vmatpush.msrb.mxu2 %v10061_v48  ;;  %v12287_v45 = vpop.f32.mrf.mxu1 }
 0x3a1   :  { %2712 = vmatmul.f32.gmra.mxu2 %v2594_v36  ;;  %8455 = vmatmul.msk.f32.gmra.mxu3 %vm752_vm3, %v2595_v46  ;;  %v12285_v21 = vpop.f32.mrf.mxu0  ;;  %v1846_v36 = vadd.f32 %v12162_v50, %v12164_v3  ;;  %v8474_v46 = vld [vmem:[%s14740_s2 + $0x2d8] sm:$0xff] }
 0x3a2   :  { %3418 = vmatpush.msrb.mxu2 %v10070_v5  ;;  %v1988_v25 = vpop.f32.mrf.mxu2  ;;  %v2907_v38 = vunpack.c.l.bf16 %v8474_v46 }
 0x3a3   :  { %v2026_v28 = vpop.f32.mrf.mxu3  ;;  %2841 = vmatmul.f32.gmra.mxu0 %v2784_v44  ;;  %v1858_v44 = vadd.f32 %v1846_v36, %v12188_v13  ;;  %v2156_v36 = vadd.f32 %v12266_v43, %v12264_v4  ;;  %v8494_v43 = vld [vmem:[%s14740_s2 + $0x338] sm:$0xff] }
 0x3a4   :  { %3419 = vmatpush.msrb.mxu2 %v10075_v52  ;;  %v2027_v20 = vadd.f32 %v2026_v28, %v1988_v25  ;;  %v8490_v25 = vld [vmem:[%s14740_s2 + $0x318] sm:$0xff]  ;;  %v1849_v28 = vadd.f32 %v12182_v8, %v12180_v10  ;;  %v8491_v10 = vld [vmem:[%s14740_s2 + $0x320] sm:$0xff] }
 0x3a5   :  { %8471 = vmatmul.msk.f32.gmra.mxu1 %vm752_vm3, %v2787_v2  ;;  %v2908_v2 = vunpack.c.h.bf16 %v8474_v46  ;;  %v3120_v13 = vunpack.c.h.bf16 %v8490_v25  ;;  %v3119_v8 = vunpack.c.l.bf16 %v8490_v25 }
 0x3a6   :  { %v12277_v14 = vadd.f32 %v2027_v20, %v1855_v31  ;;  %3420 = vmatpush.msrb.mxu2 %v10085_v12  ;;  %v8475_v12 = vld [vmem:[%s14740_s2 + $0x2e0] sm:$0xff] }
 0x3a7   :  { %v2910_v16 = vunpack.c.h.bf16 %v8475_v12 }
 0x3a8   :  { %3421 = vmatpush.msrb.mxu2 %v10095_v34  ;;  %v2909_v34 = vunpack.c.l.bf16 %v8475_v12 }
 0x3a9   :  { %2715 = vmatmul.f32.gmra.mxu2 %v2596_v42  ;;  %8456 = vmatmul.msk.f32.gmra.mxu3 %vm752_vm3, %v2597_v7  ;;  %v12306_v40 = vpop.f32.mrf.mxu0  ;;  %v12308_v35 = vpop.f32.mrf.mxu1  ;;  %v1859_v42 = vadd.f32 %v1849_v28, %v12214_v22  ;;  %v3122_v22 = vunpack.c.h.bf16 %v8491_v10  ;;  %v2159_v28 = vadd.f32 %v12287_v45, %v12285_v21  ;;  %v8495_v21 = vld [vmem:[%s14740_s2 + $0x340] sm:$0x11] }
 0x3ab   :  { %v1991_v54 = vpop.f32.mrf.mxu2  ;;  %v2029_v60 = vpop.f32.mrf.mxu3  ;;  %2844 = vmatmul.f32.gmra.mxu0 %v2786_v39 }
 0x3ac   :  { %v2030_v0 = vadd.f32 %v2029_v60, %v1991_v54  ;;  %v8476_v54 = vld [vmem:[%s14740_s2 + $0x2e8] sm:$0xff] }
 0x3ad   :  { %8472 = vmatmul.msk.f32.gmra.mxu1 %vm752_vm3, %v2789_v58  ;;  %v2912_v41 = vunpack.c.h.bf16 %v8476_v54 }
 0x3ae   :  { %v12294_v63 = vadd.f32 %v2030_v0, %v1856_v11  ;;  %v1860_v0 = vadd.f32 %v1852_v29, %v12233_v1  ;;  %v2162_v29 = vadd.f32 %v12308_v35, %v12306_v40  ;;  %v3129_v40 = vunpack.c.l.bf16 %v8495_v21 }
 0x3b1   :  { %2718 = vmatmul.f32.gmra.mxu2 %v2598_v62  ;;  %8457 = vmatmul.msk.f32.gmra.mxu3 %vm752_vm3, %v2599_v24  ;;  %v12326_v50 = vpop.f32.mrf.mxu0  ;;  %v12328_v3 = vpop.f32.mrf.mxu1  ;;  %v2911_v24 = vunpack.c.l.bf16 %v8476_v54 }
 0x3b3   :  { %v1994_v30 = vpop.f32.mrf.mxu2  ;;  %v2032_v57 = vpop.f32.mrf.mxu3  ;;  %2847 = vmatmul.f32.gmra.mxu0 %v2788_v19  ;;  %v3121_v19 = vunpack.c.l.bf16 %v8491_v10 }
 0x3b4   :  { %v2033_v59 = vadd.f32 %v2032_v57, %v1994_v30  ;;  %v8477_v30 = vld [vmem:[%s14740_s2 + $0x2f0] sm:$0xff] }
 0x3b5   :  { %8473 = vmatmul.msk.f32.gmra.mxu1 %vm752_vm3, %v2791_v47  ;;  %v3124_v47 = vunpack.c.h.bf16 %v8492_v15  ;;  %v2914_v23 = vunpack.c.h.bf16 %v8477_v30 }
 0x3b6   :  { %v12311_v17 = vadd.f32 %v2033_v59, %v1857_v9  ;;  %v2173_v59 = vadd.f32 %v2153_v18, %v12254_v49  ;;  %v8478_v49 = vld [vmem:[%s14740_s2 + $0x2f8] sm:$0xff] }
 0x3b7   :  { %v2916_v4 = vunpack.c.h.bf16 %v8478_v49 }
 0x3b9   :  { %2721 = vmatmul.f32.gmra.mxu2 %v2600_v55  ;;  %8458 = vmatmul.msk.f32.gmra.mxu3 %vm752_vm3, %v2601_v56  ;;  %v12348_v58 = vpop.f32.mrf.mxu0  ;;  %v12350_v33 = vpop.f32.mrf.mxu1  ;;  %v2913_v56 = vunpack.c.l.bf16 %v8477_v30 }
 0x3bb   :  { %v1997_v48 = vpop.f32.mrf.mxu2  ;;  %v2035_v27 = vpop.f32.mrf.mxu3  ;;  %2850 = vmatmul.f32.gmra.mxu0 %v2790_v53  ;;  %v3123_v53 = vunpack.c.l.bf16 %v8492_v15 }
 0x3bc   :  { %v2036_v5 = vadd.f32 %v2035_v27, %v1997_v48  ;;  %v2174_v27 = vadd.f32 %v2156_v36, %v12277_v14  ;;  %v3128_v14 = vunpack.c.h.bf16 %v8494_v43 }
 0x3bd   :  { %8497 = vmatmul.msk.f32.vlgmr.msrb.gmra.mxu1 %vm752_vm3, %v3118_v51  ;;  %v3126_v51 = vunpack.c.h.bf16 %v8493_v37 }
 0x3be   :  { %v12324_v52 = vadd.f32 %v2036_v5, %v1858_v44 }
 0x3c1   :  { %3042 = vmatmul.f32.vlgmr.msra.gmra.mxu2 %v2907_v38  ;;  %8482 = vmatmul.msk.f32.vlgmr.msra.gmra.mxu3 %vm752_vm3, %v2908_v2  ;;  %v12366_v1 = vpop.f32.mrf.mxu0  ;;  %v12368_v32 = vpop.f32.mrf.mxu1  ;;  %v2915_v2 = vunpack.c.l.bf16 %v8478_v49 }
 0x3c2   :  { %14822 = vst [vmem:[#allocation17_spill] sm:$0xff] %v12366_v1 }
 0x3c3   :  { %v2000_v31 = vpop.f32.mrf.mxu2  ;;  %v2038_v20 = vpop.f32.mrf.mxu3  ;;  %3232 = vmatmul.f32.vlgmr.msra.gmra.mxu0 %v3117_v26  ;;  %14823 = vst [vmem:[#allocation15_spill] sm:$0xff] %v12368_v32  ;;  %v3125_v26 = vunpack.c.l.bf16 %v8493_v37 }
 0x3c4   :  { %v2039_v7 = vadd.f32 %v2038_v20, %v2000_v31  ;;  %v2175_v20 = vadd.f32 %v2159_v28, %v12294_v63  ;;  %v3130_v63 = vunpack.c.h.bf16 %v8495_v21  ;;  %v8509_v21 = vld [vmem:[%s14740_s2 + $0x370] sm:$0xff] }
 0x3c5   :  { %8498 = vmatmul.msk.f32.gmra.mxu1 %vm752_vm3, %v3120_v13  ;;  %v8479_v13 = vld [vmem:[%s14740_s2 + $0x300] sm:$0xff] }
 0x3c6   :  { %v12341_v39 = vadd.f32 %v2039_v7, %v1859_v42  ;;  %v2917_v7 = vunpack.c.l.bf16 %v8479_v13 }
 0x3c8   :  { %14820 = vst [vmem:[#allocation3_spill] sm:$0xff] %v12341_v39 }
 0x3c9   :  { %3045 = vmatmul.f32.gmra.mxu2 %v2909_v34  ;;  %8483 = vmatmul.msk.f32.gmra.mxu3 %vm752_vm3, %v2910_v16  ;;  %v12387_v44 = vpop.f32.mrf.mxu0  ;;  %v12389_v5 = vpop.f32.mrf.mxu1  ;;  %v2918_v34 = vunpack.c.h.bf16 %v8479_v13  ;;  %v8508_v13 = vld [vmem:[%s14740_s2 + $0x368] sm:$0xff] }
 0x3cb   :  { %v2003_v60 = vpop.f32.mrf.mxu2  ;;  %v2041_v11 = vpop.f32.mrf.mxu3  ;;  %3235 = vmatmul.f32.gmra.mxu0 %v3119_v8  ;;  %v3127_v8 = vunpack.c.l.bf16 %v8494_v43 }
 0x3cc   :  { %v2042_v62 = vadd.f32 %v2041_v11, %v2003_v60  ;;  %v2176_v11 = vadd.f32 %v2162_v29, %v12311_v17 }
 0x3cd   :  { %8499 = vmatmul.msk.f32.gmra.mxu1 %vm752_vm3, %v3122_v22  ;;  %v8480_v22 = vld [vmem:[%s14740_s2 + $0x308] sm:$0x11] }
 0x3ce   :  { %v12358_v6 = vadd.f32 %v2042_v62, %v1860_v0  ;;  %v2919_v62 = vunpack.c.l.bf16 %v8480_v22 }
 0x3d0   :  { %14821 = vst [vmem:[#allocation2_spill] sm:$0xff] %v12358_v6 }
 0x3d1   :  { %3048 = vmatmul.f32.gmra.mxu2 %v2911_v24  ;;  %8484 = vmatmul.msk.f32.gmra.mxu3 %vm752_vm3, %v2912_v41  ;;  %v12410_v16 = vpop.f32.mrf.mxu1  ;;  %v2920_v24 = vunpack.c.h.bf16 %v8480_v22  ;;  %v3318_v22 = vunpack.c.h.bf16 %v8509_v21 }
 0x3d3   :  { %v2324_v57 = vpop.f32.mrf.mxu2  ;;  %v2362_v9 = vpop.f32.mrf.mxu3  ;;  %3238 = vmatmul.f32.gmra.mxu0 %v3121_v19  ;;  %v8504_v19 = vld [vmem:[%s14740_s2 + $0x348] sm:$0xff] }
 0x3d4   :  { %v2363_v55 = vadd.f32 %v2362_v9, %v2324_v57  ;;  %v3308_v30 = vunpack.c.h.bf16 %v8504_v19  ;;  %v8505_v57 = vld [vmem:[%s14740_s2 + $0x350] sm:$0xff] }
 0x3d5   :  { %8500 = vmatmul.msk.f32.gmra.mxu1 %vm752_vm3, %v3124_v47  ;;  %v3307_v47 = vunpack.c.l.bf16 %v8504_v19  ;;  %v3310_v37 = vunpack.c.h.bf16 %v8505_v57 }
 0x3d6   :  { %v12375_v61 = vadd.f32 %v2363_v55, %v2173_v59 }
 0x3d8   :  { %v12408_v45 = vpop.f32.mrf.mxu0 }
 0x3d9   :  { %3051 = vmatmul.f32.gmra.mxu2 %v2913_v56  ;;  %8485 = vmatmul.msk.f32.gmra.mxu3 %vm752_vm3, %v2914_v23  ;;  %v12426_v15 = vpop.f32.mrf.mxu1  ;;  %v3309_v23 = vunpack.c.l.bf16 %v8505_v57 }
 0x3db   :  { %v2327_v46 = vpop.f32.mrf.mxu2  ;;  %3241 = vmatmul.f32.gmra.mxu0 %v3123_v53  ;;  %v8506_v53 = vld [vmem:[%s14740_s2 + $0x358] sm:$0xff] }
 0x3dc   :  { %v2365_v48 = vpop.f32.mrf.mxu3 }
 0x3dd   :  { %v2366_v38 = vadd.f32 %v2365_v48, %v2327_v46  ;;  %8501 = vmatmul.msk.f32.gmra.mxu1 %vm752_vm3, %v3126_v51  ;;  %v3311_v48 = vunpack.c.l.bf16 %v8506_v53 }
 0x3df   :  { %v12395_v25 = vadd.f32 %v2366_v38, %v2174_v27  ;;  %v3312_v27 = vunpack.c.h.bf16 %v8506_v53  ;;  %v8507_v38 = vld [vmem:[%s14740_s2 + $0x360] sm:$0xff] }
 0x3e0   :  { %v12424_v35 = vpop.f32.mrf.mxu0  ;;  %v3313_v43 = vunpack.c.l.bf16 %v8507_v38 }
 0x3e1   :  { %3054 = vmatmul.f32.gmra.mxu2 %v2915_v2  ;;  %8486 = vmatmul.msk.f32.gmra.mxu3 %vm752_vm3, %v2916_v4  ;;  %v12442_v59 = vpop.f32.mrf.mxu1 }
 0x3e3   :  { %v2330_v12 = vpop.f32.mrf.mxu2  ;;  %3244 = vmatmul.f32.gmra.mxu0 %v3125_v26  ;;  %v3314_v26 = vunpack.c.h.bf16 %v8507_v38 }
 0x3e4   :  { %v2368_v31 = vpop.f32.mrf.mxu3 }
 0x3e5   :  { %v2369_v42 = vadd.f32 %v2368_v31, %v2330_v12  ;;  %8502 = vmatmul.msk.f32.gmra.mxu1 %vm752_vm3, %v3128_v14 }
 0x3e7   :  { %v12412_v10 = vadd.f32 %v2369_v42, %v2175_v20  ;;  %v3315_v20 = vunpack.c.l.bf16 %v8508_v13  ;;  %v3316_v42 = vunpack.c.h.bf16 %v8508_v13 }
 0x3e8   :  { %v12440_v9 = vpop.f32.mrf.mxu0 }
 0x3e9   :  { %3057 = vmatmul.f32.gmra.mxu2 %v2917_v7  ;;  %8487 = vmatmul.msk.f32.gmra.mxu3 %vm752_vm3, %v2918_v34  ;;  %v12458_v46 = vpop.f32.mrf.mxu1 }
 0x3eb   :  { %v2333_v54 = vpop.f32.mrf.mxu2  ;;  %3247 = vmatmul.f32.gmra.mxu0 %v3127_v8 }
 0x3ec   :  { %v2371_v60 = vpop.f32.mrf.mxu3 }
 0x3ed   :  { %v2372_v0 = vadd.f32 %v2371_v60, %v2333_v54  ;;  %8503 = vmatmul.msk.f32.gmra.mxu1 %vm752_vm3, %v3130_v63  ;;  %v3317_v63 = vunpack.c.l.bf16 %v8509_v21  ;;  %v8510_v54 = vld [vmem:[%s14740_s2 + $0x378] sm:$0x11] }
 0x3ef   :  { %v12422_v41 = vadd.f32 %v2372_v0, %v2176_v11 }
 0x3f0   :  { %v12456_v49 = vpop.f32.mrf.mxu0 }
 0x3f1   :  { %3060 = vmatmul.f32.gmra.mxu2 %v2919_v62  ;;  %8488 = vmatmul.msk.f32.gmra.mxu3 %vm752_vm3, %v2920_v24  ;;  %v3319_v24 = vunpack.c.l.bf16 %v8510_v54 }
 0x3f2   :  { %v12470_v14 = vpop.f32.mrf.mxu1 }
 0x3f3   :  { %3250 = vmatmul.f32.gmra.mxu0 %v3129_v40  ;;  %14828 = vst [vmem:[#allocation8_spill] sm:$0xff] %v12470_v14  ;;  %v3320_v40 = vunpack.c.h.bf16 %v8510_v54 }
 0x3f4   :  { %v12432_v17 = vpop.f32.mrf.mxu2  ;;  %v12434_v18 = vpop.f32.mrf.mxu3 }
 0x3f8   :  { %v12468_v28 = vpop.f32.mrf.mxu0 }
 0x3f9   :  { %3422 = vmatmul.f32.vlgmr.msrb.gmra.mxu2 %v3307_v47  ;;  %8512 = vmatmul.msk.f32.vlgmr.msrb.gmra.mxu3 %vm752_vm3, %v3308_v30  ;;  %14827 = vst [vmem:[#allocation9_spill] sm:$0xff] %v12468_v28 }
 0x3fa   :  { %v12482_v34 = vpop.f32.mrf.mxu1 }
 0x3fb   :  { %14830 = vst [vmem:[#allocation6_spill] sm:$0xff] %v12482_v34 }
 0x3fc   :  { %v12444_v55 = vpop.f32.mrf.mxu2  ;;  %v12446_v56 = vpop.f32.mrf.mxu3 }
 0x3fd   :  { %14824 = vst [vmem:[#allocation13_spill] sm:$0xff] %v12446_v56 }
 0x400   :  { %v12480_v7 = vpop.f32.mrf.mxu0 }
 0x401   :  { %3425 = vmatmul.f32.gmra.mxu2 %v3309_v23  ;;  %8513 = vmatmul.msk.f32.gmra.mxu3 %vm752_vm3, %v3310_v37  ;;  %14829 = vst [vmem:[#allocation7_spill] sm:$0xff] %v12480_v7 }
 0x402   :  { %v2871_v11 = vpop.f32.mrf.mxu1 }
 0x404   :  { %v12452_v36 = vpop.f32.mrf.mxu2  ;;  %v12454_v51 = vpop.f32.mrf.mxu3 }
 0x405   :  { %14825 = vst [vmem:[#allocation11_spill] sm:$0xff] %v12452_v36 }
 0x406   :  { %14826 = vst [vmem:[#allocation10_spill] sm:$0xff] %v12454_v51 }
 0x408   :  { %v2833_v60 = vpop.f32.mrf.mxu0 }
 0x409   :  { %3428 = vmatmul.f32.gmra.mxu2 %v3311_v48  ;;  %8514 = vmatmul.msk.f32.gmra.mxu3 %vm752_vm3, %v3312_v27 }
 0x40a   :  { %v2874_v57 = vpop.f32.mrf.mxu1 }
 0x40c   :  { %v12464_v2 = vpop.f32.mrf.mxu2  ;;  %v12466_v4 = vpop.f32.mrf.mxu3 }
 0x410   :  { %v2836_v30 = vpop.f32.mrf.mxu0 }
 0x411   :  { %3431 = vmatmul.f32.gmra.mxu2 %v3313_v43  ;;  %8515 = vmatmul.msk.f32.gmra.mxu3 %vm752_vm3, %v3314_v26 }
 0x412   :  { %v2877_v48 = vpop.f32.mrf.mxu1 }
 0x414   :  { %v12476_v12 = vpop.f32.mrf.mxu2  ;;  %v12478_v31 = vpop.f32.mrf.mxu3 }
 0x418   :  { %v2839_v53 = vpop.f32.mrf.mxu0 }
 0x419   :  { %3434 = vmatmul.f32.gmra.mxu2 %v3315_v20  ;;  %8516 = vmatmul.msk.f32.gmra.mxu3 %vm752_vm3, %v3316_v42 }
 0x41a   :  { %v12515_v26 = vpop.f32.mrf.mxu1 }
 0x41c   :  { %v12488_v8 = vpop.f32.mrf.mxu2  ;;  %v12490_v29 = vpop.f32.mrf.mxu3 }
 0x420   :  { %v12513_v43 = vpop.f32.mrf.mxu0 }
 0x421   :  { %3437 = vmatmul.f32.gmra.mxu2 %v3317_v63  ;;  %8517 = vmatmul.msk.f32.gmra.mxu3 %vm752_vm3, %v3318_v22 }
 0x422   :  { %v12519_v21 = vpop.f32.mrf.mxu1 }
 0x423   :  { %14836 = vst [vmem:[#allocation20_spill] sm:$0xff] %v12519_v21 }
 0x424   :  { %v12496_v0 = vpop.f32.mrf.mxu2  ;;  %v12498_v62 = vpop.f32.mrf.mxu3 }
 0x428   :  { %v12517_v42 = vpop.f32.mrf.mxu0 }
 0x429   :  { %3440 = vmatmul.f32.gmra.mxu2 %v3319_v24  ;;  %8518 = vmatmul.msk.f32.gmra.mxu3 %vm752_vm3, %v3320_v40  ;;  %14835 = vst [vmem:[#allocation21_spill] sm:$0xff] %v12517_v42  ;;  %v2875_v42 = vadd.f32 %v2874_v57, %v2836_v30 }
 0x42a   :  { %v12523_v34 = vpop.f32.mrf.mxu1 }
 0x42b   :  { %14838 = vst [vmem:[#allocation18_spill] sm:$0xff] %v12523_v34  ;;  %v2553_v34 = vadd.f32 %v12389_v5, %v12387_v44  ;;  %v2872_v5 = vadd.f32 %v2871_v11, %v2833_v60 }
 0x42c   :  { %v12501_v19 = vpop.f32.mrf.mxu2  ;;  %v12503_v47 = vpop.f32.mrf.mxu3 }
 0x430   :  { %v12521_v40 = vpop.f32.mrf.mxu0 }
 0x431   :  { %14837 = vst [vmem:[#allocation19_spill] sm:$0xff] %v12521_v40 }
 0x432   :  { %v12531_v6 = vpop.f32.mrf.mxu1 }
 0x433   :  { %14840 = vst [vmem:[#allocation14_spill] sm:$0xff] %v12531_v6  ;;  %v2556_v6 = vadd.f32 %v12410_v16, %v12408_v45  ;;  %v2559_v45 = vadd.f32 %v12426_v15, %v12424_v35  ;;  %v2562_v35 = vadd.f32 %v12442_v59, %v12440_v9  ;;  %v2375_v59 = vadd.f32 %v12434_v18, %v12432_v17 }
 0x434   :  { %v12505_v23 = vpop.f32.mrf.mxu2  ;;  %v12507_v37 = vpop.f32.mrf.mxu3 }
 0x435   :  { %14831 = vst [vmem:[#allocation5_spill] sm:$0xff] %v12505_v23  ;;  %v2576_v9 = vadd.f32 %v2562_v35, %v12422_v41  ;;  %v2565_v41 = vadd.f32 %v12458_v46, %v12456_v49 }
 0x436   :  { %14832 = vst [vmem:[#allocation4_spill] sm:$0xff] %v12507_v37 }
 0x438   :  { %v12529_v7 = vpop.f32.mrf.mxu0 }
 0x439   :  { %14839 = vst [vmem:[#allocation16_spill] sm:$0xff] %v12529_v7 }
 0x43a   :  { %v3271_v23 = vpop.f32.mrf.mxu1 }
 0x43c   :  { %v12509_v27 = vpop.f32.mrf.mxu2  ;;  %v12511_v38 = vpop.f32.mrf.mxu3  ;;  %v14857_v35 = vld [vmem:[#allocation5_spill] sm:$0xff] }
 0x43d   :  { %14833 = vst [vmem:[#allocation23_spill] sm:$0xff] %v12509_v27 }
 0x43e   :  { %14834 = vst [vmem:[#allocation22_spill] sm:$0xff] %v12511_v38 }
 0x440   :  { %v3233_v37 = vpop.f32.mrf.mxu0 }
 0x442   :  { %v3274_v14 = vpop.f32.mrf.mxu1 }
 0x444   :  { %v3043_v13 = vpop.f32.mrf.mxu2  ;;  %v3081_v20 = vpop.f32.mrf.mxu3 }
 0x448   :  { %v3236_v40 = vpop.f32.mrf.mxu0 }
 0x44c   :  { %v3046_v63 = vpop.f32.mrf.mxu2  ;;  %v3084_v22 = vpop.f32.mrf.mxu3 }
 0x44d   :  { %v3085_v56 = vadd.f32 %v3084_v22, %v3046_v63  ;;  %v2168_v63 = vadd.f32 %v12350_v33, %v12348_v58  ;;  %v2755_v22 = vadd.f32 %v12503_v47, %v12501_v19  ;;  %v14851_v47 = vld [vmem:[#allocation9_spill] sm:$0xff] }
 0x454   :  { %v3049_v54 = vpop.f32.mrf.mxu2  ;;  %v3087_v24 = vpop.f32.mrf.mxu3 }
 0x455   :  { %v3088_v57 = vadd.f32 %v3087_v24, %v3049_v54 }
 0x45c   :  { %v12525_v27 = vpop.f32.mrf.mxu2  ;;  %v12527_v38 = vpop.f32.mrf.mxu3 }
 0x464   :  { %v12533_v51 = vpop.f32.mrf.mxu2  ;;  %v12535_v36 = vpop.f32.mrf.mxu3 }
 0x465   :  { %14841 = vst [vmem:[#allocation12_spill] sm:$0xff] %v12533_v51  ;;  %v2573_v51 = vadd.f32 %v2553_v34, %v12375_v61  ;;  %v2878_v34 = vadd.f32 %v2877_v48, %v2839_v53  ;;  %v2881_v53 = vadd.f32 %v12515_v26, %v12513_v43  ;;  %v14847_v26 = vld [vmem:[#allocation13_spill] sm:$0xff] }
 0x466   :  { %14842 = vst [vmem:[#allocation24_spill] sm:$0xff] %v12535_v36  ;;  %v2743_v36 = vadd.f32 %v12466_v4, %v12464_v2  ;;  %v3239_v2 = vpop.f32.mrf.mxu0  ;;  %v3277_v4 = vpop.f32.mrf.mxu1  ;;  %v2378_v49 = vadd.f32 %v14847_v26, %v12444_v55  ;;  %v14868_v26 = vld [vmem:[#allocation23_spill] sm:$0xff] }
 0x468   :  { %v2763_v44 = vadd.f32 %v2743_v36, %v2573_v51 }
 0x46a   :  { %v2892_v16 = vadd.f32 %v2872_v5, %v2763_v44  ;;  %v14848_v5 = vld [vmem:[#allocation3_spill] sm:$0xff] }
 0x46b   :  { %v2178_v58 = vadd.f32 %v2168_v63, %v14848_v5 }
 0x46c   :  { %v12537_v32 = vpop.f32.mrf.mxu2  ;;  %v12539_v1 = vpop.f32.mrf.mxu3 }
 0x46d   :  { %14843 = vst [vmem:[#allocation25_spill] sm:$0xff] %v12537_v32  ;;  %v2574_v32 = vadd.f32 %v2556_v6, %v12395_v25  ;;  %v3272_v6 = vadd.f32 %v3271_v23, %v3233_v37  ;;  %v2575_v25 = vadd.f32 %v2559_v45, %v12412_v10  ;;  %v3278_v23 = vadd.f32 %v3277_v4, %v3239_v2  ;;  %v14849_v45 = vld [vmem:[#allocation21_spill] sm:$0xff]  ;;  %v14852_v2 = vld [vmem:[#allocation8_spill] sm:$0xff] }
 0x46e   :  { %14844 = vst [vmem:[#allocation26_spill] sm:$0xff] %v12539_v1  ;;  %v2746_v1 = vadd.f32 %v12478_v31, %v12476_v12  ;;  %v2749_v12 = vadd.f32 %v12490_v29, %v12488_v8  ;;  %v2568_v4 = vadd.f32 %v14852_v2, %v14851_v47  ;;  %v2388_v55 = vadd.f32 %v2378_v49, %v2178_v58  ;;  %v14869_v49 = vld [vmem:[#allocation22_spill] sm:$0xff] }
 0x46f   :  { %v10278_v2 = vmov 50.0  }
 0x470   :  { %v2764_v21 = vadd.f32 %v2746_v1, %v2574_v32  ;;  %v3275_v32 = vadd.f32 %v3274_v14, %v3236_v40  ;;  %v2765_v51 = vadd.f32 %v2749_v12, %v2575_v25  ;;  %v3280_v14 = vpop.f32.mrf.mxu1  ;;  %v14854_v25 = vld [vmem:[#allocation24_spill] sm:$0xff]  ;;  %10235 = vrcp.f32 %v10278_v2  ;;  %v3620_v2 = vld [vmem:[%s14741_s5 + $0xc8] sm:$0xff] }
 0x471   :  { %3698 = vmatpush.msra.mxu1 %v3620_v2  ;;  %v3601_v2 = vld [vmem:[%s14741_s5 + $0x30] sm:$0xff] }
 0x472   :  { %v2893_v61 = vadd.f32 %v2875_v42, %v2764_v21  ;;  %v2894_v10 = vadd.f32 %v2878_v34, %v2765_v51  ;;  %v3091_v42 = vadd.f32 %v12527_v38, %v12525_v27  ;;  %v14856_v51 = vld [vmem:[#allocation15_spill] sm:$0xff] }
 0x474   :  { %v12543_v28 = vpop.f32.mrf.mxu2  ;;  %v12545_v7 = vpop.f32.mrf.mxu3  ;;  %v3103_v1 = vadd.f32 %v3085_v56, %v2893_v61  ;;  %v3104_v29 = vadd.f32 %v3088_v57, %v2894_v10  ;;  %v14859_v57 = vld [vmem:[#allocation11_spill] sm:$0xff]  ;;  %v2578_v10 = vadd.f32 %v2568_v4, %v2388_v55 }
 0x475   :  { %14845 = vst [vmem:[#allocation27_spill] sm:$0xff] %v12543_v28  ;;  %v3082_v28 = vadd.f32 %v3081_v20, %v3043_v13  ;;  %v3242_v56 = vpop.f32.mrf.mxu0  ;;  %v14867_v63 = vld [vmem:[#allocation26_spill] sm:$0xff] }
 0x476   :  { %14846 = vst [vmem:[#allocation28_spill] sm:$0xff] %v12545_v7  ;;  %v3293_v30 = vadd.f32 %v3275_v32, %v3103_v1  ;;  %v3294_v20 = vadd.f32 %v3278_v23, %v3104_v29  ;;  %v3281_v24 = vadd.f32 %v3280_v14, %v3242_v56 }
 0x477   :  { %v3102_v31 = vadd.f32 %v3082_v28, %v2892_v16  ;;  %v2165_v28 = vadd.f32 %v12328_v3, %v12326_v50  ;;  %v14850_v16 = vld [vmem:[#allocation20_spill] sm:$0xff] }
 0x478   :  { %v3283_v44 = vpop.f32.mrf.mxu1  ;;  %v2884_v19 = vadd.f32 %v14850_v16, %v14849_v45  ;;  %v14871_v45 = vld [vmem:[#allocation14_spill] sm:$0xff] }
 0x479   :  { %v3292_v60 = vadd.f32 %v3272_v6, %v3102_v31  ;;  %v2177_v3 = vadd.f32 %v2165_v28, %v12324_v52  ;;  %v14853_v6 = vld [vmem:[#allocation12_spill] sm:$0xff] }
 0x47a   :  { %v3094_v1 = vadd.f32 %v14854_v25, %v14853_v6 }
 0x47b   :  { %v2387_v48 = vadd.f32 %v2375_v59, %v2177_v3 }
 0x47c   :  { %v3423_v39 = vpop.f32.mrf.mxu2  ;;  %v3461_v7 = vpop.f32.mrf.mxu3 }
 0x47d   :  { %v3462_v36 = vadd.f32 %v3461_v7, %v3423_v39  ;;  %v2752_v39 = vadd.f32 %v12498_v62, %v12496_v0  ;;  %v2577_v43 = vadd.f32 %v2565_v41, %v2387_v48  ;;  %v3245_v40 = vpop.f32.mrf.mxu0  ;;  %v14864_v48 = vld [vmem:[#allocation7_spill] sm:$0xff]  ;;  %v14865_v41 = vld [vmem:[#allocation6_spill] sm:$0xff] }
 0x47e   :  { %v3284_v56 = vadd.f32 %v3283_v44, %v3245_v40 }
 0x47f   :  { %v12562_v13 = vadd.f32 %v3462_v36, %v3292_v60  ;;  %v2766_v62 = vadd.f32 %v2752_v39, %v2576_v9  ;;  %v2767_v33 = vadd.f32 %v2755_v22, %v2577_v43  ;;  %v14855_v36 = vld [vmem:[#allocation17_spill] sm:$0xff]  ;;  %v14861_v9 = vld [vmem:[#allocation2_spill] sm:$0xff] }
 0x480   :  { %v2171_v34 = vadd.f32 %v14856_v51, %v14855_v36 }
 0x481   :  { %v3492_v37 = vsel %vm3491_vm4, %v12562_v13, 0.0  ;;  %v2895_v52 = vadd.f32 %v2881_v53, %v2766_v62  ;;  %v2896_v60 = vadd.f32 %v2884_v19, %v2767_v33  ;;  %v3286_v62 = vpop.f32.mrf.mxu1  ;;  %v14870_v33 = vld [vmem:[#allocation16_spill] sm:$0xff] }
 0x482   :  { %v2179_v59 = vadd.f32 %v2171_v34, %v14861_v9  ;;  %v2890_v16 = vadd.f32 %v14871_v45, %v14870_v33 }
 0x483   :  { %v3105_v46 = vadd.f32 %v3091_v42, %v2895_v52  ;;  %v3106_v39 = vadd.f32 %v3094_v1, %v2896_v60  ;;  %v10236_v60 = vpop.eup %10235 }
 0x484   :  { %v3426_v15 = vpop.f32.mrf.mxu2  ;;  %v3464_v11 = vpop.f32.mrf.mxu3  ;;  %vm3517_vm6 = vweird.f32 %v10236_v60 }
 0x485   :  { %v3465_v8 = vadd.f32 %v3464_v11, %v3426_v15  ;;  %v3295_v31 = vadd.f32 %v3281_v24, %v3105_v46  ;;  %v14858_v15 = vld [vmem:[#allocation4_spill] sm:$0xff]  ;;  %v3296_v42 = vadd.f32 %v3284_v56, %v3106_v39  ;;  %v2761_v46 = vadd.f32 %v14869_v49, %v14868_v26 }
 0x486   :  { %v2758_v11 = vadd.f32 %v14858_v15, %v14857_v35 }
 0x487   :  { %v12568_v7 = vadd.f32 %v3465_v8, %v3293_v30  ;;  %v14860_v8 = vld [vmem:[#allocation10_spill] sm:$0xff] }
 0x488   :  { %v2381_v28 = vadd.f32 %v14860_v8, %v14859_v57  ;;  %v2768_v23 = vadd.f32 %v2758_v11, %v2578_v10 }
 0x489   :  { %v3493_v50 = vsel %vm3491_vm4, %v12568_v7, 0.0  ;;  %v3289_v25 = vpop.f32.mrf.mxu1 }
 0x48a   :  { %v3494_v0 = vadd.f32 %v3493_v50, %v3492_v37  ;;  %v14862_v37 = vld [vmem:[#allocation19_spill] sm:$0xff]  ;;  %v14863_v50 = vld [vmem:[#allocation18_spill] sm:$0xff]  ;;  %v2389_v53 = vadd.f32 %v2381_v28, %v2179_v59  ;;  %v3513_v28 = vmul.f32 50.0, %v10236_v60 }
 0x48b   :  { %v2887_v3 = vadd.f32 %v14863_v50, %v14862_v37 }
 0x48c   :  { %v3429_v17 = vpop.f32.mrf.mxu2  ;;  %v3467_v18 = vpop.f32.mrf.mxu3  ;;  %v3514_v56 = vsub.f32 1.0, %v3513_v28 }
 0x48d   :  { %v3468_v21 = vadd.f32 %v3467_v18, %v3429_v17  ;;  %v2571_v17 = vadd.f32 %v14865_v41, %v14864_v48  ;;  %v2897_v43 = vadd.f32 %v2887_v3, %v2768_v23 }
 0x48e   :  { %v3515_v59 = vmul.f32 %v10236_v60, %v3514_v56 }
 0x48f   :  { %v12588_v54 = vadd.f32 %v3468_v21, %v3294_v20  ;;  %v14866_v21 = vld [vmem:[#allocation25_spill] sm:$0xff]  ;;  %v2579_v40 = vadd.f32 %v2571_v17, %v2389_v53 }
 0x490   :  { %v3097_v52 = vadd.f32 %v14867_v63, %v14866_v21  ;;  %v3516_v37 = vadd.f32 %v10236_v60, %v3515_v59 }
 0x491   :  { %v3495_v27 = vsel %vm3491_vm4, %v12588_v54, 0.0  ;;  %v2769_v58 = vadd.f32 %v2761_v46, %v2579_v40 }
 0x492   :  { %v3496_v38 = vadd.f32 %v3495_v27, %v3494_v0  ;;  %v3248_v0 = vpop.f32.mrf.mxu0  ;;  %v3107_v44 = vadd.f32 %v3097_v52, %v2897_v43 }
 0x493   :  { %v3287_v27 = vadd.f32 %v3286_v62, %v3248_v0  ;;  %v2898_v1 = vadd.f32 %v2890_v16, %v2769_v58  ;;  %v12627_v0 = vsel %vm3517_vm6, %v10236_v60, %v3516_v37  ;;  %v3606_v60 = vld [vmem:[%s14741_s5 + $0x58] sm:$0xff] }
 0x494   :  { %v3432_v61 = vpop.f32.mrf.mxu2  ;;  %v3470_v12 = vpop.f32.mrf.mxu3 }
 0x495   :  { %v3471_v32 = vadd.f32 %v3470_v12, %v3432_v61  ;;  %v3297_v4 = vadd.f32 %v3287_v27, %v3107_v44  ;;  %v14872_v61 = vld [vmem:[#allocation27_spill] sm:$0xff]  ;;  %v14873_v12 = vld [vmem:[#allocation28_spill] sm:$0xff] }
 0x496   :  { %v3100_v55 = vadd.f32 %v14873_v12, %v14872_v61  ;;  %v3621_v61 = vld [vmem:[%s14741_s5 + $0xd0] sm:$0xff]  ;;  %v3622_v12 = vld [vmem:[%s14741_s5 + $0xd8] sm:$0xff] }
 0x497   :  { %v12605_v30 = vadd.f32 %v3471_v32, %v3295_v31  ;;  %3736 = vmatpush.msra.mxu2 %v3621_v61  ;;  %3774 = vmatpush.msra.mxu3 %v3622_v12 }
 0x498   :  { %v3108_v36 = vadd.f32 %v3100_v55, %v2898_v1  ;;  %v3611_v55 = vld [vmem:[%s14741_s5 + $0x80] sm:$0xff]  ;;  %v3614_v1 = vld [vmem:[%s14741_s5 + $0x98] sm:$0xff] }
 0x499   :  { %v3497_v14 = vsel %vm3491_vm4, %v12605_v30, 0.0  ;;  %3775 = vmatpush.msra.mxu3 %v3614_v1 }
 0x49a   :  { %v3498_v29 = vadd.f32 %v3497_v14, %v3496_v38  ;;  %v3251_v6 = vpop.f32.mrf.mxu0 }
 0x49b   :  { %v3290_v51 = vadd.f32 %v3289_v25, %v3251_v6  ;;  %v3613_v25 = vld [vmem:[%s14741_s5 + $0x90] sm:$0xff]  ;;  %3776 = vmatpush.msra.mxu3 %v3606_v60 }
 0x49c   :  { %v3435_v18 = vpop.f32.mrf.mxu2  ;;  %v3473_v20 = vpop.f32.mrf.mxu3  ;;  %3737 = vmatpush.msra.mxu2 %v3613_v25 }
 0x49d   :  { %v3474_v22 = vadd.f32 %v3473_v20, %v3435_v18  ;;  %v3298_v57 = vadd.f32 %v3290_v51, %v3108_v36  ;;  %v3604_v36 = vld [vmem:[%s14741_s5 + $0x48] sm:$0xff]  ;;  %v3605_v51 = vld [vmem:[%s14741_s5 + $0x50] sm:$0xff] }
 0x49e   :  { %3738 = vmatpush.msra.mxu2 %v3605_v51 }
 0x49f   :  { %v3486_v24 = vadd.f32 %v3474_v22, %v3296_v42 }
 0x4a1   :  { %v3499_v38 = vsel %vm3491_vm4, %v3486_v24, 0.0 }
 0x4a2   :  { %v3500_v5 = vadd.f32 %v3499_v38, %v3498_v29 }
 0x4a4   :  { %v3438_v19 = vpop.f32.mrf.mxu2  ;;  %v3476_v47 = vpop.f32.mrf.mxu3 }
 0x4a5   :  { %v3477_v31 = vadd.f32 %v3476_v47, %v3438_v19  ;;  %v3619_v47 = vld [vmem:[%s14741_s5 + $0xc0] sm:$0xff] }
 0x4a6   :  { %3660 = vmatpush.msrb.mxu0 %v3619_v47  ;;  %v3600_v47 = vld [vmem:[%s14741_s5 + $0x28] sm:$0xff] }
 0x4a7   :  { %v3487_v32 = vadd.f32 %v3477_v31, %v3297_v4  ;;  %v3612_v31 = vld [vmem:[%s14741_s5 + $0x88] sm:$0xff] }
 0x4a8   :  { %3661 = vmatpush.msrb.mxu0 %v3611_v55  ;;  %3699 = vmatpush.msra.mxu1 %v3612_v31 }
 0x4a9   :  { %v3501_v34 = vsel %vm3491_vm4, %v3487_v32, 0.0 }
 0x4aa   :  { %v3502_v35 = vadd.f32 %v3501_v34, %v3500_v5  ;;  %3700 = vmatpush.msra.mxu1 %v3604_v36 }
 0x4ac   :  { %v3441_v15 = vpop.f32.mrf.mxu2  ;;  %v3479_v11 = vpop.f32.mrf.mxu3 }
 0x4ad   :  { %v3480_v8 = vadd.f32 %v3479_v11, %v3441_v15  ;;  %v3596_v15 = vld [vmem:[%s14741_s5 + $0x8] sm:$0xff]  ;;  %v3597_v11 = vld [vmem:[%s14741_s5 + $0x10] sm:$0xff] }
 0x4ae   :  { %3701 = vmatpush.msra.mxu1 %v3596_v15  ;;  %3739 = vmatpush.msra.mxu2 %v3597_v11 }
 0x4af   :  { %v3488_v10 = vadd.f32 %v3480_v8, %v3298_v57  ;;  %v3598_v8 = vld [vmem:[%s14741_s5 + $0x18] sm:$0xff] }
 0x4b0   :  { %3777 = vmatpush.msra.mxu3 %v3598_v8 }
 0x4b1   :  { %v3504_v39 = vsel %vm3503_vm5, %v3488_v10, 0.0 }
 0x4b2   :  { %v3505_v14 = vadd.f32 %v3504_v39, %v3502_v35  ;;  %v3595_v35 = vld [vmem:[%s14741_s5] sm:$0xff] }
 0x4b4   :  { %v3506_v9 = vrot.slane %v3505_v14, 4 }
 0x4b6   :  { %v3507_v29 = vadd.f32 %v3506_v9, %v3505_v14 }
 0x4b8   :  { %v3508_v23 = vrot.slane %v3507_v29, 2 }
 0x4ba   :  { %v3509_v50 = vadd.f32 %v3508_v23, %v3507_v29  ;;  %v12721_v23 = vld [vmem:[%s14737_s10 + $0x1] ss:$0 sm:$0xff] }
 0x4bc   :  { %v3510_v3 = vrot.slane %v3509_v50, 1 }
 0x4be   :  { %v3511_v62 = vadd.f32 %v3510_v3, %v3509_v50 }
 0x4c0   :  { %v3519_v53 = vmul.f32 %v12627_v0, %v3511_v62 }
 0x4c2   :  { %v12631_v48 = vsub.f32 %v12562_v13, %v3519_v53  ;;  %v12634_v41 = vsub.f32 %v12568_v7, %v3519_v53  ;;  %v12637_v17 = vsub.f32 %v12588_v54, %v3519_v53  ;;  %v12640_v18 = vsub.f32 %v12605_v30, %v3519_v53 }
 0x4c3   :  { %v12642_v20 = vsub.f32 %v3486_v24, %v3519_v53  ;;  %v12644_v42 = vsub.f32 %v3487_v32, %v3519_v53  ;;  %v12646_v21 = vsub.f32 %v3488_v10, %v3519_v53  ;;  %v3603_v32 = vld [vmem:[%s14741_s5 + $0x40] sm:$0xff] }
 0x4c4   :  { %v3527_v63 = vmul.f32 %v12631_v48, %v12631_v48  ;;  %v3528_v13 = vmul.f32 %v12634_v41, %v12634_v41  ;;  %v3529_v7 = vmul.f32 %v12637_v17, %v12637_v17  ;;  %v3530_v54 = vmul.f32 %v12640_v18, %v12640_v18  ;;  %3662 = vmatpush.msrb.mxu0 %v3603_v32  ;;  %v12730_v53 = vld [vmem:[%s14737_s10 + $0x2] ss:$0 sm:$0xff] }
 0x4c5   :  { %v3531_v43 = vmul.f32 %v12642_v20, %v12642_v20  ;;  %v3532_v46 = vmul.f32 %v12644_v42, %v12644_v42  ;;  %v3533_v44 = vmul.f32 %v12646_v21, %v12646_v21 }
 0x4c6   :  { %v3534_v30 = vsel %vm3491_vm4, %v3527_v63, 0.0  ;;  %v3535_v52 = vsel %vm3491_vm4, %v3528_v13, 0.0  ;;  %v3537_v26 = vsel %vm3491_vm4, %v3529_v7, 0.0  ;;  %v3539_v24 = vsel %vm3491_vm4, %v3530_v54, 0.0  ;;  %3663 = vmatpush.msrb.mxu0 %v3595_v35 }
 0x4c7   :  { %v3536_v22 = vadd.f32 %v3535_v52, %v3534_v30  ;;  %v3541_v27 = vsel %vm3491_vm4, %v3531_v43, 0.0  ;;  %v3543_v5 = vsel %vm3491_vm4, %v3532_v46, 0.0  ;;  %v3545_v33 = vsel %vm3503_vm5, %v3533_v44, 0.0  ;;  %v3624_v43 = vld [vmem:[%s14741_s5 + $0xe8] sm:$0xff]  ;;  %v3626_v46 = vld [vmem:[%s14741_s5 + $0xf8] sm:$0xff]  ;;  %v3617_v44 = vld [vmem:[%s14741_s5 + $0xb0] sm:$0xff] }
 0x4c8   :  { %3850 = vmatpush.msrb.mxu1 %v3624_v43  ;;  %3926 = vmatpush.msrb.mxu3 %v3626_v46 }
 0x4c9   :  { %v3538_v49 = vadd.f32 %v3537_v26, %v3536_v22  ;;  %v3623_v22 = vld [vmem:[%s14741_s5 + $0xe0] sm:$0xff]  ;;  %v3625_v26 = vld [vmem:[%s14741_s5 + $0xf0] sm:$0xff] }
 0x4ca   :  { %3812 = vmatpush.msra.mxu0 %v3623_v22  ;;  %3888 = vmatpush.msrb.mxu2 %v3625_v26 }
 0x4cb   :  { %v3540_v40 = vadd.f32 %v3539_v24, %v3538_v49  ;;  %v3615_v24 = vld [vmem:[%s14741_s5 + $0xa0] sm:$0xff] }
 0x4cc   :  { %3813 = vmatpush.msra.mxu0 %v3615_v24  ;;  %3889 = vmatpush.msrb.mxu2 %v3617_v44 }
 0x4cd   :  { %v3542_v38 = vadd.f32 %v3541_v27, %v3540_v40  ;;  %v3616_v40 = vld [vmem:[%s14741_s5 + $0xa8] sm:$0xff]  ;;  %v3618_v27 = vld [vmem:[%s14741_s5 + $0xb8] sm:$0xff] }
 0x4ce   :  { %3851 = vmatpush.msrb.mxu1 %v3616_v40  ;;  %3927 = vmatpush.msrb.mxu3 %v3618_v27 }
 0x4cf   :  { %v3544_v58 = vadd.f32 %v3543_v5, %v3542_v38  ;;  %v3607_v38 = vld [vmem:[%s14741_s5 + $0x60] sm:$0xff]  ;;  %v3608_v5 = vld [vmem:[%s14741_s5 + $0x68] sm:$0xff] }
 0x4d0   :  { %3814 = vmatpush.msra.mxu0 %v3607_v38  ;;  %3852 = vmatpush.msrb.mxu1 %v3608_v5 }
 0x4d1   :  { %v3546_v45 = vadd.f32 %v3545_v33, %v3544_v58  ;;  %v3609_v58 = vld [vmem:[%s14741_s5 + $0x70] sm:$0xff]  ;;  %v3610_v33 = vld [vmem:[%s14741_s5 + $0x78] sm:$0xff] }
 0x4d2   :  { %3890 = vmatpush.msrb.mxu2 %v3609_v58  ;;  %3928 = vmatpush.msrb.mxu3 %v3610_v33 }
 0x4d3   :  { %v3547_v16 = vrot.slane %v3546_v45, 4  ;;  %3853 = vmatpush.msrb.mxu1 %v3600_v47 }
 0x4d4   :  { %3891 = vmatpush.msrb.mxu2 %v3601_v2 }
 0x4d5   :  { %v3548_v19 = vadd.f32 %v3547_v16, %v3546_v45 }
 0x4d7   :  { %v3549_v4 = vrot.slane %v3548_v19, 2 }
 0x4d9   :  { %v3550_v6 = vadd.f32 %v3549_v4, %v3548_v19  ;;  %v3599_v19 = vld [vmem:[%s14741_s5 + $0x20] sm:$0xff]  ;;  %v3602_v4 = vld [vmem:[%s14741_s5 + $0x38] sm:$0xff] }
 0x4da   :  { %3815 = vmatpush.msra.mxu0 %v3599_v19  ;;  %3929 = vmatpush.msrb.mxu3 %v3602_v4 }
 0x4db   :  { %v3551_v34 = vrot.slane %v3550_v6, 1 }
 0x4dd   :  { %v3552_v57 = vadd.f32 %v3551_v34, %v3550_v6 }
 0x4df   :  { %v3553_v28 = vmul.f32 %v3552_v57, %v12627_v0 }
 0x4e1   :  { %v3554_v10 = vadd.f32 1e-05, %v3553_v28 }
 0x4e3   :  { %10237 = vrsqrt.f32 %v3554_v10  ;;  %vm3561_vm8 = vweird.f32 %v3554_v10 }
 0x4e9   :  { %v10238_v39 = vpop.eup %10237 }
 0x4ea   :  { %v3556_v56 = vmul.f32 %v10238_v39, %v3554_v10  ;;  %vm3562_vm7 = vweird.f32 %v10238_v39 }
 0x4eb   :  { %vm3563_vm9 = vmor %vm3561_vm8, %vm3562_vm7 }
 0x4ec   :  { %v3557_v14 = vmul.f32 %v10238_v39, %v3556_v56 }
 0x4ee   :  { %v3558_v9 = vmul.f32 0.5, %v3557_v14 }
 0x4f0   :  { %v3559_v59 = vsub.f32 1.5, %v3558_v9 }
 0x4f2   :  { %v3560_v29 = vmul.f32 %v10238_v39, %v3559_v59 }
 0x4f4   :  { %v3564_v37 = vsel %vm3563_vm9, %v10238_v39, %v3560_v29 }
 0x4f5   :  { %v3565_v50 = vmul.f32 %v3564_v37, %v12631_v48  ;;  %v3566_v3 = vmul.f32 %v3564_v37, %v12634_v41  ;;  %v3567_v0 = vmul.f32 %v3564_v37, %v12637_v17  ;;  %v3568_v62 = vmul.f32 %v3564_v37, %v12640_v18 }
 0x4f6   :  { %v3569_v63 = vmul.f32 %v3564_v37, %v12642_v20  ;;  %v12734_v13 = vmul.f32 %v3564_v37, %v12644_v42  ;;  %v12737_v7 = vmul.f32 %v3564_v37, %v12646_v21 }
 0x4f7   :  { %v3573_v48 = vmul.f32 %v12721_v23, %v3565_v50  ;;  %v3574_v17 = vmul.f32 %v12721_v23, %v3566_v3  ;;  %v3575_v42 = vmul.f32 %v12721_v23, %v3567_v0  ;;  %v3576_v30 = vmul.f32 %v12721_v23, %v3568_v62 }
 0x4f8   :  { %v3577_v45 = vmul.f32 %v12721_v23, %v3569_v63  ;;  %v3578_v12 = vmul.f32 %v12721_v23, %v12734_v13  ;;  %v3579_v6 = vmul.f32 %v12721_v23, %v12737_v7 }
 0x4f9   :  { %v3581_v41 = vadd.f32 %v12730_v53, %v3573_v48  ;;  %v3582_v20 = vadd.f32 %v12730_v53, %v3574_v17  ;;  %v3583_v54 = vadd.f32 %v12730_v53, %v3575_v42  ;;  %v3584_v49 = vadd.f32 %v12730_v53, %v3576_v30  ;;  %v9416_v30 = vld [vmem:[%s14742_s4 + $0x18] sm:$0xff]  }
 0x4fa   :  { %v3585_v61 = vadd.f32 %v12730_v53, %v3577_v45  ;;  %v3586_v31 = vadd.f32 %v12730_v53, %v3578_v12  ;;  %v3587_v1 = vadd.f32 %v12730_v53, %v3579_v6  ;;  %v9103_v44 = vunpack.c.h.bf16 %v9416_v30 }
 0x4fb   :  { %v12742_v18 = vmax.f32 %v3581_v41, 0.0  ;;  %v12754_v21 = vmax.f32 %v3582_v20, 0.0  ;;  %v12766_v52 = vmax.f32 %v3583_v54, 0.0  ;;  %v3591_v16 = vmax.f32 %v3584_v49, 0.0 }
 0x4fc   :  { %v3592_v55 = vmax.f32 %v3585_v61, 0.0  ;;  %v3593_v25 = vmax.f32 %v3586_v31, 0.0  ;;  %v3594_v32 = vmax.f32 %v3587_v1, 0.0  ;;  %v12995_v31 = vld [vmem:[%s14742_s4 + $0x48] sm:$0xff]  }
 0x4fd   :  { %8519 = vmatmul.msk.f32.vlgmr.msrb.gmra.mxu0 %vm3491_vm4, %v12742_v18  ;;  %8526 = vmatmul.msk.f32.vlgmr.msra.gmra.mxu1 %vm3491_vm4, %v12742_v18 }
 0x4fe   :  { %8533 = vmatmul.msk.f32.vlgmr.msra.gmra.mxu2 %vm3491_vm4, %v12742_v18  ;;  %8540 = vmatmul.msk.f32.vlgmr.msra.gmra.mxu3 %vm3491_vm4, %v12742_v18 }
 0x505   :  { %8520 = vmatmul.msk.f32.gmra.mxu0 %vm3491_vm4, %v12754_v21  ;;  %8527 = vmatmul.msk.f32.gmra.mxu1 %vm3491_vm4, %v12754_v21 }
 0x506   :  { %8534 = vmatmul.msk.f32.gmra.mxu2 %vm3491_vm4, %v12754_v21  ;;  %8541 = vmatmul.msk.f32.gmra.mxu3 %vm3491_vm4, %v12754_v21 }
 0x50d   :  { %8521 = vmatmul.msk.f32.gmra.mxu0 %vm3491_vm4, %v12766_v52  ;;  %8528 = vmatmul.msk.f32.gmra.mxu1 %vm3491_vm4, %v12766_v52 }
 0x50e   :  { %8535 = vmatmul.msk.f32.gmra.mxu2 %vm3491_vm4, %v12766_v52  ;;  %8542 = vmatmul.msk.f32.gmra.mxu3 %vm3491_vm4, %v12766_v52 }
 0x515   :  { %8522 = vmatmul.msk.f32.gmra.mxu0 %vm3491_vm4, %v3591_v16  ;;  %8529 = vmatmul.msk.f32.gmra.mxu1 %vm3491_vm4, %v3591_v16 }
 0x516   :  { %8536 = vmatmul.msk.f32.gmra.mxu2 %vm3491_vm4, %v3591_v16  ;;  %8543 = vmatmul.msk.f32.gmra.mxu3 %vm3491_vm4, %v3591_v16 }
 0x51d   :  { %8523 = vmatmul.msk.f32.gmra.mxu0 %vm3491_vm4, %v3592_v55  ;;  %8530 = vmatmul.msk.f32.gmra.mxu1 %vm3491_vm4, %v3592_v55 }
 0x51e   :  { %8537 = vmatmul.msk.f32.gmra.mxu2 %vm3491_vm4, %v3592_v55  ;;  %8544 = vmatmul.msk.f32.gmra.mxu3 %vm3491_vm4, %v3592_v55 }
 0x525   :  { %8524 = vmatmul.msk.f32.gmra.mxu0 %vm3491_vm4, %v3593_v25  ;;  %8531 = vmatmul.msk.f32.gmra.mxu1 %vm3491_vm4, %v3593_v25 }
 0x526   :  { %8538 = vmatmul.msk.f32.gmra.mxu2 %vm3491_vm4, %v3593_v25  ;;  %8545 = vmatmul.msk.f32.gmra.mxu3 %vm3491_vm4, %v3593_v25 }
 0x52d   :  { %8525 = vmatmul.msk.f32.gmra.mxu0 %vm3491_vm4, %v3594_v32  ;;  %8532 = vmatmul.msk.f32.gmra.mxu1 %vm3491_vm4, %v3594_v32 }
 0x52e   :  { %8539 = vmatmul.msk.f32.gmra.mxu2 %vm3491_vm4, %v3594_v32  ;;  %8546 = vmatmul.msk.f32.gmra.mxu3 %vm3491_vm4, %v3594_v32 }
 0x535   :  { %8547 = vmatmul.msk.f32.vlgmr.msra.gmra.mxu0 %vm3491_vm4, %v12742_v18  ;;  %8554 = vmatmul.msk.f32.vlgmr.msrb.gmra.mxu1 %vm3491_vm4, %v12742_v18 }
 0x536   :  { %8561 = vmatmul.msk.f32.vlgmr.msrb.gmra.mxu2 %vm3491_vm4, %v12742_v18  ;;  %8568 = vmatmul.msk.f32.vlgmr.msrb.gmra.mxu3 %vm3491_vm4, %v12742_v18 }
 0x53d   :  { %8548 = vmatmul.msk.f32.gmra.mxu0 %vm3491_vm4, %v12754_v21  ;;  %8555 = vmatmul.msk.f32.gmra.mxu1 %vm3491_vm4, %v12754_v21 }
 0x53e   :  { %8562 = vmatmul.msk.f32.gmra.mxu2 %vm3491_vm4, %v12754_v21  ;;  %8569 = vmatmul.msk.f32.gmra.mxu3 %vm3491_vm4, %v12754_v21 }
 0x545   :  { %8549 = vmatmul.msk.f32.gmra.mxu0 %vm3491_vm4, %v12766_v52  ;;  %8556 = vmatmul.msk.f32.gmra.mxu1 %vm3491_vm4, %v12766_v52 }
 0x546   :  { %8563 = vmatmul.msk.f32.gmra.mxu2 %vm3491_vm4, %v12766_v52  ;;  %8570 = vmatmul.msk.f32.gmra.mxu3 %vm3491_vm4, %v12766_v52  ;;  %v9102_v52 = vunpack.c.l.bf16 %v9416_v30 }
 0x54d   :  { %8550 = vmatmul.msk.f32.gmra.mxu0 %vm3491_vm4, %v3591_v16  ;;  %8557 = vmatmul.msk.f32.gmra.mxu1 %vm3491_vm4, %v3591_v16 }
 0x54e   :  { %8564 = vmatmul.msk.f32.gmra.mxu2 %vm3491_vm4, %v3591_v16  ;;  %8571 = vmatmul.msk.f32.gmra.mxu3 %vm3491_vm4, %v3591_v16  ;;  %v8588_v16 = vld [vmem:[%s14742_s4 + $0x20] sm:$0x1] }
 0x54f   :  { %v4073_v19 = vunpack.c.l.bf16 %v8588_v16 }
 0x555   :  { %8551 = vmatmul.msk.f32.gmra.mxu0 %vm3491_vm4, %v3592_v55  ;;  %8558 = vmatmul.msk.f32.gmra.mxu1 %vm3491_vm4, %v3592_v55 }
 0x556   :  { %8565 = vmatmul.msk.f32.gmra.mxu2 %vm3491_vm4, %v3592_v55  ;;  %8572 = vmatmul.msk.f32.gmra.mxu3 %vm3491_vm4, %v3592_v55  ;;  %v12990_v55 = vld [vmem:[%s14742_s4 + $0x30] sm:$0xff]  }
 0x557   :  { %v9106_v6 = vunpack.c.l.bf16 %v12990_v55 }
 0x55d   :  { %8552 = vmatmul.msk.f32.gmra.mxu0 %vm3491_vm4, %v3593_v25  ;;  %8559 = vmatmul.msk.f32.gmra.mxu1 %vm3491_vm4, %v3593_v25 }
 0x55e   :  { %8566 = vmatmul.msk.f32.gmra.mxu2 %vm3491_vm4, %v3593_v25  ;;  %8573 = vmatmul.msk.f32.gmra.mxu3 %vm3491_vm4, %v3593_v25  ;;  %v9110_v25 = vunpack.c.l.bf16 %v12995_v31 }
 0x565   :  { %8553 = vmatmul.msk.f32.gmra.mxu0 %vm3491_vm4, %v3594_v32  ;;  %8560 = vmatmul.msk.f32.gmra.mxu1 %vm3491_vm4, %v3594_v32 }
 0x566   :  { %8567 = vmatmul.msk.f32.gmra.mxu2 %vm3491_vm4, %v3594_v32  ;;  %8574 = vmatmul.msk.f32.gmra.mxu3 %vm3491_vm4, %v3594_v32 }
 0x57a   :  { %v12889_v36 = vpop.f32.mrf.mxu0  ;;  %v3703_v51 = vpop.f32.mrf.mxu1 }
 0x581   :  { %v12891_v34 = vpop.f32.mrf.mxu2  ;;  %v12893_v60 = vpop.f32.mrf.mxu3 }
 0x582   :  { %v12895_v35 = vpop.f32.mrf.mxu0  ;;  %v3706_v15 = vpop.f32.mrf.mxu1  ;;  %v10162_v1 = vpack.i.bf16 %v12891_v34, %v12893_v60 }
 0x583   :  { %v10117_v17 = vpack.i.bf16 %v12889_v36, %v12895_v35  ;;  %v10132_v54 = vpack.i.bf16 %v3703_v51, %v3706_v15 }
 0x589   :  { %v12897_v11 = vpop.f32.mrf.mxu2  ;;  %v12899_v57 = vpop.f32.mrf.mxu3 }
 0x58a   :  { %v12901_v8 = vpop.f32.mrf.mxu0  ;;  %v3709_v28 = vpop.f32.mrf.mxu1  ;;  %v10157_v27 = vpack.i.bf16 %v12897_v11, %v12899_v57 }
 0x591   :  { %v12903_v10 = vpop.f32.mrf.mxu2  ;;  %v12905_v39 = vpop.f32.mrf.mxu3 }
 0x592   :  { %v12907_v56 = vpop.f32.mrf.mxu0  ;;  %v3712_v14 = vpop.f32.mrf.mxu1  ;;  %v10152_v45 = vpack.i.bf16 %v12903_v10, %v12905_v39 }
 0x593   :  { %v10112_v9 = vpack.i.bf16 %v12901_v8, %v12907_v56  ;;  %v10127_v43 = vpack.i.bf16 %v3709_v28, %v3712_v14 }
 0x595   :  { %10113 = vrot.lane.b32.xlu2 %v10112_v9, %s10276_s13 }
 0x599   :  { %v12912_v59 = vpop.f32.mrf.mxu2  ;;  %v12914_v29 = vpop.f32.mrf.mxu3 }
 0x59a   :  { %v12916_v23 = vpop.f32.mrf.mxu0  ;;  %v3715_v37 = vpop.f32.mrf.mxu1  ;;  %v10147_v47 = vpack.i.bf16 %v12912_v59, %v12914_v29 }
 0x5a1   :  { %v3753_v50 = vpop.f32.mrf.mxu2  ;;  %v3791_v3 = vpop.f32.mrf.mxu3 }
 0x5a2   :  { %v12918_v0 = vpop.f32.mrf.mxu0  ;;  %v3718_v62 = vpop.f32.mrf.mxu1  ;;  %v10142_v22 = vpack.i.bf16 %v3753_v50, %v3791_v3 }
 0x5a3   :  { %v10107_v53 = vpack.i.bf16 %v12916_v23, %v12918_v0  ;;  %v10122_v63 = vpack.i.bf16 %v3715_v37, %v3718_v62 }
 0x5a5   :  { %10123 = vrot.lane.b32.xlu2 %v10122_v63, %s10276_s13  ;;  %10108 = vrot.lane.b32.xlu1 %v10107_v53, %s10276_s13 }
 0x5a9   :  { %v3756_v13 = vpop.f32.mrf.mxu2  ;;  %v3794_v7 = vpop.f32.mrf.mxu3 }
 0x5aa   :  { %v12924_v48 = vpop.f32.mrf.mxu0  ;;  %v3721_v41 = vpop.f32.mrf.mxu1  ;;  %v10137_v40 = vpack.i.bf16 %v3756_v13, %v3794_v7 }
 0x5ab   :  { %8589 = vmatpush.msk.msra.mxu1 %vm774_vm2, %v3721_v41  ;;  %3984 = vrot.lane.b32.xlu0 %v12924_v48, %s10276_s13 }
 0x5ad   :  { %4096 = vmatpush.msra.mxu1 %v3718_v62  ;;  %4140 = vrot.lane.b32.xlu1 %v3721_v41, %s10276_s13 }
 0x5af   :  { %4097 = vmatpush.msra.mxu1 %v3715_v37 }
 0x5b1   :  { %v3759_v18 = vpop.f32.mrf.mxu2  ;;  %v3797_v20 = vpop.f32.mrf.mxu3  ;;  %4098 = vmatpush.msra.mxu1 %v3712_v14 }
 0x5b2   :  { %8603 = vmatpush.msk.msra.mxu3 %vm774_vm2, %v3759_v18  ;;  %4382 = vrot.lane.b32.xlu2 %v3797_v20, %s10276_s13  ;;  %v12934_v42 = vpop.f32.mrf.mxu0  ;;  %v12936_v21 = vpop.f32.mrf.mxu1 }
 0x5b3   :  { %4099 = vmatpush.msra.mxu1 %v3709_v28  ;;  %10118 = vrot.lane.b32.xlu0 %v10117_v17, %s10276_s13  ;;  %v10192_v63 = vpack.i.bf16 %v12934_v42, %v12936_v21 }
 0x5b4   :  { %4217 = vmatpush.msra.mxu3 %v3756_v13 }
 0x5b5   :  { %4100 = vmatpush.msra.mxu1 %v3706_v15  ;;  %10133 = vrot.lane.b32.xlu1 %v10132_v54, %s10276_s13 }
 0x5b6   :  { %4218 = vmatpush.msra.mxu3 %v3753_v50 }
 0x5b7   :  { %4101 = vmatpush.msra.mxu1 %v3703_v51 }
 0x5b8   :  { %4219 = vmatpush.msra.mxu3 %v12912_v59  ;;  %8590 = vmatmul.msk.f32.vlgmr.msra.gmra.mxu1 %vm3992_vm10, %v9102_v52 }
 0x5b9   :  { %8617 = vmatpush.msk.msrb.mxu1 %vm774_vm2, %v3797_v20  ;;  %v12945_v26 = vpop.f32.mrf.mxu2  ;;  %v12947_v49 = vpop.f32.mrf.mxu3 }
 0x5ba   :  { %4220 = vmatpush.msra.mxu3 %v12903_v10  ;;  %10143 = vrot.lane.b32.xlu2 %v10142_v22, %s10276_s13  ;;  %v12952_v46 = vpop.f32.mrf.mxu0  ;;  %v12954_v24 = vpop.f32.mrf.mxu1  ;;  %v10222_v20 = vpack.i.bf16 %v12945_v26, %v12947_v49 }
 0x5bb   :  { %4338 = vmatpush.msrb.mxu1 %v3794_v7  ;;  %10128 = vrot.lane.b32.xlu0 %v10127_v43, %s10276_s13  ;;  %v10187_v53 = vpack.i.bf16 %v12952_v46, %v12954_v24 }
 0x5bc   :  { %4221 = vmatpush.msra.mxu3 %v12897_v11 }
 0x5bd   :  { %4339 = vmatpush.msrb.mxu1 %v3791_v3  ;;  %10138 = vrot.lane.b32.xlu1 %v10137_v40, %s10276_s13 }
 0x5be   :  { %4222 = vmatpush.msra.mxu3 %v12891_v34 }
 0x5bf   :  { %4340 = vmatpush.msrb.mxu1 %v12914_v29  ;;  %8604 = vmatmul.msk.f32.vlgmr.msra.gmra.mxu3 %vm3992_vm10, %v9106_v6 }
 0x5c0   :  { %8591 = vmatmul.msk.f32.gmra.mxu1 %vm3992_vm10, %v9103_v44 }
 0x5c1   :  { %v12963_v38 = vpop.f32.mrf.mxu2  ;;  %v12965_v5 = vpop.f32.mrf.mxu3  ;;  %4341 = vmatpush.msrb.mxu1 %v12905_v39 }
 0x5c2   :  { %10158 = vrot.lane.b32.xlu2 %v10157_v27, %s10276_s13  ;;  %v3823_v58 = vpop.f32.mrf.mxu0  ;;  %v3861_v33 = vpop.f32.mrf.mxu1  ;;  %v10217_v41 = vpack.i.bf16 %v12963_v38, %v12965_v5 }
 0x5c3   :  { %4342 = vmatpush.msrb.mxu1 %v12899_v57  ;;  %4261 = vrot.lane.b32.xlu0 %v3759_v18, %s10276_s13  ;;  %v10182_v59 = vpack.i.bf16 %v3823_v58, %v3861_v33 }
 0x5c5   :  { %4343 = vmatpush.msrb.mxu1 %v12893_v60  ;;  %10153 = vrot.lane.b32.xlu1 %v10152_v45, %s10276_s13 }
 0x5c8   :  { %8592 = vmatmul.msk.f32.gmra.mxu1 %vm3992_vm10, %v4073_v19 }
 0x5c9   :  { %v12981_v2 = vpop.f32.mrf.mxu2  ;;  %v12983_v4 = vpop.f32.mrf.mxu3 }
 0x5ca   :  { %v3826_v61 = vpop.f32.mrf.mxu0  ;;  %v3864_v12 = vpop.f32.mrf.mxu1  ;;  %v10212_v18 = vpack.i.bf16 %v12981_v2, %v12983_v4 }
 0x5cb   :  { %10148 = vrot.lane.b32.xlu0 %v10147_v47, %s10276_s13  ;;  %v10177_v50 = vpack.i.bf16 %v3826_v61, %v3864_v12 }
 0x5d0   :  { %8618 = vmatmul.msk.f32.vlgmr.msrb.gmra.mxu1 %vm3992_vm10, %v9110_v25 }
 0x5d1   :  { %v13001_v32 = vpop.f32.mrf.mxu2  ;;  %v13003_v51 = vpop.f32.mrf.mxu3 }
 0x5d2   :  { %v3829_v15 = vpop.f32.mrf.mxu0  ;;  %v3867_v11 = vpop.f32.mrf.mxu1  ;;  %v10207_v17 = vpack.i.bf16 %v13001_v32, %v13003_v51 }
 0x5d3   :  { %10163 = vrot.lane.b32.xlu0 %v10162_v1, %s10276_s13  ;;  %v10172_v37 = vpack.i.bf16 %v3829_v15, %v3867_v11  ;;  %v8577_v1 = vld [vmem:[%s14742_s4 + $0x14] sm:$0x1] }
 0x5d9   :  { %v3943_v57 = vpop.f32.mrf.mxu3  ;;  %v3905_v14 = vpop.f32.mrf.mxu2 }
 0x5da   :  { %v3832_v28 = vpop.f32.mrf.mxu0  ;;  %v3870_v10 = vpop.f32.mrf.mxu1  ;;  %v10202_v13 = vpack.i.bf16 %v3905_v14, %v3943_v57 }
 0x5db   :  { %v10167_v39 = vpack.i.bf16 %v3832_v28, %v3870_v10 }
 0x5dd   :  { %10168 = vrot.lane.b32.xlu0 %v10167_v39, %s10276_s13 }
 0x5e1   :  { %v3946_v34 = vpop.f32.mrf.mxu3  ;;  %v3908_v29 = vpop.f32.mrf.mxu2 }
 0x5e2   :  { %v3835_v60 = vpop.f32.mrf.mxu0  ;;  %v3873_v9 = vpop.f32.mrf.mxu1  ;;  %v10197_v7 = vpack.i.bf16 %v3908_v29, %v3946_v34 }
 0x5e3   :  { %8645 = vmatpush.msk.msra.mxu1 %vm774_vm2, %v3873_v9  ;;  %4624 = vrot.lane.b32.xlu1 %v3873_v9, %s10276_s13 }
 0x5e4   :  { %4503 = vrot.lane.b32.xlu2 %v3835_v60, %s10276_s13  ;;  %8631 = vmatpush.msk.msrb.mxu3 %vm774_vm2, %v3835_v60 }
 0x5e5   :  { %4580 = vmatpush.msra.mxu1 %v3870_v10  ;;  %10183 = vrot.lane.b32.xlu0 %v10182_v59, %s10276_s13 }
 0x5e6   :  { %4459 = vmatpush.msrb.mxu3 %v3832_v28  ;;  %v9097_v28 = vld [vmem:[%s14742_s4] sm:$0xff]  }
 0x5e7   :  { %4581 = vmatpush.msra.mxu1 %v3867_v11  ;;  %v9098_v59 = vunpack.c.l.bf16 %v9097_v28 }
 0x5e8   :  { %4460 = vmatpush.msrb.mxu3 %v3829_v15  ;;  %v9419_v15 = vld [vmem:[%s14742_s4 + $0x60] sm:$0xff]  }
 0x5e9   :  { %4582 = vmatpush.msra.mxu1 %v3864_v12  ;;  %v3949_v3 = vpop.f32.mrf.mxu3  ;;  %v3911_v62 = vpop.f32.mrf.mxu2  ;;  %v9114_v11 = vunpack.c.l.bf16 %v9419_v15 }
 0x5ea   :  { %4461 = vmatpush.msrb.mxu3 %v3826_v61  ;;  %v8602_v61 = vld [vmem:[%s14742_s4 + $0x38] sm:$0x1] }
 0x5eb   :  { %4583 = vmatpush.msra.mxu1 %v3861_v33  ;;  %10173 = vrot.lane.b32.xlu1 %v10172_v37, %s10276_s13  ;;  %v9107_v33 = vunpack.c.h.bf16 %v12990_v55  ;;  %v4194_v12 = vunpack.c.l.bf16 %v8602_v61  ;;  %v8595_v37 = vld [vmem:[%s14742_s4 + $0x2c] sm:$0x1] }
 0x5ec   :  { %10178 = vrot.lane.b32.xlu2 %v10177_v50, %s10276_s13  ;;  %4462 = vmatpush.msrb.mxu3 %v3823_v58  ;;  %v9115_v50 = vunpack.c.h.bf16 %v9419_v15  ;;  %v8609_v15 = vld [vmem:[%s14742_s4 + $0x44] sm:$0x1] }
 0x5ed   :  { %4584 = vmatpush.msra.mxu1 %v12954_v24  ;;  %4866 = vrot.lane.b32.xlu0 %v3949_v3, %s10276_s13 }
 0x5ee   :  { %4463 = vmatpush.msrb.mxu3 %v12952_v46 }
 0x5ef   :  { %4585 = vmatpush.msra.mxu1 %v12936_v21  ;;  %8605 = vmatmul.msk.f32.gmra.mxu3 %vm3992_vm10, %v9107_v33 }
 0x5f0   :  { %4464 = vmatpush.msrb.mxu3 %v12934_v42  ;;  %v10114_v42 = vpop.permute.xlu2 %10113 }
 0x5f1   :  { %8673 = vmatpush.msk.msrb.mxu1 %vm774_vm2, %v3949_v3  ;;  %v10115_v24 = vunpack.i.l.bf16 %v10114_v42 }
 0x5f2   :  { %8659 = vmatpush.msk.msra.mxu3 %vm774_vm2, %v3911_v62 }
 0x5f3   :  { %4822 = vmatpush.msrb.mxu1 %v3946_v34  ;;  %10188 = vrot.lane.b32.xlu1 %v10187_v53, %s10276_s13 }
 0x5f4   :  { %4701 = vmatpush.msra.mxu3 %v3908_v29  ;;  %10193 = vrot.lane.b32.xlu2 %v10192_v63, %s10276_s13  ;;  %v4121_v63 = vunpack.c.l.bf16 %v8595_v37 }
 0x5f5   :  { %4823 = vmatpush.msrb.mxu1 %v3943_v57  ;;  %10203 = vrot.lane.b32.xlu0 %v10202_v13, %s10276_s13 }
 0x5f6   :  { %4702 = vmatpush.msra.mxu3 %v3905_v14 }
 0x5f7   :  { %4824 = vmatpush.msrb.mxu1 %v13003_v51  ;;  %8606 = vmatmul.msk.f32.gmra.mxu3 %vm3992_vm10, %v4194_v12 }
 0x5f8   :  { %4703 = vmatpush.msra.mxu3 %v13001_v32  ;;  %v3964_v32 = vunpack.c.l.bf16 %v8577_v1 }
 0x5f9   :  { %4825 = vmatpush.msrb.mxu1 %v12983_v4  ;;  %v8593_v4 = vld [vmem:[%s14742_s4 + $0x24] sm:$0xff]  }
 0x5fa   :  { %4704 = vmatpush.msra.mxu3 %v12981_v2  ;;  %v4120_v10 = vunpack.c.h.bf16 %v8593_v4 }
 0x5fb   :  { %4826 = vmatpush.msrb.mxu1 %v12965_v5  ;;  %4745 = vrot.lane.b32.xlu1 %v3911_v62, %s10276_s13  ;;  %v9111_v62 = vunpack.c.h.bf16 %v12995_v31  ;;  %v8630_v31 = vld [vmem:[%s14742_s4 + $0x68] sm:$0x1] }
 0x5fc   :  { %4705 = vmatpush.msra.mxu3 %v12963_v38  ;;  %10198 = vrot.lane.b32.xlu2 %v10197_v7, %s10276_s13 }
 0x5fd   :  { %4827 = vmatpush.msrb.mxu1 %v12947_v49  ;;  %10218 = vrot.lane.b32.xlu0 %v10217_v41, %s10276_s13  ;;  %v8575_v49 = vld [vmem:[%s14742_s4 + $0xc] sm:$0xff]  }
 0x5fe   :  { %4706 = vmatpush.msra.mxu3 %v12945_v26  ;;  %v10116_v26 = vunpack.i.h.bf16 %v10114_v42  ;;  %v3962_v38 = vunpack.c.l.bf16 %v8575_v49  ;;  %v3963_v47 = vunpack.c.h.bf16 %v8575_v49  ;;  %8619 = vmatmul.msk.f32.gmra.mxu1 %vm3992_vm10, %v9111_v62  ;;  %v8616_v42 = vld [vmem:[%s14742_s4 + $0x50] sm:$0x1] }
 0x5ff   :  { %v10124_v54 = vpop.permute.xlu2 %10123  ;;  %8632 = vmatmul.msk.f32.vlgmr.msrb.gmra.mxu3 %vm3992_vm10, %v9114_v11  ;;  %v8649_v11 = vld [vmem:[%s14742_s4 + $0x84] sm:$0xff]  }
 0x600   :  { %v10125_v43 = vunpack.i.l.bf16 %v10124_v54  ;;  %v10126_v40 = vunpack.i.h.bf16 %v10124_v54  ;;  %v3954_v54 = vld [vmem:[%s14742_s4 + $0x8] sm:$0x1] }
 0x603   :  { %10208 = vrot.lane.b32.xlu1 %v10207_v17, %s10276_s13  ;;  %v9099_v17 = vunpack.c.h.bf16 %v9097_v28 }
 0x604   :  { %10213 = vrot.lane.b32.xlu2 %v10212_v18, %s10276_s13  ;;  %v8621_v18 = vld [vmem:[%s14742_s4 + $0x54] sm:$0xff]  }
 0x607   :  { %8633 = vmatmul.msk.f32.gmra.mxu3 %vm3992_vm10, %v9115_v50  ;;  %v8635_v50 = vld [vmem:[%s14742_s4 + $0x6c] sm:$0xff]  }
 0x60b   :  { %10223 = vrot.lane.b32.xlu1 %v10222_v20, %s10276_s13  ;;  %v4436_v20 = vunpack.c.l.bf16 %v8630_v31 }
 0x60c   :  { %v4383_v45 = vpop.permute.xlu2 %4382 }
 0x60f   :  { %8634 = vmatmul.msk.f32.gmra.mxu3 %vm3992_vm10, %v4436_v20 }
 0x614   :  { %v10144_v6 = vpop.permute.xlu2 %10143 }
 0x617   :  { %v10109_v21 = vpop.permute.xlu1 %10108 }
 0x618   :  { %v10110_v52 = vunpack.i.l.bf16 %v10109_v21  ;;  %v10111_v46 = vunpack.i.h.bf16 %v10109_v21  ;;  %v4315_v21 = vunpack.c.l.bf16 %v8616_v42 }
 0x61a   :  { %8620 = vmatmul.msk.f32.gmra.mxu1 %vm3992_vm10, %v4315_v21 }
 0x61c   :  { %v10159_v34 = vpop.permute.xlu2 %10158 }
 0x61d   :  { %v3985_v30 = vpop.permute.xlu0 %3984  ;;  %v10160_v29 = vunpack.i.l.bf16 %v10159_v34  ;;  %v10161_v3 = vunpack.i.h.bf16 %v10159_v34 }
 0x61e   :  { %8578 = vmatpush.msk.msrb.mxu0 %vm774_vm2, %v3985_v30  ;;  %v4361_v30 = vunpack.c.l.bf16 %v8621_v18 }
 0x61f   :  { %v4141_v22 = vpop.permute.xlu1 %4140 }
 0x620   :  { %4014 = vmatpush.msrb.mxu0 %v10110_v52  ;;  %8596 = vmatpush.msk.msra.mxu2 %vm774_vm2, %v4141_v22 }
 0x622   :  { %4015 = vmatpush.msrb.mxu0 %v10111_v46  ;;  %4169 = vmatpush.msra.mxu2 %v10125_v43  ;;  %v3957_v43 = vunpack.c.l.bf16 %v3954_v54  ;;  %v9421_v46 = vld [vmem:[%s14742_s4 + $0x90] sm:$0xff]   ;;  %v4483_v54 = vunpack.c.h.bf16 %v8635_v50 }
 0x624   :  { %4016 = vmatpush.msrb.mxu0 %v10115_v24  ;;  %4170 = vmatpush.msra.mxu2 %v10126_v40  ;;  %v9122_v24 = vunpack.c.l.bf16 %v9421_v46  ;;  %v9420_v40 = vld [vmem:[%s14742_s4 + $0x78] sm:$0xff]  }
 0x625   :  { %v10119_v44 = vpop.permute.xlu0 %10118  ;;  %v9118_v49 = vunpack.c.l.bf16 %v9420_v40 }
 0x626   :  { %v10120_v27 = vunpack.i.l.bf16 %v10119_v44  ;;  %4017 = vmatpush.msrb.mxu0 %v10116_v26  ;;  %v10121_v5 = vunpack.i.h.bf16 %v10119_v44  ;;  %8660 = vmatmul.msk.f32.vlgmr.msra.gmra.mxu3 %vm3992_vm10, %v9122_v24 }
 0x627   :  { %v10134_v58 = vpop.permute.xlu1 %10133  ;;  %8646 = vmatmul.msk.f32.vlgmr.msra.gmra.mxu1 %vm3992_vm10, %v9118_v49 }
 0x628   :  { %4018 = vmatpush.msrb.mxu0 %v10120_v27  ;;  %v8607_v27 = vld [vmem:[%s14742_s4 + $0x3c] sm:$0xff]  }
 0x629   :  { %v4240_v33 = vunpack.c.l.bf16 %v8607_v27 }
 0x62a   :  { %4019 = vmatpush.msrb.mxu0 %v10121_v5 }
 0x62b   :  { %8579 = vmatmul.msk.f32.vlgmr.msrb.gmra.mxu0 %vm3992_vm10, %v3962_v38  ;;  %v4362_v38 = vunpack.c.h.bf16 %v8621_v18  ;;  %v8651_v18 = vld [vmem:[%s14742_s4 + $0x8c] sm:$0x1] }
 0x62c   :  { %8582 = vmatpush.msk.msra.mxu0 %vm774_vm2, %v12924_v48  ;;  %v10135_v48 = vunpack.i.l.bf16 %v10134_v58 }
 0x62d   :  { %v10129_v16 = vpop.permute.xlu0 %10128 }
 0x62e   :  { %v10130_v19 = vunpack.i.l.bf16 %v10129_v16  ;;  %4051 = vmatpush.msra.mxu0 %v12918_v0  ;;  %v10131_v2 = vunpack.i.h.bf16 %v10129_v16  ;;  %v10136_v0 = vunpack.i.h.bf16 %v10134_v58  ;;  %v9123_v16 = vunpack.c.h.bf16 %v9421_v46 }
 0x62f   :  { %v10139_v55 = vpop.permute.xlu1 %10138 }
 0x630   :  { %4052 = vmatpush.msra.mxu0 %v12916_v23  ;;  %4171 = vmatpush.msra.mxu2 %v10130_v19  ;;  %v4119_v23 = vunpack.c.l.bf16 %v8593_v4  ;;  %v10141_v51 = vunpack.i.h.bf16 %v10139_v55  ;;  %v9119_v19 = vunpack.c.h.bf16 %v9420_v40  ;;  %v8637_v40 = vld [vmem:[%s14742_s4 + $0x74] sm:$0x1] }
 0x631   :  { %8661 = vmatmul.msk.f32.gmra.mxu3 %vm3992_vm10, %v9123_v16 }
 0x632   :  { %4053 = vmatpush.msra.mxu0 %v12907_v56  ;;  %4172 = vmatpush.msra.mxu2 %v10131_v2  ;;  %v10140_v56 = vunpack.i.l.bf16 %v10139_v55 }
 0x633   :  { %8580 = vmatmul.msk.f32.gmra.mxu0 %vm3992_vm10, %v3963_v47  ;;  %8647 = vmatmul.msk.f32.gmra.mxu1 %vm3992_vm10, %v9119_v19 }
 0x634   :  { %4054 = vmatpush.msra.mxu0 %v12901_v8  ;;  %4173 = vmatpush.msra.mxu2 %v10135_v48  ;;  %v10145_v8 = vunpack.i.l.bf16 %v10144_v6 }
 0x635   :  { %v4262_v25 = vpop.permute.xlu0 %4261 }
 0x636   :  { %4055 = vmatpush.msra.mxu0 %v12895_v35  ;;  %4174 = vmatpush.msra.mxu2 %v10136_v0  ;;  %v10146_v35 = vunpack.i.h.bf16 %v10144_v6  ;;  %v8658_v6 = vld [vmem:[%s14742_s4 + $0x98] sm:$0x1] }
 0x637   :  { %8597 = vmatmul.msk.f32.vlgmr.msra.gmra.mxu2 %vm3992_vm10, %v4119_v23  ;;  %v10154_v57 = vpop.permute.xlu1 %10153  ;;  %v4241_v23 = vunpack.c.h.bf16 %v8607_v27  ;;  %v4678_v1 = vunpack.c.l.bf16 %v8658_v6  ;;  %v4484_v27 = vunpack.c.l.bf16 %v8637_v40 }
 0x638   :  { %8624 = vmatpush.msk.msrb.mxu2 %vm774_vm2, %v4383_v45  ;;  %4056 = vmatpush.msra.mxu0 %v12889_v36  ;;  %v10156_v60 = vunpack.i.h.bf16 %v10154_v57  ;;  %v10155_v9 = vunpack.i.l.bf16 %v10154_v57  ;;  %v8623_v45 = vld [vmem:[%s14742_s4 + $0x5c] sm:$0x1] }
 0x639   :  { %v4363_v2 = vunpack.c.l.bf16 %v8623_v45  ;;  %8662 = vmatmul.msk.f32.gmra.mxu3 %vm3992_vm10, %v4678_v1  ;;  %v8679_v45 = vld [vmem:[%s14742_s4 + $0xbc] sm:$0x1] }
 0x63a   :  { %8610 = vmatpush.msk.msrb.mxu0 %vm774_vm2, %v4262_v25  ;;  %4411 = vmatpush.msrb.mxu2 %v10140_v56  ;;  %v4847_v19 = vunpack.c.l.bf16 %v8679_v45 }
 0x63b   :  { %8581 = vmatmul.msk.f32.gmra.mxu0 %vm3992_vm10, %v3964_v32  ;;  %v8644_v32 = vld [vmem:[%s14742_s4 + $0x80] sm:$0x1] }
 0x63c   :  { %4290 = vmatpush.msrb.mxu0 %v10141_v51  ;;  %4412 = vmatpush.msrb.mxu2 %v10145_v8  ;;  %v4557_v8 = vunpack.c.l.bf16 %v8644_v32 }
 0x63d   :  { %v10149_v36 = vpop.permute.xlu0 %10148 }
 0x63e   :  { %4291 = vmatpush.msrb.mxu0 %v10146_v35  ;;  %v10151_v39 = vunpack.i.h.bf16 %v10149_v36  ;;  %v10150_v14 = vunpack.i.l.bf16 %v10149_v36  ;;  %v4504_v41 = vpop.permute.xlu2 %4503  ;;  %8648 = vmatmul.msk.f32.gmra.mxu1 %vm3992_vm10, %v4557_v8 }
 0x63f   :  { %8598 = vmatmul.msk.f32.gmra.mxu2 %vm3992_vm10, %v4120_v10 }
 0x640   :  { %4292 = vmatpush.msrb.mxu0 %v10151_v39  ;;  %4413 = vmatpush.msrb.mxu2 %v10150_v14  ;;  %v4242_v39 = vunpack.c.l.bf16 %v8609_v15  ;;  %v4603_v14 = vunpack.c.l.bf16 %v8649_v11 }
 0x642   :  { %4293 = vmatpush.msrb.mxu0 %v10156_v60  ;;  %4414 = vmatpush.msrb.mxu2 %v10155_v9  ;;  %v9422_v9 = vld [vmem:[%s14742_s4 + $0xa8] sm:$0xff]   ;;  %v4224_v1 = vpop.f32.mrf.mxu3 }
 0x643   :  { %8583 = vmatmul.msk.f32.vlgmr.msra.gmra.mxu0 %vm3992_vm10, %v9098_v59  ;;  %v9126_v59 = vunpack.c.l.bf16 %v9422_v9 }
 0x644   :  { %4415 = vmatpush.msrb.mxu2 %v10160_v29  ;;  %4294 = vmatpush.msrb.mxu0 %v10161_v3 }
 0x645   :  { %v10164_v53 = vpop.permute.xlu0 %10163 }
 0x646   :  { %v10166_v13 = vunpack.i.h.bf16 %v10164_v53  ;;  %v10165_v7 = vunpack.i.l.bf16 %v10164_v53  ;;  %v10179_v26 = vpop.permute.xlu2 %10178  ;;  %8674 = vmatmul.msk.f32.vlgmr.msrb.gmra.mxu1 %vm3992_vm10, %v9126_v59  ;;  %v4482_v53 = vunpack.c.l.bf16 %v8635_v50 }
 0x647   :  { %8599 = vmatmul.msk.f32.gmra.mxu2 %vm3992_vm10, %v4121_v63  ;;  %v10181_v12 = vunpack.i.h.bf16 %v10179_v26  ;;  %v10180_v55 = vunpack.i.l.bf16 %v10179_v26  ;;  %v4604_v63 = vunpack.c.h.bf16 %v8649_v11 }
 0x648   :  { %4295 = vmatpush.msrb.mxu0 %v10166_v13  ;;  %4416 = vmatpush.msrb.mxu2 %v10165_v7  ;;  %v9127_v13 = vunpack.c.h.bf16 %v9422_v9 }
 0x64a   :  { %8638 = vmatpush.msk.msra.mxu0 %vm774_vm2, %v4504_v41 }
 0x64b   :  { %8584 = vmatmul.msk.f32.gmra.mxu0 %vm3992_vm10, %v9099_v17 }
 0x64e   :  { %v10194_v4 = vpop.permute.xlu2 %10193  ;;  %8675 = vmatmul.msk.f32.gmra.mxu1 %vm3992_vm10, %v9127_v13 }
 0x64f   :  { %v10169_v52 = vpop.permute.xlu0 %10168  ;;  %8625 = vmatmul.msk.f32.vlgmr.msrb.gmra.mxu2 %vm3992_vm10, %v4361_v30  ;;  %v10196_v36 = vunpack.i.h.bf16 %v10194_v4  ;;  %v10195_v28 = vunpack.i.l.bf16 %v10194_v4  ;;  %v4605_v30 = vunpack.c.l.bf16 %v8651_v18 }
 0x650   :  { %v10171_v22 = vunpack.i.h.bf16 %v10169_v52  ;;  %v10170_v5 = vunpack.i.l.bf16 %v10169_v52 }
 0x652   :  { %4532 = vmatpush.msra.mxu0 %v10171_v22 }
 0x653   :  { %8585 = vmatmul.msk.f32.gmra.mxu0 %vm3992_vm10, %v3957_v43  ;;  %v8672_v43 = vld [vmem:[%s14742_s4 + $0xb0] sm:$0x1] }
 0x654   :  { %v4799_v46 = vunpack.c.l.bf16 %v8672_v43 }
 0x655   :  { %v4625_v44 = vpop.permute.xlu1 %4624 }
 0x656   :  { %8652 = vmatpush.msk.msra.mxu2 %vm774_vm2, %v4625_v44  ;;  %v10199_v10 = vpop.permute.xlu2 %10198  ;;  %v8677_v44 = vld [vmem:[%s14742_s4 + $0xb4] sm:$0xff]   ;;  %8676 = vmatmul.msk.f32.gmra.mxu1 %vm3992_vm10, %v4799_v46 }
 0x657   :  { %v10184_v58 = vpop.permute.xlu0 %10183  ;;  %8626 = vmatmul.msk.f32.gmra.mxu2 %vm3992_vm10, %v4362_v38  ;;  %v10200_v60 = vunpack.i.l.bf16 %v10199_v10  ;;  %v10201_v3 = vunpack.i.h.bf16 %v10199_v10  ;;  %v4845_v38 = vunpack.c.l.bf16 %v8677_v44 }
 0x658   :  { %4653 = vmatpush.msra.mxu2 %v10170_v5  ;;  %v10185_v25 = vunpack.i.l.bf16 %v10184_v58  ;;  %v10186_v56 = vunpack.i.h.bf16 %v10184_v58  ;;  %v8663_v5 = vld [vmem:[%s14742_s4 + $0x9c] sm:$0xff]  }
 0x659   :  { %v4724_v58 = vunpack.c.l.bf16 %v8663_v5  ;;  %v4725_v16 = vunpack.c.h.bf16 %v8663_v5 }
 0x65b   :  { %8611 = vmatmul.msk.f32.vlgmr.msrb.gmra.mxu0 %vm3992_vm10, %v4240_v33  ;;  %v4846_v33 = vunpack.c.h.bf16 %v8677_v44 }
 0x65d   :  { %v10174_v47 = vpop.permute.xlu1 %10173 }
 0x65e   :  { %v10176_v61 = vunpack.i.h.bf16 %v10174_v47  ;;  %v10175_v48 = vunpack.i.l.bf16 %v10174_v47  ;;  %v10214_v7 = vpop.permute.xlu2 %10213  ;;  %v8665_v47 = vld [vmem:[%s14742_s4 + $0xa4] sm:$0x1] }
 0x65f   :  { %v4867_v0 = vpop.permute.xlu0 %4866  ;;  %8627 = vmatmul.msk.f32.gmra.mxu2 %vm3992_vm10, %v4363_v2  ;;  %v10216_v42 = vunpack.i.h.bf16 %v10214_v7  ;;  %v10215_v21 = vunpack.i.l.bf16 %v10214_v7  ;;  %v4726_v2 = vunpack.c.l.bf16 %v8665_v47 }
 0x660   :  { %4533 = vmatpush.msra.mxu0 %v10176_v61  ;;  %4654 = vmatpush.msra.mxu2 %v10175_v48  ;;  %v4103_v61 = vpop.f32.mrf.mxu1 }
 0x662   :  { %4534 = vmatpush.msra.mxu0 %v10181_v12  ;;  %4655 = vmatpush.msra.mxu2 %v10180_v55 }
 0x663   :  { %8612 = vmatmul.msk.f32.gmra.mxu0 %vm3992_vm10, %v4241_v23 }
 0x664   :  { %4656 = vmatpush.msra.mxu2 %v10185_v25  ;;  %4535 = vmatpush.msra.mxu0 %v10186_v56 }
 0x665   :  { %v10189_v51 = vpop.permute.xlu1 %10188 }
 0x666   :  { %v10191_v35 = vunpack.i.h.bf16 %v10189_v51  ;;  %v10190_v57 = vunpack.i.l.bf16 %v10189_v51 }
 0x667   :  { %v10204_v34 = vpop.permute.xlu0 %10203 }
 0x668   :  { %4536 = vmatpush.msra.mxu0 %v10191_v35  ;;  %4657 = vmatpush.msra.mxu2 %v10190_v57  ;;  %v10205_v29 = vunpack.i.l.bf16 %v10204_v34  ;;  %v10206_v62 = vunpack.i.h.bf16 %v10204_v34  ;;  %v4106_v12 = vpop.f32.mrf.mxu1 }
 0x66a   :  { %4537 = vmatpush.msra.mxu0 %v10196_v36  ;;  %4658 = vmatpush.msra.mxu2 %v10195_v28 }
 0x66b   :  { %8613 = vmatmul.msk.f32.gmra.mxu0 %vm3992_vm10, %v4242_v39  ;;  %8653 = vmatmul.msk.f32.vlgmr.msra.gmra.mxu2 %vm3992_vm10, %v4603_v14 }
 0x66c   :  { %8680 = vmatpush.msk.msrb.mxu2 %vm774_vm2, %v4867_v0 }
 0x66d   :  { %v4746_v37 = vpop.permute.xlu1 %4745 }
 0x66e   :  { %4895 = vmatpush.msrb.mxu2 %v10200_v60  ;;  %8666 = vmatpush.msk.msrb.mxu0 %vm774_vm2, %v4746_v37 }
 0x66f   :  { %v10219_v20 = vpop.permute.xlu0 %10218 }
 0x670   :  { %4896 = vmatpush.msrb.mxu2 %v10205_v29  ;;  %4774 = vmatpush.msrb.mxu0 %v10201_v3  ;;  %v10220_v52 = vunpack.i.l.bf16 %v10219_v20  ;;  %v10221_v22 = vunpack.i.h.bf16 %v10219_v20  ;;  %v4109_v23 = vpop.f32.mrf.mxu1 }
 0x672   :  { %4775 = vmatpush.msrb.mxu0 %v10206_v62  ;;  %v4227_v51 = vpop.f32.mrf.mxu3 }
 0x673   :  { %8639 = vmatmul.msk.f32.vlgmr.msra.gmra.mxu0 %vm3992_vm10, %v4482_v53  ;;  %8654 = vmatmul.msk.f32.gmra.mxu2 %vm3992_vm10, %v4604_v63 }
 0x675   :  { %v10209_v41 = vpop.permute.xlu1 %10208 }
 0x676   :  { %v10211_v17 = vunpack.i.h.bf16 %v10209_v41  ;;  %v10210_v31 = vunpack.i.l.bf16 %v10209_v41 }
 0x678   :  { %4776 = vmatpush.msrb.mxu0 %v10211_v17  ;;  %4897 = vmatpush.msrb.mxu2 %v10210_v31  ;;  %v4345_v32 = vpop.f32.mrf.mxu1 }
 0x67a   :  { %4777 = vmatpush.msrb.mxu0 %v10216_v42  ;;  %4898 = vmatpush.msrb.mxu2 %v10215_v21  ;;  %v4230_v36 = vpop.f32.mrf.mxu3 }
 0x67b   :  { %8640 = vmatmul.msk.f32.gmra.mxu0 %vm3992_vm10, %v4483_v54  ;;  %8655 = vmatmul.msk.f32.gmra.mxu2 %vm3992_vm10, %v4605_v30 }
 0x67c   :  { %4899 = vmatpush.msrb.mxu2 %v10220_v52  ;;  %4778 = vmatpush.msrb.mxu0 %v10221_v22 }
 0x67d   :  { %v10224_v24 = vpop.permute.xlu1 %10223 }
 0x67e   :  { %v10226_v26 = vunpack.i.h.bf16 %v10224_v24  ;;  %v10225_v49 = vunpack.i.l.bf16 %v10224_v24 }
 0x680   :  { %4779 = vmatpush.msrb.mxu0 %v10226_v26  ;;  %4900 = vmatpush.msrb.mxu2 %v10225_v49  ;;  %v4348_v11 = vpop.f32.mrf.mxu1 }
 0x682   :  { %v4466_v14 = vpop.f32.mrf.mxu3 }
 0x683   :  { %8641 = vmatmul.msk.f32.gmra.mxu0 %vm3992_vm10, %v4484_v27  ;;  %8681 = vmatmul.msk.f32.vlgmr.msrb.gmra.mxu2 %vm3992_vm10, %v4845_v38 }
 0x68a   :  { %v4469_v3 = vpop.f32.mrf.mxu3 }
 0x68b   :  { %8667 = vmatmul.msk.f32.vlgmr.msrb.gmra.mxu0 %vm3992_vm10, %v4724_v58  ;;  %8682 = vmatmul.msk.f32.gmra.mxu2 %vm3992_vm10, %v4846_v33 }
 0x692   :  { %v4472_v54 = vpop.f32.mrf.mxu3 }
 0x693   :  { %8668 = vmatmul.msk.f32.gmra.mxu0 %vm3992_vm10, %v4725_v16  ;;  %8683 = vmatmul.msk.f32.gmra.mxu2 %vm3992_vm10, %v4847_v19 }
 0x697   :  { %v4351_v10 = vpop.f32.mrf.mxu1 }
 0x69b   :  { %8669 = vmatmul.msk.f32.gmra.mxu0 %vm3992_vm10, %v4726_v2 }
 0x6a4   :  { %v4587_v60 = vpop.f32.mrf.mxu1 }
 0x6a8   :  { %v4021_v4 = vpop.f32.mrf.mxu0 }
 0x6a9   :  { %v4708_v38 = vpop.f32.mrf.mxu3 }
 0x6b0   :  { %v4024_v48 = vpop.f32.mrf.mxu0  ;;  %v4590_v41 = vpop.f32.mrf.mxu1 }
 0x6b8   :  { %v4027_v55 = vpop.f32.mrf.mxu0 }
 0x6ba   :  { %v4176_v0 = vpop.f32.mrf.mxu2 }
 0x6bb   :  { %v4593_v46 = vpop.f32.mrf.mxu1 }
 0x6c0   :  { %v4058_v6 = vpop.f32.mrf.mxu0 }
 0x6c1   :  { %v4059_v9 = vadd.f32 %v4058_v6, %v4021_v4 }
 0x6c2   :  { %v4179_v25 = vpop.f32.mrf.mxu2 }
 0x6c3   :  { %v4112_v37 = vadd.f32 %v4103_v61, %v4059_v9  ;;  %v4829_v19 = vpop.f32.mrf.mxu1 }
 0x6c5   :  { %v4185_v53 = vadd.f32 %v4176_v0, %v4112_v37 }
 0x6c7   :  { %v4233_v31 = vadd.f32 %v4224_v1, %v4185_v53 }
 0x6c8   :  { %v4061_v56 = vpop.f32.mrf.mxu0 }
 0x6c9   :  { %v4062_v59 = vadd.f32 %v4061_v56, %v4024_v48 }
 0x6ca   :  { %v4182_v8 = vpop.f32.mrf.mxu2 }
 0x6cb   :  { %v4113_v50 = vadd.f32 %v4106_v12, %v4062_v59 }
 0x6cd   :  { %v4186_v63 = vadd.f32 %v4179_v25, %v4113_v50  ;;  %v4832_v25 = vpop.f32.mrf.mxu1 }
 0x6cf   :  { %v4234_v18 = vadd.f32 %v4227_v51, %v4186_v63 }
 0x6d0   :  { %v4064_v15 = vpop.f32.mrf.mxu0 }
 0x6d1   :  { %v4065_v13 = vadd.f32 %v4064_v15, %v4027_v55  ;;  %v4711_v55 = vpop.f32.mrf.mxu3 }
 0x6d2   :  { %v4418_v35 = vpop.f32.mrf.mxu2 }
 0x6d3   :  { %v4114_v17 = vadd.f32 %v4109_v23, %v4065_v13 }
 0x6d5   :  { %v4187_v30 = vadd.f32 %v4182_v8, %v4114_v17  ;;  %v4835_v9 = vpop.f32.mrf.mxu1 }
 0x6d7   :  { %v4235_v24 = vadd.f32 %v4230_v36, %v4187_v30 }
 0x6d8   :  { %v4297_v57 = vpop.f32.mrf.mxu0 }
 0x6d9   :  { %v4306_v20 = vadd.f32 %v4297_v57, %v4233_v31 }
 0x6da   :  { %v4421_v28 = vpop.f32.mrf.mxu2 }
 0x6db   :  { %v4354_v22 = vadd.f32 %v4345_v32, %v4306_v20 }
 0x6dd   :  { %v4427_v40 = vadd.f32 %v4418_v35, %v4354_v22  ;;  %v10279_v35 = vmov 18.0  }
 0x6de   :  { %10239 = vrcp.f32 %v10279_v35  ;;  %v5030_v35 = vld [vmem:[%s14743_s7 + $0x198] sm:$0xff] }
 0x6df   :  { %v4475_v58 = vadd.f32 %v4466_v14, %v4427_v40 }
 0x6e0   :  { %v4300_v39 = vpop.f32.mrf.mxu0 }
 0x6e1   :  { %v4307_v42 = vadd.f32 %v4300_v39, %v4234_v18 }
 0x6e2   :  { %v4424_v34 = vpop.f32.mrf.mxu2 }
 0x6e3   :  { %v4355_v43 = vadd.f32 %v4348_v11, %v4307_v42 }
 0x6e5   :  { %v4428_v26 = vadd.f32 %v4421_v28, %v4355_v43  ;;  %v4714_v28 = vpop.f32.mrf.mxu3 }
 0x6e7   :  { %v4476_v33 = vadd.f32 %v4469_v3, %v4428_v26 }
 0x6e8   :  { %v4303_v29 = vpop.f32.mrf.mxu0 }
 0x6e9   :  { %v4308_v49 = vadd.f32 %v4303_v29, %v4235_v24 }
 0x6eb   :  { %v4356_v5 = vadd.f32 %v4351_v10, %v4308_v49 }
 0x6ed   :  { %v4429_v47 = vadd.f32 %v4424_v34, %v4356_v5  ;;  %v10240_v34 = vpop.eup %10239  ;;  %v5093_v5 = vld [vmem:[%s14743_s7 + $0x390] sm:$0xff] }
 0x6ee   :  { %v4660_v62 = vpop.f32.mrf.mxu2  ;;  %vm4933_vm12 = vweird.f32 %v10240_v34  ;;  %5176 = vmatpush.msra.mxu1 %v5093_v5 }
 0x6ef   :  { %v4477_v12 = vadd.f32 %v4472_v54, %v4429_v47  ;;  %v5076_v47 = vld [vmem:[%s14743_s7 + $0x308] sm:$0xff] }
 0x6f0   :  { %v4539_v7 = vpop.f32.mrf.mxu0 }
 0x6f1   :  { %v4548_v45 = vadd.f32 %v4539_v7, %v4475_v58 }
 0x6f3   :  { %v4596_v2 = vadd.f32 %v4587_v60, %v4548_v45  ;;  %v5094_v45 = vld [vmem:[%s14743_s7 + $0x398] sm:$0xff] }
 0x6f4   :  { %5202 = vmatpush.msra.mxu2 %v5094_v45  ;;  %v5032_v45 = vld [vmem:[%s14743_s7 + $0x1a8] sm:$0xff] }
 0x6f5   :  { %v4669_v0 = vadd.f32 %v4660_v62, %v4596_v2  ;;  %v4929_v62 = vmul.f32 18.0, %v10240_v34  ;;  %v5077_v2 = vld [vmem:[%s14743_s7 + $0x310] sm:$0xff] }
 0x6f6   :  { %v4663_v21 = vpop.f32.mrf.mxu2  ;;  %5177 = vmatpush.msra.mxu1 %v5077_v2  ;;  %v5016_v2 = vld [vmem:[%s14743_s7 + $0x128] sm:$0xff] }
 0x6f7   :  { %v4717_v56 = vadd.f32 %v4708_v38, %v4669_v0  ;;  %v5092_v38 = vld [vmem:[%s14743_s7 + $0x388] sm:$0xff]  ;;  %v5061_v0 = vld [vmem:[%s14743_s7 + $0x290] sm:$0xff] }
 0x6f8   :  { %v4542_v52 = vpop.f32.mrf.mxu0  ;;  %5150 = vmatpush.msra.mxu0 %v5092_v38  ;;  %5178 = vmatpush.msra.mxu1 %v5061_v0  ;;  %v5050_v38 = vld [vmem:[%s14743_s7 + $0x238] sm:$0xff]  ;;  %v5001_v0 = vld [vmem:[%s14743_s7 + $0xb0] sm:$0xff] }
 0x6f9   :  { %v4549_v16 = vadd.f32 %v4542_v52, %v4476_v33 }
 0x6fa   :  { %5151 = vmatpush.msra.mxu0 %v5076_v47  ;;  %v5015_v47 = vld [vmem:[%s14743_s7 + $0x120] sm:$0xff] }
 0x6fb   :  { %v4597_v4 = vadd.f32 %v4590_v41, %v4549_v16  ;;  %v4930_v41 = vsub.f32 1.0, %v4929_v62  ;;  %v4982_v62 = vld [vmem:[%s14743_s7 + $0x18] sm:$0xff] }
 0x6fd   :  { %v4670_v23 = vadd.f32 %v4663_v21, %v4597_v4  ;;  %v4931_v18 = vmul.f32 %v10240_v34, %v4930_v41  ;;  %v5096_v41 = vld [vmem:[%s14743_s7 + $0x3a8] sm:$0xff] }
 0x6fe   :  { %v4666_v44 = vpop.f32.mrf.mxu2 }
 0x6ff   :  { %v4718_v32 = vadd.f32 %v4711_v55, %v4670_v23  ;;  %v4932_v21 = vadd.f32 %v10240_v34, %v4931_v18  ;;  %v5060_v55 = vld [vmem:[%s14743_s7 + $0x288] sm:$0xff]  ;;  %v5062_v23 = vld [vmem:[%s14743_s7 + $0x298] sm:$0xff]  ;;  %v5079_v18 = vld [vmem:[%s14743_s7 + $0x320] sm:$0xff] }
 0x700   :  { %v4545_v27 = vpop.f32.mrf.mxu0  ;;  %5152 = vmatpush.msra.mxu0 %v5060_v55  ;;  %v5000_v55 = vld [vmem:[%s14743_s7 + $0xa8] sm:$0xff] }
 0x701   :  { %v4550_v6 = vadd.f32 %v4545_v27, %v4477_v12  ;;  %v13200_v52 = vsel %vm4933_vm12, %v10240_v34, %v4932_v21  ;;  %v5091_v27 = vld [vmem:[%s14743_s7 + $0x380] sm:$0xff]  ;;  %v5082_v21 = vld [vmem:[%s14743_s7 + $0x338] sm:$0xff] }
 0x702   :  { %5124 = vmatpush.msrb.mxu3 %v5091_v27  ;;  %v5059_v12 = vld [vmem:[%s14743_s7 + $0x280] sm:$0xff]  ;;  %v5049_v27 = vld [vmem:[%s14743_s7 + $0x230] sm:$0xff] }
 0x703   :  { %v4598_v1 = vadd.f32 %v4593_v46, %v4550_v6  ;;  %v4995_v34 = vld [vmem:[%s14743_s7 + $0x80] sm:$0xff] }
 0x705   :  { %v4671_v57 = vadd.f32 %v4666_v44, %v4598_v1  ;;  %v5044_v1 = vld [vmem:[%s14743_s7 + $0x208] sm:$0xff] }
 0x706   :  { %v4902_v61 = vpop.f32.mrf.mxu2  ;;  %5153 = vmatpush.msra.mxu0 %v5044_v1  ;;  %v4983_v1 = vld [vmem:[%s14743_s7 + $0x20] sm:$0xff] }
 0x707   :  { %v4719_v14 = vadd.f32 %v4714_v28, %v4671_v57  ;;  %v5012_v28 = vld [vmem:[%s14743_s7 + $0x108] sm:$0xff] }
 0x708   :  { %v4781_v48 = vpop.f32.mrf.mxu0 }
 0x709   :  { %v4790_v15 = vadd.f32 %v4781_v48, %v4717_v56  ;;  %v5045_v56 = vld [vmem:[%s14743_s7 + $0x210] sm:$0xff] }
 0x70a   :  { %5179 = vmatpush.msra.mxu1 %v5045_v56  ;;  %v4984_v56 = vld [vmem:[%s14743_s7 + $0x28] sm:$0xff] }
 0x70b   :  { %v4838_v10 = vadd.f32 %v4829_v19, %v4790_v15  ;;  %v5075_v19 = vld [vmem:[%s14743_s7 + $0x300] sm:$0xff]  ;;  %v5028_v15 = vld [vmem:[%s14743_s7 + $0x188] sm:$0xff] }
 0x70c   :  { %5125 = vmatpush.msrb.mxu3 %v5075_v19  ;;  %5154 = vmatpush.msra.mxu0 %v5028_v15  ;;  %v5034_v19 = vld [vmem:[%s14743_s7 + $0x1b8] sm:$0xff] }
 0x70d   :  { %v4911_v59 = vadd.f32 %v4902_v61, %v4838_v10  ;;  %v5078_v61 = vld [vmem:[%s14743_s7 + $0x318] sm:$0xff]  ;;  %v5013_v10 = vld [vmem:[%s14743_s7 + $0x110] sm:$0xff] }
 0x70e   :  { %v4905_v51 = vpop.f32.mrf.mxu2  ;;  %5203 = vmatpush.msra.mxu2 %v5078_v61  ;;  %5126 = vmatpush.msrb.mxu3 %v5059_v12  ;;  %v5017_v61 = vld [vmem:[%s14743_s7 + $0x130] sm:$0xff]  ;;  %v4999_v12 = vld [vmem:[%s14743_s7 + $0xa0] sm:$0xff] }
 0x70f   :  { %v4916_v53 = vsel %vm69_vm0, %v4911_v59, 0.0  ;;  %5155 = vmatpush.msra.mxu0 %v5012_v28 }
 0x710   :  { %v4784_v8 = vpop.f32.mrf.mxu0  ;;  %5204 = vmatpush.msra.mxu2 %v5062_v23  ;;  %v5002_v23 = vld [vmem:[%s14743_s7 + $0xb8] sm:$0xff] }
 0x711   :  { %v4791_v11 = vadd.f32 %v4784_v8, %v4718_v32  ;;  %v5046_v32 = vld [vmem:[%s14743_s7 + $0x218] sm:$0xff] }
 0x712   :  { %5205 = vmatpush.msra.mxu2 %v5046_v32  ;;  %v4985_v32 = vld [vmem:[%s14743_s7 + $0x30] sm:$0xff] }
 0x713   :  { %v4839_v36 = vadd.f32 %v4832_v25, %v4791_v11  ;;  %v5043_v25 = vld [vmem:[%s14743_s7 + $0x200] sm:$0xff]  ;;  %v5029_v11 = vld [vmem:[%s14743_s7 + $0x190] sm:$0xff] }
 0x714   :  { %5127 = vmatpush.msrb.mxu3 %v5043_v25  ;;  %5180 = vmatpush.msra.mxu1 %v5029_v11  ;;  %v10230_v25 = vld [vmem:[%s14737_s10 + $0x3] ss:$0 sm:$0xff]  ;;  %v10231_v11 = vld [vmem:[%s14737_s10 + $0x4] ss:$0 sm:$0xff] }
 0x715   :  { %v4912_v39 = vadd.f32 %v4905_v51, %v4839_v36  ;;  %v5027_v51 = vld [vmem:[%s14743_s7 + $0x180] sm:$0xff]  ;;  %5206 = vmatpush.msra.mxu2 %v5030_v35 }
 0x716   :  { %v4908_v37 = vpop.f32.mrf.mxu2  ;;  %5128 = vmatpush.msrb.mxu3 %v5027_v51  ;;  %v5011_v36 = vld [vmem:[%s14743_s7 + $0x100] sm:$0xff]  ;;  %5181 = vmatpush.msra.mxu1 %v5013_v10 }
 0x717   :  { %v4917_v50 = vsel %vm69_vm0, %v4912_v39, 0.0 }
 0x718   :  { %v4787_v60 = vpop.f32.mrf.mxu0  ;;  %v4918_v13 = vadd.f32 %v4917_v50, %v4916_v53  ;;  %5129 = vmatpush.msrb.mxu3 %v5011_v36  ;;  %v4980_v50 = vld [vmem:[%s14743_s7 + $0x8] sm:$0xff] }
 0x719   :  { %v4792_v29 = vadd.f32 %v4787_v60, %v4719_v14  ;;  %v4996_v60 = vld [vmem:[%s14743_s7 + $0x88] sm:$0xff] }
 0x71a   :  { %5130 = vmatpush.msrb.mxu3 %v4995_v34  ;;  %5156 = vmatpush.msra.mxu0 %v4996_v60  ;;  %v5102_v60 = vld [vmem:[%s14743_s7 + $0x3d8] sm:$0xff] }
 0x71b   :  { %v4840_v3 = vadd.f32 %v4835_v9, %v4792_v29  ;;  %v4997_v9 = vld [vmem:[%s14743_s7 + $0x90] sm:$0xff] }
 0x71c   :  { %5182 = vmatpush.msra.mxu1 %v4997_v9  ;;  %5157 = vmatpush.msra.mxu0 %v4980_v50  ;;  %v5083_v9 = vld [vmem:[%s14743_s7 + $0x340] sm:$0xff]  ;;  %v5068_v50 = vld [vmem:[%s14743_s7 + $0x2c8] sm:$0xff] }
 0x71d   :  { %v4913_v63 = vadd.f32 %v4908_v37, %v4840_v3  ;;  %v4979_v37 = vld [vmem:[%s14743_s7] sm:$0xff]  ;;  %v4981_v3 = vld [vmem:[%s14743_s7 + $0x10] sm:$0xff] }
 0x71e   :  { %5131 = vmatpush.msrb.mxu3 %v4979_v37  ;;  %5183 = vmatpush.msra.mxu1 %v4981_v3  ;;  %v5067_v37 = vld [vmem:[%s14743_s7 + $0x2c0] sm:$0xff]  ;;  %v5069_v3 = vld [vmem:[%s14743_s7 + $0x2d0] sm:$0xff] }
 0x71f   :  { %v4920_v7 = vsel %vm4919_vm11, %v4913_v63, 0.0  ;;  %5254 = vmatpush.msrb.mxu0 %v5096_v41  ;;  %v5053_v41 = vld [vmem:[%s14743_s7 + $0x250] sm:$0xff] }
 0x720   :  { %v4921_v17 = vadd.f32 %v4920_v7, %v4918_v13  ;;  %v5095_v7 = vld [vmem:[%s14743_s7 + $0x3a0] sm:$0xff] }
 0x721   :  { %5228 = vmatpush.msra.mxu3 %v5095_v7  ;;  %v5052_v7 = vld [vmem:[%s14743_s7 + $0x248] sm:$0xff] }
 0x722   :  { %v4922_v31 = vrot.slane %v4921_v17, 4 }
 0x723   :  { %5229 = vmatpush.msra.mxu3 %v5079_v18  ;;  %v5036_v18 = vld [vmem:[%s14743_s7 + $0x1c8] sm:$0xff] }
 0x724   :  { %v4923_v20 = vadd.f32 %v4922_v31, %v4921_v17  ;;  %v5097_v17 = vld [vmem:[%s14743_s7 + $0x3b0] sm:$0xff]  ;;  %v5098_v31 = vld [vmem:[%s14743_s7 + $0x3b8] sm:$0xff] }
 0x725   :  { %5280 = vmatpush.msrb.mxu1 %v5097_v17  ;;  %v5054_v17 = vld [vmem:[%s14743_s7 + $0x258] sm:$0xff] }
 0x726   :  { %v4924_v42 = vrot.slane %v4923_v20, 2 }
 0x728   :  { %v4925_v54 = vadd.f32 %v4924_v42, %v4923_v20  ;;  %v5080_v20 = vld [vmem:[%s14743_s7 + $0x328] sm:$0xff]  ;;  %v5081_v42 = vld [vmem:[%s14743_s7 + $0x330] sm:$0xff] }
 0x729   :  { %5255 = vmatpush.msrb.mxu0 %v5080_v20  ;;  %5281 = vmatpush.msrb.mxu1 %v5081_v42  ;;  %v5037_v42 = vld [vmem:[%s14743_s7 + $0x1d0] sm:$0xff] }
 0x72a   :  { %v4926_v30 = vrot.slane %v4925_v54, 1 }
 0x72c   :  { %v4927_v22 = vadd.f32 %v4926_v30, %v4925_v54  ;;  %v5063_v54 = vld [vmem:[%s14743_s7 + $0x2a0] sm:$0xff] }
 0x72d   :  { %5230 = vmatpush.msra.mxu3 %v5063_v54  ;;  %v5019_v54 = vld [vmem:[%s14743_s7 + $0x140] sm:$0xff] }
 0x72e   :  { %v4935_v43 = vmul.f32 %v13200_v52, %v4927_v22  ;;  %v5065_v22 = vld [vmem:[%s14743_s7 + $0x2b0] sm:$0xff] }
 0x72f   :  { %5282 = vmatpush.msrb.mxu1 %v5065_v22  ;;  %v5022_v22 = vld [vmem:[%s14743_s7 + $0x158] sm:$0xff] }
 0x730   :  { %v13203_v46 = vsub.f32 %v4911_v59, %v4935_v43  ;;  %v13205_v24 = vsub.f32 %v4912_v39, %v4935_v43  ;;  %v13207_v40 = vsub.f32 %v4913_v63, %v4935_v43  ;;  %v5014_v39 = vld [vmem:[%s14743_s7 + $0x118] sm:$0xff] }
 0x731   :  { %5207 = vmatpush.msra.mxu2 %v5014_v39  ;;  %v4998_v59 = vld [vmem:[%s14743_s7 + $0x98] sm:$0xff]  ;;  %5283 = vmatpush.msrb.mxu1 %v5049_v27  ;;  %v5101_v39 = vld [vmem:[%s14743_s7 + $0x3d0] sm:$0xff] }
 0x732   :  { %v4939_v26 = vmul.f32 %v13203_v46, %v13203_v46  ;;  %v4940_v49 = vmul.f32 %v13205_v24, %v13205_v24  ;;  %v4941_v44 = vmul.f32 %v13207_v40, %v13207_v40  ;;  %v5066_v43 = vld [vmem:[%s14743_s7 + $0x2b8] sm:$0xff] }
 0x733   :  { %5208 = vmatpush.msra.mxu2 %v4998_v59  ;;  %v5084_v59 = vld [vmem:[%s14743_s7 + $0x348] sm:$0xff]  ;;  %v5006_v27 = vld [vmem:[%s14743_s7 + $0xd8] sm:$0xff] }
 0x734   :  { %v4942_v58 = vsel %vm69_vm0, %v4939_v26, 0.0  ;;  %v4943_v33 = vsel %vm69_vm0, %v4940_v49, 0.0  ;;  %v4945_v4 = vsel %vm4919_vm11, %v4941_v44, 0.0  ;;  %v5047_v49 = vld [vmem:[%s14743_s7 + $0x220] sm:$0xff]  ;;  %v5048_v44 = vld [vmem:[%s14743_s7 + $0x228] sm:$0xff] }
 0x735   :  { %v4944_v16 = vadd.f32 %v4943_v33, %v4942_v58  ;;  %5209 = vmatpush.msra.mxu2 %v4982_v62  ;;  %5231 = vmatpush.msra.mxu3 %v5047_v49  ;;  %v5031_v33 = vld [vmem:[%s14743_s7 + $0x1a0] sm:$0xff]  ;;  %v5070_v62 = vld [vmem:[%s14743_s7 + $0x2d8] sm:$0xff]  ;;  %v5004_v49 = vld [vmem:[%s14743_s7 + $0xc8] sm:$0xff] }
 0x737   :  { %v4946_v48 = vadd.f32 %v4945_v4, %v4944_v16  ;;  %5306 = vmatpush.msrb.mxu2 %v5098_v31  ;;  %v5033_v16 = vld [vmem:[%s14743_s7 + $0x1b0] sm:$0xff]  ;;  %5232 = vmatpush.msra.mxu3 %v5031_v33  ;;  %v5035_v31 = vld [vmem:[%s14743_s7 + $0x1c0] sm:$0xff]  ;;  %v4990_v33 = vld [vmem:[%s14743_s7 + $0x58] sm:$0xff] }
 0x738   :  { %5284 = vmatpush.msrb.mxu1 %v5033_v16  ;;  %v5105_v16 = vld [vmem:[%s14743_s7 + $0x3f0] sm:$0xff] }
 0x739   :  { %v4947_v6 = vrot.slane %v4946_v48, 4  ;;  %5307 = vmatpush.msrb.mxu2 %v5082_v21  ;;  %5233 = vmatpush.msra.mxu3 %v5015_v47  ;;  %v5038_v21 = vld [vmem:[%s14743_s7 + $0x1d8] sm:$0xff]  ;;  %v5087_v47 = vld [vmem:[%s14743_s7 + $0x360] sm:$0xff] }
 0x73a   :  { %5285 = vmatpush.msrb.mxu1 %v5017_v61  ;;  %v5071_v61 = vld [vmem:[%s14743_s7 + $0x2e0] sm:$0xff] }
 0x73b   :  { %v4948_v8 = vadd.f32 %v4947_v6, %v4946_v48  ;;  %5308 = vmatpush.msrb.mxu2 %v5066_v43  ;;  %v5018_v48 = vld [vmem:[%s14743_s7 + $0x138] sm:$0xff]  ;;  %5234 = vmatpush.msra.mxu3 %v4999_v12 }
 0x73c   :  { %5286 = vmatpush.msrb.mxu1 %v5001_v0  ;;  %v5074_v12 = vld [vmem:[%s14743_s7 + $0x2f8] sm:$0xff]  ;;  %v5057_v0 = vld [vmem:[%s14743_s7 + $0x270] sm:$0xff] }
 0x73d   :  { %v4949_v57 = vrot.slane %v4948_v8, 2  ;;  %5309 = vmatpush.msrb.mxu2 %v5050_v38  ;;  %5235 = vmatpush.msra.mxu3 %v4983_v1  ;;  %v4987_v38 = vld [vmem:[%s14743_s7 + $0x40] sm:$0xff]  ;;  %v5042_v1 = vld [vmem:[%s14743_s7 + $0x1f8] sm:$0xff] }
 0x73e   :  { %5287 = vmatpush.msrb.mxu1 %v4985_v32  ;;  %v5025_v32 = vld [vmem:[%s14743_s7 + $0x170] sm:$0xff] }
 0x73f   :  { %v4950_v14 = vadd.f32 %v4949_v57, %v4948_v8  ;;  %5310 = vmatpush.msrb.mxu2 %v5034_v19  ;;  %v4986_v8 = vld [vmem:[%s14743_s7 + $0x38] sm:$0xff] }
 0x740   :  { %v5106_v19 = vld [vmem:[%s14743_s7 + $0x3f8] sm:$0xff] }
 0x741   :  { %v4951_v29 = vrot.slane %v4950_v14, 1  ;;  %5311 = vmatpush.msrb.mxu2 %v5018_v48  ;;  %v5073_v48 = vld [vmem:[%s14743_s7 + $0x2f0] sm:$0xff] }
 0x743   :  { %v4952_v53 = vadd.f32 %v4951_v29, %v4950_v14  ;;  %5312 = vmatpush.msrb.mxu2 %v5002_v23  ;;  %v5086_v29 = vld [vmem:[%s14743_s7 + $0x358] sm:$0xff] }
 0x744   :  { %v5058_v23 = vld [vmem:[%s14743_s7 + $0x278] sm:$0xff] }
 0x745   :  { %v4953_v63 = vmul.f32 %v4952_v53, %v13200_v52  ;;  %v5064_v52 = vld [vmem:[%s14743_s7 + $0x2a8] sm:$0xff]  ;;  %5313 = vmatpush.msrb.mxu2 %v4986_v8  ;;  %v5026_v8 = vld [vmem:[%s14743_s7 + $0x178] sm:$0xff] }
 0x746   :  { %5256 = vmatpush.msrb.mxu0 %v5064_v52  ;;  %v5021_v52 = vld [vmem:[%s14743_s7 + $0x150] sm:$0xff] }
 0x747   :  { %v13315_v13 = vadd.f32 1e-05, %v4953_v63 }
 0x748   :  { %5257 = vmatpush.msrb.mxu0 %v5048_v44  ;;  %v5005_v44 = vld [vmem:[%s14743_s7 + $0xd0] sm:$0xff] }
 0x749   :  { %10241 = vrsqrt.f32 %v13315_v13  ;;  %vm4961_vm14 = vweird.f32 %v13315_v13 }
 0x74a   :  { %5258 = vmatpush.msrb.mxu0 %v5032_v45  ;;  %v5103_v45 = vld [vmem:[%s14743_s7 + $0x3e0] sm:$0xff] }
 0x74c   :  { %5259 = vmatpush.msrb.mxu0 %v5016_v2  ;;  %v5089_v2 = vld [vmem:[%s14743_s7 + $0x370] sm:$0xff] }
 0x74e   :  { %5260 = vmatpush.msrb.mxu0 %v5000_v55  ;;  %v5055_v55 = vld [vmem:[%s14743_s7 + $0x260] sm:$0xff] }
 0x74f   :  { %v10242_v30 = vpop.eup %10241 }
 0x750   :  { %v4956_v26 = vmul.f32 %v10242_v30, %v13315_v13  ;;  %vm4962_vm13 = vweird.f32 %v10242_v30  ;;  %5261 = vmatpush.msrb.mxu0 %v4984_v56  ;;  %v5051_v13 = vld [vmem:[%s14743_s7 + $0x240] sm:$0xff] }
 0x751   :  { %vm4963_vm15 = vmor %vm4961_vm14, %vm4962_vm13  ;;  %v5023_v56 = vld [vmem:[%s14743_s7 + $0x160] sm:$0xff] }
 0x752   :  { %v4957_v5 = vmul.f32 %v10242_v30, %v4956_v26  ;;  %v5003_v26 = vld [vmem:[%s14743_s7 + $0xc0] sm:$0xff] }
 0x754   :  { %v4958_v58 = vmul.f32 0.5, %v4957_v5  ;;  %v4988_v5 = vld [vmem:[%s14743_s7 + $0x48] sm:$0xff] }
 0x756   :  { %v4959_v4 = vsub.f32 1.5, %v4958_v58  ;;  %v4989_v58 = vld [vmem:[%s14743_s7 + $0x50] sm:$0xff] }
 0x758   :  { %v4960_v6 = vmul.f32 %v10242_v30, %v4959_v4  ;;  %v5090_v4 = vld [vmem:[%s14743_s7 + $0x378] sm:$0xff] }
 0x75a   :  { %v4964_v51 = vsel %vm4963_vm15, %v10242_v30, %v4960_v6  ;;  %v5020_v30 = vld [vmem:[%s14743_s7 + $0x148] sm:$0xff]  ;;  %v5039_v6 = vld [vmem:[%s14743_s7 + $0x1e0] sm:$0xff] }
 0x75b   :  { %v4965_v15 = vmul.f32 %v4964_v51, %v13203_v46  ;;  %v4966_v35 = vmul.f32 %v4964_v51, %v13205_v24  ;;  %v5099_v46 = vld [vmem:[%s14743_s7 + $0x3c0] sm:$0xff]  ;;  %v5100_v24 = vld [vmem:[%s14743_s7 + $0x3c8] sm:$0xff]  ;;  %v4967_v14 = vmul.f32 %v4964_v51, %v13207_v40  ;;  %v5085_v40 = vld [vmem:[%s14743_s7 + $0x350] sm:$0xff] }
 0x75c   :  { %v5007_v51 = vld [vmem:[%s14743_s7 + $0xe0] sm:$0xff] }
 0x75d   :  { %v4969_v57 = vmul.f32 %v10230_v25, %v4965_v15  ;;  %v4970_v28 = vmul.f32 %v10230_v25, %v4966_v35  ;;  %v4971_v53 = vmul.f32 %v10230_v25, %v4967_v14  ;;  %v5041_v25 = vld [vmem:[%s14743_s7 + $0x1f0] sm:$0xff]  ;;  %v4991_v35 = vld [vmem:[%s14743_s7 + $0x60] sm:$0xff]  ;;  %v5040_v14 = vld [vmem:[%s14743_s7 + $0x1e8] sm:$0xff] }
 0x75e   :  { %v5009_v15 = vld [vmem:[%s14743_s7 + $0xf0] sm:$0xff] }
 0x75f   :  { %v4973_v36 = vadd.f32 %v10231_v11, %v4969_v57  ;;  %v4974_v34 = vadd.f32 %v10231_v11, %v4970_v28  ;;  %v4975_v20 = vadd.f32 %v10231_v11, %v4971_v53  ;;  %v5010_v11 = vld [vmem:[%s14743_s7 + $0xf8] sm:$0xff]  ;;  %v4993_v57 = vld [vmem:[%s14743_s7 + $0x70] sm:$0xff]  ;;  %v5104_v28 = vld [vmem:[%s14743_s7 + $0x3e8] sm:$0xff] }
 0x760   :  { %v9424_v53 = vld [vmem:[%s14744_s6 + $0x10] sm:$0xff]  }
 0x761   :  { %v13425_v10 = vmax.f32 %v4973_v36, 0.0  ;;  %v13472_v63 = vmax.f32 %v4974_v34, 0.0  ;;  %v13518_v43 = vmax.f32 %v4975_v20, 0.0  ;;  %v4994_v36 = vld [vmem:[%s14743_s7 + $0x78] sm:$0xff]  ;;  %v5024_v34 = vld [vmem:[%s14743_s7 + $0x168] sm:$0xff]  ;;  %v9428_v20 = vld [vmem:[%s14744_s6 + $0x30] sm:$0xff]  }
 0x763   :  { %8684 = vmatmul.msk.f32.vlgmr.msrb.gmra.mxu3 %vm69_vm0, %v13425_v10  ;;  %8687 = vmatmul.msk.f32.vlgmr.msra.gmra.mxu0 %vm69_vm0, %v13425_v10 }
 0x764   :  { %8690 = vmatmul.msk.f32.vlgmr.msra.gmra.mxu1 %vm69_vm0, %v13425_v10  ;;  %8693 = vmatmul.msk.f32.vlgmr.msra.gmra.mxu2 %vm69_vm0, %v13425_v10 }
 0x765   :  { %5332 = vmatpush.msrb.mxu3 %v5099_v46  ;;  %5358 = vmatpush.msra.mxu0 %v5100_v24  ;;  %v5088_v46 = vld [vmem:[%s14743_s7 + $0x368] sm:$0xff] }
 0x766   :  { %5384 = vmatpush.msra.mxu1 %v5101_v39  ;;  %5410 = vmatpush.msra.mxu2 %v5102_v60  ;;  %v5072_v24 = vld [vmem:[%s14743_s7 + $0x2e8] sm:$0xff] }
 0x767   :  { %5333 = vmatpush.msrb.mxu3 %v5083_v9  ;;  %5359 = vmatpush.msra.mxu0 %v5084_v59  ;;  %v5056_v39 = vld [vmem:[%s14743_s7 + $0x268] sm:$0xff] }
 0x768   :  { %5385 = vmatpush.msra.mxu1 %v5085_v40  ;;  %5411 = vmatpush.msra.mxu2 %v5086_v29  ;;  %v5008_v60 = vld [vmem:[%s14743_s7 + $0xe8] sm:$0xff] }
 0x769   :  { %5334 = vmatpush.msrb.mxu3 %v5067_v37  ;;  %5360 = vmatpush.msra.mxu0 %v5068_v50  ;;  %v4992_v9 = vld [vmem:[%s14743_s7 + $0x68] sm:$0xff] }
 0x76a   :  { %5386 = vmatpush.msra.mxu1 %v5069_v3  ;;  %5412 = vmatpush.msra.mxu2 %v5070_v62 }
 0x76b   :  { %8685 = vmatmul.msk.f32.gmra.mxu3 %vm69_vm0, %v13472_v63  ;;  %8688 = vmatmul.msk.f32.gmra.mxu0 %vm69_vm0, %v13472_v63 }
 0x76c   :  { %8691 = vmatmul.msk.f32.gmra.mxu1 %vm69_vm0, %v13472_v63  ;;  %8694 = vmatmul.msk.f32.gmra.mxu2 %vm69_vm0, %v13472_v63 }
 0x76d   :  { %5335 = vmatpush.msrb.mxu3 %v5051_v13  ;;  %5361 = vmatpush.msra.mxu0 %v5052_v7 }
 0x76e   :  { %5387 = vmatpush.msra.mxu1 %v5053_v41  ;;  %5413 = vmatpush.msra.mxu2 %v5054_v17  ;;  %v9138_v41 = vunpack.c.l.bf16 %v9424_v53 }
 0x76f   :  { %5336 = vmatpush.msrb.mxu3 %v5035_v31  ;;  %5362 = vmatpush.msra.mxu0 %v5036_v18  ;;  %v9129_v31 = vld [vmem:[%s14744_s6] sm:$0xff]  }
 0x770   :  { %5388 = vmatpush.msra.mxu1 %v5037_v42  ;;  %5414 = vmatpush.msra.mxu2 %v5038_v21 }
 0x771   :  { %5337 = vmatpush.msrb.mxu3 %v5019_v54  ;;  %5363 = vmatpush.msra.mxu0 %v5020_v30  ;;  %v9130_v54 = vunpack.c.l.bf16 %v9129_v31 }
 0x772   :  { %5389 = vmatpush.msra.mxu1 %v5021_v52  ;;  %5415 = vmatpush.msra.mxu2 %v5022_v22  ;;  %v9154_v52 = vunpack.c.l.bf16 %v9428_v20  ;;  %v9139_v22 = vunpack.c.h.bf16 %v9424_v53 }
 0x773   :  { %8686 = vmatmul.msk.f32.gmra.mxu3 %vm69_vm0, %v13518_v43  ;;  %8689 = vmatmul.msk.f32.gmra.mxu0 %vm69_vm0, %v13518_v43 }
 0x774   :  { %8692 = vmatmul.msk.f32.gmra.mxu1 %vm69_vm0, %v13518_v43  ;;  %8695 = vmatmul.msk.f32.gmra.mxu2 %vm69_vm0, %v13518_v43 }
 0x775   :  { %5338 = vmatpush.msrb.mxu3 %v5003_v26  ;;  %5364 = vmatpush.msra.mxu0 %v5004_v49 }
 0x776   :  { %5390 = vmatpush.msra.mxu1 %v5005_v44  ;;  %5416 = vmatpush.msra.mxu2 %v5006_v27  ;;  %v9425_v44 = vld [vmem:[%s14744_s6 + $0x18] sm:$0xff]  }
 0x777   :  { %5339 = vmatpush.msrb.mxu3 %v4987_v38  ;;  %5365 = vmatpush.msra.mxu0 %v4988_v5  ;;  %v9131_v38 = vunpack.c.h.bf16 %v9129_v31  ;;  %v9427_v5 = vld [vmem:[%s14744_s6 + $0x28] sm:$0xff]  }
 0x778   :  { %5391 = vmatpush.msra.mxu1 %v4989_v58  ;;  %5417 = vmatpush.msra.mxu2 %v4990_v33  ;;  %v9155_v33 = vunpack.c.h.bf16 %v9428_v20 }
 0x77b   :  { %8696 = vmatmul.msk.f32.vlgmr.msra.gmra.mxu3 %vm69_vm0, %v13425_v10  ;;  %8699 = vmatmul.msk.f32.vlgmr.msrb.gmra.mxu0 %vm69_vm0, %v13425_v10 }
 0x77c   :  { %8702 = vmatmul.msk.f32.vlgmr.msrb.gmra.mxu1 %vm69_vm0, %v13425_v10  ;;  %8705 = vmatmul.msk.f32.vlgmr.msrb.gmra.mxu2 %vm69_vm0, %v13425_v10 }
 0x77d   :  { %5436 = vmatpush.msrb.mxu0 %v5103_v45  ;;  %9493 = vmatpush.msra.mxu3 %v5103_v45  ;;  %v9142_v45 = vunpack.c.l.bf16 %v9425_v44 }
 0x77e   :  { %5488 = vmatpush.msrb.mxu1 %v5105_v16  ;;  %5514 = vmatpush.msrb.mxu2 %v5106_v19  ;;  %v9150_v16 = vunpack.c.l.bf16 %v9427_v5  ;;  %v9423_v19 = vld [vmem:[%s14744_s6 + $0x8] sm:$0xff]  }
 0x77f   :  { %5437 = vmatpush.msrb.mxu0 %v5087_v47  ;;  %9494 = vmatpush.msra.mxu3 %v5087_v47 }
 0x780   :  { %5489 = vmatpush.msrb.mxu1 %v5089_v2  ;;  %5515 = vmatpush.msrb.mxu2 %v5090_v4  ;;  %v9429_v2 = vld [vmem:[%s14744_s6 + $0x38] sm:$0xff]  }
 0x781   :  { %5438 = vmatpush.msrb.mxu0 %v5071_v61  ;;  %9495 = vmatpush.msra.mxu3 %v5071_v61 }
 0x782   :  { %5490 = vmatpush.msrb.mxu1 %v5073_v48  ;;  %5516 = vmatpush.msrb.mxu2 %v5074_v12  ;;  %v9134_v48 = vunpack.c.l.bf16 %v9423_v19 }
 0x783   :  { %8697 = vmatmul.msk.f32.gmra.mxu3 %vm69_vm0, %v13472_v63  ;;  %8700 = vmatmul.msk.f32.gmra.mxu0 %vm69_vm0, %v13472_v63 }
 0x784   :  { %8703 = vmatmul.msk.f32.gmra.mxu1 %vm69_vm0, %v13472_v63  ;;  %8706 = vmatmul.msk.f32.gmra.mxu2 %vm69_vm0, %v13472_v63 }
 0x785   :  { %5439 = vmatpush.msrb.mxu0 %v5055_v55  ;;  %9496 = vmatpush.msra.mxu3 %v5055_v55  ;;  %v9158_v55 = vunpack.c.l.bf16 %v9429_v2 }
 0x786   :  { %5491 = vmatpush.msrb.mxu1 %v5057_v0  ;;  %5517 = vmatpush.msrb.mxu2 %v5058_v23  ;;  %v9143_v0 = vunpack.c.h.bf16 %v9425_v44  ;;  %v9151_v23 = vunpack.c.h.bf16 %v9427_v5 }
 0x787   :  { %5440 = vmatpush.msrb.mxu0 %v5039_v6  ;;  %9497 = vmatpush.msra.mxu3 %v5039_v6 }
 0x788   :  { %5492 = vmatpush.msrb.mxu1 %v5041_v25  ;;  %5518 = vmatpush.msrb.mxu2 %v5042_v1  ;;  %v9430_v1 = vld [vmem:[%s14744_s6 + $0x40] sm:$0xff]  }
 0x789   :  { %5441 = vmatpush.msrb.mxu0 %v5023_v56  ;;  %9498 = vmatpush.msra.mxu3 %v5023_v56 }
 0x78a   :  { %5493 = vmatpush.msrb.mxu1 %v5025_v32  ;;  %5519 = vmatpush.msrb.mxu2 %v5026_v8  ;;  %v9135_v32 = vunpack.c.h.bf16 %v9423_v19  ;;  %v9434_v8 = vld [vmem:[%s14744_s6 + $0x60] sm:$0xff]  }
 0x78b   :  { %8698 = vmatmul.msk.f32.gmra.mxu3 %vm69_vm0, %v13518_v43  ;;  %8701 = vmatmul.msk.f32.gmra.mxu0 %vm69_vm0, %v13518_v43 }
 0x78c   :  { %8704 = vmatmul.msk.f32.gmra.mxu1 %vm69_vm0, %v13518_v43  ;;  %8707 = vmatmul.msk.f32.gmra.mxu2 %vm69_vm0, %v13518_v43 }
 0x78d   :  { %5442 = vmatpush.msrb.mxu0 %v5007_v51  ;;  %9499 = vmatpush.msra.mxu3 %v5007_v51 }
 0x78e   :  { %5494 = vmatpush.msrb.mxu1 %v5009_v15  ;;  %5520 = vmatpush.msrb.mxu2 %v5010_v11  ;;  %v9159_v15 = vunpack.c.h.bf16 %v9429_v2  ;;  %v9162_v11 = vunpack.c.l.bf16 %v9430_v1 }
 0x78f   :  { %5443 = vmatpush.msrb.mxu0 %v4991_v35  ;;  %9500 = vmatpush.msra.mxu3 %v4991_v35  ;;  %v9178_v35 = vunpack.c.l.bf16 %v9434_v8 }
 0x790   :  { %5495 = vmatpush.msrb.mxu1 %v4993_v57  ;;  %5521 = vmatpush.msrb.mxu2 %v4994_v36  ;;  %v9432_v57 = vld [vmem:[%s14744_s6 + $0x50] sm:$0xff]  }
 0x793   :  { %8708 = vmatmul.msk.f32.vlgmr.msrb.gmra.mxu3 %vm69_vm0, %v13425_v10  ;;  %8711 = vmatmul.msk.f32.vlgmr.msra.gmra.mxu0 %vm69_vm0, %v13425_v10 }
 0x794   :  { %8714 = vmatmul.msk.f32.vlgmr.msra.gmra.mxu1 %vm69_vm0, %v13425_v10  ;;  %8717 = vmatmul.msk.f32.vlgmr.msra.gmra.mxu2 %vm69_vm0, %v13425_v10 }
 0x795   :  { %5462 = vmatpush.msra.mxu0 %v5104_v28  ;;  %v9436_v28 = vld [vmem:[%s14744_s6 + $0x70] sm:$0xff]  }
 0x797   :  { %5463 = vmatpush.msra.mxu0 %v5088_v46 }
 0x799   :  { %5464 = vmatpush.msra.mxu0 %v5072_v24 }
 0x79b   :  { %8709 = vmatmul.msk.f32.gmra.mxu3 %vm69_vm0, %v13472_v63  ;;  %8712 = vmatmul.msk.f32.gmra.mxu0 %vm69_vm0, %v13472_v63 }
 0x79c   :  { %8715 = vmatmul.msk.f32.gmra.mxu1 %vm69_vm0, %v13472_v63  ;;  %8718 = vmatmul.msk.f32.gmra.mxu2 %vm69_vm0, %v13472_v63 }
 0x79d   :  { %5465 = vmatpush.msra.mxu0 %v5056_v39  ;;  %v9170_v39 = vunpack.c.l.bf16 %v9432_v57 }
 0x79f   :  { %5466 = vmatpush.msra.mxu0 %v5040_v14 }
 0x7a1   :  { %5467 = vmatpush.msra.mxu0 %v5024_v34  ;;  %v9186_v34 = vunpack.c.l.bf16 %v9436_v28 }
 0x7a3   :  { %8710 = vmatmul.msk.f32.gmra.mxu3 %vm69_vm0, %v13518_v43  ;;  %8713 = vmatmul.msk.f32.gmra.mxu0 %vm69_vm0, %v13518_v43 }
 0x7a4   :  { %8716 = vmatmul.msk.f32.gmra.mxu1 %vm69_vm0, %v13518_v43  ;;  %8719 = vmatmul.msk.f32.gmra.mxu2 %vm69_vm0, %v13518_v43 }
 0x7a5   :  { %5468 = vmatpush.msra.mxu0 %v5008_v60  ;;  %v9163_v60 = vunpack.c.h.bf16 %v9430_v1 }
 0x7a7   :  { %5469 = vmatpush.msra.mxu0 %v4992_v9  ;;  %v9179_v9 = vunpack.c.h.bf16 %v9434_v8 }
 0x7ab   :  { %8720 = vmatmul.msk.f32.vlgmr.msrb.gmra.mxu0 %vm69_vm0, %v13425_v10  ;;  %8722 = vmatmul.msk.f32.vlgmr.msra.gmra.mxu3 %vm69_vm0, %v13518_v43 }
 0x7ac   :  { %8726 = vmatmul.msk.f32.vlgmr.msrb.gmra.mxu1 %vm69_vm0, %v13425_v10  ;;  %8729 = vmatmul.msk.f32.vlgmr.msrb.gmra.mxu2 %vm69_vm0, %v13425_v10 }
 0x7b3   :  { %8721 = vmatmul.msk.f32.gmra.mxu0 %vm69_vm0, %v13472_v63 }
 0x7b4   :  { %8727 = vmatmul.msk.f32.gmra.mxu1 %vm69_vm0, %v13472_v63  ;;  %8730 = vmatmul.msk.f32.gmra.mxu2 %vm69_vm0, %v13472_v63 }
 0x7bb   :  { %8723 = vmatmul.msk.f32.vlgmr.msra.gmra.mxu0 %vm69_vm0, %v13425_v10 }
 0x7bc   :  { %8728 = vmatmul.msk.f32.gmra.mxu1 %vm69_vm0, %v13518_v43  ;;  %8731 = vmatmul.msk.f32.gmra.mxu2 %vm69_vm0, %v13518_v43 }
 0x7c3   :  { %8724 = vmatmul.msk.f32.gmra.mxu0 %vm69_vm0, %v13472_v63  ;;  %v9426_v63 = vld [vmem:[%s14744_s6 + $0x20] sm:$0xff]  }
 0x7c4   :  { %v9146_v17 = vunpack.c.l.bf16 %v9426_v63 }
 0x7cb   :  { %8725 = vmatmul.msk.f32.gmra.mxu0 %vm69_vm0, %v13518_v43  ;;  %vm5549_vm0 = vcmask 146432   ;;  %v9147_v43 = vunpack.c.h.bf16 %v9426_v63  ;;  %v9433_v63 = vld [vmem:[%s14744_s6 + $0x58] sm:$0xff]  }
 0x7e0   :  { %v5159_v59 = vpop.f32.mrf.mxu0 }
 0x7e1   :  { %v5185_v40 = vpop.f32.mrf.mxu1 }
 0x7e6   :  { %v5133_v29 = vpop.f32.mrf.mxu3 }
 0x7e7   :  { %v5211_v37 = vpop.f32.mrf.mxu2 }
 0x7e8   :  { %v5162_v50 = vpop.f32.mrf.mxu0 }
 0x7e9   :  { %v5188_v3 = vpop.f32.mrf.mxu1 }
 0x7ee   :  { %v5136_v62 = vpop.f32.mrf.mxu3 }
 0x7ef   :  { %v5214_v10 = vpop.f32.mrf.mxu2 }
 0x7f0   :  { %v5165_v13 = vpop.f32.mrf.mxu0 }
 0x7f1   :  { %v5191_v7 = vpop.f32.mrf.mxu1  ;;  %8736 = vmatpush.msk.msrb.mxu3 %vm774_vm2, %v5165_v13 }
 0x7f2   :  { %8750 = vmatpush.msk.msra.mxu1 %vm774_vm2, %v5191_v7 }
 0x7f3   :  { %5579 = vmatpush.msrb.mxu3 %v5162_v50  ;;  %v9171_v50 = vunpack.c.h.bf16 %v9432_v57  ;;  %v9446_v57 = vld [vmem:[%s14744_s6 + $0xc0] sm:$0xff]  }
 0x7f4   :  { %5676 = vmatpush.msra.mxu1 %v5188_v3  ;;  %v9435_v3 = vld [vmem:[%s14744_s6 + $0x68] sm:$0xff]  }
 0x7f5   :  { %5580 = vmatpush.msrb.mxu3 %v5159_v59  ;;  %v9182_v13 = vunpack.c.l.bf16 %v9435_v3 }
 0x7f6   :  { %5677 = vmatpush.msra.mxu1 %v5185_v40  ;;  %v5139_v18 = vpop.f32.mrf.mxu3  ;;  %8737 = vmatmul.msk.f32.vlgmr.msrb.gmra.mxu3 %vm5549_vm0, %v9138_v41  ;;  %v9437_v41 = vld [vmem:[%s14744_s6 + $0x78] sm:$0xff]  }
 0x7f7   :  { %v5217_v42 = vpop.f32.mrf.mxu2  ;;  %8741 = vmatpush.msk.msrb.mxu0 %vm774_vm2, %v5139_v18  ;;  %8751 = vmatmul.msk.f32.vlgmr.msra.gmra.mxu1 %vm5549_vm0, %v9146_v17  ;;  %v9174_v18 = vunpack.c.l.bf16 %v9433_v63 }
 0x7f8   :  { %8759 = vmatpush.msk.msra.mxu2 %vm774_vm2, %v5217_v42  ;;  %v5263_v21 = vpop.f32.mrf.mxu0  ;;  %v9190_v42 = vunpack.c.l.bf16 %v9437_v41 }
 0x7f9   :  { %v5289_v30 = vpop.f32.mrf.mxu1  ;;  %5623 = vmatpush.msrb.mxu0 %v5136_v62 }
 0x7fa   :  { %5733 = vmatpush.msra.mxu2 %v5214_v10  ;;  %v9187_v10 = vunpack.c.h.bf16 %v9436_v28  ;;  %v9450_v28 = vld [vmem:[%s14744_s6 + $0xe0] sm:$0xff]  }
 0x7fb   :  { %5624 = vmatpush.msrb.mxu0 %v5133_v29  ;;  %v9431_v29 = vld [vmem:[%s14744_s6 + $0x48] sm:$0xff]  }
 0x7fc   :  { %5734 = vmatpush.msra.mxu2 %v5211_v37  ;;  %8742 = vmatmul.msk.f32.vlgmr.msrb.gmra.mxu0 %vm5549_vm0, %v9130_v54  ;;  %v9166_v53 = vunpack.c.l.bf16 %v9431_v29  ;;  %v9183_v54 = vunpack.c.h.bf16 %v9435_v3 }
 0x7fd   :  { %8760 = vmatmul.msk.f32.vlgmr.msra.gmra.mxu2 %vm5549_vm0, %v9154_v52 }
 0x7fe   :  { %v5237_v26 = vpop.f32.mrf.mxu3  ;;  %8738 = vmatmul.msk.f32.gmra.mxu3 %vm5549_vm0, %v9139_v22  ;;  %v9438_v22 = vld [vmem:[%s14744_s6 + $0x80] sm:$0xff]  }
 0x7ff   :  { %v5315_v49 = vpop.f32.mrf.mxu2  ;;  %8752 = vmatmul.msk.f32.gmra.mxu1 %vm5549_vm0, %v9147_v43 }
 0x800   :  { %v5266_v27 = vpop.f32.mrf.mxu0 }
 0x801   :  { %v5292_v58 = vpop.f32.mrf.mxu1 }
 0x804   :  { %8743 = vmatmul.msk.f32.gmra.mxu0 %vm5549_vm0, %v9131_v38  ;;  %v9194_v38 = vunpack.c.l.bf16 %v9438_v22 }
 0x805   :  { %8761 = vmatmul.msk.f32.gmra.mxu2 %vm5549_vm0, %v9155_v33  ;;  %v9444_v33 = vld [vmem:[%s14744_s6 + $0xb0] sm:$0xff]  }
 0x806   :  { %v5240_v47 = vpop.f32.mrf.mxu3  ;;  %8739 = vmatmul.msk.f32.gmra.mxu3 %vm5549_vm0, %v9142_v45  ;;  %v9218_v2 = vunpack.c.l.bf16 %v9444_v33 }
 0x807   :  { %v5318_v4 = vpop.f32.mrf.mxu2  ;;  %8753 = vmatmul.msk.f32.gmra.mxu1 %vm5549_vm0, %v9150_v16 }
 0x808   :  { %v5269_v61 = vpop.f32.mrf.mxu0 }
 0x809   :  { %v5295_v12 = vpop.f32.mrf.mxu1  ;;  %8777 = vmatpush.msk.msra.mxu0 %vm774_vm2, %v5269_v61 }
 0x80a   :  { %8786 = vmatpush.msk.msrb.mxu1 %vm774_vm2, %v5295_v12  ;;  %v9439_v12 = vld [vmem:[%s14744_s6 + $0x88] sm:$0xff]  }
 0x80b   :  { %5847 = vmatpush.msra.mxu0 %v5266_v27  ;;  %v9191_v27 = vunpack.c.h.bf16 %v9437_v41 }
 0x80c   :  { %5904 = vmatpush.msrb.mxu1 %v5292_v58  ;;  %8744 = vmatmul.msk.f32.gmra.mxu0 %vm5549_vm0, %v9134_v48  ;;  %v9440_v58 = vld [vmem:[%s14744_s6 + $0x90] sm:$0xff]  }
 0x80d   :  { %8762 = vmatmul.msk.f32.gmra.mxu2 %vm5549_vm0, %v9158_v55  ;;  %5848 = vmatpush.msra.mxu0 %v5263_v21  ;;  %v9167_v21 = vunpack.c.h.bf16 %v9431_v29  ;;  %v9202_v19 = vunpack.c.l.bf16 %v9440_v58  ;;  %v9447_v29 = vld [vmem:[%s14744_s6 + $0xc8] sm:$0xff]  }
 0x80e   :  { %5905 = vmatpush.msrb.mxu1 %v5289_v30  ;;  %v5243_v6 = vpop.f32.mrf.mxu3  ;;  %8740 = vmatmul.msk.f32.gmra.mxu3 %vm5549_vm0, %v9143_v0  ;;  %v9203_v0 = vunpack.c.h.bf16 %v9440_v58  ;;  %v9231_v41 = vunpack.c.h.bf16 %v9447_v29 }
 0x80f   :  { %v5321_v25 = vpop.f32.mrf.mxu2  ;;  %8768 = vmatpush.msk.msra.mxu3 %vm774_vm2, %v5243_v6  ;;  %8754 = vmatmul.msk.f32.gmra.mxu1 %vm5549_vm0, %v9151_v23  ;;  %v9443_v23 = vld [vmem:[%s14744_s6 + $0xa8] sm:$0xff]   ;;  %v9219_v6 = vunpack.c.h.bf16 %v9444_v33 }
 0x810   :  { %8795 = vmatpush.msk.msrb.mxu2 %vm774_vm2, %v5321_v25  ;;  %v5367_v56 = vpop.f32.mrf.mxu0  ;;  %v9198_v25 = vunpack.c.l.bf16 %v9439_v12  ;;  %v9214_v1 = vunpack.c.l.bf16 %v9443_v23 }
 0x811   :  { %v5393_v51 = vpop.f32.mrf.mxu1  ;;  %5790 = vmatpush.msra.mxu3 %v5240_v47 }
 0x812   :  { %5961 = vmatpush.msrb.mxu2 %v5318_v4  ;;  %v9195_v4 = vunpack.c.h.bf16 %v9438_v22 }
 0x813   :  { %5791 = vmatpush.msra.mxu3 %v5237_v26  ;;  %v9175_v26 = vunpack.c.h.bf16 %v9433_v63 }
 0x814   :  { %5962 = vmatpush.msrb.mxu2 %v5315_v49  ;;  %8745 = vmatmul.msk.f32.gmra.mxu0 %vm5549_vm0, %v9135_v32  ;;  %v9442_v49 = vld [vmem:[%s14744_s6 + $0xa0] sm:$0xff]   ;;  %v9445_v32 = vld [vmem:[%s14744_s6 + $0xb8] sm:$0xff]  }
 0x815   :  { %8763 = vmatmul.msk.f32.gmra.mxu2 %vm5549_vm0, %v9159_v15  ;;  %v9210_v5 = vunpack.c.l.bf16 %v9442_v49  ;;  %v9211_v61 = vunpack.c.h.bf16 %v9442_v49  ;;  %v9222_v15 = vunpack.c.l.bf16 %v9445_v32 }
 0x816   :  { %v5341_v36 = vpop.f32.mrf.mxu3  ;;  %8769 = vmatmul.msk.f32.vlgmr.msra.gmra.mxu3 %vm5549_vm0, %v9162_v11  ;;  %v9199_v11 = vunpack.c.h.bf16 %v9439_v12 }
 0x817   :  { %v5419_v46 = vpop.f32.mrf.mxu2  ;;  %8787 = vmatmul.msk.f32.vlgmr.msrb.gmra.mxu1 %vm5549_vm0, %v9178_v35  ;;  %v9215_v35 = vunpack.c.h.bf16 %v9443_v23 }
 0x818   :  { %v5370_v24 = vpop.f32.mrf.mxu0 }
 0x819   :  { %v5396_v14 = vpop.f32.mrf.mxu1 }
 0x81c   :  { %8778 = vmatmul.msk.f32.vlgmr.msra.gmra.mxu0 %vm5549_vm0, %v9170_v39  ;;  %v9242_v39 = vunpack.c.l.bf16 %v9450_v28 }
 0x81d   :  { %8796 = vmatmul.msk.f32.vlgmr.msrb.gmra.mxu2 %vm5549_vm0, %v9186_v34  ;;  %v9452_v34 = vld [vmem:[%s14744_s6 + $0xf0] sm:$0xff]  }
 0x81e   :  { %v5344_v59 = vpop.f32.mrf.mxu3  ;;  %8770 = vmatmul.msk.f32.gmra.mxu3 %vm5549_vm0, %v9163_v60  ;;  %v9251_v3 = vunpack.c.h.bf16 %v9452_v34 }
 0x81f   :  { %v5422_v40 = vpop.f32.mrf.mxu2  ;;  %8788 = vmatmul.msk.f32.gmra.mxu1 %vm5549_vm0, %v9179_v9  ;;  %v9250_v9 = vunpack.c.l.bf16 %v9452_v34 }
 0x820   :  { %v5373_v37 = vpop.f32.mrf.mxu0 }
 0x821   :  { %v5399_v62 = vpop.f32.mrf.mxu1  ;;  %8813 = vmatpush.msk.msrb.mxu0 %vm774_vm2, %v5373_v37 }
 0x822   :  { %8822 = vmatpush.msk.msra.mxu1 %vm774_vm2, %v5399_v62  ;;  %v9230_v62 = vunpack.c.l.bf16 %v9447_v29 }
 0x823   :  { %6075 = vmatpush.msrb.mxu0 %v5370_v24  ;;  %v9226_v24 = vunpack.c.l.bf16 %v9446_v57 }
 0x824   :  { %6132 = vmatpush.msra.mxu1 %v5396_v14  ;;  %8779 = vmatmul.msk.f32.gmra.mxu0 %vm5549_vm0, %v9171_v50  ;;  %v9448_v14 = vld [vmem:[%s14744_s6 + $0xd0] sm:$0xff]   ;;  %v9451_v50 = vld [vmem:[%s14744_s6 + $0xe8] sm:$0xff]  }
 0x825   :  { %8797 = vmatmul.msk.f32.gmra.mxu2 %vm5549_vm0, %v9187_v10  ;;  %6076 = vmatpush.msrb.mxu0 %v5367_v56  ;;  %v9441_v56 = vld [vmem:[%s14744_s6 + $0x98] sm:$0xff]   ;;  %v9234_v60 = vunpack.c.l.bf16 %v9448_v14  ;;  %v9235_v37 = vunpack.c.h.bf16 %v9448_v14  ;;  %v9246_v10 = vunpack.c.l.bf16 %v9451_v50 }
 0x826   :  { %6133 = vmatpush.msra.mxu1 %v5393_v51  ;;  %v5347_v7 = vpop.f32.mrf.mxu3  ;;  %8771 = vmatmul.msk.f32.gmra.mxu3 %vm5549_vm0, %v9166_v53  ;;  %v9206_v51 = vunpack.c.l.bf16 %v9441_v56  ;;  %v9449_v53 = vld [vmem:[%s14744_s6 + $0xd8] sm:$0xff]  }
 0x827   :  { %v5425_v17 = vpop.f32.mrf.mxu2  ;;  %8804 = vmatpush.msk.msrb.mxu3 %vm774_vm2, %v5347_v7  ;;  %8789 = vmatmul.msk.f32.gmra.mxu1 %vm5549_vm0, %v9182_v13  ;;  %v9453_v13 = vld [vmem:[%s14744_s6 + $0xf8] sm:$0xff]   ;;  %v9238_v63 = vunpack.c.l.bf16 %v9449_v53 }
 0x828   :  { %8831 = vmatpush.msk.msra.mxu2 %vm774_vm2, %v5425_v17  ;;  %v5445_v31 = vpop.f32.mrf.mxu0  ;;  %v9254_v7 = vunpack.c.l.bf16 %v9453_v13  ;;  %v9247_v17 = vunpack.c.h.bf16 %v9451_v50 }
 0x829   :  { %v5497_v20 = vpop.f32.mrf.mxu1  ;;  %6018 = vmatpush.msrb.mxu3 %v5344_v59  ;;  %v9227_v59 = vunpack.c.h.bf16 %v9446_v57 }
 0x82a   :  { %6189 = vmatpush.msra.mxu2 %v5422_v40  ;;  %v9243_v40 = vunpack.c.h.bf16 %v9450_v28 }
 0x82b   :  { %6019 = vmatpush.msrb.mxu3 %v5341_v36  ;;  %v9207_v36 = vunpack.c.h.bf16 %v9441_v56 }
 0x82c   :  { %6190 = vmatpush.msra.mxu2 %v5419_v46  ;;  %8780 = vmatmul.msk.f32.gmra.mxu0 %vm5549_vm0, %v9174_v18  ;;  %v9223_v46 = vunpack.c.h.bf16 %v9445_v32  ;;  %v9255_v18 = vunpack.c.h.bf16 %v9453_v13 }
 0x82d   :  { %8798 = vmatmul.msk.f32.gmra.mxu2 %vm5549_vm0, %v9190_v42 }
 0x82e   :  { %v5451_v30 = vpop.f32.mrf.mxu3  ;;  %8772 = vmatmul.msk.f32.gmra.mxu3 %vm5549_vm0, %v9167_v21 }
 0x82f   :  { %v5523_v52 = vpop.f32.mrf.mxu2  ;;  %8840 = vmatpush.msk.msra.mxu3 %vm774_vm2, %v5451_v30  ;;  %8790 = vmatmul.msk.f32.gmra.mxu1 %vm5549_vm0, %v9183_v54 }
 0x830   :  { %v5448_v43 = vpop.f32.mrf.mxu0 }
 0x831   :  { %v5500_v44 = vpop.f32.mrf.mxu1  ;;  %6246 = vmatpush.msra.mxu3 %v5448_v43 }
 0x833   :  { %6247 = vmatpush.msra.mxu3 %v5445_v31  ;;  %v9239_v31 = vunpack.c.h.bf16 %v9449_v53 }
 0x834   :  { %8781 = vmatmul.msk.f32.gmra.mxu0 %vm5549_vm0, %v9175_v26 }
 0x835   :  { %8799 = vmatmul.msk.f32.gmra.mxu2 %vm5549_vm0, %v9191_v27 }
 0x836   :  { %8805 = vmatmul.msk.f32.vlgmr.msrb.gmra.mxu3 %vm5549_vm0, %v9194_v38 }
 0x837   :  { %v5526_v45 = vpop.f32.mrf.mxu2  ;;  %8823 = vmatmul.msk.f32.vlgmr.msra.gmra.mxu1 %vm5549_vm0, %v9210_v5 }
 0x838   :  { %v5471_v16 = vpop.f32.mrf.mxu0 }
 0x839   :  { %v5503_v47 = vpop.f32.mrf.mxu1 }
 0x83a   :  { %8858 = vmatpush.msk.msrb.mxu1 %vm774_vm2, %v5503_v47 }
 0x83c   :  { %6360 = vmatpush.msrb.mxu1 %v5500_v44  ;;  %8814 = vmatmul.msk.f32.vlgmr.msrb.gmra.mxu0 %vm5549_vm0, %v9202_v19 }
 0x83d   :  { %8832 = vmatmul.msk.f32.vlgmr.msra.gmra.mxu2 %vm5549_vm0, %v9218_v2 }
 0x83e   :  { %6361 = vmatpush.msrb.mxu1 %v5497_v20  ;;  %8806 = vmatmul.msk.f32.gmra.mxu3 %vm5549_vm0, %v9195_v4 }
 0x83f   :  { %v5529_v48 = vpop.f32.mrf.mxu2  ;;  %8824 = vmatmul.msk.f32.gmra.mxu1 %vm5549_vm0, %v9211_v61 }
 0x840   :  { %8867 = vmatpush.msk.msrb.mxu2 %vm774_vm2, %v5529_v48  ;;  %v5474_v55 = vpop.f32.mrf.mxu0 }
 0x842   :  { %6417 = vmatpush.msrb.mxu2 %v5526_v45 }
 0x844   :  { %6418 = vmatpush.msrb.mxu2 %v5523_v52  ;;  %8815 = vmatmul.msk.f32.gmra.mxu0 %vm5549_vm0, %v9203_v0 }
 0x845   :  { %8833 = vmatmul.msk.f32.gmra.mxu2 %vm5549_vm0, %v9219_v6 }
 0x846   :  { %8807 = vmatmul.msk.f32.gmra.mxu3 %vm5549_vm0, %v9198_v25 }
 0x847   :  { %8825 = vmatmul.msk.f32.gmra.mxu1 %vm5549_vm0, %v9214_v1 }
 0x848   :  { %v5477_v8 = vpop.f32.mrf.mxu0 }
 0x849   :  { %8849 = vmatpush.msk.msra.mxu0 %vm774_vm2, %v5477_v8 }
 0x84b   :  { %6303 = vmatpush.msra.mxu0 %v5474_v55 }
 0x84c   :  { %8816 = vmatmul.msk.f32.gmra.mxu0 %vm5549_vm0, %v9206_v51 }
 0x84d   :  { %8834 = vmatmul.msk.f32.gmra.mxu2 %vm5549_vm0, %v9222_v15  ;;  %6304 = vmatpush.msra.mxu0 %v5471_v16 }
 0x84e   :  { %8808 = vmatmul.msk.f32.gmra.mxu3 %vm5549_vm0, %v9199_v11 }
 0x84f   :  { %8826 = vmatmul.msk.f32.gmra.mxu1 %vm5549_vm0, %v9215_v35 }
 0x854   :  { %8817 = vmatmul.msk.f32.gmra.mxu0 %vm5549_vm0, %v9207_v36 }
 0x855   :  { %8835 = vmatmul.msk.f32.gmra.mxu2 %vm5549_vm0, %v9223_v46 }
 0x856   :  { %8841 = vmatmul.msk.f32.vlgmr.msra.gmra.mxu3 %vm5549_vm0, %v9226_v24 }
 0x857   :  { %8859 = vmatmul.msk.f32.vlgmr.msrb.gmra.mxu1 %vm5549_vm0, %v9242_v39 }
 0x85c   :  { %8850 = vmatmul.msk.f32.vlgmr.msra.gmra.mxu0 %vm5549_vm0, %v9234_v60 }
 0x85d   :  { %8868 = vmatmul.msk.f32.vlgmr.msrb.gmra.mxu2 %vm5549_vm0, %v9250_v9 }
 0x85e   :  { %8842 = vmatmul.msk.f32.gmra.mxu3 %vm5549_vm0, %v9227_v59 }
 0x85f   :  { %8860 = vmatmul.msk.f32.gmra.mxu1 %vm5549_vm0, %v9243_v40 }
 0x864   :  { %8851 = vmatmul.msk.f32.gmra.mxu0 %vm5549_vm0, %v9235_v37 }
 0x865   :  { %8869 = vmatmul.msk.f32.gmra.mxu2 %vm5549_vm0, %v9251_v3 }
 0x866   :  { %8843 = vmatmul.msk.f32.gmra.mxu3 %vm5549_vm0, %v9230_v62 }
 0x867   :  { %8861 = vmatmul.msk.f32.gmra.mxu1 %vm5549_vm0, %v9246_v10 }
 0x86c   :  { %8852 = vmatmul.msk.f32.gmra.mxu0 %vm5549_vm0, %v9238_v63 }
 0x86d   :  { %8870 = vmatmul.msk.f32.gmra.mxu2 %vm5549_vm0, %v9254_v7 }
 0x86e   :  { %8844 = vmatmul.msk.f32.gmra.mxu3 %vm5549_vm0, %v9231_v41 }
 0x86f   :  { %8862 = vmatmul.msk.f32.gmra.mxu1 %vm5549_vm0, %v9247_v17 }
 0x874   :  { %8853 = vmatmul.msk.f32.gmra.mxu0 %vm5549_vm0, %v9239_v31  ;;  %v5679_v20 = vpop.f32.mrf.mxu1 }
 0x875   :  { %8871 = vmatmul.msk.f32.gmra.mxu2 %vm5549_vm0, %v9255_v18 }
 0x879   :  { %v5582_v42 = vpop.f32.mrf.mxu3  ;;  %v5626_v21 = vpop.f32.mrf.mxu0 }
 0x87a   :  { %v5627_v46 = vadd.f32 %v5626_v21, %v5582_v42 }
 0x87c   :  { %v5682_v54 = vpop.f32.mrf.mxu1  ;;  %v5691_v34 = vadd.f32 %v5679_v20, %v5627_v46 }
 0x880   :  { %v5736_v30 = vpop.f32.mrf.mxu2 }
 0x881   :  { %v5585_v52 = vpop.f32.mrf.mxu3  ;;  %v5629_v22 = vpop.f32.mrf.mxu0  ;;  %v5748_v29 = vadd.f32 %v5736_v30, %v5691_v34 }
 0x882   :  { %v5630_v36 = vadd.f32 %v5629_v22, %v5585_v52 }
 0x884   :  { %v5685_v43 = vpop.f32.mrf.mxu1  ;;  %v5692_v39 = vadd.f32 %v5682_v54, %v5630_v36 }
 0x888   :  { %v5739_v26 = vpop.f32.mrf.mxu2 }
 0x889   :  { %v5588_v49 = vpop.f32.mrf.mxu3  ;;  %v5632_v44 = vpop.f32.mrf.mxu0  ;;  %v5749_v60 = vadd.f32 %v5739_v26, %v5692_v39 }
 0x88a   :  { %v5633_v24 = vadd.f32 %v5632_v44, %v5588_v49 }
 0x88c   :  { %v5688_v27 = vpop.f32.mrf.mxu1  ;;  %v5693_v40 = vadd.f32 %v5685_v43, %v5633_v24 }
 0x890   :  { %v5742_v38 = vpop.f32.mrf.mxu2 }
 0x891   :  { %v5591_v5 = vpop.f32.mrf.mxu3  ;;  %v5635_v58 = vpop.f32.mrf.mxu0  ;;  %v5750_v50 = vadd.f32 %v5742_v38, %v5693_v40  ;;  %v10280_v40 = vmov 32.0  }
 0x892   :  { %v5636_v10 = vadd.f32 %v5635_v58, %v5591_v5  ;;  %10243 = vrcp.f32 %v10280_v40 }
 0x894   :  { %v5907_v33 = vpop.f32.mrf.mxu1  ;;  %v5694_v31 = vadd.f32 %v5688_v27, %v5636_v10 }
 0x898   :  { %v5745_v45 = vpop.f32.mrf.mxu2 }
 0x899   :  { %v5793_v16 = vpop.f32.mrf.mxu3  ;;  %v5850_v19 = vpop.f32.mrf.mxu0  ;;  %v5751_v20 = vadd.f32 %v5745_v45, %v5694_v31 }
 0x89a   :  { %v5805_v62 = vadd.f32 %v5793_v16, %v5748_v29 }
 0x89c   :  { %v5910_v47 = vpop.f32.mrf.mxu1  ;;  %v5862_v7 = vadd.f32 %v5850_v19, %v5805_v62  ;;  %v10244_v62 = vpop.eup %10243 }
 0x89d   :  { %vm6452_vm2 = vweird.f32 %v10244_v62 }
 0x89e   :  { %v5919_v54 = vadd.f32 %v5907_v33, %v5862_v7 }
 0x8a0   :  { %v5964_v2 = vpop.f32.mrf.mxu2 }
 0x8a1   :  { %v5796_v4 = vpop.f32.mrf.mxu3  ;;  %v5853_v61 = vpop.f32.mrf.mxu0  ;;  %v5976_v26 = vadd.f32 %v5964_v2, %v5919_v54 }
 0x8a2   :  { %v5806_v37 = vadd.f32 %v5796_v4, %v5749_v60 }
 0x8a4   :  { %v5913_v48 = vpop.f32.mrf.mxu1  ;;  %v5863_v13 = vadd.f32 %v5853_v61, %v5806_v37 }
 0x8a6   :  { %v5920_v42 = vadd.f32 %v5910_v47, %v5863_v13 }
 0x8a8   :  { %v5967_v12 = vpop.f32.mrf.mxu2 }
 0x8a9   :  { %v5799_v55 = vpop.f32.mrf.mxu3  ;;  %v5856_v0 = vpop.f32.mrf.mxu0  ;;  %v5977_v30 = vadd.f32 %v5967_v12, %v5920_v42 }
 0x8aa   :  { %v5807_v53 = vadd.f32 %v5799_v55, %v5750_v50 }
 0x8ac   :  { %v5916_v23 = vpop.f32.mrf.mxu1  ;;  %v5864_v18 = vadd.f32 %v5856_v0, %v5807_v53 }
 0x8ae   :  { %v5921_v52 = vadd.f32 %v5913_v48, %v5864_v18 }
 0x8b0   :  { %v5970_v6 = vpop.f32.mrf.mxu2 }
 0x8b1   :  { %v5802_v25 = vpop.f32.mrf.mxu3  ;;  %v5859_v1 = vpop.f32.mrf.mxu0  ;;  %v5978_v5 = vadd.f32 %v5970_v6, %v5921_v52 }
 0x8b2   :  { %v5808_v22 = vadd.f32 %v5802_v25, %v5751_v20 }
 0x8b4   :  { %v6135_v56 = vpop.f32.mrf.mxu1  ;;  %v5865_v58 = vadd.f32 %v5859_v1, %v5808_v22 }
 0x8b6   :  { %v5922_v61 = vadd.f32 %v5916_v23, %v5865_v58  ;;  %v6514_v58 = vld [vmem:[%s14745_s9 + $0x60] sm:$0xff] }
 0x8b8   :  { %v5973_v32 = vpop.f32.mrf.mxu2 }
 0x8b9   :  { %v6021_v8 = vpop.f32.mrf.mxu3  ;;  %v6078_v51 = vpop.f32.mrf.mxu0  ;;  %v5979_v25 = vadd.f32 %v5973_v32, %v5922_v61 }
 0x8ba   :  { %v6033_v16 = vadd.f32 %v6021_v8, %v5976_v26  ;;  %v6516_v26 = vld [vmem:[%s14745_s9 + $0x70] sm:$0xff] }
 0x8bc   :  { %v6138_v15 = vpop.f32.mrf.mxu1  ;;  %v6090_v55 = vadd.f32 %v6078_v51, %v6033_v16 }
 0x8be   :  { %v6147_v12 = vadd.f32 %v6135_v56, %v6090_v55 }
 0x8c0   :  { %v6192_v11 = vpop.f32.mrf.mxu2 }
 0x8c1   :  { %v6024_v35 = vpop.f32.mrf.mxu3  ;;  %v6081_v57 = vpop.f32.mrf.mxu0  ;;  %v6204_v46 = vadd.f32 %v6192_v11, %v6147_v12  ;;  %v6510_v12 = vld [vmem:[%s14745_s9 + $0x40] sm:$0xff] }
 0x8c2   :  { %v6034_v49 = vadd.f32 %v6024_v35, %v5977_v30  ;;  %v6517_v30 = vld [vmem:[%s14745_s9 + $0x78] sm:$0xff] }
 0x8c3   :  { %6518 = vmatpush.msrb.mxu3 %v6517_v30 }
 0x8c4   :  { %v6141_v28 = vpop.f32.mrf.mxu1  ;;  %v6091_v4 = vadd.f32 %v6081_v57, %v6034_v49 }
 0x8c5   :  { %6519 = vmatpush.msrb.mxu3 %v6516_v26 }
 0x8c6   :  { %v6148_v0 = vadd.f32 %v6138_v15, %v6091_v4  ;;  %v6513_v4 = vld [vmem:[%s14745_s9 + $0x58] sm:$0xff] }
 0x8c8   :  { %v6195_v14 = vpop.f32.mrf.mxu2 }
 0x8c9   :  { %v6027_v9 = vpop.f32.mrf.mxu3  ;;  %v6084_v59 = vpop.f32.mrf.mxu0  ;;  %v6205_v35 = vadd.f32 %v6195_v14, %v6148_v0  ;;  %v6511_v0 = vld [vmem:[%s14745_s9 + $0x48] sm:$0xff] }
 0x8ca   :  { %v6035_v19 = vadd.f32 %v6027_v9, %v5978_v5 }
 0x8cc   :  { %v6144_v3 = vpop.f32.mrf.mxu1  ;;  %v6092_v47 = vadd.f32 %v6084_v59, %v6035_v19 }
 0x8ce   :  { %v6149_v36 = vadd.f32 %v6141_v28, %v6092_v47 }
 0x8d0   :  { %v6198_v63 = vpop.f32.mrf.mxu2 }
 0x8d1   :  { %v6030_v41 = vpop.f32.mrf.mxu3  ;;  %v6087_v17 = vpop.f32.mrf.mxu0  ;;  %v6206_v6 = vadd.f32 %v6198_v63, %v6149_v36 }
 0x8d2   :  { %v6036_v2 = vadd.f32 %v6030_v41, %v5979_v25 }
 0x8d4   :  { %v6363_v21 = vpop.f32.mrf.mxu1  ;;  %v6093_v1 = vadd.f32 %v6087_v17, %v6036_v2 }
 0x8d6   :  { %v6150_v9 = vadd.f32 %v6144_v3, %v6093_v1  ;;  %v6448_v3 = vmul.f32 32.0, %v10244_v62 }
 0x8d8   :  { %v6201_v43 = vpop.f32.mrf.mxu2  ;;  %v6449_v20 = vsub.f32 1.0, %v6448_v3 }
 0x8d9   :  { %v6249_v44 = vpop.f32.mrf.mxu3  ;;  %v6306_v38 = vpop.f32.mrf.mxu0  ;;  %v6207_v32 = vadd.f32 %v6201_v43, %v6150_v9  ;;  %v6503_v9 = vld [vmem:[%s14745_s9 + $0x8] sm:$0xff] }
 0x8da   :  { %v6261_v57 = vadd.f32 %v6249_v44, %v6204_v46 }
 0x8dc   :  { %v6366_v27 = vpop.f32.mrf.mxu1  ;;  %v6318_v15 = vadd.f32 %v6306_v38, %v6261_v57  ;;  %v6515_v38 = vld [vmem:[%s14745_s9 + $0x68] sm:$0xff]  ;;  %v6506_v57 = vld [vmem:[%s14745_s9 + $0x20] sm:$0xff] }
 0x8dd   :  { %6520 = vmatpush.msrb.mxu3 %v6515_v38 }
 0x8de   :  { %v6375_v14 = vadd.f32 %v6363_v21, %v6318_v15  ;;  %v6450_v21 = vmul.f32 %v10244_v62, %v6449_v20 }
 0x8df   :  { %6521 = vmatpush.msrb.mxu3 %v6514_v58  ;;  %v9257_v58 = vld [vmem:[%s14746_s8] sm:$0xff]  }
 0x8e0   :  { %v6420_v45 = vpop.f32.mrf.mxu2  ;;  %v6451_v49 = vadd.f32 %v10244_v62, %v6450_v21 }
 0x8e1   :  { %v6252_v33 = vpop.f32.mrf.mxu3  ;;  %v6309_v48 = vpop.f32.mrf.mxu0  ;;  %v6432_v63 = vadd.f32 %v6420_v45, %v6375_v14  ;;  %6522 = vmatpush.msrb.mxu3 %v6513_v4  ;;  %v8907_v4 = vld [vmem:[%s14746_s8 + $0x54] sm:$0xf] }
 0x8e2   :  { %v6262_v24 = vadd.f32 %v6252_v33, %v6205_v35  ;;  %v6453_v16 = vsel %vm6452_vm2, %v10244_v62, %v6451_v49  ;;  %v6509_v35 = vld [vmem:[%s14745_s9 + $0x38] sm:$0xff] }
 0x8e4   :  { %v6369_v39 = vpop.f32.mrf.mxu1  ;;  %v6319_v60 = vadd.f32 %v6309_v48, %v6262_v24 }
 0x8e6   :  { %v6376_v56 = vadd.f32 %v6366_v27, %v6319_v60  ;;  %v6512_v27 = vld [vmem:[%s14745_s9 + $0x50] sm:$0xff] }
 0x8e7   :  { %6523 = vmatpush.msrb.mxu3 %v6512_v27 }
 0x8e8   :  { %v6423_v8 = vpop.f32.mrf.mxu2 }
 0x8e9   :  { %v6255_v23 = vpop.f32.mrf.mxu3  ;;  %v6312_v34 = vpop.f32.mrf.mxu0  ;;  %v6433_v10 = vadd.f32 %v6423_v8, %v6376_v56  ;;  %6524 = vmatpush.msrb.mxu3 %v6511_v0  ;;  %v6507_v8 = vld [vmem:[%s14745_s9 + $0x28] sm:$0xff]  ;;  %v9461_v0 = vld [vmem:[%s14746_s8 + $0x58] sm:$0xff]  }
 0x8ea   :  { %v6263_v51 = vadd.f32 %v6255_v23, %v6206_v6  ;;  %v6508_v6 = vld [vmem:[%s14745_s9 + $0x30] sm:$0xff] }
 0x8eb   :  { %v6438_v17 = vadd.f32 %v6433_v10, %v6432_v63  ;;  %6525 = vmatpush.msrb.mxu3 %v6510_v12  ;;  %v9290_v12 = vunpack.c.l.bf16 %v9461_v0 }
 0x8ec   :  { %v6320_v59 = vadd.f32 %v6312_v34, %v6263_v51  ;;  %v6372_v53 = vpop.f32.mrf.mxu1  ;;  %v6505_v34 = vld [vmem:[%s14745_s9 + $0x18] sm:$0xff]  ;;  %v6504_v51 = vld [vmem:[%s14745_s9 + $0x10] sm:$0xff] }
 0x8ed   :  { %6526 = vmatpush.msrb.mxu3 %v6509_v35 }
 0x8ee   :  { %v6377_v11 = vadd.f32 %v6369_v39, %v6320_v59  ;;  %v6502_v59 = vld [vmem:[%s14745_s9] sm:$0xff] }
 0x8ef   :  { %6527 = vmatpush.msrb.mxu3 %v6508_v6  ;;  %v9291_v6 = vunpack.c.h.bf16 %v9461_v0  ;;  %v9465_v0 = vld [vmem:[%s14746_s8 + $0x80] sm:$0xff]  }
 0x8f0   :  { %v6426_v28 = vpop.f32.mrf.mxu2 }
 0x8f1   :  { %v6258_v29 = vpop.f32.mrf.mxu3  ;;  %v6315_v37 = vpop.f32.mrf.mxu0  ;;  %v6434_v7 = vadd.f32 %v6426_v28, %v6377_v11  ;;  %6528 = vmatpush.msrb.mxu3 %v6507_v8  ;;  %v9462_v8 = vld [vmem:[%s14746_s8 + $0x60] sm:$0xff]  }
 0x8f2   :  { %v6264_v50 = vadd.f32 %v6258_v29, %v6207_v32 }
 0x8f3   :  { %v6439_v18 = vadd.f32 %v6438_v17, %v6434_v7  ;;  %6529 = vmatpush.msrb.mxu3 %v6506_v57 }
 0x8f4   :  { %v6321_v13 = vadd.f32 %v6315_v37, %v6264_v50 }
 0x8f5   :  { %6530 = vmatpush.msrb.mxu3 %v6505_v34  ;;  %v9294_v34 = vunpack.c.l.bf16 %v9462_v8 }
 0x8f6   :  { %v6378_v41 = vadd.f32 %v6372_v53, %v6321_v13 }
 0x8f7   :  { %6531 = vmatpush.msrb.mxu3 %v6504_v51  ;;  %v9455_v51 = vld [vmem:[%s14746_s8 + $0x10] sm:$0xff]  }
 0x8f8   :  { %v6429_v31 = vpop.f32.mrf.mxu2 }
 0x8f9   :  { %v6435_v42 = vadd.f32 %v6429_v31, %v6378_v41  ;;  %6532 = vmatpush.msrb.mxu3 %v6503_v9  ;;  %v9266_v9 = vunpack.c.l.bf16 %v9455_v51 }
 0x8fb   :  { %v6440_v54 = vadd.f32 %v6439_v18, %v6435_v42  ;;  %6533 = vmatpush.msrb.mxu3 %v6502_v59 }
 0x8fd   :  { %v6441_v52 = vrot.slane %v6440_v54, 4 }
 0x8ff   :  { %v6442_v22 = vadd.f32 %v6441_v52, %v6440_v54 }
 0x901   :  { %v6443_v43 = vrot.slane %v6442_v22, 2 }
 0x903   :  { %v6444_v44 = vadd.f32 %v6443_v43, %v6442_v22 }
 0x905   :  { %v6445_v5 = vrot.slane %v6444_v44, 1 }
 0x907   :  { %v6446_v19 = vadd.f32 %v6445_v5, %v6444_v44 }
 0x909   :  { %v6454_v61 = vmul.f32 %v6453_v16, %v6446_v19  ;;  %v9458_v19 = vld [vmem:[%s14746_s8 + $0x38] sm:$0xff]  }
 0x90b   :  { %v6455_v55 = vsub.f32 %v6432_v63, %v6454_v61  ;;  %v6456_v47 = vsub.f32 %v6433_v10, %v6454_v61  ;;  %v6457_v45 = vsub.f32 %v6434_v7, %v6454_v61  ;;  %v6458_v33 = vsub.f32 %v6435_v42, %v6454_v61  ;;  %v10232_v10 = vld [vmem:[%s14737_s10 + $0x5] ss:$0 sm:$0xff]  ;;  %v10233_v63 = vld [vmem:[%s14737_s10 + $0x6] ss:$0 sm:$0xff] }
 0x90c   :  { %v9258_v61 = vunpack.c.l.bf16 %v9257_v58 }
 0x90d   :  { %v6459_v48 = vmul.f32 %v6455_v55, %v6455_v55  ;;  %v6460_v25 = vmul.f32 %v6456_v47, %v6456_v47  ;;  %v6461_v36 = vmul.f32 %v6457_v45, %v6457_v45  ;;  %v6462_v46 = vmul.f32 %v6458_v33, %v6458_v33 }
 0x90f   :  { %v6463_v2 = vadd.f32 %v6460_v25, %v6459_v48  ;;  %v9279_v25 = vunpack.c.h.bf16 %v9458_v19 }
 0x911   :  { %v6464_v24 = vadd.f32 %v6463_v2, %v6461_v36  ;;  %v9454_v36 = vld [vmem:[%s14746_s8 + $0x8] sm:$0xff]   ;;  %v9459_v2 = vld [vmem:[%s14746_s8 + $0x40] sm:$0xff]  }
 0x912   :  { %v9262_v35 = vunpack.c.l.bf16 %v9454_v36 }
 0x913   :  { %v6465_v1 = vadd.f32 %v6464_v24, %v6462_v46  ;;  %v9282_v24 = vunpack.c.l.bf16 %v9459_v2 }
 0x915   :  { %v6466_v39 = vrot.slane %v6465_v1, 4 }
 0x917   :  { %v6467_v23 = vadd.f32 %v6466_v39, %v6465_v1  ;;  %v9457_v1 = vld [vmem:[%s14746_s8 + $0x28] sm:$0xff]   ;;  %v9263_v39 = vunpack.c.h.bf16 %v9454_v36  ;;  %v8968_v36 = vld [vmem:[%s14746_s8 + $0xd8] sm:$0xf] }
 0x918   :  { %v9274_v57 = vunpack.c.l.bf16 %v9457_v1 }
 0x919   :  { %v6468_v60 = vrot.slane %v6467_v23, 2 }
 0x91b   :  { %v6469_v15 = vadd.f32 %v6468_v60, %v6467_v23  ;;  %v9283_v23 = vunpack.c.h.bf16 %v9459_v2  ;;  %v9460_v60 = vld [vmem:[%s14746_s8 + $0x48] sm:$0xff]   ;;  %v8940_v2 = vld [vmem:[%s14746_s8 + $0xa0] sm:$0xf] }
 0x91c   :  { %v9286_v59 = vunpack.c.l.bf16 %v9460_v60 }
 0x91d   :  { %v6470_v40 = vrot.slane %v6469_v15, 1 }
 0x91f   :  { %v6471_v56 = vadd.f32 %v6470_v40, %v6469_v15  ;;  %v9275_v15 = vunpack.c.h.bf16 %v9457_v1  ;;  %v9295_v40 = vunpack.c.h.bf16 %v9462_v8  ;;  %v8955_v1 = vld [vmem:[%s14746_s8 + $0xc0] sm:$0x1]  ;;  %v8927_v8 = vld [vmem:[%s14746_s8 + $0x88] sm:$0x1] }
 0x921   :  { %v6472_v32 = vmul.f32 %v6471_v56, %v6453_v16  ;;  %v8879_v16 = vld [vmem:[%s14746_s8 + $0x1c] sm:$0xf]  ;;  %v8884_v56 = vld [vmem:[%s14746_s8 + $0x30] sm:$0xf] }
 0x922   :  { %v6647_v27 = vunpack.c.l.bf16 %v8879_v16 }
 0x923   :  { %v6473_v28 = vadd.f32 1e-05, %v6472_v32  ;;  %v8912_v32 = vld [vmem:[%s14746_s8 + $0x68] sm:$0xf] }
 0x925   :  { %10245 = vrsqrt.f32 %v6473_v28  ;;  %vm6480_vm5 = vweird.f32 %v6473_v28 }
 0x92b   :  { %v10246_v14 = vpop.eup %10245 }
 0x92c   :  { %v6475_v11 = vmul.f32 %v10246_v14, %v6473_v28  ;;  %vm6481_vm3 = vweird.f32 %v10246_v14  ;;  %v9267_v28 = vunpack.c.h.bf16 %v9455_v51 }
 0x92d   :  { %vm6482_vm6 = vmor %vm6480_vm5, %vm6481_vm3 }
 0x92e   :  { %v6476_v29 = vmul.f32 %v10246_v14, %v6475_v11  ;;  %v9287_v11 = vunpack.c.h.bf16 %v9460_v60 }
 0x930   :  { %v6477_v37 = vmul.f32 0.5, %v6476_v29  ;;  %v6834_v29 = vunpack.c.l.bf16 %v8912_v32 }
 0x932   :  { %v6478_v50 = vsub.f32 1.5, %v6477_v37  ;;  %v6555_v37 = vld [vmem:[%s14746_s8 + $0x18] sm:$0x1] }
 0x934   :  { %v6479_v62 = vmul.f32 %v10246_v14, %v6478_v50  ;;  %v8885_v50 = vld [vmem:[%s14746_s8 + $0x34] sm:$0x1] }
 0x936   :  { %v6483_v53 = vsel %vm6482_vm6, %v10246_v14, %v6479_v62  ;;  %v6652_v14 = vunpack.c.l.bf16 %v8884_v56  ;;  %v8899_v62 = vld [vmem:[%s14746_s8 + $0x50] sm:$0x1] }
 0x937   :  { %v6484_v13 = vmul.f32 %v6483_v53, %v6455_v55  ;;  %v6485_v41 = vmul.f32 %v6483_v53, %v6456_v47  ;;  %v6486_v42 = vmul.f32 %v6483_v53, %v6457_v45  ;;  %v6487_v52 = vmul.f32 %v6483_v53, %v6458_v33  ;;  %v9456_v45 = vld [vmem:[%s14746_s8 + $0x20] sm:$0xff]  }
 0x938   :  { %v9278_v55 = vunpack.c.l.bf16 %v9458_v19  ;;  %v6829_v47 = vunpack.c.l.bf16 %v8907_v4  ;;  %v9259_v33 = vunpack.c.h.bf16 %v9257_v58  ;;  %v9270_v48 = vunpack.c.l.bf16 %v9456_v45  ;;  %v9472_v19 = vld [vmem:[%s14746_s8 + $0xd0] sm:$0xff]   ;;  %v9467_v4 = vld [vmem:[%s14746_s8 + $0x98] sm:$0xff]  }
 0x939   :  { %v6489_v7 = vmul.f32 %v10232_v10, %v6484_v13  ;;  %v6490_v31 = vmul.f32 %v10232_v10, %v6485_v41  ;;  %v6491_v54 = vmul.f32 %v10232_v10, %v6486_v42  ;;  %v6492_v30 = vmul.f32 %v10232_v10, %v6487_v52  ;;  %v8913_v10 = vld [vmem:[%s14746_s8 + $0x6c] sm:$0x1]  ;;  %v9463_v41 = vld [vmem:[%s14746_s8 + $0x70] sm:$0xff]  }
 0x93a   :  { %v9271_v46 = vunpack.c.h.bf16 %v9456_v45  ;;  %v6562_v53 = vunpack.c.l.bf16 %v6555_v37  ;;  %v6653_v13 = vunpack.c.l.bf16 %v8885_v50  ;;  %v9471_v52 = vld [vmem:[%s14746_s8 + $0xc8] sm:$0xff]   ;;  %v9470_v45 = vld [vmem:[%s14746_s8 + $0xb8] sm:$0xff]  }
 0x93b   :  { %v6494_v3 = vadd.f32 %v10233_v63, %v6489_v7  ;;  %v6495_v18 = vadd.f32 %v10233_v63, %v6490_v31  ;;  %v6496_v21 = vadd.f32 %v10233_v63, %v6491_v54  ;;  %v6497_v43 = vadd.f32 %v10233_v63, %v6492_v30  ;;  %v8963_v31 = vld [vmem:[%s14746_s8 + $0xc4] sm:$0xf] }
 0x93c   :  { %v6744_v63 = vunpack.c.l.bf16 %v8899_v62  ;;  %v6835_v7 = vunpack.c.l.bf16 %v8913_v10  ;;  %v7193_v54 = vunpack.c.l.bf16 %v8963_v31  ;;  %v9299_v30 = vunpack.c.h.bf16 %v9463_v41 }
 0x93d   :  { %v6498_v17 = vmax.f32 %v6494_v3, 0.0  ;;  %v6499_v20 = vmax.f32 %v6495_v18, 0.0  ;;  %v6500_v22 = vmax.f32 %v6496_v21, 0.0  ;;  %v6501_v26 = vmax.f32 %v6497_v43, 0.0  ;;  %v8935_v3 = vld [vmem:[%s14746_s8 + $0x8c] sm:$0xf] }
 0x93e   :  { %v9298_v18 = vunpack.c.l.bf16 %v9463_v41  ;;  %v7011_v42 = vunpack.c.l.bf16 %v8935_v3  ;;  %v9466_v21 = vld [vmem:[%s14746_s8 + $0x90] sm:$0xff]   ;;  %v9330_v43 = vunpack.c.l.bf16 %v9471_v52  ;;  %v9331_v16 = vunpack.c.h.bf16 %v9471_v52  ;;  %v9482_v52 = vld [vmem:[%s14746_s8 + $0x140] sm:$0xff]  }
 0x93f   :  { %6534 = vmatmul.f32.vlgmr.msrb.gmra.mxu3 %v6498_v17  ;;  %v9468_v17 = vld [vmem:[%s14746_s8 + $0xa8] sm:$0xff]  }
 0x947   :  { %6537 = vmatmul.f32.gmra.mxu3 %v6499_v20  ;;  %v9318_v20 = vunpack.c.l.bf16 %v9468_v17 }
 0x94f   :  { %6540 = vmatmul.f32.gmra.mxu3 %v6500_v22  ;;  %v9319_v22 = vunpack.c.h.bf16 %v9468_v17 }
 0x957   :  { %6543 = vmatmul.f32.gmra.mxu3 %v6501_v26  ;;  %v9310_v26 = vunpack.c.l.bf16 %v9466_v21 }
 0x9c2   :  { %v13950_v49 = vpop.f32.mrf.mxu3 }
 0x9ca   :  { %v13952_v44 = vpop.f32.mrf.mxu3 }
 0x9d2   :  { %v13954_v38 = vpop.f32.mrf.mxu3 }
 0x9da   :  { %v13956_v5 = vpop.f32.mrf.mxu3 }
 0x9db   :  { %6596 = vmatpush.msrb.mxu0 %v13956_v5  ;;  %6687 = vmatpush.msra.mxu1 %v13956_v5 }
 0x9dc   :  { %6778 = vmatpush.msra.mxu2 %v13956_v5  ;;  %6869 = vmatpush.msra.mxu3 %v13956_v5 }
 0x9dd   :  { %6597 = vmatpush.msrb.mxu0 %v13954_v38  ;;  %6688 = vmatpush.msra.mxu1 %v13954_v38 }
 0x9de   :  { %6779 = vmatpush.msra.mxu2 %v13954_v38  ;;  %6870 = vmatpush.msra.mxu3 %v13954_v38 }
 0x9df   :  { %6598 = vmatpush.msrb.mxu0 %v13952_v44  ;;  %6689 = vmatpush.msra.mxu1 %v13952_v44 }
 0x9e0   :  { %6780 = vmatpush.msra.mxu2 %v13952_v44  ;;  %6871 = vmatpush.msra.mxu3 %v13952_v44 }
 0x9e1   :  { %6599 = vmatpush.msrb.mxu0 %v13950_v49  ;;  %6690 = vmatpush.msra.mxu1 %v13950_v49 }
 0x9e2   :  { %6781 = vmatpush.msra.mxu2 %v13950_v49  ;;  %6872 = vmatpush.msra.mxu3 %v13950_v49 }
 0x9e3   :  { %8872 = vmatmul.msk.f32.vlgmr.msrb.gmra.mxu0 %vm3491_vm4, %v9258_v61  ;;  %8886 = vmatmul.msk.f32.vlgmr.msra.gmra.mxu1 %vm3491_vm4, %v6647_v27 }
 0x9e4   :  { %8900 = vmatmul.msk.f32.vlgmr.msra.gmra.mxu2 %vm3491_vm4, %v9278_v55  ;;  %8914 = vmatmul.msk.f32.vlgmr.msra.gmra.mxu3 %vm3491_vm4, %v6829_v47  ;;  %v9334_v55 = vunpack.c.l.bf16 %v9472_v19  ;;  %v9314_v47 = vunpack.c.l.bf16 %v9467_v4 }
 0x9e5   :  { %6960 = vmatpush.msra.mxu0 %v13956_v5  ;;  %7051 = vmatpush.msrb.mxu1 %v13956_v5 }
 0x9e6   :  { %7142 = vmatpush.msrb.mxu2 %v13956_v5  ;;  %7233 = vmatpush.msrb.mxu3 %v13956_v5 }
 0x9e7   :  { %6961 = vmatpush.msra.mxu0 %v13954_v38  ;;  %7052 = vmatpush.msrb.mxu1 %v13954_v38 }
 0x9e8   :  { %7143 = vmatpush.msrb.mxu2 %v13954_v38  ;;  %7234 = vmatpush.msrb.mxu3 %v13954_v38 }
 0x9e9   :  { %6962 = vmatpush.msra.mxu0 %v13952_v44  ;;  %7053 = vmatpush.msrb.mxu1 %v13952_v44 }
 0x9ea   :  { %7144 = vmatpush.msrb.mxu2 %v13952_v44  ;;  %7235 = vmatpush.msrb.mxu3 %v13952_v44 }
 0x9eb   :  { %6963 = vmatpush.msra.mxu0 %v13950_v49  ;;  %7054 = vmatpush.msrb.mxu1 %v13950_v49 }
 0x9ec   :  { %7145 = vmatpush.msrb.mxu2 %v13950_v49  ;;  %7236 = vmatpush.msrb.mxu3 %v13950_v49 }
 0x9ed   :  { %7324 = vmatpush.msrb.mxu0 %v13956_v5  ;;  %7415 = vmatpush.msra.mxu1 %v13956_v5 }
 0x9ee   :  { %7506 = vmatpush.msra.mxu2 %v13956_v5  ;;  %7597 = vmatpush.msra.mxu3 %v13956_v5 }
 0x9ef   :  { %8873 = vmatmul.msk.f32.gmra.mxu0 %vm3491_vm4, %v9259_v33  ;;  %8887 = vmatmul.msk.f32.gmra.mxu1 %vm3491_vm4, %v9270_v48  ;;  %v9326_v33 = vunpack.c.l.bf16 %v9470_v45  ;;  %v9306_v48 = vunpack.c.l.bf16 %v9465_v0 }
 0x9f0   :  { %8901 = vmatmul.msk.f32.gmra.mxu2 %vm3491_vm4, %v9279_v25  ;;  %8915 = vmatmul.msk.f32.gmra.mxu3 %vm3491_vm4, %v9290_v12  ;;  %v9335_v25 = vunpack.c.h.bf16 %v9472_v19  ;;  %v9315_v12 = vunpack.c.h.bf16 %v9467_v4 }
 0x9f1   :  { %7325 = vmatpush.msrb.mxu0 %v13954_v38  ;;  %7416 = vmatpush.msra.mxu1 %v13954_v38 }
 0x9f2   :  { %7507 = vmatpush.msra.mxu2 %v13954_v38  ;;  %7598 = vmatpush.msra.mxu3 %v13954_v38 }
 0x9f3   :  { %7326 = vmatpush.msrb.mxu0 %v13952_v44  ;;  %7417 = vmatpush.msra.mxu1 %v13952_v44 }
 0x9f4   :  { %7508 = vmatpush.msra.mxu2 %v13952_v44  ;;  %7599 = vmatpush.msra.mxu3 %v13952_v44 }
 0x9f5   :  { %7327 = vmatpush.msrb.mxu0 %v13950_v49  ;;  %7418 = vmatpush.msra.mxu1 %v13950_v49 }
 0x9f6   :  { %7509 = vmatpush.msra.mxu2 %v13950_v49  ;;  %7600 = vmatpush.msra.mxu3 %v13950_v49 }
 0x9f7   :  { %8874 = vmatmul.msk.f32.gmra.mxu0 %vm3491_vm4, %v9262_v35  ;;  %8888 = vmatmul.msk.f32.gmra.mxu1 %vm3491_vm4, %v9271_v46  ;;  %v9327_v35 = vunpack.c.h.bf16 %v9470_v45  ;;  %v9307_v46 = vunpack.c.h.bf16 %v9465_v0 }
 0x9f8   :  { %8902 = vmatmul.msk.f32.gmra.mxu2 %vm3491_vm4, %v9282_v24  ;;  %8916 = vmatmul.msk.f32.gmra.mxu3 %vm3491_vm4, %v9291_v6  ;;  %v7198_v24 = vunpack.c.l.bf16 %v8968_v36  ;;  %v7016_v6 = vunpack.c.l.bf16 %v8940_v2 }
 0x9ff   :  { %8875 = vmatmul.msk.f32.gmra.mxu0 %vm3491_vm4, %v9263_v39  ;;  %8889 = vmatmul.msk.f32.gmra.mxu1 %vm3491_vm4, %v9274_v57  ;;  %v8969_v39 = vld [vmem:[%s14746_s8 + $0xdc] sm:$0x1]  ;;  %v8941_v57 = vld [vmem:[%s14746_s8 + $0xa4] sm:$0x1] }
 0xa00   :  { %8903 = vmatmul.msk.f32.gmra.mxu2 %vm3491_vm4, %v9283_v23  ;;  %8917 = vmatmul.msk.f32.gmra.mxu3 %vm3491_vm4, %v9294_v34  ;;  %v7108_v23 = vunpack.c.l.bf16 %v8955_v1  ;;  %v6926_v34 = vunpack.c.l.bf16 %v8927_v8  ;;  %v7199_v51 = vunpack.c.l.bf16 %v8969_v39  ;;  %v7017_v60 = vunpack.c.l.bf16 %v8941_v57  ;;  %v9024_v1 = vld [vmem:[%s14746_s8 + $0x148] sm:$0xf]  ;;  %v8996_v8 = vld [vmem:[%s14746_s8 + $0x110] sm:$0xf] }
 0xa07   :  { %8876 = vmatmul.msk.f32.gmra.mxu0 %vm3491_vm4, %v9266_v9  ;;  %8890 = vmatmul.msk.f32.gmra.mxu1 %vm3491_vm4, %v9275_v15  ;;  %v9478_v9 = vld [vmem:[%s14746_s8 + $0x118] sm:$0xff]   ;;  %v9473_v15 = vld [vmem:[%s14746_s8 + $0xe0] sm:$0xff]  }
 0xa08   :  { %8904 = vmatmul.msk.f32.gmra.mxu2 %vm3491_vm4, %v9286_v59  ;;  %8918 = vmatmul.msk.f32.gmra.mxu3 %vm3491_vm4, %v9295_v40  ;;  %v9019_v59 = vld [vmem:[%s14746_s8 + $0x134] sm:$0xf]  ;;  %v8991_v40 = vld [vmem:[%s14746_s8 + $0xfc] sm:$0xf]  ;;  %v9358_v56 = vunpack.c.l.bf16 %v9478_v9  ;;  %v9338_v32 = vunpack.c.l.bf16 %v9473_v15  ;;  %v9359_v37 = vunpack.c.h.bf16 %v9478_v9  ;;  %v9339_v50 = vunpack.c.h.bf16 %v9473_v15 }
 0xa09   :  { %v7562_v15 = vunpack.c.l.bf16 %v9024_v1  ;;  %v9486_v1 = vld [vmem:[%s14746_s8 + $0x170] sm:$0xff]  }
 0xa0f   :  { %8877 = vmatmul.msk.f32.gmra.mxu0 %vm3491_vm4, %v9267_v28  ;;  %8891 = vmatmul.msk.f32.gmra.mxu1 %vm3491_vm4, %v6652_v14  ;;  %v7557_v28 = vunpack.c.l.bf16 %v9019_v59  ;;  %v7375_v14 = vunpack.c.l.bf16 %v8991_v40  ;;  %v7380_v59 = vunpack.c.l.bf16 %v8996_v8 }
 0xa10   :  { %8905 = vmatmul.msk.f32.gmra.mxu2 %vm3491_vm4, %v9287_v11  ;;  %8919 = vmatmul.msk.f32.gmra.mxu3 %vm3491_vm4, %v6834_v29  ;;  %v9481_v11 = vld [vmem:[%s14746_s8 + $0x138] sm:$0xff]   ;;  %v9476_v29 = vld [vmem:[%s14746_s8 + $0x100] sm:$0xff]  }
 0xa11   :  { %v9370_v62 = vunpack.c.l.bf16 %v9481_v11  ;;  %v9350_v10 = vunpack.c.l.bf16 %v9476_v29  ;;  %v9371_v17 = vunpack.c.h.bf16 %v9481_v11  ;;  %v9351_v31 = vunpack.c.h.bf16 %v9476_v29 }
 0xa17   :  { %8878 = vmatmul.msk.f32.gmra.mxu0 %vm3491_vm4, %v6562_v53  ;;  %8892 = vmatmul.msk.f32.gmra.mxu1 %vm3491_vm4, %v6653_v13  ;;  %v9479_v13 = vld [vmem:[%s14746_s8 + $0x120] sm:$0xff]  }
 0xa18   :  { %8906 = vmatmul.msk.f32.gmra.mxu2 %vm3491_vm4, %v6744_v63  ;;  %8920 = vmatmul.msk.f32.gmra.mxu3 %vm3491_vm4, %v6835_v7  ;;  %v9474_v7 = vld [vmem:[%s14746_s8 + $0xe8] sm:$0xff]   ;;  %v9362_v41 = vunpack.c.l.bf16 %v9479_v13 }
 0xa19   :  { %v9342_v3 = vunpack.c.l.bf16 %v9474_v7 }
 0xa1f   :  { %8928 = vmatmul.msk.f32.vlgmr.msra.gmra.mxu0 %vm3491_vm4, %v9298_v18  ;;  %8942 = vmatmul.msk.f32.vlgmr.msrb.gmra.mxu1 %vm3491_vm4, %v7011_v42  ;;  %v6547_v18 = vlaneseq }
 0xa20   :  { %8956 = vmatmul.msk.f32.vlgmr.msrb.gmra.mxu2 %vm3491_vm4, %v9318_v20  ;;  %8970 = vmatmul.msk.f32.vlgmr.msrb.gmra.mxu3 %vm3491_vm4, %v7193_v54 }
 0xa21   :  { %7688 = vmatpush.msra.mxu0 %v13956_v5  ;;  %7779 = vmatpush.msrb.mxu1 %v13956_v5  ;;  %v14230_v54 = vand.u32 127, %v6547_v18 }
 0xa22   :  { %7870 = vmatpush.msrb.mxu2 %v13956_v5  ;;  %7961 = vmatpush.msrb.mxu3 %v13956_v5 }
 0xa23   :  { %7689 = vmatpush.msra.mxu0 %v13954_v38  ;;  %7780 = vmatpush.msrb.mxu1 %v13954_v38  ;;  %vm6622_vm7 = vcmp.eq.s32.totalorder %v14230_v54, 0  ;;  %vm6713_vm8 = vcmp.eq.s32.totalorder %v14230_v54, 1  ;;  %vm6804_vm9 = vcmp.eq.s32.totalorder %v14230_v54, 2  ;;  %vm6895_vm10 = vcmp.eq.s32.totalorder %v14230_v54, 3 }
 0xa24   :  { %7871 = vmatpush.msrb.mxu2 %v13954_v38  ;;  %7962 = vmatpush.msrb.mxu3 %v13954_v38  ;;  %v9464_v38 = vld [vmem:[%s14746_s8 + $0x78] sm:$0xff]   ;;  %vm6986_vm11 = vcmp.eq.s32.totalorder %v14230_v54, 4  ;;  %vm7077_vm12 = vcmp.eq.s32.totalorder %v14230_v54, 5  ;;  %vm7168_vm13 = vcmp.eq.s32.totalorder %v14230_v54, 6  ;;  %vm7259_vm14 = vcmp.eq.s32.totalorder %v14230_v54, 7 }
 0xa25   :  { %7690 = vmatpush.msra.mxu0 %v13952_v44  ;;  %7781 = vmatpush.msrb.mxu1 %v13952_v44  ;;  %v9302_v58 = vunpack.c.l.bf16 %v9464_v38  ;;  %v9303_v27 = vunpack.c.h.bf16 %v9464_v38  ;;  %vm7441_vm15 = vcmp.eq.s32.totalorder %v14230_v54, 9  ;;  %vm7532_vm0 = vcmp.eq.s32.totalorder %v14230_v54, 10 }
 0xa26   :  { %7872 = vmatpush.msrb.mxu2 %v13952_v44  ;;  %7963 = vmatpush.msrb.mxu3 %v13952_v44  ;;  %v9469_v44 = vld [vmem:[%s14746_s8 + $0xb0] sm:$0xff]   ;;  %vm7623_vm2 = vcmp.eq.s32.totalorder %v14230_v54, 11  ;;  %vm7714_vm3 = vcmp.eq.s32.totalorder %v14230_v54, 12  ;;  %vm7805_vm5 = vcmp.eq.s32.totalorder %v14230_v54, 13  ;;  %vm7896_vm6 = vcmp.eq.s32.totalorder %v14230_v54, 14 }
 0xa27   :  { %7691 = vmatpush.msra.mxu0 %v13950_v49  ;;  %7782 = vmatpush.msrb.mxu1 %v13950_v49  ;;  %v9322_v5 = vunpack.c.l.bf16 %v9469_v44  ;;  %v9323_v61 = vunpack.c.h.bf16 %v9469_v44  ;;  %v9374_v44 = vunpack.c.l.bf16 %v9482_v52 }
 0xa28   :  { %7873 = vmatpush.msrb.mxu2 %v13950_v49  ;;  %7964 = vmatpush.msrb.mxu3 %v13950_v49  ;;  %v9311_v49 = vunpack.c.h.bf16 %v9466_v21  ;;  %v9477_v21 = vld [vmem:[%s14746_s8 + $0x108] sm:$0xff]  }
 0xa29   :  { %8957 = vmatmul.msk.f32.gmra.mxu2 %vm3491_vm4, %v9319_v22  ;;  %8929 = vmatmul.msk.f32.gmra.mxu0 %vm3491_vm4, %v9299_v30  ;;  %v9354_v38 = vunpack.c.l.bf16 %v9477_v21 }
 0xa2a   :  { %8971 = vmatmul.msk.f32.gmra.mxu3 %vm3491_vm4, %v9330_v43  ;;  %8943 = vmatmul.msk.f32.gmra.mxu1 %vm3491_vm4, %v9310_v26  ;;  %v9363_v43 = vunpack.c.h.bf16 %v9479_v13  ;;  %v9343_v26 = vunpack.c.h.bf16 %v9474_v7 }
 0xa31   :  { %8958 = vmatmul.msk.f32.gmra.mxu2 %vm3491_vm4, %v9322_v5  ;;  %8930 = vmatmul.msk.f32.gmra.mxu0 %vm3491_vm4, %v9302_v58 }
 0xa32   :  { %8972 = vmatmul.msk.f32.gmra.mxu3 %vm3491_vm4, %v9331_v16  ;;  %8944 = vmatmul.msk.f32.gmra.mxu1 %vm3491_vm4, %v9311_v49  ;;  %v9480_v16 = vld [vmem:[%s14746_s8 + $0x128] sm:$0xff]   ;;  %v9475_v49 = vld [vmem:[%s14746_s8 + $0xf0] sm:$0xff]  }
 0xa33   :  { %v9347_v9 = vunpack.c.h.bf16 %v9475_v49 }
 0xa39   :  { %8959 = vmatmul.msk.f32.gmra.mxu2 %vm3491_vm4, %v9323_v61  ;;  %8931 = vmatmul.msk.f32.gmra.mxu0 %vm3491_vm4, %v9303_v27 }
 0xa3a   :  { %8973 = vmatmul.msk.f32.gmra.mxu3 %vm3491_vm4, %v9334_v55  ;;  %8945 = vmatmul.msk.f32.gmra.mxu1 %vm3491_vm4, %v9314_v47 }
 0xa41   :  { %8960 = vmatmul.msk.f32.gmra.mxu2 %vm3491_vm4, %v9326_v33  ;;  %8932 = vmatmul.msk.f32.gmra.mxu0 %vm3491_vm4, %v9306_v48  ;;  %v9366_v33 = vunpack.c.l.bf16 %v9480_v16  ;;  %v9346_v48 = vunpack.c.l.bf16 %v9475_v49 }
 0xa42   :  { %8974 = vmatmul.msk.f32.gmra.mxu3 %vm3491_vm4, %v9335_v25  ;;  %8946 = vmatmul.msk.f32.gmra.mxu1 %vm3491_vm4, %v9315_v12  ;;  %v9375_v25 = vunpack.c.h.bf16 %v9482_v52  ;;  %v9355_v12 = vunpack.c.h.bf16 %v9477_v21 }
 0xa49   :  { %8961 = vmatmul.msk.f32.gmra.mxu2 %vm3491_vm4, %v9327_v35  ;;  %8933 = vmatmul.msk.f32.gmra.mxu0 %vm3491_vm4, %v9307_v46 }
 0xa4a   :  { %8975 = vmatmul.msk.f32.gmra.mxu3 %vm3491_vm4, %v7198_v24  ;;  %8947 = vmatmul.msk.f32.gmra.mxu1 %vm3491_vm4, %v7016_v6 }
 0xa51   :  { %8962 = vmatmul.msk.f32.gmra.mxu2 %vm3491_vm4, %v7108_v23  ;;  %8934 = vmatmul.msk.f32.gmra.mxu0 %vm3491_vm4, %v6926_v34 }
 0xa52   :  { %8976 = vmatmul.msk.f32.gmra.mxu3 %vm3491_vm4, %v7199_v51  ;;  %8948 = vmatmul.msk.f32.gmra.mxu1 %vm3491_vm4, %v7017_v60  ;;  %v9367_v60 = vunpack.c.h.bf16 %v9480_v16  ;;  %v9047_v16 = vld [vmem:[%s14746_s8 + $0x16c] sm:$0xf] }
 0xa59   :  { %9012 = vmatmul.msk.f32.vlgmr.msra.gmra.mxu2 %vm3491_vm4, %v9358_v56  ;;  %8984 = vmatmul.msk.f32.vlgmr.msrb.gmra.mxu0 %vm3491_vm4, %v9338_v32 }
 0xa5a   :  { %9026 = vmatmul.msk.f32.vlgmr.msra.gmra.mxu3 %vm3491_vm4, %v7557_v28  ;;  %8998 = vmatmul.msk.f32.vlgmr.msra.gmra.mxu1 %vm3491_vm4, %v7375_v14  ;;  %v9011_v28 = vld [vmem:[%s14746_s8 + $0x130] sm:$0x1]  ;;  %v8983_v14 = vld [vmem:[%s14746_s8 + $0xf8] sm:$0x1] }
 0xa5b   :  { %v7290_v52 = vunpack.c.l.bf16 %v8983_v14 }
 0xa60   :  { %v14212_v53 = vpop.f32.mrf.mxu0  ;;  %v14217_v63 = vpop.f32.mrf.mxu1 }
 0xa61   :  { %9013 = vmatmul.msk.f32.gmra.mxu2 %vm3491_vm4, %v9359_v37  ;;  %8985 = vmatmul.msk.f32.gmra.mxu0 %vm3491_vm4, %v9339_v50  ;;  %v9025_v50 = vld [vmem:[%s14746_s8 + $0x14c] sm:$0x1] }
 0xa62   :  { %9027 = vmatmul.msk.f32.gmra.mxu3 %vm3491_vm4, %v9370_v62  ;;  %8999 = vmatmul.msk.f32.gmra.mxu1 %vm3491_vm4, %v9350_v10  ;;  %v8997_v62 = vld [vmem:[%s14746_s8 + $0x114] sm:$0x1] }
 0xa67   :  { %v14224_v42 = vpop.f32.mrf.mxu2  ;;  %v14226_v20 = vpop.f32.mrf.mxu3 }
 0xa68   :  { %v6807_v8 = vsel %vm6804_vm9, %v14224_v42, 0.0  ;;  %v6898_v14 = vsel %vm6895_vm10, %v14226_v20, 0.0  ;;  %v9484_v20 = vld [vmem:[%s14746_s8 + $0x158] sm:$0xff]  }
 0xa69   :  { %9014 = vmatmul.msk.f32.gmra.mxu2 %vm3491_vm4, %v9362_v41  ;;  %8986 = vmatmul.msk.f32.gmra.mxu0 %vm3491_vm4, %v9342_v3  ;;  %v7472_v41 = vunpack.c.l.bf16 %v9011_v28 }
 0xa6a   :  { %9028 = vmatmul.msk.f32.gmra.mxu3 %vm3491_vm4, %v9371_v17  ;;  %9000 = vmatmul.msk.f32.gmra.mxu1 %vm3491_vm4, %v9351_v31 }
 0xa6c   :  { %v6604_v22 = vpop.f32.mrf.mxu0  ;;  %v6695_v30 = vpop.f32.mrf.mxu1 }
 0xa6d   :  { %v6626_v5 = vsel %vm6622_vm7, %v6604_v22, 0.0  ;;  %v6717_v58 = vsel %vm6713_vm8, %v6695_v30, 0.0  ;;  %v7563_v22 = vunpack.c.l.bf16 %v9025_v50  ;;  %v7381_v30 = vunpack.c.l.bf16 %v8997_v62 }
 0xa6e   :  { %v6724_v19 = vadd.f32 %v6717_v58, %v6626_v5  ;;  %v9075_v58 = vld [vmem:[%s14746_s8 + $0x1a4] sm:$0xf] }
 0xa71   :  { %9015 = vmatmul.msk.f32.gmra.mxu2 %vm3491_vm4, %v9363_v43  ;;  %8987 = vmatmul.msk.f32.gmra.mxu0 %vm3491_vm4, %v9343_v26  ;;  %v9488_v26 = vld [vmem:[%s14746_s8 + $0x188] sm:$0xff]  }
 0xa72   :  { %9029 = vmatmul.msk.f32.gmra.mxu3 %vm3491_vm4, %v9374_v44  ;;  %9001 = vmatmul.msk.f32.gmra.mxu1 %vm3491_vm4, %v9354_v38  ;;  %v9483_v44 = vld [vmem:[%s14746_s8 + $0x150] sm:$0xff]  }
 0xa73   :  { %v6786_v4 = vpop.f32.mrf.mxu2  ;;  %v6877_v61 = vpop.f32.mrf.mxu3 }
 0xa74   :  { %v6808_v27 = vsel %vm6804_vm9, %v6786_v4, 0.0  ;;  %v6899_v55 = vsel %vm6895_vm10, %v6877_v61, 0.0  ;;  %v6607_v47 = vpop.f32.mrf.mxu0  ;;  %v6698_v45 = vpop.f32.mrf.mxu1  ;;  %v9398_v61 = vunpack.c.l.bf16 %v9488_v26 }
 0xa75   :  { %v6815_v0 = vadd.f32 %v6808_v27, %v6724_v19  ;;  %v6627_v2 = vsel %vm6622_vm7, %v6607_v47, 0.0  ;;  %v6718_v35 = vsel %vm6713_vm8, %v6698_v45, 0.0 }
 0xa76   :  { %v6725_v46 = vadd.f32 %v6718_v35, %v6627_v2  ;;  %v6625_v2 = vsel %vm6622_vm7, %v14212_v53, 0.0  ;;  %v6716_v35 = vsel %vm6713_vm8, %v14217_v63, 0.0 }
 0xa77   :  { %v14260_v36 = vadd.f32 %v6899_v55, %v6815_v0  ;;  %v9378_v0 = vunpack.c.l.bf16 %v9483_v44 }
 0xa79   :  { %9016 = vmatmul.msk.f32.gmra.mxu2 %vm3491_vm4, %v9366_v33  ;;  %8988 = vmatmul.msk.f32.gmra.mxu0 %vm3491_vm4, %v9346_v48  ;;  %v7921_v48 = vunpack.c.l.bf16 %v9075_v58  ;;  %v9487_v58 = vld [vmem:[%s14746_s8 + $0x178] sm:$0xff]  }
 0xa7a   :  { %9030 = vmatmul.msk.f32.gmra.mxu3 %vm3491_vm4, %v9375_v25  ;;  %9002 = vmatmul.msk.f32.gmra.mxu1 %vm3491_vm4, %v9355_v12  ;;  %v7739_v25 = vunpack.c.l.bf16 %v9047_v16 }
 0xa7b   :  { %v6789_v24 = vpop.f32.mrf.mxu2  ;;  %v6880_v6 = vpop.f32.mrf.mxu3 }
 0xa7c   :  { %v6809_v39 = vsel %vm6804_vm9, %v6789_v24, 0.0  ;;  %v6900_v57 = vsel %vm6895_vm10, %v6880_v6, 0.0  ;;  %v6610_v23 = vpop.f32.mrf.mxu0  ;;  %v6701_v34 = vpop.f32.mrf.mxu1  ;;  %v9491_v6 = vld [vmem:[%s14746_s8 + $0x1a8] sm:$0xff]  }
 0xa7d   :  { %v6816_v51 = vadd.f32 %v6809_v39, %v6725_v46  ;;  %v6628_v56 = vsel %vm6622_vm7, %v6610_v23, 0.0  ;;  %v6719_v32 = vsel %vm6713_vm8, %v6701_v34, 0.0  ;;  %v9410_v42 = vunpack.c.l.bf16 %v9491_v6 }
 0xa7e   :  { %v6726_v11 = vadd.f32 %v6719_v32, %v6628_v56  ;;  %v9390_v56 = vunpack.c.l.bf16 %v9486_v1 }
 0xa7f   :  { %v14280_v40 = vadd.f32 %v6900_v57, %v6816_v51  ;;  %v9399_v57 = vunpack.c.h.bf16 %v9488_v26 }
 0xa81   :  { %9017 = vmatmul.msk.f32.gmra.mxu2 %vm3491_vm4, %v9367_v60  ;;  %8989 = vmatmul.msk.f32.gmra.mxu0 %vm3491_vm4, %v9347_v9  ;;  %v9379_v9 = vunpack.c.h.bf16 %v9483_v44 }
 0xa82   :  { %9031 = vmatmul.msk.f32.gmra.mxu3 %vm3491_vm4, %v7562_v15  ;;  %9003 = vmatmul.msk.f32.gmra.mxu1 %vm3491_vm4, %v7380_v59  ;;  %v6723_v15 = vadd.f32 %v6716_v35, %v6625_v2  ;;  %v9490_v35 = vld [vmem:[%s14746_s8 + $0x198] sm:$0xff]  }
 0xa83   :  { %v6792_v29 = vpop.f32.mrf.mxu2  ;;  %v6883_v37 = vpop.f32.mrf.mxu3 }
 0xa84   :  { %v6810_v10 = vsel %vm6804_vm9, %v6792_v29, 0.0  ;;  %v6901_v13 = vsel %vm6895_vm10, %v6883_v37, 0.0  ;;  %v6613_v7 = vpop.f32.mrf.mxu0  ;;  %v6704_v3 = vpop.f32.mrf.mxu1  ;;  %v6814_v28 = vadd.f32 %v6807_v8, %v6723_v15 }
 0xa85   :  { %v6817_v17 = vadd.f32 %v6810_v10, %v6726_v11  ;;  %v6629_v31 = vsel %vm6622_vm7, %v6613_v7, 0.0  ;;  %v6720_v18 = vsel %vm6713_vm8, %v6704_v3, 0.0  ;;  %v9489_v11 = vld [vmem:[%s14746_s8 + $0x190] sm:$0xff]  }
 0xa86   :  { %v6727_v21 = vadd.f32 %v6720_v18, %v6629_v31  ;;  %v6905_v50 = vadd.f32 %v6898_v14, %v6814_v28  ;;  %v9402_v7 = vunpack.c.l.bf16 %v9489_v11  ;;  %v9382_v18 = vunpack.c.l.bf16 %v9484_v20 }
 0xa87   :  { %v14310_v43 = vadd.f32 %v6901_v13, %v6817_v17 }
 0xa89   :  { %9018 = vmatmul.msk.f32.gmra.mxu2 %vm3491_vm4, %v7472_v41  ;;  %8990 = vmatmul.msk.f32.gmra.mxu0 %vm3491_vm4, %v7290_v52 }
 0xa8a   :  { %9032 = vmatmul.msk.f32.gmra.mxu3 %vm3491_vm4, %v7563_v22  ;;  %9004 = vmatmul.msk.f32.gmra.mxu1 %vm3491_vm4, %v7381_v30  ;;  %v9391_v22 = vunpack.c.h.bf16 %v9486_v1  ;;  %v9406_v1 = vunpack.c.l.bf16 %v9490_v35 }
 0xa8b   :  { %v6795_v38 = vpop.f32.mrf.mxu2  ;;  %v6886_v5 = vpop.f32.mrf.mxu3 }
 0xa8c   :  { %v6811_v49 = vsel %vm6804_vm9, %v6795_v38, 0.0  ;;  %v6902_v19 = vsel %vm6895_vm10, %v6886_v5, 0.0  ;;  %v6616_v4 = vpop.f32.mrf.mxu0  ;;  %v6707_v27 = vpop.f32.mrf.mxu1  ;;  %v9492_v5 = vld [vmem:[%s14746_s8 + $0x1b0] sm:$0xff]  }
 0xa8d   :  { %v6818_v55 = vadd.f32 %v6811_v49, %v6727_v21  ;;  %v6630_v47 = vsel %vm6622_vm7, %v6616_v4, 0.0  ;;  %v6721_v45 = vsel %vm6713_vm8, %v6707_v27, 0.0  ;;  %v9411_v21 = vunpack.c.h.bf16 %v9491_v6 }
 0xa8e   :  { %v6728_v33 = vadd.f32 %v6721_v45, %v6630_v47  ;;  %v9403_v4 = vunpack.c.h.bf16 %v9489_v11  ;;  %v9394_v47 = vunpack.c.l.bf16 %v9487_v58  ;;  %v9407_v11 = vunpack.c.h.bf16 %v9490_v35 }
 0xa8f   :  { %v14336_v12 = vadd.f32 %v6902_v19, %v6818_v55  ;;  %v9414_v55 = vunpack.c.l.bf16 %v9492_v5 }
 0xa91   :  { %9068 = vmatmul.msk.f32.vlgmr.msrb.gmra.mxu2 %vm3491_vm4, %v9398_v61  ;;  %9040 = vmatmul.msk.f32.vlgmr.msra.gmra.mxu0 %vm3491_vm4, %v9378_v0  ;;  %v9383_v61 = vunpack.c.h.bf16 %v9484_v20 }
 0xa92   :  { %9082 = vmatmul.msk.f32.vlgmr.msrb.gmra.mxu3 %vm3491_vm4, %v7921_v48  ;;  %9054 = vmatmul.msk.f32.vlgmr.msrb.gmra.mxu1 %vm3491_vm4, %v7739_v25 }
 0xa93   :  { %v6798_v46 = vpop.f32.mrf.mxu2  ;;  %v6889_v24 = vpop.f32.mrf.mxu3 }
 0xa94   :  { %v6812_v53 = vsel %vm6804_vm9, %v6798_v46, 0.0  ;;  %v6903_v63 = vsel %vm6895_vm10, %v6889_v24, 0.0  ;;  %v6619_v39 = vpop.f32.mrf.mxu0  ;;  %v6710_v23 = vpop.f32.mrf.mxu1 }
 0xa95   :  { %v6819_v34 = vadd.f32 %v6812_v53, %v6728_v33  ;;  %v6631_v51 = vsel %vm6622_vm7, %v6619_v39, 0.0  ;;  %v6722_v60 = vsel %vm6713_vm8, %v6710_v23, 0.0  ;;  %v9395_v23 = vunpack.c.h.bf16 %v9487_v58 }
 0xa96   :  { %v6729_v59 = vadd.f32 %v6722_v60, %v6631_v51  ;;  %vm7987_vm7 = vcmp.eq.s32.totalorder %v14230_v54, 15  ;;  %vm8022_vm8 = vcmask 123904  }
 0xa97   :  { %v14365_v32 = vadd.f32 %v6903_v63, %v6819_v34 }
 0xa99   :  { %9069 = vmatmul.msk.f32.gmra.mxu2 %vm3491_vm4, %v9399_v57  ;;  %9041 = vmatmul.msk.f32.gmra.mxu0 %vm3491_vm4, %v9379_v9  ;;  %v9415_v57 = vunpack.c.h.bf16 %v9492_v5 }
 0xa9a   :  { %9083 = vmatmul.msk.f32.gmra.mxu3 %vm3491_vm4, %v9410_v42  ;;  %9055 = vmatmul.msk.f32.gmra.mxu1 %vm3491_vm4, %v9390_v56  ;;  %v9080_v42 = vld [vmem:[%s14746_s8 + $0x1b8] sm:$0xf] }
 0xa9b   :  { %v6801_v29 = vpop.f32.mrf.mxu2  ;;  %v6892_v37 = vpop.f32.mrf.mxu3 }
 0xa9c   :  { %v6813_v62 = vsel %vm6804_vm9, %v6801_v29, 0.0  ;;  %v6904_v10 = vsel %vm6895_vm10, %v6892_v37, 0.0  ;;  %v6965_v13 = vpop.f32.mrf.mxu0  ;;  %v7056_v41 = vpop.f32.mrf.mxu1  ;;  %vm8168_vm10 = vcmask 7168  }
 0xa9d   :  { %v6820_v3 = vadd.f32 %v6813_v62, %v6729_v59  ;;  %v6989_v17 = vsel %vm6986_vm11, %v6965_v13, 0.0  ;;  %v7080_v31 = vsel %vm7077_vm12, %v7056_v41, 0.0  ;;  %v7926_v62 = vunpack.c.l.bf16 %v9080_v42 }
 0xa9e   :  { %v6996_v52 = vadd.f32 %v6989_v17, %v6905_v50 }
 0xa9f   :  { %v14390_v30 = vadd.f32 %v6904_v10, %v6820_v3 }
 0xaa0   :  { %v7087_v26 = vadd.f32 %v7080_v31, %v6996_v52  ;;  %v9081_v52 = vld [vmem:[%s14746_s8 + $0x1bc] sm:$0x1] }
 0xaa1   :  { %9070 = vmatmul.msk.f32.gmra.mxu2 %vm3491_vm4, %v9402_v7  ;;  %9042 = vmatmul.msk.f32.gmra.mxu0 %vm3491_vm4, %v9382_v18  ;;  %v9067_v18 = vld [vmem:[%s14746_s8 + $0x1a0] sm:$0x1] }
 0xaa2   :  { %9084 = vmatmul.msk.f32.gmra.mxu3 %vm3491_vm4, %v9411_v21  ;;  %9056 = vmatmul.msk.f32.gmra.mxu1 %vm3491_vm4, %v9391_v22  ;;  %v9053_v21 = vld [vmem:[%s14746_s8 + $0x184] sm:$0x1] }
 0xaa3   :  { %v7147_v44 = vpop.f32.mrf.mxu2  ;;  %v7238_v38 = vpop.f32.mrf.mxu3 }
 0xaa4   :  { %v7171_v16 = vsel %vm7168_vm13, %v7147_v44, 0.0  ;;  %v7262_v49 = vsel %vm7259_vm14, %v7238_v38, 0.0  ;;  %v7836_v38 = vunpack.c.l.bf16 %v9067_v18 }
 0xaa5   :  { %v7178_v19 = vadd.f32 %v7171_v16, %v7087_v26 }
 0xaa6   :  { %v6968_v27 = vpop.f32.mrf.mxu0 }
 0xaa7   :  { %v14408_v45 = vadd.f32 %v7262_v49, %v7178_v19  ;;  %v6990_v0 = vsel %vm6986_vm11, %v6968_v27, 0.0  ;;  %v7059_v33 = vpop.f32.mrf.mxu1  ;;  %v7927_v19 = vunpack.c.l.bf16 %v9081_v52 }
 0xaa8   :  { %v6997_v48 = vadd.f32 %v6990_v0, %v14260_v36  ;;  %v7081_v25 = vsel %vm7077_vm12, %v7059_v33, 0.0  ;;  %v9485_v36 = vld [vmem:[%s14746_s8 + $0x160] sm:$0xff]  }
 0xaa9   :  { %9071 = vmatmul.msk.f32.gmra.mxu2 %vm3491_vm4, %v9403_v4  ;;  %9043 = vmatmul.msk.f32.gmra.mxu0 %vm3491_vm4, %v9383_v61  ;;  %v9386_v8 = vunpack.c.l.bf16 %v9485_v36  ;;  %v9387_v20 = vunpack.c.h.bf16 %v9485_v36  ;;  %v7745_v4 = vunpack.c.l.bf16 %v9053_v21 }
 0xaaa   :  { %v7088_v2 = vadd.f32 %v7081_v25, %v6997_v48  ;;  %9085 = vmatmul.msk.f32.gmra.mxu3 %vm3491_vm4, %v9414_v55  ;;  %9057 = vmatmul.msk.f32.gmra.mxu1 %vm3491_vm4, %v9394_v47 }
 0xaac   :  { %v7150_v46 = vpop.f32.mrf.mxu2 }
 0xaad   :  { %v7172_v24 = vsel %vm7168_vm13, %v7150_v46, 0.0  ;;  %v7241_v6 = vpop.f32.mrf.mxu3 }
 0xaae   :  { %v7179_v53 = vadd.f32 %v7172_v24, %v7088_v2  ;;  %v7263_v63 = vsel %vm7259_vm14, %v7241_v6, 0.0  ;;  %v6971_v39 = vpop.f32.mrf.mxu0 }
 0xaaf   :  { %v6991_v34 = vsel %vm6986_vm11, %v6971_v39, 0.0  ;;  %v7062_v51 = vpop.f32.mrf.mxu1 }
 0xab0   :  { %v14431_v60 = vadd.f32 %v7263_v63, %v7179_v53  ;;  %v6998_v9 = vadd.f32 %v6991_v34, %v14280_v40  ;;  %v7082_v15 = vsel %vm7077_vm12, %v7062_v51, 0.0  ;;  %v9052_v40 = vld [vmem:[%s14746_s8 + $0x180] sm:$0xf] }
 0xab1   :  { %9072 = vmatmul.msk.f32.gmra.mxu2 %vm3491_vm4, %v9406_v1  ;;  %9044 = vmatmul.msk.f32.gmra.mxu0 %vm3491_vm4, %v9386_v8  ;;  %v7744_v10 = vunpack.c.l.bf16 %v9052_v40 }
 0xab2   :  { %v7089_v59 = vadd.f32 %v7082_v15, %v6998_v9  ;;  %9086 = vmatmul.msk.f32.gmra.mxu3 %vm3491_vm4, %v9415_v57  ;;  %9058 = vmatmul.msk.f32.gmra.mxu1 %vm3491_vm4, %v9395_v23 }
 0xab4   :  { %v7153_v56 = vpop.f32.mrf.mxu2 }
 0xab5   :  { %v7173_v28 = vsel %vm7168_vm13, %v7153_v56, 0.0  ;;  %v7244_v14 = vpop.f32.mrf.mxu3 }
 0xab6   :  { %v7180_v29 = vadd.f32 %v7173_v28, %v7089_v59  ;;  %v7264_v37 = vsel %vm7259_vm14, %v7244_v14, 0.0  ;;  %v6974_v50 = vpop.f32.mrf.mxu0 }
 0xab7   :  { %v6992_v13 = vsel %vm6986_vm11, %v6974_v50, 0.0  ;;  %v7065_v7 = vpop.f32.mrf.mxu1 }
 0xab8   :  { %v14452_v41 = vadd.f32 %v7264_v37, %v7180_v29  ;;  %v6999_v3 = vadd.f32 %v6992_v13, %v14310_v43  ;;  %v7083_v17 = vsel %vm7077_vm12, %v7065_v7, 0.0  ;;  %v9039_v43 = vld [vmem:[%s14746_s8 + $0x168] sm:$0x1] }
 0xab9   :  { %9073 = vmatmul.msk.f32.gmra.mxu2 %vm3491_vm4, %v9407_v11  ;;  %9045 = vmatmul.msk.f32.gmra.mxu0 %vm3491_vm4, %v9387_v20  ;;  %v7654_v5 = vunpack.c.l.bf16 %v9039_v43 }
 0xaba   :  { %v7090_v31 = vadd.f32 %v7083_v17, %v6999_v3  ;;  %9087 = vmatmul.msk.f32.gmra.mxu3 %vm3491_vm4, %v7926_v62  ;;  %9059 = vmatmul.msk.f32.gmra.mxu1 %vm3491_vm4, %v7744_v10 }
 0xabc   :  { %v7156_v22 = vpop.f32.mrf.mxu2 }
 0xabd   :  { %v7174_v26 = vsel %vm7168_vm13, %v7156_v22, 0.0  ;;  %v7247_v44 = vpop.f32.mrf.mxu3 }
 0xabe   :  { %v7181_v58 = vadd.f32 %v7174_v26, %v7090_v31  ;;  %v7265_v16 = vsel %vm7259_vm14, %v7247_v44, 0.0  ;;  %v6977_v49 = vpop.f32.mrf.mxu0 }
 0xabf   :  { %v6993_v61 = vsel %vm6986_vm11, %v6977_v49, 0.0  ;;  %v7068_v27 = vpop.f32.mrf.mxu1 }
 0xac0   :  { %v14479_v55 = vadd.f32 %v7265_v16, %v7181_v58  ;;  %v7000_v47 = vadd.f32 %v6993_v61, %v14336_v12  ;;  %v7084_v0 = vsel %vm7077_vm12, %v7068_v27, 0.0 }
 0xac1   :  { %9074 = vmatmul.msk.f32.gmra.mxu2 %vm3491_vm4, %v7836_v38  ;;  %9046 = vmatmul.msk.f32.gmra.mxu0 %vm3491_vm4, %v7654_v5 }
 0xac2   :  { %v7091_v33 = vadd.f32 %v7084_v0, %v7000_v47  ;;  %9088 = vmatmul.msk.f32.gmra.mxu3 %vm3491_vm4, %v7927_v19  ;;  %9060 = vmatmul.msk.f32.gmra.mxu1 %vm3491_vm4, %v7745_v4  ;;  %vm7350_vm4 = vcmp.eq.s32.totalorder %v14230_v54, 8 }
 0xac4   :  { %v7159_v48 = vpop.f32.mrf.mxu2 }
 0xac5   :  { %v7175_v25 = vsel %vm7168_vm13, %v7159_v48, 0.0  ;;  %v7250_v2 = vpop.f32.mrf.mxu3 }
 0xac6   :  { %v7182_v35 = vadd.f32 %v7175_v25, %v7091_v33  ;;  %v7266_v12 = vsel %vm7259_vm14, %v7250_v2, 0.0  ;;  %v6980_v36 = vpop.f32.mrf.mxu0 }
 0xac7   :  { %v6994_v46 = vsel %vm6986_vm11, %v6980_v36, 0.0  ;;  %v7071_v24 = vpop.f32.mrf.mxu1 }
 0xac8   :  { %v14494_v6 = vadd.f32 %v7266_v12, %v7182_v35  ;;  %v7001_v1 = vadd.f32 %v6994_v46, %v14365_v32  ;;  %v7085_v8 = vsel %vm7077_vm12, %v7071_v24, 0.0 }
 0xaca   :  { %v7092_v53 = vadd.f32 %v7085_v8, %v7001_v1 }
 0xacc   :  { %v7162_v63 = vpop.f32.mrf.mxu2 }
 0xacd   :  { %v7176_v39 = vsel %vm7168_vm13, %v7162_v63, 0.0  ;;  %v7253_v57 = vpop.f32.mrf.mxu3 }
 0xace   :  { %v7183_v23 = vadd.f32 %v7176_v39, %v7092_v53  ;;  %v7267_v34 = vsel %vm7259_vm14, %v7253_v57, 0.0  ;;  %v6983_v51 = vpop.f32.mrf.mxu0 }
 0xacf   :  { %v6995_v9 = vsel %vm6986_vm11, %v6983_v51, 0.0  ;;  %v7074_v15 = vpop.f32.mrf.mxu1 }
 0xad0   :  { %v14505_v59 = vadd.f32 %v7267_v34, %v7183_v23  ;;  %v7002_v32 = vadd.f32 %v6995_v9, %v14390_v30  ;;  %v7086_v42 = vsel %vm7077_vm12, %v7074_v15, 0.0 }
 0xad2   :  { %v7093_v40 = vadd.f32 %v7086_v42, %v7002_v32 }
 0xad4   :  { %v7165_v56 = vpop.f32.mrf.mxu2 }
 0xad5   :  { %v7177_v28 = vsel %vm7168_vm13, %v7165_v56, 0.0  ;;  %v7256_v14 = vpop.f32.mrf.mxu3 }
 0xad6   :  { %v7184_v11 = vadd.f32 %v7177_v28, %v7093_v40  ;;  %v7268_v20 = vsel %vm7259_vm14, %v7256_v14, 0.0  ;;  %v7329_v29 = vpop.f32.mrf.mxu0 }
 0xad7   :  { %v7420_v37 = vpop.f32.mrf.mxu1  ;;  %v7353_v19 = vsel %vm7350_vm4, %v7329_v29, 0.0 }
 0xad8   :  { %v14514_v50 = vadd.f32 %v7268_v20, %v7184_v11  ;;  %v7360_v4 = vadd.f32 %v7353_v19, %v14408_v45  ;;  %v7444_v27 = vsel %vm7441_vm15, %v7420_v37, 0.0 }
 0xada   :  { %v7451_v25 = vadd.f32 %v7444_v27, %v7360_v4 }
 0xadc   :  { %v7511_v62 = vpop.f32.mrf.mxu2 }
 0xadd   :  { %v7602_v10 = vpop.f32.mrf.mxu3  ;;  %v7535_v33 = vsel %vm7532_vm0, %v7511_v62, 0.0 }
 0xade   :  { %v7332_v30 = vpop.f32.mrf.mxu0  ;;  %v7542_v2 = vadd.f32 %v7535_v33, %v7451_v25  ;;  %v7626_v35 = vsel %vm7623_vm2, %v7602_v10, 0.0 }
 0xadf   :  { %v7423_v13 = vpop.f32.mrf.mxu1  ;;  %v7354_v45 = vsel %vm7350_vm4, %v7332_v30, 0.0 }
 0xae0   :  { %v7361_v12 = vadd.f32 %v7354_v45, %v14431_v60  ;;  %v7445_v46 = vsel %vm7441_vm15, %v7423_v13, 0.0  ;;  %v7633_v1 = vadd.f32 %v7626_v35, %v7542_v2 }
 0xae2   :  { %v7452_v39 = vadd.f32 %v7445_v46, %v7361_v12 }
 0xae4   :  { %v7514_v7 = vpop.f32.mrf.mxu2 }
 0xae5   :  { %v7605_v3 = vpop.f32.mrf.mxu3  ;;  %v7536_v53 = vsel %vm7532_vm0, %v7514_v7, 0.0 }
 0xae6   :  { %v7335_v17 = vpop.f32.mrf.mxu0  ;;  %v7543_v51 = vadd.f32 %v7536_v53, %v7452_v39  ;;  %v7627_v9 = vsel %vm7623_vm2, %v7605_v3, 0.0 }
 0xae7   :  { %v7426_v31 = vpop.f32.mrf.mxu1  ;;  %v7355_v23 = vsel %vm7350_vm4, %v7335_v17, 0.0 }
 0xae8   :  { %v7362_v15 = vadd.f32 %v7355_v23, %v14452_v41  ;;  %v7446_v40 = vsel %vm7441_vm15, %v7426_v31, 0.0  ;;  %v7634_v14 = vadd.f32 %v7627_v9, %v7543_v51 }
 0xaea   :  { %v7453_v10 = vadd.f32 %v7446_v40, %v7362_v15 }
 0xaec   :  { %v7517_v18 = vpop.f32.mrf.mxu2 }
 0xaed   :  { %v14516_v43 = vpop.f32.mrf.mxu3  ;;  %v7537_v37 = vsel %vm7532_vm0, %v7517_v18, 0.0 }
 0xaee   :  { %v7338_v52 = vpop.f32.mrf.mxu0  ;;  %v7544_v17 = vadd.f32 %v7537_v37, %v7453_v10  ;;  %v7628_v18 = vsel %vm7623_vm2, %v14516_v43, 0.0 }
 0xaef   :  { %v14518_v21 = vpop.f32.mrf.mxu1  ;;  %v7356_v7 = vsel %vm7350_vm4, %v7338_v52, 0.0 }
 0xaf0   :  { %v7363_v19 = vadd.f32 %v7356_v7, %v14479_v55  ;;  %v7447_v33 = vsel %vm7441_vm15, %v14518_v21, 0.0  ;;  %v7635_v45 = vadd.f32 %v7628_v18, %v7544_v17 }
 0xaf4   :  { %v14520_v22 = vpop.f32.mrf.mxu2 }
 0xaf5   :  { %v14522_v26 = vpop.f32.mrf.mxu3  ;;  %v7538_v55 = vsel %vm7532_vm0, %v14520_v22, 0.0 }
 0xaf6   :  { %v14524_v44 = vpop.f32.mrf.mxu0  ;;  %v7629_v22 = vsel %vm7623_vm2, %v14522_v26, 0.0 }
 0xaf7   :  { %v14526_v38 = vpop.f32.mrf.mxu1  ;;  %v7357_v53 = vsel %vm7350_vm4, %v14524_v44, 0.0 }
 0xaf8   :  { %v7448_v51 = vsel %vm7441_vm15, %v14526_v38, 0.0 }
 0xafc   :  { %v14528_v5 = vpop.f32.mrf.mxu2 }
 0xafd   :  { %v14530_v58 = vpop.f32.mrf.mxu3 }
 0xafe   :  { %v14533_v16 = vpop.f32.mrf.mxu0 }
 0xaff   :  { %v14535_v49 = vpop.f32.mrf.mxu1 }
 0xb04   :  { %v14542_v61 = vpop.f32.mrf.mxu2 }
 0xb05   :  { %v14546_v47 = vpop.f32.mrf.mxu3 }
 0xb06   :  { %v14548_v0 = vpop.f32.mrf.mxu0 }
 0xb07   :  { %v14552_v48 = vpop.f32.mrf.mxu1 }
 0xb0c   :  { %v14560_v36 = vpop.f32.mrf.mxu2 }
 0xb0d   :  { %v14565_v24 = vpop.f32.mrf.mxu3 }
 0xb0e   :  { %v7693_v8 = vpop.f32.mrf.mxu0 }
 0xb0f   :  { %v7717_v63 = vsel %vm7714_vm3, %v7693_v8, 0.0  ;;  %v7784_v60 = vpop.f32.mrf.mxu1 }
 0xb10   :  { %v7724_v57 = vadd.f32 %v7717_v63, %v7633_v1  ;;  %v7808_v34 = vsel %vm7805_vm5, %v7784_v60, 0.0  ;;  %v7454_v1 = vadd.f32 %v7447_v33, %v7363_v19 }
 0xb12   :  { %v7815_v32 = vadd.f32 %v7808_v34, %v7724_v57  ;;  %v7545_v60 = vadd.f32 %v7538_v55, %v7454_v1  ;;  %v7364_v57 = vadd.f32 %v7357_v53, %v14494_v6  ;;  %v7539_v6 = vsel %vm7532_vm0, %v14528_v5, 0.0 }
 0xb13   :  { %v7630_v5 = vsel %vm7623_vm2, %v14530_v58, 0.0 }
 0xb14   :  { %v7875_v42 = vpop.f32.mrf.mxu2  ;;  %v7636_v15 = vadd.f32 %v7629_v22, %v7545_v60 }
 0xb15   :  { %v7899_v56 = vsel %vm7896_vm6, %v7875_v42, 0.0  ;;  %v7966_v28 = vpop.f32.mrf.mxu3 }
 0xb16   :  { %v7906_v11 = vadd.f32 %v7899_v56, %v7815_v32  ;;  %v7990_v20 = vsel %vm7987_vm7, %v7966_v28, 0.0  ;;  %v7696_v29 = vpop.f32.mrf.mxu0  ;;  %v7455_v28 = vadd.f32 %v7448_v51, %v7364_v57  ;;  %v7632_v57 = vsel %vm7623_vm2, %v14565_v24, 0.0 }
 0xb17   :  { %v7718_v41 = vsel %vm7714_vm3, %v7696_v29, 0.0  ;;  %v7787_v62 = vpop.f32.mrf.mxu1 }
 0xb18   :  { %v7997_v30 = vadd.f32 %v7990_v20, %v7906_v11  ;;  %v7725_v13 = vadd.f32 %v7718_v41, %v7634_v14  ;;  %v7809_v3 = vsel %vm7805_vm5, %v7787_v62, 0.0  ;;  %v7358_v11 = vsel %vm7350_vm4, %v14533_v16, 0.0 }
 0xb19   :  { %v7546_v29 = vadd.f32 %v7539_v6, %v7455_v28  ;;  %v7365_v41 = vadd.f32 %v7358_v11, %v14505_v59  ;;  %v7540_v59 = vsel %vm7532_vm0, %v14542_v61, 0.0  ;;  %v7631_v61 = vsel %vm7623_vm2, %v14546_v47, 0.0 }
 0xb1a   :  { %v8004_v31 = vsel %vm242_vm1, %v7997_v30, 0.0  ;;  %v7816_v4 = vadd.f32 %v7809_v3, %v7725_v13  ;;  %v7449_v30 = vsel %vm7441_vm15, %v14535_v49, 0.0 }
 0xb1b   :  { %8005 = vadd.xlane.f32.xlu2 %v8004_v31  ;;  %v7637_v7 = vadd.f32 %v7630_v5, %v7546_v29  ;;  %v7456_v19 = vadd.f32 %v7449_v30, %v7365_v41  ;;  %v14700_v41 = vld [vmem:[%s14737_s10 + $0x7] ss:$0 sm:$0xff] }
 0xb1c   :  { %v7878_v27 = vpop.f32.mrf.mxu2 }
 0xb1d   :  { %v7900_v52 = vsel %vm7896_vm6, %v7878_v27, 0.0  ;;  %v7969_v25 = vpop.f32.mrf.mxu3  ;;  %v7359_v27 = vsel %vm7350_vm4, %v14548_v0, 0.0 }
 0xb1e   :  { %v7907_v2 = vadd.f32 %v7900_v52, %v7816_v4  ;;  %v7991_v35 = vsel %vm7987_vm7, %v7969_v25, 0.0  ;;  %v7699_v12 = vpop.f32.mrf.mxu0  ;;  %v7547_v52 = vadd.f32 %v7540_v59, %v7456_v19 }
 0xb1f   :  { %v7719_v43 = vsel %vm7714_vm3, %v7699_v12, 0.0  ;;  %v7790_v46 = vpop.f32.mrf.mxu1  ;;  %v7450_v12 = vsel %vm7441_vm15, %v14552_v48, 0.0 }
 0xb20   :  { %v7998_v21 = vadd.f32 %v7991_v35, %v7907_v2  ;;  %v7726_v8 = vadd.f32 %v7719_v43, %v7635_v45  ;;  %v7810_v63 = vsel %vm7805_vm5, %v7790_v46, 0.0  ;;  %v7366_v45 = vadd.f32 %v7359_v27, %v14514_v50 }
 0xb21   :  { %v7638_v43 = vadd.f32 %v7631_v61, %v7547_v52  ;;  %v7541_v50 = vsel %vm7532_vm0, %v14560_v36, 0.0 }
 0xb22   :  { %v8007_v39 = vsel %vm242_vm1, %v7998_v21, 0.0  ;;  %v7817_v23 = vadd.f32 %v7810_v63, %v7726_v8  ;;  %v7457_v53 = vadd.f32 %v7450_v12, %v7366_v45 }
 0xb23   :  { %8008 = vadd.xlane.f32.xlu0 %v8007_v39 }
 0xb24   :  { %v7881_v34 = vpop.f32.mrf.mxu2  ;;  %v7548_v39 = vadd.f32 %v7541_v50, %v7457_v53 }
 0xb25   :  { %v7901_v44 = vsel %vm7896_vm6, %v7881_v34, 0.0  ;;  %v7972_v9 = vpop.f32.mrf.mxu3 }
 0xb26   :  { %v7908_v32 = vadd.f32 %v7901_v44, %v7817_v23  ;;  %v7992_v42 = vsel %vm7987_vm7, %v7972_v9, 0.0  ;;  %v7702_v40 = vpop.f32.mrf.mxu0  ;;  %v7639_v44 = vadd.f32 %v7632_v57, %v7548_v39 }
 0xb27   :  { %v7720_v26 = vsel %vm7714_vm3, %v7702_v40, 0.0  ;;  %v7793_v56 = vpop.f32.mrf.mxu1 }
 0xb28   :  { %v7999_v38 = vadd.f32 %v7992_v42, %v7908_v32  ;;  %v7727_v14 = vadd.f32 %v7720_v26, %v7636_v15  ;;  %v7811_v20 = vsel %vm7805_vm5, %v7793_v56, 0.0 }
 0xb2a   :  { %v8010_v37 = vsel %vm242_vm1, %v7999_v38, 0.0  ;;  %v7818_v62 = vadd.f32 %v7811_v20, %v7727_v14 }
 0xb2b   :  { %8011 = vadd.xlane.f32.xlu1 %v8010_v37 }
 0xb2c   :  { %v7884_v10 = vpop.f32.mrf.mxu2 }
 0xb2d   :  { %v7902_v16 = vsel %vm7896_vm6, %v7884_v10, 0.0  ;;  %v7975_v13 = vpop.f32.mrf.mxu3 }
 0xb2e   :  { %v7909_v3 = vadd.f32 %v7902_v16, %v7818_v62  ;;  %v7993_v17 = vsel %vm7987_vm7, %v7975_v13, 0.0  ;;  %v7705_v31 = vpop.f32.mrf.mxu0 }
 0xb2f   :  { %v7721_v58 = vsel %vm7714_vm3, %v7705_v31, 0.0  ;;  %v7796_v18 = vpop.f32.mrf.mxu1 }
 0xb30   :  { %v8000_v49 = vadd.f32 %v7993_v17, %v7909_v3  ;;  %v7728_v4 = vadd.f32 %v7721_v58, %v7637_v7  ;;  %v7812_v33 = vsel %vm7805_vm5, %v7796_v18, 0.0 }
 0xb32   :  { %v8013_v25 = vsel %vm242_vm1, %v8000_v49, 0.0  ;;  %v7819_v2 = vadd.f32 %v7812_v33, %v7728_v4 }
 0xb33   :  { %8014 = vadd.xlane.f32.xlu2 %v8013_v25 }
 0xb34   :  { %v7887_v35 = vpop.f32.mrf.mxu2 }
 0xb35   :  { %v7903_v0 = vsel %vm7896_vm6, %v7887_v35, 0.0  ;;  %v7978_v55 = vpop.f32.mrf.mxu3 }
 0xb36   :  { %v7910_v46 = vadd.f32 %v7903_v0, %v7819_v2  ;;  %v7994_v1 = vsel %vm7987_vm7, %v7978_v55, 0.0  ;;  %v7708_v21 = vpop.f32.mrf.mxu0 }
 0xb37   :  { %v7722_v47 = vsel %vm7714_vm3, %v7708_v21, 0.0  ;;  %v7799_v8 = vpop.f32.mrf.mxu1 }
 0xb38   :  { %v8001_v48 = vadd.f32 %v7994_v1, %v7910_v46  ;;  %v7729_v63 = vadd.f32 %v7722_v47, %v7638_v43  ;;  %v7813_v60 = vsel %vm7805_vm5, %v7799_v8, 0.0 }
 0xb3a   :  { %v8016_v22 = vsel %vm242_vm1, %v8001_v48, 0.0  ;;  %v7820_v23 = vadd.f32 %v7813_v60, %v7729_v63 }
 0xb3b   :  { %8017 = vadd.xlane.f32.xlu2 %v8016_v22 }
 0xb3c   :  { %v7890_v36 = vpop.f32.mrf.mxu2 }
 0xb3d   :  { %v7904_v34 = vsel %vm7896_vm6, %v7890_v36, 0.0  ;;  %v7981_v51 = vpop.f32.mrf.mxu3 }
 0xb3e   :  { %v7911_v9 = vadd.f32 %v7904_v34, %v7820_v23  ;;  %v7995_v15 = vsel %vm7987_vm7, %v7981_v51, 0.0  ;;  %v7711_v32 = vpop.f32.mrf.mxu0 }
 0xb3f   :  { %v7723_v42 = vsel %vm7714_vm3, %v7711_v32, 0.0  ;;  %v7802_v40 = vpop.f32.mrf.mxu1 }
 0xb40   :  { %v8002_v6 = vadd.f32 %v7995_v15, %v7911_v9  ;;  %v7730_v26 = vadd.f32 %v7723_v42, %v7639_v44  ;;  %v7814_v24 = vsel %vm7805_vm5, %v7802_v40, 0.0 }
 0xb42   :  { %v8019_v56 = vsel %vm242_vm1, %v8002_v6, 0.0  ;;  %v7821_v28 = vadd.f32 %v7814_v24, %v7730_v26 }
 0xb43   :  { %8020 = vadd.xlane.f32.xlu0 %v8019_v56 }
 0xb44   :  { %v7893_v38 = vpop.f32.mrf.mxu2 }
 0xb45   :  { %v7905_v14 = vsel %vm7896_vm6, %v7893_v38, 0.0  ;;  %v7984_v11 = vpop.f32.mrf.mxu3 }
 0xb46   :  { %v7912_v20 = vadd.f32 %v7905_v14, %v7821_v28  ;;  %v7996_v29 = vsel %vm7987_vm7, %v7984_v11, 0.0 }
 0xb48   :  { %v8003_v37 = vadd.f32 %v7996_v29, %v7912_v20 }
 0xb4a   :  { %v8023_v5 = vsel %vm8022_vm8, %v8003_v37, 0.0 }
 0xb4b   :  { %8024 = vadd.xlane.f32.xlu1 %v8023_v5 }
 0xb8e   :  { %v8006_v62 = vpop.xlane.xlu2 %8005 }
 0xb8f   :  { %v8028_v10 = vadd.f32 %v14700_v41, %v8006_v62 }
 0xb91   :  { %v9089_v30 = vmul.f32 -1.442695, %v8028_v10 }
 0xb93   :  { %10247 = vpow2.f32 %v9089_v30 }
 0xb96   :  { %v8009_v16 = vpop.xlane.xlu0 %8008 }
 0xb97   :  { %v8029_v13 = vadd.f32 %v14700_v41, %v8009_v16 }
 0xb99   :  { %v10248_v7 = vpop.eup %10247  ;;  %v9090_v54 = vmul.f32 -1.442695, %v8029_v13 }
 0xb9a   :  { %v8056_v3 = vadd.f32 1.0, %v10248_v7 }
 0xb9b   :  { %10249 = vpow2.f32 %v9090_v54 }
 0xb9c   :  { %10251 = vrcp.f32 %v8056_v3  ;;  %v8074_v27 = vand.u32 2147483648, %v8056_v3  ;;  %v8072_v25 = vand.u32 2147483647, %v8056_v3  ;;  %vm8068_vm9 = vweird.f32 %v8056_v3 }
 0xb9e   :  { %v8012_v17 = vpop.xlane.xlu1 %8011  ;;  %v8075_v0 = vor.u32 1.1754944e-38, %v8074_v27  ;;  %vm8073_vm12 = vcmp.eq.f32.partialorder %v8072_v25, 8.507059e+37 }
 0xb9f   :  { %v8030_v31 = vadd.f32 %v14700_v41, %v8012_v17 }
 0xba1   :  { %v10250_v59 = vpop.eup %10249  ;;  %v9091_v58 = vmul.f32 -1.442695, %v8030_v31 }
 0xba2   :  { %v10252_v18 = vpop.eup %10251  ;;  %v8057_v19 = vadd.f32 1.0, %v10250_v59 }
 0xba3   :  { %v8064_v49 = vmul.f32 %v10252_v18, %v8056_v3  ;;  %10253 = vpow2.f32 %v9091_v58  ;;  %vm8069_vm1 = vweird.f32 %v10252_v18 }
 0xba4   :  { %10255 = vrcp.f32 %v8057_v19  ;;  %vm8070_vm11 = vmor %vm8068_vm9, %vm8069_vm1  ;;  %v8089_v50 = vand.u32 2147483648, %v8057_v19  ;;  %v8087_v53 = vand.u32 2147483647, %v8057_v19  ;;  %vm8083_vm14 = vweird.f32 %v8057_v19 }
 0xba5   :  { %v8065_v4 = vsub.f32 1.0, %v8064_v49 }
 0xba6   :  { %v8015_v33 = vpop.xlane.xlu2 %8014  ;;  %v8090_v57 = vor.u32 1.1754944e-38, %v8089_v50  ;;  %vm8088_vm15 = vcmp.eq.f32.partialorder %v8087_v53, 8.507059e+37 }
 0xba7   :  { %v8066_v52 = vmul.f32 %v10252_v18, %v8065_v4  ;;  %v8031_v61 = vadd.f32 %v14700_v41, %v8015_v33 }
 0xba9   :  { %v10254_v45 = vpop.eup %10253  ;;  %v8067_v2 = vadd.f32 %v10252_v18, %v8066_v52  ;;  %v9092_v35 = vmul.f32 -1.442695, %v8031_v61 }
 0xbaa   :  { %v10256_v12 = vpop.eup %10255  ;;  %v8058_v55 = vadd.f32 1.0, %v10254_v45 }
 0xbab   :  { %v8071_v43 = vsel %vm8070_vm11, %v10252_v18, %v8067_v2  ;;  %v8079_v46 = vmul.f32 %v10256_v12, %v8057_v19  ;;  %10257 = vpow2.f32 %v9092_v35  ;;  %vm8084_vm13 = vweird.f32 %v10256_v12 }
 0xbac   :  { %v8076_v1 = vsel %vm8073_vm12, %v8075_v0, %v8071_v43  ;;  %10259 = vrcp.f32 %v8058_v55  ;;  %vm8085_vm4 = vmor %vm8083_vm14, %vm8084_vm13  ;;  %v8104_v9 = vand.u32 2147483648, %v8058_v55  ;;  %v8102_v42 = vand.u32 2147483647, %v8058_v55 }
 0xbad   :  { %8169 = vst.msk [vmem:[%s14747_s11] sm:$0xff] %vm8168_vm10, %v8076_v1  ;;  %v8080_v21 = vsub.f32 1.0, %v8079_v46  ;;  %vm8098_vm2 = vweird.f32 %v8058_v55 }
 0xbae   :  { %v8018_v47 = vpop.xlane.xlu2 %8017  ;;  %v8105_v28 = vor.u32 1.1754944e-38, %v8104_v9  ;;  %vm8103_vm5 = vcmp.eq.f32.partialorder %v8102_v42, 8.507059e+37 }
 0xbaf   :  { %v8081_v8 = vmul.f32 %v10256_v12, %v8080_v21  ;;  %v8032_v48 = vadd.f32 %v14700_v41, %v8018_v47 }
 0xbb1   :  { %v10258_v63 = vpop.eup %10257  ;;  %v8082_v60 = vadd.f32 %v10256_v12, %v8081_v8  ;;  %v9093_v39 = vmul.f32 -1.442695, %v8032_v48 }
 0xbb2   :  { %v10260_v22 = vpop.eup %10259  ;;  %v8059_v23 = vadd.f32 1.0, %v10258_v63 }
 0xbb3   :  { %v8086_v36 = vsel %vm8085_vm4, %v10256_v12, %v8082_v60  ;;  %v8094_v34 = vmul.f32 %v10260_v22, %v8058_v55  ;;  %10261 = vpow2.f32 %v9093_v39  ;;  %vm8099_vm0 = vweird.f32 %v10260_v22 }
 0xbb4   :  { %v8091_v51 = vsel %vm8088_vm15, %v8090_v57, %v8086_v36  ;;  %10263 = vrcp.f32 %v8059_v23  ;;  %vm8100_vm3 = vmor %vm8098_vm2, %vm8099_vm0  ;;  %v8119_v37 = vand.u32 2147483648, %v8059_v23  ;;  %v8117_v10 = vand.u32 2147483647, %v8059_v23 }
 0xbb5   :  { %8170 = vst.msk [vmem:[%s14747_s11 + $0x8] sm:$0xff] %vm8168_vm10, %v8091_v51  ;;  %v8095_v44 = vsub.f32 1.0, %v8094_v34  ;;  %vm8113_vm7 = vweird.f32 %v8059_v23 }
 0xbb6   :  { %v8021_v15 = vpop.xlane.xlu0 %8020  ;;  %v8120_v3 = vor.u32 1.1754944e-38, %v8119_v37  ;;  %vm8118_vm1 = vcmp.eq.f32.partialorder %v8117_v10, 8.507059e+37 }
 0xbb7   :  { %v8096_v32 = vmul.f32 %v10260_v22, %v8095_v44  ;;  %v8033_v40 = vadd.f32 %v14700_v41, %v8021_v15 }
 0xbb9   :  { %v10262_v6 = vpop.eup %10261  ;;  %v8097_v26 = vadd.f32 %v10260_v22, %v8096_v32  ;;  %v9094_v24 = vmul.f32 -1.442695, %v8033_v40 }
 0xbba   :  { %v10264_v56 = vpop.eup %10263  ;;  %v8060_v38 = vadd.f32 1.0, %v10262_v6 }
 0xbbb   :  { %v8101_v14 = vsel %vm8100_vm3, %v10260_v22, %v8097_v26  ;;  %v8109_v11 = vmul.f32 %v10264_v56, %v8059_v23  ;;  %10265 = vpow2.f32 %v9094_v24  ;;  %vm8114_vm6 = vweird.f32 %v10264_v56 }
 0xbbc   :  { %v8106_v20 = vsel %vm8103_vm5, %v8105_v28, %v8101_v14  ;;  %10267 = vrcp.f32 %v8060_v38  ;;  %vm8115_vm8 = vmor %vm8113_vm7, %vm8114_vm6  ;;  %v8134_v18 = vand.u32 2147483648, %v8060_v38  ;;  %v8132_v49 = vand.u32 2147483647, %v8060_v38 }
 0xbbd   :  { %8171 = vst.msk [vmem:[%s14747_s11 + $0x10] sm:$0xff] %vm8168_vm10, %v8106_v20  ;;  %v8110_v29 = vsub.f32 1.0, %v8109_v11  ;;  %vm8128_vm11 = vweird.f32 %v8060_v38  ;;  %vm8175_vm5 = vcmask 1024  }
 0xbbe   :  { %v8025_v5 = vpop.xlane.xlu1 %8024  ;;  %v8135_v52 = vor.u32 1.1754944e-38, %v8134_v18  ;;  %vm8133_vm13 = vcmp.eq.f32.partialorder %v8132_v49, 8.507059e+37 }
 0xbbf   :  { %v8111_v62 = vmul.f32 %v10264_v56, %v8110_v29  ;;  %v8034_v30 = vadd.f32 %v14700_v41, %v8025_v5 }
 0xbc1   :  { %v10266_v16 = vpop.eup %10265  ;;  %v8112_v13 = vadd.f32 %v10264_v56, %v8111_v62  ;;  %v9095_v7 = vmul.f32 -1.442695, %v8034_v30 }
 0xbc2   :  { %v10268_v54 = vpop.eup %10267  ;;  %v8061_v17 = vadd.f32 1.0, %v10266_v16 }
 0xbc3   :  { %v8116_v31 = vsel %vm8115_vm8, %v10264_v56, %v8112_v13  ;;  %v8124_v59 = vmul.f32 %v10268_v54, %v8060_v38  ;;  %10269 = vpow2.f32 %v9095_v7  ;;  %vm8129_vm9 = vweird.f32 %v10268_v54 }
 0xbc4   :  { %v8121_v58 = vsel %vm8118_vm1, %v8120_v3, %v8116_v31  ;;  %10271 = vrcp.f32 %v8061_v17  ;;  %vm8130_vm12 = vmor %vm8128_vm11, %vm8129_vm9  ;;  %v8149_v12 = vand.u32 2147483648, %v8061_v17  ;;  %v8147_v55 = vand.u32 2147483647, %v8061_v17 }
 0xbc5   :  { %8172 = vst.msk [vmem:[%s14747_s11 + $0x18] sm:$0xff] %vm8168_vm10, %v8121_v58  ;;  %v8125_v41 = vsub.f32 1.0, %v8124_v59  ;;  %vm8143_vm4 = vweird.f32 %v8061_v17 }
 0xbc6   :  { %v8150_v1 = vor.u32 1.1754944e-38, %v8149_v12  ;;  %vm8148_vm0 = vcmp.eq.f32.partialorder %v8147_v55, 8.507059e+37 }
 0xbc7   :  { %v8126_v19 = vmul.f32 %v10268_v54, %v8125_v41 }
 0xbc9   :  { %v10270_v4 = vpop.eup %10269  ;;  %v8127_v27 = vadd.f32 %v10268_v54, %v8126_v19 }
 0xbca   :  { %v10272_v33 = vpop.eup %10271  ;;  %v8062_v25 = vadd.f32 1.0, %v10270_v4 }
 0xbcb   :  { %v8131_v61 = vsel %vm8130_vm12, %v10268_v54, %v8127_v27  ;;  %v8139_v45 = vmul.f32 %v10272_v33, %v8061_v17  ;;  %vm8144_vm14 = vweird.f32 %v10272_v33 }
 0xbcc   :  { %v8136_v2 = vsel %vm8133_vm13, %v8135_v52, %v8131_v61  ;;  %10273 = vrcp.f32 %v8062_v25  ;;  %vm8145_vm15 = vmor %vm8143_vm4, %vm8144_vm14  ;;  %v8164_v53 = vand.u32 2147483648, %v8062_v25  ;;  %v8162_v63 = vand.u32 2147483647, %v8062_v25 }
 0xbcd   :  { %8173 = vst.msk [vmem:[%s14747_s11 + $0x20] sm:$0xff] %vm8168_vm10, %v8136_v2  ;;  %v8140_v35 = vsub.f32 1.0, %v8139_v45  ;;  %vm8158_vm3 = vweird.f32 %v8062_v25 }
 0xbce   :  { %v8165_v39 = vor.u32 1.1754944e-38, %v8164_v53  ;;  %vm8163_vm7 = vcmp.eq.f32.partialorder %v8162_v63, 8.507059e+37 }
 0xbcf   :  { %v8141_v0 = vmul.f32 %v10272_v33, %v8140_v35 }
 0xbd1   :  { %v8142_v43 = vadd.f32 %v10272_v33, %v8141_v0 }
 0xbd2   :  { %v10274_v46 = vpop.eup %10273 }
 0xbd3   :  { %v8146_v21 = vsel %vm8145_vm15, %v10272_v33, %v8142_v43  ;;  %v8154_v50 = vmul.f32 %v10274_v46, %v8062_v25  ;;  %vm8159_vm2 = vweird.f32 %v10274_v46 }
 0xbd4   :  { %v8151_v47 = vsel %vm8148_vm0, %v8150_v1, %v8146_v21  ;;  %vm8160_vm6 = vmor %vm8158_vm3, %vm8159_vm2 }
 0xbd5   :  { %8174 = vst.msk [vmem:[%s14747_s11 + $0x28] sm:$0xff] %vm8168_vm10, %v8151_v47  ;;  %v8155_v8 = vsub.f32 1.0, %v8154_v50 }
 0xbd7   :  { %v8156_v48 = vmul.f32 %v10274_v46, %v8155_v8 }
 0xbd9   :  { %v8157_v60 = vadd.f32 %v10274_v46, %v8156_v48 }
 0xbdb   :  { %v8161_v22 = vsel %vm8160_vm6, %v10274_v46, %v8157_v60 }
 0xbdc   :  { %v8166_v57 = vsel %vm8163_vm7, %v8165_v39, %v8161_v22 }
 0xbdd   :  { %8176 = vst.msk [vmem:[%s14747_s11 + $0x30] sm:$0x3] %vm8175_vm5, %v8166_v57 }

</bundles_post_ra>
